<compile_context>
chip_gen: v6e
topology: v6e:2x2x1
jax: 0.10.0
libtpu: 0.0.40
codegen_flags: <defaults>
</compile_context>

<pallas_src>
import functools

import jax
import jax.numpy as jnp
from jax.experimental import pallas as pl
from jax.experimental.pallas import tpu as pltpu


# ----------------------------------------------------------------------------
# Fused act(X @ W + b) Pallas kernel — full-K block, single dot per grid cell.
# ----------------------------------------------------------------------------
def _mm_bias_act_kernel(x_ref, w_ref, b_ref, o_ref, *, apply_relu):
    acc = jnp.dot(x_ref[...], w_ref[...], preferred_element_type=jnp.float32)
    out = acc + b_ref[...]            # b_ref: (1, tn) f32, broadcasts over rows
    if apply_relu:
        out = jnp.maximum(out, 0.0)
    o_ref[...] = out.astype(o_ref.dtype)


def _largest_divisor_tile(m, cap):
    """Largest tile <= cap that divides m (falls back by halving)."""
    t = min(m, cap)
    while t > 1 and m % t != 0:
        t //= 2
    return t


def matmul_bias_act(x, w_t, b, *, apply_relu, out_dtype=jnp.float32,
                    tm=None, tn=None):
    """Computes act(x @ w_t + b) with a tiled Pallas kernel.

    x   : (M, K)  activations (bf16 preferred; cast to bf16 for the MXU)
    w_t : (K, N)  already transposed / patch-ordered weight (bf16)
    b   : (N,)    f32 bias
    tm/tn: output tile sizes; default = full extent. Callers pick tiles so
           every layer runs in 1-2 grid steps (~0.35 us pipeline overhead per
           step), blocks stay small vs. VMEM, and the last dim of each output
           block is 128-lane-dense or the full extent.
    """
    M, K = x.shape
    Kw, N = w_t.shape
    assert K == Kw
    tm = M if tm is None else tm
    tn = N if tn is None else tn
    assert M % tm == 0 and N % tn == 0

    xb = x.astype(jnp.bfloat16)
    wb = w_t.astype(jnp.bfloat16)
    bf = b.astype(jnp.float32).reshape(1, N)

    grid = (M // tm, N // tn)
    kernel = functools.partial(_mm_bias_act_kernel, apply_relu=apply_relu)

    return pl.pallas_call(
        kernel,
        out_shape=jax.ShapeDtypeStruct((M, N), out_dtype),
        grid_spec=pltpu.PrefetchScalarGridSpec(
            num_scalar_prefetch=0,
            grid=grid,
            in_specs=[
                pl.BlockSpec((tm, K), lambda i, j: (i, 0)),   # full-K activation tile
                pl.BlockSpec((K, tn), lambda i, j: (0, j)),   # full-K weight tile
                pl.BlockSpec((1, tn), lambda i, j: (0, j)),   # bias tile
            ],
            out_specs=pl.BlockSpec((tm, tn), lambda i, j: (i, j)),
        ),
        compiler_params=pltpu.CompilerParams(
            dimension_semantics=("parallel", "parallel"),
            vmem_limit_bytes=32 * 1024 * 1024,
        ),
    )(xb, wb, bf)


# ----------------------------------------------------------------------------
# NHWC im2col glue (plain JAX, fused by jit): kernel 4, stride 2, padding 1.
# Patch feature ordering is (kh, kw, C); weights are pre-permuted to match.
# ----------------------------------------------------------------------------
def im2col_nhwc(x, k=4, s=2, p=1):
    B, H, W, C = x.shape
    OH = (H + 2 * p - k) // s + 1
    OW = (W + 2 * p - k) // s + 1
    xp = jnp.pad(x, ((0, 0), (p, p), (p, p), (0, 0)))
    cols = []
    for i in range(k):
        for j in range(k):
            cols.append(xp[:, i:i + s * OH:s, j:j + s * OW:s, :])  # (B,OH,OW,C)
    patches = jnp.stack(cols, axis=3)                 # (B, OH, OW, k*k, C)
    patches = patches.reshape(B * OH * OW, k * k * C)
    return patches, OH, OW


def conv_block(x_nhwc, w_mat, b, *, tm_cap, tn=None, out_dtype=jnp.bfloat16):
    """Conv2d(k=4,s=2,p=1)+ReLU on NHWC activations via im2col + Pallas matmul."""
    B = x_nhwc.shape[0]
    patches, OH, OW = im2col_nhwc(x_nhwc)             # bf16 patches (input is bf16)
    tm = _largest_divisor_tile(patches.shape[0], tm_cap)
    out = matmul_bias_act(patches, w_mat, b, apply_relu=True,
                          out_dtype=out_dtype, tm=tm, tn=tn)
    return out.reshape(B, OH, OW, -1)                 # NHWC, no transpose needed


# ----------------------------------------------------------------------------
# Parameter init (deterministic, PyTorch-like shapes) + one-time preparation
# ----------------------------------------------------------------------------
def init_params(key, latent_dim=128):
    ks = jax.random.split(key, 8)

    def conv_init(kw_, kb_, o, c, k):
        fan_in = c * k * k
        bound = 1.0 / jnp.sqrt(fan_in)
        w = jax.random.uniform(kw_, (o, c, k, k), jnp.float32, -bound, bound)
        b = jax.random.uniform(kb_, (o,), jnp.float32, -bound, bound)
        return w, b

    w1, b1 = conv_init(ks[0], ks[1], 64, 3, 4)
    w2, b2 = conv_init(ks[2], ks[3], 128, 64, 4)
    w3, b3 = conv_init(ks[4], ks[5], 256, 128, 4)

    fan_in = 256 * 8 * 8
    bound = 1.0 / jnp.sqrt(fan_in)
    wl = jax.random.uniform(ks[6], (latent_dim, fan_in), jnp.float32, -bound, bound)
    bl = jax.random.uniform(ks[7], (latent_dim,), jnp.float32, -bound, bound)
    return (w1, b1, w2, b2, w3, b3, wl, bl)


def prepare_params(params):
    """One-time weight permutation / padding + bf16 cast (hoisted out of forward)."""
    w1, b1, w2, b2, w3, b3, wl, bl = params

    def conv_w_mat(w):
        # PyTorch (O, C, kh, kw) -> (kh, kw, C, O) -> (kh*kw*C, O)
        o = w.shape[0]
        return jnp.transpose(w, (2, 3, 1, 0)).reshape(-1, o).astype(jnp.bfloat16)

    # conv1: pad 64 -> 128 output channels with zero weight columns + zero bias
    # so the Pallas output tile is lane-dense (last dim 128). The padded
    # channels are exactly zero and are dropped (h[..., :64]) before conv2.
    w1m = jnp.pad(conv_w_mat(w1), ((0, 0), (0, 64)))        # (48, 128)
    b1p = jnp.pad(b1, (0, 64))                               # (128,)

    w2m, w3m = conv_w_mat(w2), conv_w_mat(w3)

    latent = wl.shape[0]
    # PyTorch Flatten sees (C,H,W); our activations flatten as (H,W,C).
    wlm = (
        wl.reshape(latent, 256, 8, 8)
        .transpose(0, 2, 3, 1)
        .reshape(latent, -1)
        .T.astype(jnp.bfloat16)
    )
    return (w1m, b1p, w2m, b2, w3m, b3, wlm, bl)


# ----------------------------------------------------------------------------
# Full forward pass (matches nn.Sequential in the PyTorch module)
# ----------------------------------------------------------------------------
def encoder_forward(x_nchw, prepared):
    w1m, b1p, w2m, b2, w3m, b3, wlm, bl = prepared
    # NCHW -> NHWC once, and cast to bf16 once so every downstream im2col /
    # matmul operand is built directly in bf16.
    x = jnp.transpose(x_nchw, (0, 2, 3, 1)).astype(jnp.bfloat16)

    # conv1: M=B*1024 -> tm=1024 (2 steps for B=2), N=128 (padded, lane-dense)
    h = conv_block(x, w1m, b1p, tm_cap=1024)          # (B, 32, 32, 128); ch 64..127 == 0
    # conv2: consume only the 64 real channels; M=B*256 -> tm=256 (2 steps)
    h = conv_block(h[..., :64], w2m, b2, tm_cap=256)  # (B, 16, 16, 128)
    # conv3: M=B*64 -> tm=128, tn=128 over N=256 (2 parallel steps for v7x;
    # on v6e a single tn=256 step is the alternative — difference is ~1 step)
    h = conv_block(h, w3m, b3, tm_cap=128, tn=128)    # (B, 8, 8, 256)

    B = h.shape[0]
    h_flat = h.reshape(B, -1)                         # (B, 8*8*256) NHWC order, bf16
    z = matmul_bias_act(h_flat, wlm, bl, apply_relu=False, out_dtype=jnp.float32)
    return z                                          # (B, latent_dim)


if __name__ == "__main__":
    latent_dim = 128
    key = jax.random.PRNGKey(0)
    k_x, k_p = jax.random.split(key)

    # Spatial size must be 64x64 so Flatten produces 256*8*8 (required by the
    # Linear layer of the original module). Batch=2, channels=3, NCHW input.
    x = jax.random.normal(k_x, (2, 3, 64, 64), dtype=jnp.float32)
    params = init_params(k_p, latent_dim)
    prepared = prepare_params(params)                 # one-time weight prep

    fwd = jax.jit(encoder_forward)
    out = jax.block_until_ready(fwd(x, prepared))

    assert out.shape == (2, latent_dim), out.shape
    assert jnp.all(jnp.isfinite(out))
    print("KERNEL_OK")
</pallas_src>

<mosaic_0001>
module attributes {stable_mosaic.version = 11 : i64} {
  func.func @_mm_bias_act_kernel(%arg0: i32, %arg1: i32, %arg2: memref<1024x48xbf16, #tpu.memory_space<vmem>>, %arg3: memref<48x128xbf16, #tpu.memory_space<vmem>>, %arg4: memref<1x128xf32, #tpu.memory_space<vmem>>, %arg5: memref<1024x128xbf16, #tpu.memory_space<vmem>>) attributes {dimension_semantics = [#tpu.dimension_semantics<parallel>, #tpu.dimension_semantics<parallel>], iteration_bounds = array<i64: 2, 1>, scalar_prefetch = 0 : i64, scratch_operands = 0 : i64, tpu.core_type = #tpu.core_type<tc>, window_params = [{transform_indices = @transform_0, window_bounds = array<i64: 1024, 48>}, {transform_indices = @transform_1, window_bounds = array<i64: 48, 128>}, {transform_indices = @transform_2, window_bounds = array<i64: 1, 128>}, {transform_indices = @transform_3, window_bounds = array<i64: 1024, 128>}]} {
    %c0 = arith.constant 0 : index
    %c0_0 = arith.constant 0 : index
    %0 = vector.load %arg2[%c0, %c0_0] : memref<1024x48xbf16, #tpu.memory_space<vmem>>, vector<1024x48xbf16>
    %c0_1 = arith.constant 0 : index
    %c0_2 = arith.constant 0 : index
    %1 = vector.load %arg3[%c0_1, %c0_2] : memref<48x128xbf16, #tpu.memory_space<vmem>>, vector<48x128xbf16>
    %cst = arith.constant dense<0.000000e+00> : vector<1024x128xf32>
    %2 = tpu.matmul %0, %1, %cst {dimension_numbers = #tpu.dot_dimension_numbers<[1], [0], [0], [1], [0, 0, 1, 1], [], []>} : vector<1024x48xbf16>, vector<48x128xbf16>, vector<1024x128xf32> -> vector<1024x128xf32>
    %c0_3 = arith.constant 0 : index
    %c0_4 = arith.constant 0 : index
    %3 = vector.load %arg4[%c0_3, %c0_4] : memref<1x128xf32, #tpu.memory_space<vmem>>, vector<1x128xf32>
    %4 = vector.broadcast %3 : vector<1x128xf32> to vector<1024x128xf32>
    %5 = arith.addf %2, %4 : vector<1024x128xf32>
    %cst_5 = arith.constant 0.000000e+00 : f32
    %6 = vector.broadcast %cst_5 : f32 to vector<1024x128xf32>
    %7 = arith.maximumf %5, %6 : vector<1024x128xf32>
    %8 = arith.truncf %7 : vector<1024x128xf32> to vector<1024x128xbf16>
    %c0_6 = arith.constant 0 : index
    %c0_7 = arith.constant 0 : index
    %9 = vector.load %arg5[%c0_6, %c0_7] : memref<1024x128xbf16, #tpu.memory_space<vmem>>, vector<1024x128xbf16>
    tpu.vector_store %arg5[%c0_6, %c0_7], %8 {strides = array<i32>} : memref<1024x128xbf16, #tpu.memory_space<vmem>>, vector<1024x128xbf16>,
    return
  }
  func.func @transform_0(%arg0: i32, %arg1: i32) -> (i32, i32) {
    %c0_i32 = arith.constant 0 : i32
    %c0_i32_0 = arith.constant 0 : i32
    return %arg0, %c0_i32 : i32, i32
  }
  func.func @transform_1(%arg0: i32, %arg1: i32) -> (i32, i32) {
    %c0_i32 = arith.constant 0 : i32
    %c0_i32_0 = arith.constant 0 : i32
    return %c0_i32, %arg1 : i32, i32
  }
  func.func @transform_2(%arg0: i32, %arg1: i32) -> (i32, i32) {
    %c0_i32 = arith.constant 0 : i32
    %c0_i32_0 = arith.constant 0 : i32
    return %c0_i32, %arg1 : i32, i32
  }
  func.func @transform_3(%arg0: i32, %arg1: i32) -> (i32, i32) {
    %c0_i32 = arith.constant 0 : i32
    return %arg0, %arg1 : i32, i32
  }
}

module attributes {stable_mosaic.version = 11 : i64} {
  func.func @_mm_bias_act_kernel(%arg0: i32, %arg1: i32, %arg2: memref<256x1024xbf16, #tpu.memory_space<vmem>>, %arg3: memref<1024x128xbf16, #tpu.memory_space<vmem>>, %arg4: memref<1x128xf32, #tpu.memory_space<vmem>>, %arg5: memref<256x128xbf16, #tpu.memory_space<vmem>>) attributes {dimension_semantics = [#tpu.dimension_semantics<parallel>, #tpu.dimension_semantics<parallel>], iteration_bounds = array<i64: 2, 1>, scalar_prefetch = 0 : i64, scratch_operands = 0 : i64, tpu.core_type = #tpu.core_type<tc>, window_params = [{transform_indices = @transform_0, window_bounds = array<i64: 256, 1024>}, {transform_indices = @transform_1, window_bounds = array<i64: 1024, 128>}, {transform_indices = @transform_2, window_bounds = array<i64: 1, 128>}, {transform_indices = @transform_3, window_bounds = array<i64: 256, 128>}]} {
    %c0 = arith.constant 0 : index
    %c0_0 = arith.constant 0 : index
    %0 = vector.load %arg2[%c0, %c0_0] : memref<256x1024xbf16, #tpu.memory_space<vmem>>, vector<256x1024xbf16>
    %c0_1 = arith.constant 0 : index
    %c0_2 = arith.constant 0 : index
    %1 = vector.load %arg3[%c0_1, %c0_2] : memref<1024x128xbf16, #tpu.memory_space<vmem>>, vector<1024x128xbf16>
    %cst = arith.constant dense<0.000000e+00> : vector<256x128xf32>
    %2 = tpu.matmul %0, %1, %cst {dimension_numbers = #tpu.dot_dimension_numbers<[1], [0], [0], [1], [0, 0, 1, 1], [], []>} : vector<256x1024xbf16>, vector<1024x128xbf16>, vector<256x128xf32> -> vector<256x128xf32>
    %c0_3 = arith.constant 0 : index
    %c0_4 = arith.constant 0 : index
    %3 = vector.load %arg4[%c0_3, %c0_4] : memref<1x128xf32, #tpu.memory_space<vmem>>, vector<1x128xf32>
    %4 = vector.broadcast %3 : vector<1x128xf32> to vector<256x128xf32>
    %5 = arith.addf %2, %4 : vector<256x128xf32>
    %cst_5 = arith.constant 0.000000e+00 : f32
    %6 = vector.broadcast %cst_5 : f32 to vector<256x128xf32>
    %7 = arith.maximumf %5, %6 : vector<256x128xf32>
    %8 = arith.truncf %7 : vector<256x128xf32> to vector<256x128xbf16>
    %c0_6 = arith.constant 0 : index
    %c0_7 = arith.constant 0 : index
    %9 = vector.load %arg5[%c0_6, %c0_7] : memref<256x128xbf16, #tpu.memory_space<vmem>>, vector<256x128xbf16>
    tpu.vector_store %arg5[%c0_6, %c0_7], %8 {strides = array<i32>} : memref<256x128xbf16, #tpu.memory_space<vmem>>, vector<256x128xbf16>,
    return
  }
  func.func @transform_0(%arg0: i32, %arg1: i32) -> (i32, i32) {
    %c0_i32 = arith.constant 0 : i32
    %c0_i32_0 = arith.constant 0 : i32
    return %arg0, %c0_i32 : i32, i32
  }
  func.func @transform_1(%arg0: i32, %arg1: i32) -> (i32, i32) {
    %c0_i32 = arith.constant 0 : i32
    %c0_i32_0 = arith.constant 0 : i32
    return %c0_i32, %arg1 : i32, i32
  }
  func.func @transform_2(%arg0: i32, %arg1: i32) -> (i32, i32) {
    %c0_i32 = arith.constant 0 : i32
    %c0_i32_0 = arith.constant 0 : i32
    return %c0_i32, %arg1 : i32, i32
  }
  func.func @transform_3(%arg0: i32, %arg1: i32) -> (i32, i32) {
    %c0_i32 = arith.constant 0 : i32
    return %arg0, %arg1 : i32, i32
  }
}

module attributes {stable_mosaic.version = 11 : i64} {
  func.func @_mm_bias_act_kernel(%arg0: i32, %arg1: i32, %arg2: memref<2x16384xbf16, #tpu.memory_space<vmem>>, %arg3: memref<16384x128xbf16, #tpu.memory_space<vmem>>, %arg4: memref<1x128xf32, #tpu.memory_space<vmem>>, %arg5: memref<2x128xf32, #tpu.memory_space<vmem>>) attributes {dimension_semantics = [#tpu.dimension_semantics<parallel>, #tpu.dimension_semantics<parallel>], iteration_bounds = array<i64: 1, 1>, scalar_prefetch = 0 : i64, scratch_operands = 0 : i64, tpu.core_type = #tpu.core_type<tc>, window_params = [{transform_indices = @transform_0, window_bounds = array<i64: 2, 16384>}, {transform_indices = @transform_1, window_bounds = array<i64: 16384, 128>}, {transform_indices = @transform_2, window_bounds = array<i64: 1, 128>}, {transform_indices = @transform_3, window_bounds = array<i64: 2, 128>}]} {
    %c0 = arith.constant 0 : index
    %c0_0 = arith.constant 0 : index
    %0 = vector.load %arg2[%c0, %c0_0] : memref<2x16384xbf16, #tpu.memory_space<vmem>>, vector<2x16384xbf16>
    %c0_1 = arith.constant 0 : index
    %c0_2 = arith.constant 0 : index
    %1 = vector.load %arg3[%c0_1, %c0_2] : memref<16384x128xbf16, #tpu.memory_space<vmem>>, vector<16384x128xbf16>
    %cst = arith.constant dense<0.000000e+00> : vector<2x128xf32>
    %2 = tpu.matmul %0, %1, %cst {dimension_numbers = #tpu.dot_dimension_numbers<[1], [0], [0], [1], [0, 0, 1, 1], [], []>} : vector<2x16384xbf16>, vector<16384x128xbf16>, vector<2x128xf32> -> vector<2x128xf32>
    %c0_3 = arith.constant 0 : index
    %c0_4 = arith.constant 0 : index
    %3 = vector.load %arg4[%c0_3, %c0_4] : memref<1x128xf32, #tpu.memory_space<vmem>>, vector<1x128xf32>
    %4 = vector.broadcast %3 : vector<1x128xf32> to vector<2x128xf32>
    %5 = arith.addf %2, %4 : vector<2x128xf32>
    %c0_5 = arith.constant 0 : index
    %c0_6 = arith.constant 0 : index
    %6 = vector.load %arg5[%c0_5, %c0_6] : memref<2x128xf32, #tpu.memory_space<vmem>>, vector<2x128xf32>
    tpu.vector_store %arg5[%c0_5, %c0_6], %5 {strides = array<i32>} : memref<2x128xf32, #tpu.memory_space<vmem>>, vector<2x128xf32>,
    return
  }
  func.func @transform_0(%arg0: i32, %arg1: i32) -> (i32, i32) {
    %c0_i32 = arith.constant 0 : i32
    %c0_i32_0 = arith.constant 0 : i32
    return %arg0, %c0_i32 : i32, i32
  }
  func.func @transform_1(%arg0: i32, %arg1: i32) -> (i32, i32) {
    %c0_i32 = arith.constant 0 : i32
    %c0_i32_0 = arith.constant 0 : i32
    return %c0_i32, %arg1 : i32, i32
  }
  func.func @transform_2(%arg0: i32, %arg1: i32) -> (i32, i32) {
    %c0_i32 = arith.constant 0 : i32
    %c0_i32_0 = arith.constant 0 : i32
    return %c0_i32, %arg1 : i32, i32
  }
  func.func @transform_3(%arg0: i32, %arg1: i32) -> (i32, i32) {
    %c0_i32 = arith.constant 0 : i32
    return %arg0, %arg1 : i32, i32
  }
}

module attributes {stable_mosaic.version = 11 : i64} {
  func.func @_mm_bias_act_kernel(%arg0: i32, %arg1: i32, %arg2: memref<128x2048xbf16, #tpu.memory_space<vmem>>, %arg3: memref<2048x128xbf16, #tpu.memory_space<vmem>>, %arg4: memref<1x128xf32, #tpu.memory_space<vmem>>, %arg5: memref<128x128xbf16, #tpu.memory_space<vmem>>) attributes {dimension_semantics = [#tpu.dimension_semantics<parallel>, #tpu.dimension_semantics<parallel>], iteration_bounds = array<i64: 1, 2>, scalar_prefetch = 0 : i64, scratch_operands = 0 : i64, tpu.core_type = #tpu.core_type<tc>, window_params = [{transform_indices = @transform_0, window_bounds = array<i64: 128, 2048>}, {transform_indices = @transform_1, window_bounds = array<i64: 2048, 128>}, {transform_indices = @transform_2, window_bounds = array<i64: 1, 128>}, {transform_indices = @transform_3, window_bounds = array<i64: 128, 128>}]} {
    %c0 = arith.constant 0 : index
    %c0_0 = arith.constant 0 : index
    %0 = vector.load %arg2[%c0, %c0_0] : memref<128x2048xbf16, #tpu.memory_space<vmem>>, vector<128x2048xbf16>
    %c0_1 = arith.constant 0 : index
    %c0_2 = arith.constant 0 : index
    %1 = vector.load %arg3[%c0_1, %c0_2] : memref<2048x128xbf16, #tpu.memory_space<vmem>>, vector<2048x128xbf16>
    %cst = arith.constant dense<0.000000e+00> : vector<128x128xf32>
    %2 = tpu.matmul %0, %1, %cst {dimension_numbers = #tpu.dot_dimension_numbers<[1], [0], [0], [1], [0, 0, 1, 1], [], []>} : vector<128x2048xbf16>, vector<2048x128xbf16>, vector<128x128xf32> -> vector<128x128xf32>
    %c0_3 = arith.constant 0 : index
    %c0_4 = arith.constant 0 : index
    %3 = vector.load %arg4[%c0_3, %c0_4] : memref<1x128xf32, #tpu.memory_space<vmem>>, vector<1x128xf32>
    %4 = vector.broadcast %3 : vector<1x128xf32> to vector<128x128xf32>
    %5 = arith.addf %2, %4 : vector<128x128xf32>
    %cst_5 = arith.constant 0.000000e+00 : f32
    %6 = vector.broadcast %cst_5 : f32 to vector<128x128xf32>
    %7 = arith.maximumf %5, %6 : vector<128x128xf32>
    %8 = arith.truncf %7 : vector<128x128xf32> to vector<128x128xbf16>
    %c0_6 = arith.constant 0 : index
    %c0_7 = arith.constant 0 : index
    %9 = vector.load %arg5[%c0_6, %c0_7] : memref<128x128xbf16, #tpu.memory_space<vmem>>, vector<128x128xbf16>
    tpu.vector_store %arg5[%c0_6, %c0_7], %8 {strides = array<i32>} : memref<128x128xbf16, #tpu.memory_space<vmem>>, vector<128x128xbf16>,
    return
  }
  func.func @transform_0(%arg0: i32, %arg1: i32) -> (i32, i32) {
    %c0_i32 = arith.constant 0 : i32
    %c0_i32_0 = arith.constant 0 : i32
    return %arg0, %c0_i32 : i32, i32
  }
  func.func @transform_1(%arg0: i32, %arg1: i32) -> (i32, i32) {
    %c0_i32 = arith.constant 0 : i32
    %c0_i32_0 = arith.constant 0 : i32
    return %c0_i32, %arg1 : i32, i32
  }
  func.func @transform_2(%arg0: i32, %arg1: i32) -> (i32, i32) {
    %c0_i32 = arith.constant 0 : i32
    %c0_i32_0 = arith.constant 0 : i32
    return %c0_i32, %arg1 : i32, i32
  }
  func.func @transform_3(%arg0: i32, %arg1: i32) -> (i32, i32) {
    %c0_i32 = arith.constant 0 : i32
    return %arg0, %arg1 : i32, i32
  }
}

</mosaic_0001>

<bundles_post_ra>
// kernel: encoder_forward.4
= control target key start
LH: loop header
LB: loop body
LE: loop exit
PB: predicated region body
PF: predicated region fallthrough
CT: control target
= control target key end

     0   :  { %s3439_s12 = smov 0   ;;  %s3441_s13 = smov 0   ;;  %s3817_s0 = inlined_call_operand.vmem [shape: bf16[2048,48], index: 0, kind: input, shape index: {}]   ;;  %s3818_s1 = inlined_call_operand.vmem [shape: bf16[48,128], index: 1, kind: input, shape index: {}]   ;;  %s3819_s2 = inlined_call_operand.vmem [shape: f32[1,128], index: 2, kind: input, shape index: {}]   ;;  %s3820_s3 = inlined_call_operand.vmem [shape: bf16[2048,128], index: 3, kind: output, shape index: {}]  }
   0x1   :  { %s3443_s14 = smov 0  }
   0x2 LB: > { %s25_s15 = sadd.s32 1, %s3413_s13  ;;  %p2319_p0 = scmp.ge.s32.totalorder %s3417_s14, 1  ;;  %s3417_s14 = sphi %s3443_s14, %s13_s14   ;;  %s3413_s13 = sphi %s3441_s13, %s3822_s13   ;;  %s3409_s12 = sphi %s3439_s12, %s3821_s12  }
   0x3   : > { %p27_p1 = scmp.ge.s32.totalorder %s25_s15, 2  ;;  %p169_p2 = scmp.lt.s32.totalorder %s3417_s14, 3 }
   0x5   : > { %s3824_s15 = smov (%p27_p1, %s25_s15), 0  ;;  %p170_p3 = pnand %p2319_p0, %p169_p2 }
   0x6   : > { %s2320_s18 = sshll.u32 (!%p170_p3), %s3409_s12, 7 }
   0x7   : > { %173 = sbr.rel (%p170_p3) target bundleno = 351 (0x15f), region = 32  ;;  %p204_p4 = scmp.lt.s32.totalorder (!%p170_p3), %s2320_s18, 255 }
   0xc   : > { %v3328_v0 = vld [vmem:[%s3818_s1 + $0x10] sm:$0xff]   ;;  %v3329_v1 = vld [vmem:[%s3818_s1 + $0x8] sm:$0xff]   ;;  %s3826_s18 = smov (!%p204_p4, %s2320_s18), 255  ;;  %v3330_v2 = vld [vmem:[%s3818_s1] sm:$0xff]   ;;  %vm705_vm0 = vcmask 392192  }
   0xd   : > { %3164 = vmatprep.subr.bf16.mxu0 %v3328_v0  ;;  %3298 = vmatprep.subr.bf16.mxu1 %v3328_v0  ;;  %s2321_s23 = sshll.u32 %s3826_s18, 2 }
   0xe   : > { %3165 = vmatpush3.bf16.msra.mxu0 %v3328_v0  ;;  %3301 = vmatpush3.bf16.msra.mxu1 %v3328_v0  ;;  %s3474_s26 = scalar_lea.vmem %s3817_s0, %s2321_s23  ;;  %s3622_s4 = scalar_lea.vmem %s3820_s3, %s2321_s23 }
   0xf   : > { %3166 = vmatprep.subr.bf16.mxu0 %v3329_v1  ;;  %3299 = vmatprep.subr.bf16.mxu1 %v3329_v1  ;;  %v3331_v3 = vld [vmem:[%s3474_s26] sm:$0xff]   ;;  %v3333_v5 = vld [vmem:[%s3474_s26 + $0x8] sm:$0xff]   ;;  %v3335_v7 = vld [vmem:[%s3474_s26 + $0x10] sm:$0xff]  }
  0x10   : > { %v3332_v4 = vld [vmem:[%s3474_s26 + $0x100] sm:$0xff]   ;;  %3170 = vmatprep.mubr.msk.bf16.mxu0 %vm705_vm0, %v3331_v3  ;;  %v3334_v6 = vld [vmem:[%s3474_s26 + $0x108] sm:$0xff]   ;;  %v3336_v8 = vld [vmem:[%s3474_s26 + $0x110] sm:$0xff]  }
  0x11   : > { %3234 = vmatprep.mubr.msk.bf16.mxu1 %vm705_vm0, %v3332_v4  ;;  %v3337_v9 = vld [vmem:[%s3474_s26 + $0x18] sm:$0xff]   ;;  %v3339_v11 = vld [vmem:[%s3474_s26 + $0x20] sm:$0xff]   ;;  %v3341_v13 = vld [vmem:[%s3474_s26 + $0x28] sm:$0xff]  }
  0x12   : > { %3167 = vmatpush3.bf16.msra.mxu0 %v3329_v1  ;;  %3302 = vmatpush3.bf16.msra.mxu1 %v3329_v1  ;;  %v3338_v10 = vld [vmem:[%s3474_s26 + $0x118] sm:$0xff]   ;;  %v3340_v12 = vld [vmem:[%s3474_s26 + $0x120] sm:$0xff]   ;;  %v3342_v14 = vld [vmem:[%s3474_s26 + $0x128] sm:$0xff]  }
  0x13   : > { %3168 = vmatprep.subr.bf16.mxu0 %v3330_v2  ;;  %3300 = vmatprep.subr.bf16.mxu1 %v3330_v2  ;;  %v3343_v15 = vld [vmem:[%s3474_s26 + $0x30] sm:$0xff]   ;;  %v3345_v17 = vld [vmem:[%s3474_s26 + $0x38] sm:$0xff]   ;;  %v3347_v19 = vld [vmem:[%s3474_s26 + $0x40] sm:$0xff]  }
  0x14   : > { %v3344_v16 = vld [vmem:[%s3474_s26 + $0x130] sm:$0xff]   ;;  %v3346_v18 = vld [vmem:[%s3474_s26 + $0x138] sm:$0xff]   ;;  %v3348_v20 = vld [vmem:[%s3474_s26 + $0x140] sm:$0xff]  }
  0x15   : > { %v3349_v21 = vld [vmem:[%s3474_s26 + $0x48] sm:$0xff]   ;;  %v3351_v23 = vld [vmem:[%s3474_s26 + $0x50] sm:$0xff]   ;;  %v3353_v25 = vld [vmem:[%s3474_s26 + $0x58] sm:$0xff]  }
  0x16   : > { %3169 = vmatpush3.bf16.msra.mxu0 %v3330_v2  ;;  %3303 = vmatpush3.bf16.msra.mxu1 %v3330_v2  ;;  %v3350_v22 = vld [vmem:[%s3474_s26 + $0x148] sm:$0xff]   ;;  %v3352_v24 = vld [vmem:[%s3474_s26 + $0x150] sm:$0xff]   ;;  %v3354_v26 = vld [vmem:[%s3474_s26 + $0x158] sm:$0xff]  }
  0x17   : > { %v3355_v27 = vld [vmem:[%s3474_s26 + $0x60] sm:$0xff]   ;;  %v3357_v29 = vld [vmem:[%s3474_s26 + $0x68] sm:$0xff]   ;;  %v3359_v31 = vld [vmem:[%s3474_s26 + $0x70] sm:$0xff]  }
  0x18   : > { %v3356_v28 = vld [vmem:[%s3474_s26 + $0x160] sm:$0xff]   ;;  %v3358_v30 = vld [vmem:[%s3474_s26 + $0x168] sm:$0xff]   ;;  %v3360_v32 = vld [vmem:[%s3474_s26 + $0x170] sm:$0xff]  }
  0x19   : > { %3171 = vmatmul.mubr.msk.bf16.vlgmr.msra.gmra.mxu0 %vm705_vm0, %v3333_v5  ;;  %3235 = vmatmul.mubr.msk.bf16.vlgmr.msra.gmra.mxu1 %vm705_vm0, %v3334_v6  ;;  %v3361_v33 = vld [vmem:[%s3474_s26 + $0x78] sm:$0xff]   ;;  %v3363_v35 = vld [vmem:[%s3474_s26 + $0x80] sm:$0xff]   ;;  %v3365_v37 = vld [vmem:[%s3474_s26 + $0x88] sm:$0xff]  }
  0x1a   : > { %3174 = vmatprep.mubr.msk.bf16.mxu0 %vm705_vm0, %v3335_v7  ;;  %3238 = vmatprep.mubr.msk.bf16.mxu1 %vm705_vm0, %v3336_v8  ;;  %v3362_v34 = vld [vmem:[%s3474_s26 + $0x178] sm:$0xff]   ;;  %v3364_v36 = vld [vmem:[%s3474_s26 + $0x180] sm:$0xff]   ;;  %v3366_v38 = vld [vmem:[%s3474_s26 + $0x188] sm:$0xff]  }
  0x1b   : > { %v3367_v39 = vld [vmem:[%s3474_s26 + $0x90] sm:$0xff]   ;;  %v3369_v41 = vld [vmem:[%s3474_s26 + $0x98] sm:$0xff]   ;;  %v3371_v43 = vld [vmem:[%s3474_s26 + $0xa0] sm:$0xff]  }
  0x1c   : > { %v3368_v40 = vld [vmem:[%s3474_s26 + $0x190] sm:$0xff]   ;;  %v3370_v42 = vld [vmem:[%s3474_s26 + $0x198] sm:$0xff]   ;;  %v3372_v44 = vld [vmem:[%s3474_s26 + $0x1a0] sm:$0xff]  }
  0x1d   : > { %v3373_v45 = vld [vmem:[%s3474_s26 + $0xa8] sm:$0xff]   ;;  %v3375_v47 = vld [vmem:[%s3474_s26 + $0xb0] sm:$0xff]   ;;  %v3377_v49 = vld [vmem:[%s3474_s26 + $0xb8] sm:$0xff]  }
  0x1e   : > { %v3374_v46 = vld [vmem:[%s3474_s26 + $0x1a8] sm:$0xff]   ;;  %v3376_v48 = vld [vmem:[%s3474_s26 + $0x1b0] sm:$0xff]   ;;  %v3378_v50 = vld [vmem:[%s3474_s26 + $0x1b8] sm:$0xff]  }
  0x1f   : > { %v3379_v51 = vld [vmem:[%s3474_s26 + $0xc0] sm:$0xff]   ;;  %v3381_v53 = vld [vmem:[%s3474_s26 + $0xc8] sm:$0xff]   ;;  %v3383_v55 = vld [vmem:[%s3474_s26 + $0xd0] sm:$0xff]  }
  0x20   : > { %v3380_v52 = vld [vmem:[%s3474_s26 + $0x1c0] sm:$0xff]   ;;  %v3382_v54 = vld [vmem:[%s3474_s26 + $0x1c8] sm:$0xff]   ;;  %v3384_v56 = vld [vmem:[%s3474_s26 + $0x1d0] sm:$0xff]  }
  0x21   : > { %3175 = vmatmul.mubr.msk.bf16.gmra.mxu0 %vm705_vm0, %v3337_v9  ;;  %3239 = vmatmul.mubr.msk.bf16.gmra.mxu1 %vm705_vm0, %v3338_v10  ;;  %v3385_v57 = vld [vmem:[%s3474_s26 + $0xd8] sm:$0xff]   ;;  %v3387_v59 = vld [vmem:[%s3474_s26 + $0xe0] sm:$0xff]   ;;  %v3389_v61 = vld [vmem:[%s3474_s26 + $0xe8] sm:$0xff]  }
  0x22   : > { %3178 = vmatprep.mubr.msk.bf16.mxu0 %vm705_vm0, %v3339_v11  ;;  %3242 = vmatprep.mubr.msk.bf16.mxu1 %vm705_vm0, %v3340_v12  ;;  %v3386_v58 = vld [vmem:[%s3474_s26 + $0x1d8] sm:$0xff]   ;;  %v3388_v60 = vld [vmem:[%s3474_s26 + $0x1e0] sm:$0xff]   ;;  %v3390_v62 = vld [vmem:[%s3474_s26 + $0x1e8] sm:$0xff]  }
  0x23   : > { %v3391_v63 = vld [vmem:[%s3474_s26 + $0xf0] sm:$0xff]   ;;  %v3393_v1 = vld [vmem:[%s3474_s26 + $0xf8] sm:$0xff]   ;;  %v3607_v3 = vld [vmem:[%s3819_s2] ss:$0 sm:$0xff] }
  0x24   : > { %v3392_v0 = vld [vmem:[%s3474_s26 + $0x1f0] sm:$0xff]   ;;  %v3394_v2 = vld [vmem:[%s3474_s26 + $0x1f8] sm:$0xff]  }
  0x29   : > { %3179 = vmatmul.mubr.msk.bf16.gmra.mxu0 %vm705_vm0, %v3341_v13  ;;  %3243 = vmatmul.mubr.msk.bf16.gmra.mxu1 %vm705_vm0, %v3342_v14 }
  0x2a   : > { %3182 = vmatprep.mubr.msk.bf16.mxu0 %vm705_vm0, %v3343_v15  ;;  %3246 = vmatprep.mubr.msk.bf16.mxu1 %vm705_vm0, %v3344_v16 }
  0x31   : > { %3183 = vmatmul.mubr.msk.bf16.gmra.mxu0 %vm705_vm0, %v3345_v17  ;;  %3247 = vmatmul.mubr.msk.bf16.gmra.mxu1 %vm705_vm0, %v3346_v18 }
  0x32   : > { %3186 = vmatprep.mubr.msk.bf16.mxu0 %vm705_vm0, %v3347_v19  ;;  %3250 = vmatprep.mubr.msk.bf16.mxu1 %vm705_vm0, %v3348_v20 }
  0x39   : > { %3187 = vmatmul.mubr.msk.bf16.gmra.mxu0 %vm705_vm0, %v3349_v21  ;;  %3251 = vmatmul.mubr.msk.bf16.gmra.mxu1 %vm705_vm0, %v3350_v22 }
  0x3a   : > { %3190 = vmatprep.mubr.msk.bf16.mxu0 %vm705_vm0, %v3351_v23  ;;  %3254 = vmatprep.mubr.msk.bf16.mxu1 %vm705_vm0, %v3352_v24 }
  0x41   : > { %3191 = vmatmul.mubr.msk.bf16.gmra.mxu0 %vm705_vm0, %v3353_v25  ;;  %3255 = vmatmul.mubr.msk.bf16.gmra.mxu1 %vm705_vm0, %v3354_v26 }
  0x42   : > { %3194 = vmatprep.mubr.msk.bf16.mxu0 %vm705_vm0, %v3355_v27  ;;  %3258 = vmatprep.mubr.msk.bf16.mxu1 %vm705_vm0, %v3356_v28 }
  0x49   : > { %3195 = vmatmul.mubr.msk.bf16.gmra.mxu0 %vm705_vm0, %v3357_v29  ;;  %3259 = vmatmul.mubr.msk.bf16.gmra.mxu1 %vm705_vm0, %v3358_v30 }
  0x4a   : > { %3198 = vmatprep.mubr.msk.bf16.mxu0 %vm705_vm0, %v3359_v31  ;;  %3262 = vmatprep.mubr.msk.bf16.mxu1 %vm705_vm0, %v3360_v32 }
  0x51   : > { %3199 = vmatmul.mubr.msk.bf16.gmra.mxu0 %vm705_vm0, %v3361_v33  ;;  %3263 = vmatmul.mubr.msk.bf16.gmra.mxu1 %vm705_vm0, %v3362_v34 }
  0x52   : > { %3202 = vmatprep.mubr.msk.bf16.mxu0 %vm705_vm0, %v3363_v35  ;;  %3266 = vmatprep.mubr.msk.bf16.mxu1 %vm705_vm0, %v3364_v36 }
  0x59   : > { %3203 = vmatmul.mubr.msk.bf16.gmra.mxu0 %vm705_vm0, %v3365_v37  ;;  %3267 = vmatmul.mubr.msk.bf16.gmra.mxu1 %vm705_vm0, %v3366_v38 }
  0x5a   : > { %3206 = vmatprep.mubr.msk.bf16.mxu0 %vm705_vm0, %v3367_v39  ;;  %3270 = vmatprep.mubr.msk.bf16.mxu1 %vm705_vm0, %v3368_v40 }
  0x61   : > { %3207 = vmatmul.mubr.msk.bf16.gmra.mxu0 %vm705_vm0, %v3369_v41  ;;  %3271 = vmatmul.mubr.msk.bf16.gmra.mxu1 %vm705_vm0, %v3370_v42 }
  0x62   : > { %3210 = vmatprep.mubr.msk.bf16.mxu0 %vm705_vm0, %v3371_v43  ;;  %3274 = vmatprep.mubr.msk.bf16.mxu1 %vm705_vm0, %v3372_v44 }
  0x69   : > { %3211 = vmatmul.mubr.msk.bf16.gmra.mxu0 %vm705_vm0, %v3373_v45  ;;  %3275 = vmatmul.mubr.msk.bf16.gmra.mxu1 %vm705_vm0, %v3374_v46 }
  0x6a   : > { %3214 = vmatprep.mubr.msk.bf16.mxu0 %vm705_vm0, %v3375_v47  ;;  %3278 = vmatprep.mubr.msk.bf16.mxu1 %vm705_vm0, %v3376_v48 }
  0x71   : > { %3215 = vmatmul.mubr.msk.bf16.gmra.mxu0 %vm705_vm0, %v3377_v49  ;;  %3279 = vmatmul.mubr.msk.bf16.gmra.mxu1 %vm705_vm0, %v3378_v50 }
  0x72   : > { %3218 = vmatprep.mubr.msk.bf16.mxu0 %vm705_vm0, %v3379_v51  ;;  %3282 = vmatprep.mubr.msk.bf16.mxu1 %vm705_vm0, %v3380_v52 }
  0x79   : > { %3219 = vmatmul.mubr.msk.bf16.gmra.mxu0 %vm705_vm0, %v3381_v53  ;;  %3283 = vmatmul.mubr.msk.bf16.gmra.mxu1 %vm705_vm0, %v3382_v54 }
  0x7a   : > { %3222 = vmatprep.mubr.msk.bf16.mxu0 %vm705_vm0, %v3383_v55  ;;  %3286 = vmatprep.mubr.msk.bf16.mxu1 %vm705_vm0, %v3384_v56 }
  0x81   : > { %3223 = vmatmul.mubr.msk.bf16.gmra.mxu0 %vm705_vm0, %v3385_v57  ;;  %3287 = vmatmul.mubr.msk.bf16.gmra.mxu1 %vm705_vm0, %v3386_v58 }
  0x82   : > { %3226 = vmatprep.mubr.msk.bf16.mxu0 %vm705_vm0, %v3387_v59  ;;  %3290 = vmatprep.mubr.msk.bf16.mxu1 %vm705_vm0, %v3388_v60 }
  0x89   : > { %3227 = vmatmul.mubr.msk.bf16.gmra.mxu0 %vm705_vm0, %v3389_v61  ;;  %3291 = vmatmul.mubr.msk.bf16.gmra.mxu1 %vm705_vm0, %v3390_v62 }
  0x8a   : > { %3230 = vmatprep.mubr.msk.bf16.mxu0 %vm705_vm0, %v3391_v63  ;;  %3294 = vmatprep.mubr.msk.bf16.mxu1 %vm705_vm0, %v3392_v0 }
  0x91   : > { %3231 = vmatmul.mubr.msk.bf16.gmra.mxu0 %vm705_vm0, %v3393_v1  ;;  %3295 = vmatmul.mubr.msk.bf16.gmra.mxu1 %vm705_vm0, %v3394_v2 }
  0xd9   : > { %v3172_v4 = vpop.f32.mrf.mxu0  ;;  %v3236_v5 = vpop.f32.mrf.mxu1 }
  0xda   : > { %v941_v6 = vadd.f32 %v3172_v4, %v3607_v3  ;;  %v1197_v7 = vadd.f32 %v3236_v5, %v3607_v3 }
  0xdb   : > { %v932_v8 = vpop.f32.mrf.mxu0  ;;  %v1188_v9 = vpop.f32.mrf.mxu1 }
  0xdc   : > { %v933_v10 = vadd.f32 %v3607_v3, %v932_v8  ;;  %v1189_v11 = vadd.f32 %v3607_v3, %v1188_v9  ;;  %v1445_v16 = vmax.f32 %v941_v6, 0.0  ;;  %v1509_v17 = vmax.f32 %v1197_v7, 0.0 }
  0xdd   : > { %v3173_v12 = vpop.f32.mrf.mxu0  ;;  %v3237_v13 = vpop.f32.mrf.mxu1 }
  0xde   : > { %v944_v14 = vadd.f32 %v3173_v12, %v3607_v3  ;;  %v1200_v15 = vadd.f32 %v3237_v13, %v3607_v3  ;;  %v1443_v24 = vmax.f32 %v933_v10, 0.0  ;;  %v1507_v25 = vmax.f32 %v1189_v11, 0.0 }
  0xdf   : > { %v935_v18 = vpop.f32.mrf.mxu0  ;;  %v1191_v19 = vpop.f32.mrf.mxu1 }
  0xe0   : > { %v1446_v20 = vmax.f32 %v944_v14, 0.0  ;;  %v1510_v21 = vmax.f32 %v1200_v15, 0.0  ;;  %v936_v22 = vadd.f32 %v3607_v3, %v935_v18  ;;  %v1192_v23 = vadd.f32 %v3607_v3, %v1191_v19 }
  0xe1   : > { %v3176_v26 = vpop.f32.mrf.mxu0  ;;  %v3240_v27 = vpop.f32.mrf.mxu1 }
  0xe2   : > { %v2722_v28 = vpack.c.bf16 %v1446_v20, %v1445_v16  ;;  %v2882_v29 = vpack.c.bf16 %v1510_v21, %v1509_v17  ;;  %v1444_v30 = vmax.f32 %v936_v22, 0.0  ;;  %v1508_v31 = vmax.f32 %v1192_v23, 0.0 }
  0xe3   : > { %v957_v32 = vadd.f32 %v3176_v26, %v3607_v3  ;;  %v1213_v33 = vadd.f32 %v3240_v27, %v3607_v3  ;;  %v948_v34 = vpop.f32.mrf.mxu0  ;;  %v1204_v35 = vpop.f32.mrf.mxu1 }
  0xe4   : > { %3034 = vst [vmem:[%s3622_s4 + $0x8] sm:$0xff] %v2722_v28   ;;  %3066 = vst [vmem:[%s3622_s4 + $0x108] sm:$0xff] %v2882_v29   ;;  %v2717_v36 = vpack.c.bf16 %v1444_v30, %v1443_v24  ;;  %v2877_v37 = vpack.c.bf16 %v1508_v31, %v1507_v25  ;;  %v949_v38 = vadd.f32 %v3607_v3, %v948_v34 }
  0xe5   : > { %v1205_v39 = vadd.f32 %v3607_v3, %v1204_v35  ;;  %v3177_v40 = vpop.f32.mrf.mxu0  ;;  %v3241_v41 = vpop.f32.mrf.mxu1  ;;  %v1449_v44 = vmax.f32 %v957_v32, 0.0  ;;  %v1513_v45 = vmax.f32 %v1213_v33, 0.0 }
  0xe6   : > { %2718 = vst [vmem:[%s3622_s4] sm:$0xff] %v2717_v36   ;;  %3065 = vst [vmem:[%s3622_s4 + $0x100] sm:$0xff] %v2877_v37   ;;  %v960_v42 = vadd.f32 %v3177_v40, %v3607_v3  ;;  %v1216_v43 = vadd.f32 %v3241_v41, %v3607_v3  ;;  %v1447_v52 = vmax.f32 %v949_v38, 0.0 }
  0xe7   : > { %v951_v46 = vpop.f32.mrf.mxu0  ;;  %v1207_v47 = vpop.f32.mrf.mxu1  ;;  %v1511_v53 = vmax.f32 %v1205_v39, 0.0 }
  0xe8   : > { %v1450_v48 = vmax.f32 %v960_v42, 0.0  ;;  %v1514_v49 = vmax.f32 %v1216_v43, 0.0  ;;  %v952_v50 = vadd.f32 %v3607_v3, %v951_v46  ;;  %v1208_v51 = vadd.f32 %v3607_v3, %v1207_v47 }
  0xe9   : > { %v3180_v54 = vpop.f32.mrf.mxu0  ;;  %v3244_v55 = vpop.f32.mrf.mxu1 }
  0xea   : > { %v2732_v56 = vpack.c.bf16 %v1450_v48, %v1449_v44  ;;  %v2892_v57 = vpack.c.bf16 %v1514_v49, %v1513_v45  ;;  %v1448_v58 = vmax.f32 %v952_v50, 0.0  ;;  %v1512_v59 = vmax.f32 %v1208_v51, 0.0 }
  0xeb   : > { %v973_v60 = vadd.f32 %v3180_v54, %v3607_v3  ;;  %v1229_v61 = vadd.f32 %v3244_v55, %v3607_v3  ;;  %v964_v62 = vpop.f32.mrf.mxu0  ;;  %v1220_v63 = vpop.f32.mrf.mxu1 }
  0xec   : > { %3036 = vst [vmem:[%s3622_s4 + $0x18] sm:$0xff] %v2732_v56   ;;  %3068 = vst [vmem:[%s3622_s4 + $0x118] sm:$0xff] %v2892_v57   ;;  %v2727_v0 = vpack.c.bf16 %v1448_v58, %v1447_v52  ;;  %v2887_v1 = vpack.c.bf16 %v1512_v59, %v1511_v53  ;;  %v965_v2 = vadd.f32 %v3607_v3, %v964_v62 }
  0xed   : > { %v1221_v4 = vadd.f32 %v3607_v3, %v1220_v63  ;;  %v3181_v5 = vpop.f32.mrf.mxu0  ;;  %v3245_v6 = vpop.f32.mrf.mxu1  ;;  %v1453_v9 = vmax.f32 %v973_v60, 0.0  ;;  %v1517_v10 = vmax.f32 %v1229_v61, 0.0 }
  0xee   : > { %3035 = vst [vmem:[%s3622_s4 + $0x10] sm:$0xff] %v2727_v0   ;;  %3067 = vst [vmem:[%s3622_s4 + $0x110] sm:$0xff] %v2887_v1   ;;  %v976_v7 = vadd.f32 %v3181_v5, %v3607_v3  ;;  %v1232_v8 = vadd.f32 %v3245_v6, %v3607_v3  ;;  %v1451_v17 = vmax.f32 %v965_v2, 0.0 }
  0xef   : > { %v967_v11 = vpop.f32.mrf.mxu0  ;;  %v1223_v12 = vpop.f32.mrf.mxu1  ;;  %v1515_v18 = vmax.f32 %v1221_v4, 0.0 }
  0xf0   : > { %v1454_v13 = vmax.f32 %v976_v7, 0.0  ;;  %v1518_v14 = vmax.f32 %v1232_v8, 0.0  ;;  %v968_v15 = vadd.f32 %v3607_v3, %v967_v11  ;;  %v1224_v16 = vadd.f32 %v3607_v3, %v1223_v12 }
  0xf1   : > { %v3184_v19 = vpop.f32.mrf.mxu0  ;;  %v3248_v20 = vpop.f32.mrf.mxu1 }
  0xf2   : > { %v2742_v21 = vpack.c.bf16 %v1454_v13, %v1453_v9  ;;  %v2902_v22 = vpack.c.bf16 %v1518_v14, %v1517_v10  ;;  %v1452_v23 = vmax.f32 %v968_v15, 0.0  ;;  %v1516_v24 = vmax.f32 %v1224_v16, 0.0 }
  0xf3   : > { %v989_v25 = vadd.f32 %v3184_v19, %v3607_v3  ;;  %v1245_v26 = vadd.f32 %v3248_v20, %v3607_v3  ;;  %v980_v27 = vpop.f32.mrf.mxu0  ;;  %v1236_v28 = vpop.f32.mrf.mxu1 }
  0xf4   : > { %3038 = vst [vmem:[%s3622_s4 + $0x28] sm:$0xff] %v2742_v21   ;;  %3070 = vst [vmem:[%s3622_s4 + $0x128] sm:$0xff] %v2902_v22   ;;  %v2737_v29 = vpack.c.bf16 %v1452_v23, %v1451_v17  ;;  %v2897_v30 = vpack.c.bf16 %v1516_v24, %v1515_v18  ;;  %v981_v31 = vadd.f32 %v3607_v3, %v980_v27 }
  0xf5   : > { %v1237_v32 = vadd.f32 %v3607_v3, %v1236_v28  ;;  %v3185_v33 = vpop.f32.mrf.mxu0  ;;  %v3249_v34 = vpop.f32.mrf.mxu1  ;;  %v1457_v37 = vmax.f32 %v989_v25, 0.0  ;;  %v1521_v38 = vmax.f32 %v1245_v26, 0.0 }
  0xf6   : > { %3037 = vst [vmem:[%s3622_s4 + $0x20] sm:$0xff] %v2737_v29   ;;  %3069 = vst [vmem:[%s3622_s4 + $0x120] sm:$0xff] %v2897_v30   ;;  %v992_v35 = vadd.f32 %v3185_v33, %v3607_v3  ;;  %v1248_v36 = vadd.f32 %v3249_v34, %v3607_v3  ;;  %v1455_v45 = vmax.f32 %v981_v31, 0.0 }
  0xf7   : > { %v983_v39 = vpop.f32.mrf.mxu0  ;;  %v1239_v40 = vpop.f32.mrf.mxu1  ;;  %v1519_v46 = vmax.f32 %v1237_v32, 0.0 }
  0xf8   : > { %v1458_v41 = vmax.f32 %v992_v35, 0.0  ;;  %v1522_v42 = vmax.f32 %v1248_v36, 0.0  ;;  %v984_v43 = vadd.f32 %v3607_v3, %v983_v39  ;;  %v1240_v44 = vadd.f32 %v3607_v3, %v1239_v40 }
  0xf9   : > { %v3188_v47 = vpop.f32.mrf.mxu0  ;;  %v3252_v48 = vpop.f32.mrf.mxu1 }
  0xfa   : > { %v2752_v49 = vpack.c.bf16 %v1458_v41, %v1457_v37  ;;  %v2912_v50 = vpack.c.bf16 %v1522_v42, %v1521_v38  ;;  %v1456_v51 = vmax.f32 %v984_v43, 0.0  ;;  %v1520_v52 = vmax.f32 %v1240_v44, 0.0 }
  0xfb   : > { %v1005_v53 = vadd.f32 %v3188_v47, %v3607_v3  ;;  %v1261_v54 = vadd.f32 %v3252_v48, %v3607_v3  ;;  %v996_v55 = vpop.f32.mrf.mxu0  ;;  %v1252_v56 = vpop.f32.mrf.mxu1 }
  0xfc   : > { %3040 = vst [vmem:[%s3622_s4 + $0x38] sm:$0xff] %v2752_v49   ;;  %3072 = vst [vmem:[%s3622_s4 + $0x138] sm:$0xff] %v2912_v50   ;;  %v2747_v57 = vpack.c.bf16 %v1456_v51, %v1455_v45  ;;  %v2907_v58 = vpack.c.bf16 %v1520_v52, %v1519_v46  ;;  %v997_v59 = vadd.f32 %v3607_v3, %v996_v55 }
  0xfd   : > { %v1253_v60 = vadd.f32 %v3607_v3, %v1252_v56  ;;  %v3189_v61 = vpop.f32.mrf.mxu0  ;;  %v3253_v62 = vpop.f32.mrf.mxu1  ;;  %v1461_v1 = vmax.f32 %v1005_v53, 0.0  ;;  %v1525_v2 = vmax.f32 %v1261_v54, 0.0 }
  0xfe   : > { %3039 = vst [vmem:[%s3622_s4 + $0x30] sm:$0xff] %v2747_v57   ;;  %3071 = vst [vmem:[%s3622_s4 + $0x130] sm:$0xff] %v2907_v58   ;;  %v1008_v63 = vadd.f32 %v3189_v61, %v3607_v3  ;;  %v1264_v0 = vadd.f32 %v3253_v62, %v3607_v3  ;;  %v1459_v10 = vmax.f32 %v997_v59, 0.0 }
  0xff   : > { %v999_v4 = vpop.f32.mrf.mxu0  ;;  %v1255_v5 = vpop.f32.mrf.mxu1  ;;  %v1523_v11 = vmax.f32 %v1253_v60, 0.0 }
 0x100   : > { %v1462_v6 = vmax.f32 %v1008_v63, 0.0  ;;  %v1526_v7 = vmax.f32 %v1264_v0, 0.0  ;;  %v1000_v8 = vadd.f32 %v3607_v3, %v999_v4  ;;  %v1256_v9 = vadd.f32 %v3607_v3, %v1255_v5 }
 0x101   : > { %v3192_v12 = vpop.f32.mrf.mxu0  ;;  %v3256_v13 = vpop.f32.mrf.mxu1 }
 0x102   : > { %v2762_v14 = vpack.c.bf16 %v1462_v6, %v1461_v1  ;;  %v2922_v15 = vpack.c.bf16 %v1526_v7, %v1525_v2  ;;  %v1460_v16 = vmax.f32 %v1000_v8, 0.0  ;;  %v1524_v17 = vmax.f32 %v1256_v9, 0.0 }
 0x103   : > { %v1021_v18 = vadd.f32 %v3192_v12, %v3607_v3  ;;  %v1277_v19 = vadd.f32 %v3256_v13, %v3607_v3  ;;  %v1012_v20 = vpop.f32.mrf.mxu0  ;;  %v1268_v21 = vpop.f32.mrf.mxu1 }
 0x104   : > { %3042 = vst [vmem:[%s3622_s4 + $0x48] sm:$0xff] %v2762_v14   ;;  %3074 = vst [vmem:[%s3622_s4 + $0x148] sm:$0xff] %v2922_v15   ;;  %v2757_v22 = vpack.c.bf16 %v1460_v16, %v1459_v10  ;;  %v2917_v23 = vpack.c.bf16 %v1524_v17, %v1523_v11  ;;  %v1013_v24 = vadd.f32 %v3607_v3, %v1012_v20 }
 0x105   : > { %v1269_v25 = vadd.f32 %v3607_v3, %v1268_v21  ;;  %v3193_v26 = vpop.f32.mrf.mxu0  ;;  %v3257_v27 = vpop.f32.mrf.mxu1  ;;  %v1465_v30 = vmax.f32 %v1021_v18, 0.0  ;;  %v1529_v31 = vmax.f32 %v1277_v19, 0.0 }
 0x106   : > { %3041 = vst [vmem:[%s3622_s4 + $0x40] sm:$0xff] %v2757_v22   ;;  %3073 = vst [vmem:[%s3622_s4 + $0x140] sm:$0xff] %v2917_v23   ;;  %v1024_v28 = vadd.f32 %v3193_v26, %v3607_v3  ;;  %v1280_v29 = vadd.f32 %v3257_v27, %v3607_v3  ;;  %v1463_v38 = vmax.f32 %v1013_v24, 0.0 }
 0x107   : > { %v1015_v32 = vpop.f32.mrf.mxu0  ;;  %v1271_v33 = vpop.f32.mrf.mxu1  ;;  %v1527_v39 = vmax.f32 %v1269_v25, 0.0 }
 0x108   : > { %v1466_v34 = vmax.f32 %v1024_v28, 0.0  ;;  %v1530_v35 = vmax.f32 %v1280_v29, 0.0  ;;  %v1016_v36 = vadd.f32 %v3607_v3, %v1015_v32  ;;  %v1272_v37 = vadd.f32 %v3607_v3, %v1271_v33 }
 0x109   : > { %v3196_v40 = vpop.f32.mrf.mxu0  ;;  %v3260_v41 = vpop.f32.mrf.mxu1 }
 0x10a   : > { %v2772_v42 = vpack.c.bf16 %v1466_v34, %v1465_v30  ;;  %v2932_v43 = vpack.c.bf16 %v1530_v35, %v1529_v31  ;;  %v1464_v44 = vmax.f32 %v1016_v36, 0.0  ;;  %v1528_v45 = vmax.f32 %v1272_v37, 0.0 }
 0x10b   : > { %v1037_v46 = vadd.f32 %v3196_v40, %v3607_v3  ;;  %v1293_v47 = vadd.f32 %v3260_v41, %v3607_v3  ;;  %v1028_v48 = vpop.f32.mrf.mxu0  ;;  %v1284_v49 = vpop.f32.mrf.mxu1 }
 0x10c   : > { %3044 = vst [vmem:[%s3622_s4 + $0x58] sm:$0xff] %v2772_v42   ;;  %3076 = vst [vmem:[%s3622_s4 + $0x158] sm:$0xff] %v2932_v43   ;;  %v2767_v50 = vpack.c.bf16 %v1464_v44, %v1463_v38  ;;  %v2927_v51 = vpack.c.bf16 %v1528_v45, %v1527_v39  ;;  %v1029_v52 = vadd.f32 %v3607_v3, %v1028_v48 }
 0x10d   : > { %v1285_v53 = vadd.f32 %v3607_v3, %v1284_v49  ;;  %v3197_v54 = vpop.f32.mrf.mxu0  ;;  %v3261_v55 = vpop.f32.mrf.mxu1  ;;  %v1469_v58 = vmax.f32 %v1037_v46, 0.0  ;;  %v1533_v59 = vmax.f32 %v1293_v47, 0.0 }
 0x10e   : > { %3043 = vst [vmem:[%s3622_s4 + $0x50] sm:$0xff] %v2767_v50   ;;  %3075 = vst [vmem:[%s3622_s4 + $0x150] sm:$0xff] %v2927_v51   ;;  %v1040_v56 = vadd.f32 %v3197_v54, %v3607_v3  ;;  %v1296_v57 = vadd.f32 %v3261_v55, %v3607_v3  ;;  %v1467_v2 = vmax.f32 %v1029_v52, 0.0 }
 0x10f   : > { %v1031_v60 = vpop.f32.mrf.mxu0  ;;  %v1287_v61 = vpop.f32.mrf.mxu1  ;;  %v1531_v4 = vmax.f32 %v1285_v53, 0.0 }
 0x110   : > { %v1470_v62 = vmax.f32 %v1040_v56, 0.0  ;;  %v1534_v63 = vmax.f32 %v1296_v57, 0.0  ;;  %v1032_v0 = vadd.f32 %v3607_v3, %v1031_v60  ;;  %v1288_v1 = vadd.f32 %v3607_v3, %v1287_v61 }
 0x111   : > { %v3200_v5 = vpop.f32.mrf.mxu0  ;;  %v3264_v6 = vpop.f32.mrf.mxu1 }
 0x112   : > { %v2782_v7 = vpack.c.bf16 %v1470_v62, %v1469_v58  ;;  %v2942_v8 = vpack.c.bf16 %v1534_v63, %v1533_v59  ;;  %v1468_v9 = vmax.f32 %v1032_v0, 0.0  ;;  %v1532_v10 = vmax.f32 %v1288_v1, 0.0 }
 0x113   : > { %v1053_v11 = vadd.f32 %v3200_v5, %v3607_v3  ;;  %v1309_v12 = vadd.f32 %v3264_v6, %v3607_v3  ;;  %v1044_v13 = vpop.f32.mrf.mxu0  ;;  %v1300_v14 = vpop.f32.mrf.mxu1 }
 0x114   : > { %3046 = vst [vmem:[%s3622_s4 + $0x68] sm:$0xff] %v2782_v7   ;;  %3078 = vst [vmem:[%s3622_s4 + $0x168] sm:$0xff] %v2942_v8   ;;  %v2777_v15 = vpack.c.bf16 %v1468_v9, %v1467_v2  ;;  %v2937_v16 = vpack.c.bf16 %v1532_v10, %v1531_v4  ;;  %v1045_v17 = vadd.f32 %v3607_v3, %v1044_v13 }
 0x115   : > { %v1301_v18 = vadd.f32 %v3607_v3, %v1300_v14  ;;  %v3201_v19 = vpop.f32.mrf.mxu0  ;;  %v3265_v20 = vpop.f32.mrf.mxu1  ;;  %v1473_v23 = vmax.f32 %v1053_v11, 0.0  ;;  %v1537_v24 = vmax.f32 %v1309_v12, 0.0 }
 0x116   : > { %3045 = vst [vmem:[%s3622_s4 + $0x60] sm:$0xff] %v2777_v15   ;;  %3077 = vst [vmem:[%s3622_s4 + $0x160] sm:$0xff] %v2937_v16   ;;  %v1056_v21 = vadd.f32 %v3201_v19, %v3607_v3  ;;  %v1312_v22 = vadd.f32 %v3265_v20, %v3607_v3  ;;  %v1471_v31 = vmax.f32 %v1045_v17, 0.0 }
 0x117   : > { %v1047_v25 = vpop.f32.mrf.mxu0  ;;  %v1303_v26 = vpop.f32.mrf.mxu1  ;;  %v1535_v32 = vmax.f32 %v1301_v18, 0.0 }
 0x118   : > { %v1474_v27 = vmax.f32 %v1056_v21, 0.0  ;;  %v1538_v28 = vmax.f32 %v1312_v22, 0.0  ;;  %v1048_v29 = vadd.f32 %v3607_v3, %v1047_v25  ;;  %v1304_v30 = vadd.f32 %v3607_v3, %v1303_v26 }
 0x119   : > { %v3204_v33 = vpop.f32.mrf.mxu0  ;;  %v3268_v34 = vpop.f32.mrf.mxu1 }
 0x11a   : > { %v2792_v35 = vpack.c.bf16 %v1474_v27, %v1473_v23  ;;  %v2952_v36 = vpack.c.bf16 %v1538_v28, %v1537_v24  ;;  %v1472_v37 = vmax.f32 %v1048_v29, 0.0  ;;  %v1536_v38 = vmax.f32 %v1304_v30, 0.0 }
 0x11b   : > { %v1069_v39 = vadd.f32 %v3204_v33, %v3607_v3  ;;  %v1325_v40 = vadd.f32 %v3268_v34, %v3607_v3  ;;  %v1060_v41 = vpop.f32.mrf.mxu0  ;;  %v1316_v42 = vpop.f32.mrf.mxu1 }
 0x11c   : > { %3048 = vst [vmem:[%s3622_s4 + $0x78] sm:$0xff] %v2792_v35   ;;  %3080 = vst [vmem:[%s3622_s4 + $0x178] sm:$0xff] %v2952_v36   ;;  %v2787_v43 = vpack.c.bf16 %v1472_v37, %v1471_v31  ;;  %v2947_v44 = vpack.c.bf16 %v1536_v38, %v1535_v32  ;;  %v1061_v45 = vadd.f32 %v3607_v3, %v1060_v41 }
 0x11d   : > { %v1317_v46 = vadd.f32 %v3607_v3, %v1316_v42  ;;  %v3205_v47 = vpop.f32.mrf.mxu0  ;;  %v3269_v48 = vpop.f32.mrf.mxu1  ;;  %v1477_v51 = vmax.f32 %v1069_v39, 0.0  ;;  %v1541_v52 = vmax.f32 %v1325_v40, 0.0 }
 0x11e   : > { %3047 = vst [vmem:[%s3622_s4 + $0x70] sm:$0xff] %v2787_v43   ;;  %3079 = vst [vmem:[%s3622_s4 + $0x170] sm:$0xff] %v2947_v44   ;;  %v1072_v49 = vadd.f32 %v3205_v47, %v3607_v3  ;;  %v1328_v50 = vadd.f32 %v3269_v48, %v3607_v3  ;;  %v1475_v59 = vmax.f32 %v1061_v45, 0.0 }
 0x11f   : > { %v1063_v53 = vpop.f32.mrf.mxu0  ;;  %v1319_v54 = vpop.f32.mrf.mxu1  ;;  %v1539_v60 = vmax.f32 %v1317_v46, 0.0 }
 0x120   : > { %v1478_v55 = vmax.f32 %v1072_v49, 0.0  ;;  %v1542_v56 = vmax.f32 %v1328_v50, 0.0  ;;  %v1064_v57 = vadd.f32 %v3607_v3, %v1063_v53  ;;  %v1320_v58 = vadd.f32 %v3607_v3, %v1319_v54 }
 0x121   : > { %v3208_v61 = vpop.f32.mrf.mxu0  ;;  %v3272_v62 = vpop.f32.mrf.mxu1 }
 0x122   : > { %v2802_v63 = vpack.c.bf16 %v1478_v55, %v1477_v51  ;;  %v2962_v0 = vpack.c.bf16 %v1542_v56, %v1541_v52  ;;  %v1476_v1 = vmax.f32 %v1064_v57, 0.0  ;;  %v1540_v2 = vmax.f32 %v1320_v58, 0.0 }
 0x123   : > { %v1085_v4 = vadd.f32 %v3208_v61, %v3607_v3  ;;  %v1341_v5 = vadd.f32 %v3272_v62, %v3607_v3  ;;  %v1076_v6 = vpop.f32.mrf.mxu0  ;;  %v1332_v7 = vpop.f32.mrf.mxu1 }
 0x124   : > { %3050 = vst [vmem:[%s3622_s4 + $0x88] sm:$0xff] %v2802_v63   ;;  %3082 = vst [vmem:[%s3622_s4 + $0x188] sm:$0xff] %v2962_v0   ;;  %v2797_v8 = vpack.c.bf16 %v1476_v1, %v1475_v59  ;;  %v2957_v9 = vpack.c.bf16 %v1540_v2, %v1539_v60  ;;  %v1077_v10 = vadd.f32 %v3607_v3, %v1076_v6 }
 0x125   : > { %v1333_v11 = vadd.f32 %v3607_v3, %v1332_v7  ;;  %v3209_v12 = vpop.f32.mrf.mxu0  ;;  %v3273_v13 = vpop.f32.mrf.mxu1  ;;  %v1481_v16 = vmax.f32 %v1085_v4, 0.0  ;;  %v1545_v17 = vmax.f32 %v1341_v5, 0.0 }
 0x126   : > { %3049 = vst [vmem:[%s3622_s4 + $0x80] sm:$0xff] %v2797_v8   ;;  %3081 = vst [vmem:[%s3622_s4 + $0x180] sm:$0xff] %v2957_v9   ;;  %v1088_v14 = vadd.f32 %v3209_v12, %v3607_v3  ;;  %v1344_v15 = vadd.f32 %v3273_v13, %v3607_v3  ;;  %v1479_v24 = vmax.f32 %v1077_v10, 0.0 }
 0x127   : > { %v1079_v18 = vpop.f32.mrf.mxu0  ;;  %v1335_v19 = vpop.f32.mrf.mxu1  ;;  %v1543_v25 = vmax.f32 %v1333_v11, 0.0 }
 0x128   : > { %v1482_v20 = vmax.f32 %v1088_v14, 0.0  ;;  %v1546_v21 = vmax.f32 %v1344_v15, 0.0  ;;  %v1080_v22 = vadd.f32 %v3607_v3, %v1079_v18  ;;  %v1336_v23 = vadd.f32 %v3607_v3, %v1335_v19 }
 0x129   : > { %v3212_v26 = vpop.f32.mrf.mxu0  ;;  %v3276_v27 = vpop.f32.mrf.mxu1 }
 0x12a   : > { %v2812_v28 = vpack.c.bf16 %v1482_v20, %v1481_v16  ;;  %v2972_v29 = vpack.c.bf16 %v1546_v21, %v1545_v17  ;;  %v1480_v30 = vmax.f32 %v1080_v22, 0.0  ;;  %v1544_v31 = vmax.f32 %v1336_v23, 0.0 }
 0x12b   : > { %v1101_v32 = vadd.f32 %v3212_v26, %v3607_v3  ;;  %v1357_v33 = vadd.f32 %v3276_v27, %v3607_v3  ;;  %v1092_v34 = vpop.f32.mrf.mxu0  ;;  %v1348_v35 = vpop.f32.mrf.mxu1 }
 0x12c   : > { %3052 = vst [vmem:[%s3622_s4 + $0x98] sm:$0xff] %v2812_v28   ;;  %3084 = vst [vmem:[%s3622_s4 + $0x198] sm:$0xff] %v2972_v29   ;;  %v2807_v36 = vpack.c.bf16 %v1480_v30, %v1479_v24  ;;  %v2967_v37 = vpack.c.bf16 %v1544_v31, %v1543_v25  ;;  %v1093_v38 = vadd.f32 %v3607_v3, %v1092_v34 }
 0x12d   : > { %v1349_v39 = vadd.f32 %v3607_v3, %v1348_v35  ;;  %v3213_v40 = vpop.f32.mrf.mxu0  ;;  %v3277_v41 = vpop.f32.mrf.mxu1  ;;  %v1485_v44 = vmax.f32 %v1101_v32, 0.0  ;;  %v1549_v45 = vmax.f32 %v1357_v33, 0.0 }
 0x12e   : > { %3051 = vst [vmem:[%s3622_s4 + $0x90] sm:$0xff] %v2807_v36   ;;  %3083 = vst [vmem:[%s3622_s4 + $0x190] sm:$0xff] %v2967_v37   ;;  %v1104_v42 = vadd.f32 %v3213_v40, %v3607_v3  ;;  %v1360_v43 = vadd.f32 %v3277_v41, %v3607_v3  ;;  %v1483_v52 = vmax.f32 %v1093_v38, 0.0 }
 0x12f   : > { %v1095_v46 = vpop.f32.mrf.mxu0  ;;  %v1351_v47 = vpop.f32.mrf.mxu1  ;;  %v1547_v53 = vmax.f32 %v1349_v39, 0.0 }
 0x130   : > { %v1486_v48 = vmax.f32 %v1104_v42, 0.0  ;;  %v1550_v49 = vmax.f32 %v1360_v43, 0.0  ;;  %v1096_v50 = vadd.f32 %v3607_v3, %v1095_v46  ;;  %v1352_v51 = vadd.f32 %v3607_v3, %v1351_v47 }
 0x131   : > { %v3216_v54 = vpop.f32.mrf.mxu0  ;;  %v3280_v55 = vpop.f32.mrf.mxu1 }
 0x132   : > { %v2822_v56 = vpack.c.bf16 %v1486_v48, %v1485_v44  ;;  %v2982_v57 = vpack.c.bf16 %v1550_v49, %v1549_v45  ;;  %v1484_v58 = vmax.f32 %v1096_v50, 0.0  ;;  %v1548_v59 = vmax.f32 %v1352_v51, 0.0 }
 0x133   : > { %v1117_v60 = vadd.f32 %v3216_v54, %v3607_v3  ;;  %v1373_v61 = vadd.f32 %v3280_v55, %v3607_v3  ;;  %v1108_v62 = vpop.f32.mrf.mxu0  ;;  %v1364_v63 = vpop.f32.mrf.mxu1 }
 0x134   : > { %3054 = vst [vmem:[%s3622_s4 + $0xa8] sm:$0xff] %v2822_v56   ;;  %3086 = vst [vmem:[%s3622_s4 + $0x1a8] sm:$0xff] %v2982_v57   ;;  %v2817_v0 = vpack.c.bf16 %v1484_v58, %v1483_v52  ;;  %v2977_v1 = vpack.c.bf16 %v1548_v59, %v1547_v53  ;;  %v1109_v2 = vadd.f32 %v3607_v3, %v1108_v62 }
 0x135   : > { %v1365_v4 = vadd.f32 %v3607_v3, %v1364_v63  ;;  %v3217_v5 = vpop.f32.mrf.mxu0  ;;  %v3281_v6 = vpop.f32.mrf.mxu1  ;;  %v1489_v9 = vmax.f32 %v1117_v60, 0.0  ;;  %v1553_v10 = vmax.f32 %v1373_v61, 0.0 }
 0x136   : > { %3053 = vst [vmem:[%s3622_s4 + $0xa0] sm:$0xff] %v2817_v0   ;;  %3085 = vst [vmem:[%s3622_s4 + $0x1a0] sm:$0xff] %v2977_v1   ;;  %v1120_v7 = vadd.f32 %v3217_v5, %v3607_v3  ;;  %v1376_v8 = vadd.f32 %v3281_v6, %v3607_v3  ;;  %v1487_v17 = vmax.f32 %v1109_v2, 0.0 }
 0x137   : > { %v1111_v11 = vpop.f32.mrf.mxu0  ;;  %v1367_v12 = vpop.f32.mrf.mxu1  ;;  %v1551_v18 = vmax.f32 %v1365_v4, 0.0 }
 0x138   : > { %v1490_v13 = vmax.f32 %v1120_v7, 0.0  ;;  %v1554_v14 = vmax.f32 %v1376_v8, 0.0  ;;  %v1112_v15 = vadd.f32 %v3607_v3, %v1111_v11  ;;  %v1368_v16 = vadd.f32 %v3607_v3, %v1367_v12 }
 0x139   : > { %v3220_v19 = vpop.f32.mrf.mxu0  ;;  %v3284_v20 = vpop.f32.mrf.mxu1 }
 0x13a   : > { %v2832_v21 = vpack.c.bf16 %v1490_v13, %v1489_v9  ;;  %v2992_v22 = vpack.c.bf16 %v1554_v14, %v1553_v10  ;;  %v1488_v23 = vmax.f32 %v1112_v15, 0.0  ;;  %v1552_v24 = vmax.f32 %v1368_v16, 0.0 }
 0x13b   : > { %v1133_v25 = vadd.f32 %v3220_v19, %v3607_v3  ;;  %v1389_v26 = vadd.f32 %v3284_v20, %v3607_v3  ;;  %v1124_v27 = vpop.f32.mrf.mxu0  ;;  %v1380_v28 = vpop.f32.mrf.mxu1 }
 0x13c   : > { %3056 = vst [vmem:[%s3622_s4 + $0xb8] sm:$0xff] %v2832_v21   ;;  %3088 = vst [vmem:[%s3622_s4 + $0x1b8] sm:$0xff] %v2992_v22   ;;  %v2827_v29 = vpack.c.bf16 %v1488_v23, %v1487_v17  ;;  %v2987_v30 = vpack.c.bf16 %v1552_v24, %v1551_v18  ;;  %v1125_v31 = vadd.f32 %v3607_v3, %v1124_v27 }
 0x13d   : > { %v1381_v32 = vadd.f32 %v3607_v3, %v1380_v28  ;;  %v3221_v33 = vpop.f32.mrf.mxu0  ;;  %v3285_v34 = vpop.f32.mrf.mxu1  ;;  %v1493_v37 = vmax.f32 %v1133_v25, 0.0  ;;  %v1557_v38 = vmax.f32 %v1389_v26, 0.0 }
 0x13e   : > { %3055 = vst [vmem:[%s3622_s4 + $0xb0] sm:$0xff] %v2827_v29   ;;  %3087 = vst [vmem:[%s3622_s4 + $0x1b0] sm:$0xff] %v2987_v30   ;;  %v1136_v35 = vadd.f32 %v3221_v33, %v3607_v3  ;;  %v1392_v36 = vadd.f32 %v3285_v34, %v3607_v3  ;;  %v1491_v45 = vmax.f32 %v1125_v31, 0.0 }
 0x13f   : > { %v1127_v39 = vpop.f32.mrf.mxu0  ;;  %v1383_v40 = vpop.f32.mrf.mxu1  ;;  %v1555_v46 = vmax.f32 %v1381_v32, 0.0 }
 0x140   : > { %v1494_v41 = vmax.f32 %v1136_v35, 0.0  ;;  %v1558_v42 = vmax.f32 %v1392_v36, 0.0  ;;  %v1128_v43 = vadd.f32 %v3607_v3, %v1127_v39  ;;  %v1384_v44 = vadd.f32 %v3607_v3, %v1383_v40 }
 0x141   : > { %v3224_v47 = vpop.f32.mrf.mxu0  ;;  %v3288_v48 = vpop.f32.mrf.mxu1 }
 0x142   : > { %v2842_v49 = vpack.c.bf16 %v1494_v41, %v1493_v37  ;;  %v3002_v50 = vpack.c.bf16 %v1558_v42, %v1557_v38  ;;  %v1492_v51 = vmax.f32 %v1128_v43, 0.0  ;;  %v1556_v52 = vmax.f32 %v1384_v44, 0.0 }
 0x143   : > { %v1149_v53 = vadd.f32 %v3224_v47, %v3607_v3  ;;  %v1405_v54 = vadd.f32 %v3288_v48, %v3607_v3  ;;  %v1140_v55 = vpop.f32.mrf.mxu0  ;;  %v1396_v56 = vpop.f32.mrf.mxu1 }
 0x144   : > { %3058 = vst [vmem:[%s3622_s4 + $0xc8] sm:$0xff] %v2842_v49   ;;  %3090 = vst [vmem:[%s3622_s4 + $0x1c8] sm:$0xff] %v3002_v50   ;;  %v2837_v57 = vpack.c.bf16 %v1492_v51, %v1491_v45  ;;  %v2997_v58 = vpack.c.bf16 %v1556_v52, %v1555_v46  ;;  %v1141_v59 = vadd.f32 %v3607_v3, %v1140_v55 }
 0x145   : > { %v1397_v60 = vadd.f32 %v3607_v3, %v1396_v56  ;;  %v3225_v61 = vpop.f32.mrf.mxu0  ;;  %v3289_v62 = vpop.f32.mrf.mxu1  ;;  %v1497_v1 = vmax.f32 %v1149_v53, 0.0  ;;  %v1561_v2 = vmax.f32 %v1405_v54, 0.0 }
 0x146   : > { %3057 = vst [vmem:[%s3622_s4 + $0xc0] sm:$0xff] %v2837_v57   ;;  %3089 = vst [vmem:[%s3622_s4 + $0x1c0] sm:$0xff] %v2997_v58   ;;  %v1152_v63 = vadd.f32 %v3225_v61, %v3607_v3  ;;  %v1408_v0 = vadd.f32 %v3289_v62, %v3607_v3  ;;  %v1495_v10 = vmax.f32 %v1141_v59, 0.0 }
 0x147   : > { %v1143_v4 = vpop.f32.mrf.mxu0  ;;  %v1399_v5 = vpop.f32.mrf.mxu1  ;;  %v1559_v11 = vmax.f32 %v1397_v60, 0.0 }
 0x148   : > { %v1498_v6 = vmax.f32 %v1152_v63, 0.0  ;;  %v1562_v7 = vmax.f32 %v1408_v0, 0.0  ;;  %v1144_v8 = vadd.f32 %v3607_v3, %v1143_v4  ;;  %v1400_v9 = vadd.f32 %v3607_v3, %v1399_v5 }
 0x149   : > { %v3228_v12 = vpop.f32.mrf.mxu0  ;;  %v3292_v13 = vpop.f32.mrf.mxu1 }
 0x14a   : > { %v2852_v14 = vpack.c.bf16 %v1498_v6, %v1497_v1  ;;  %v3012_v15 = vpack.c.bf16 %v1562_v7, %v1561_v2  ;;  %v1496_v16 = vmax.f32 %v1144_v8, 0.0  ;;  %v1560_v17 = vmax.f32 %v1400_v9, 0.0 }
 0x14b   : > { %v1165_v18 = vadd.f32 %v3228_v12, %v3607_v3  ;;  %v1421_v19 = vadd.f32 %v3292_v13, %v3607_v3  ;;  %v1156_v20 = vpop.f32.mrf.mxu0  ;;  %v1412_v21 = vpop.f32.mrf.mxu1 }
 0x14c   : > { %3060 = vst [vmem:[%s3622_s4 + $0xd8] sm:$0xff] %v2852_v14   ;;  %3092 = vst [vmem:[%s3622_s4 + $0x1d8] sm:$0xff] %v3012_v15   ;;  %v2847_v22 = vpack.c.bf16 %v1496_v16, %v1495_v10  ;;  %v3007_v23 = vpack.c.bf16 %v1560_v17, %v1559_v11  ;;  %v1157_v24 = vadd.f32 %v3607_v3, %v1156_v20 }
 0x14d   : > { %v1413_v25 = vadd.f32 %v3607_v3, %v1412_v21  ;;  %v3229_v26 = vpop.f32.mrf.mxu0  ;;  %v3293_v27 = vpop.f32.mrf.mxu1  ;;  %v1501_v30 = vmax.f32 %v1165_v18, 0.0  ;;  %v1565_v31 = vmax.f32 %v1421_v19, 0.0 }
 0x14e   : > { %3059 = vst [vmem:[%s3622_s4 + $0xd0] sm:$0xff] %v2847_v22   ;;  %3091 = vst [vmem:[%s3622_s4 + $0x1d0] sm:$0xff] %v3007_v23   ;;  %v1168_v28 = vadd.f32 %v3229_v26, %v3607_v3  ;;  %v1424_v29 = vadd.f32 %v3293_v27, %v3607_v3  ;;  %v1499_v38 = vmax.f32 %v1157_v24, 0.0 }
 0x14f   : > { %v1159_v32 = vpop.f32.mrf.mxu0  ;;  %v1415_v33 = vpop.f32.mrf.mxu1  ;;  %v1563_v39 = vmax.f32 %v1413_v25, 0.0 }
 0x150   : > { %v1502_v34 = vmax.f32 %v1168_v28, 0.0  ;;  %v1566_v35 = vmax.f32 %v1424_v29, 0.0  ;;  %v1160_v36 = vadd.f32 %v3607_v3, %v1159_v32  ;;  %v1416_v37 = vadd.f32 %v3607_v3, %v1415_v33 }
 0x151   : > { %v3232_v40 = vpop.f32.mrf.mxu0  ;;  %v3296_v41 = vpop.f32.mrf.mxu1 }
 0x152   : > { %v2862_v42 = vpack.c.bf16 %v1502_v34, %v1501_v30  ;;  %v3022_v43 = vpack.c.bf16 %v1566_v35, %v1565_v31  ;;  %v1500_v44 = vmax.f32 %v1160_v36, 0.0  ;;  %v1564_v45 = vmax.f32 %v1416_v37, 0.0 }
 0x153   : > { %v1181_v46 = vadd.f32 %v3232_v40, %v3607_v3  ;;  %v1437_v47 = vadd.f32 %v3296_v41, %v3607_v3  ;;  %v1172_v48 = vpop.f32.mrf.mxu0  ;;  %v1428_v49 = vpop.f32.mrf.mxu1 }
 0x154   : > { %3062 = vst [vmem:[%s3622_s4 + $0xe8] sm:$0xff] %v2862_v42   ;;  %3094 = vst [vmem:[%s3622_s4 + $0x1e8] sm:$0xff] %v3022_v43   ;;  %v2857_v50 = vpack.c.bf16 %v1500_v44, %v1499_v38  ;;  %v3017_v51 = vpack.c.bf16 %v1564_v45, %v1563_v39  ;;  %v1173_v52 = vadd.f32 %v3607_v3, %v1172_v48 }
 0x155   : > { %v1429_v53 = vadd.f32 %v3607_v3, %v1428_v49  ;;  %v3233_v54 = vpop.f32.mrf.mxu0  ;;  %v3297_v55 = vpop.f32.mrf.mxu1  ;;  %v1505_v58 = vmax.f32 %v1181_v46, 0.0  ;;  %v1569_v59 = vmax.f32 %v1437_v47, 0.0 }
 0x156   : > { %3061 = vst [vmem:[%s3622_s4 + $0xe0] sm:$0xff] %v2857_v50   ;;  %3093 = vst [vmem:[%s3622_s4 + $0x1e0] sm:$0xff] %v3017_v51   ;;  %v1184_v56 = vadd.f32 %v3233_v54, %v3607_v3  ;;  %v1440_v57 = vadd.f32 %v3297_v55, %v3607_v3  ;;  %v1503_v2 = vmax.f32 %v1173_v52, 0.0 }
 0x157   : > { %v1175_v60 = vpop.f32.mrf.mxu0  ;;  %v1431_v61 = vpop.f32.mrf.mxu1  ;;  %v1567_v4 = vmax.f32 %v1429_v53, 0.0 }
 0x158   : > { %v1506_v62 = vmax.f32 %v1184_v56, 0.0  ;;  %v1570_v63 = vmax.f32 %v1440_v57, 0.0  ;;  %v1176_v0 = vadd.f32 %v3607_v3, %v1175_v60  ;;  %v1432_v1 = vadd.f32 %v3607_v3, %v1431_v61 }
 0x15a   : > { %v2872_v5 = vpack.c.bf16 %v1506_v62, %v1505_v58  ;;  %v3032_v6 = vpack.c.bf16 %v1570_v63, %v1569_v59  ;;  %v1504_v7 = vmax.f32 %v1176_v0, 0.0  ;;  %v1568_v8 = vmax.f32 %v1432_v1, 0.0 }
 0x15c   : > { %3064 = vst [vmem:[%s3622_s4 + $0xf8] sm:$0xff] %v2872_v5   ;;  %3096 = vst [vmem:[%s3622_s4 + $0x1f8] sm:$0xff] %v3032_v6   ;;  %v2867_v9 = vpack.c.bf16 %v1504_v7, %v1503_v2  ;;  %v3027_v10 = vpack.c.bf16 %v1568_v8, %v1567_v4 }
 0x15e   : > { %3063 = vst [vmem:[%s3622_s4 + $0xf0] sm:$0xff] %v2867_v9   ;;  %3095 = vst [vmem:[%s3622_s4 + $0x1f0] sm:$0xff] %v3027_v10  }
 0x15f PF: > { %s13_s14 = sadd.s32 1, %s3417_s14   ;;  %s3821_s12 = smov %s3413_s13 }
 0x160   : > { %p10_p5 = scmp.ge.s32.totalorder %s13_s14, 4   ;;  %s3822_s13 = smov %s3824_s15 }
 0x162   :  { %12 = sbr.rel (!%p10_p5) target bundleno = 2 (0x2), region = 68 }

// kernel: encoder_forward.5
= control target key start
LH: loop header
LB: loop body
LE: loop exit
PB: predicated region body
PF: predicated region fallthrough
CT: control target
= control target key end

     0   :  { %s3401_s12 = smov 0   ;;  %s3403_s13 = smov 0   ;;  %s3914_s0 = inlined_call_operand.vmem [shape: bf16[512,1024], index: 0, kind: input, shape index: {}]   ;;  %s3915_s1 = inlined_call_operand.vmem [shape: bf16[1024,128], index: 1, kind: input, shape index: {}]   ;;  %s3916_s2 = inlined_call_operand.vmem [shape: f32[1,128], index: 2, kind: input, shape index: {}]   ;;  %s3917_s3 = inlined_call_operand.vmem [shape: bf16[512,128], index: 3, kind: output, shape index: {}]  }
   0x1   :  { %s3405_s14 = smov 0  }
   0x2 LB: > { %s25_s15 = sadd.s32 1, %s3375_s13  ;;  %p2460_p0 = scmp.ge.s32.totalorder %s3379_s14, 1  ;;  %s3379_s14 = sphi %s3405_s14, %s13_s14   ;;  %s3375_s13 = sphi %s3403_s13, %s3919_s13   ;;  %s3371_s12 = sphi %s3401_s12, %s3918_s12  }
   0x3   : > { %p27_p1 = scmp.ge.s32.totalorder %s25_s15, 2  ;;  %p170_p2 = scmp.lt.s32.totalorder %s3379_s14, 3 }
   0x5   : > { %s3921_s15 = smov (%p27_p1, %s25_s15), 0  ;;  %p171_p3 = pnand %p2460_p0, %p170_p2 }
   0x6   : > { %s2461_s25 = sshll.u32 (!%p171_p3), %s3371_s12, 5 }
   0x7   : > { %174 = sbr.rel (%p171_p3) target bundleno = 504 (0x1f8), region = 32  ;;  %p206_p4 = scmp.lt.s32.totalorder (!%p171_p3), %s2461_s25, 63 }
   0xc   : > { %v3293_v0 = vld [vmem:[%s3915_s1 + $0x78] sm:$0xff]   ;;  %v3297_v4 = vld [vmem:[%s3915_s1 + $0x70] sm:$0xff]   ;;  %v3301_v8 = vld [vmem:[%s3915_s1 + $0x68] sm:$0xff]   ;;  %s3923_s25 = smov (!%p206_p4, %s2461_s25), 63 }
   0xd   : > { %v3294_v1 = vld [vmem:[%s3915_s1 + $0xf8] sm:$0xff]   ;;  %2821 = vmatprep.subr.bf16.mxu0 %v3293_v0  ;;  %v3298_v5 = vld [vmem:[%s3915_s1 + $0xf0] sm:$0xff]   ;;  %v3302_v9 = vld [vmem:[%s3915_s1 + $0xe8] sm:$0xff]   ;;  %s2693_s24 = sshll.u32 %s3923_s25, 5 }
   0xe   : > { %v3295_v2 = vld [vmem:[%s3915_s1 + $0x38] sm:$0xff]   ;;  %2933 = vmatprep.subr.bf16.mxu1 %v3294_v1  ;;  %v3299_v6 = vld [vmem:[%s3915_s1 + $0x30] sm:$0xff]   ;;  %v3303_v10 = vld [vmem:[%s3915_s1 + $0x28] sm:$0xff]   ;;  %s3518_s12 = scalar_lea.vmem %s3914_s0, %s2693_s24 }
   0xf   : > { %v3296_v3 = vld [vmem:[%s3915_s1 + $0xb8] sm:$0xff]   ;;  %2822 = vmatpush3.bf16.msra.mxu0 %v3295_v2  ;;  %v3300_v7 = vld [vmem:[%s3915_s1 + $0xb0] sm:$0xff]   ;;  %v3304_v11 = vld [vmem:[%s3915_s1 + $0xa8] sm:$0xff]  }
  0x10   : > { %2934 = vmatpush3.bf16.msra.mxu1 %v3296_v3  ;;  %2823 = vmatprep.subr.bf16.mxu0 %v3297_v4  ;;  %v3305_v12 = vld [vmem:[%s3915_s1 + $0x60] sm:$0xff]   ;;  %v3309_v16 = vld [vmem:[%s3915_s1 + $0x58] sm:$0xff]   ;;  %v3313_v20 = vld [vmem:[%s3915_s1 + $0x50] sm:$0xff]  }
  0x11   : > { %2935 = vmatprep.subr.bf16.mxu1 %v3298_v5  ;;  %v3306_v13 = vld [vmem:[%s3915_s1 + $0xe0] sm:$0xff]   ;;  %v3310_v17 = vld [vmem:[%s3915_s1 + $0xd8] sm:$0xff]   ;;  %v3314_v21 = vld [vmem:[%s3915_s1 + $0xd0] sm:$0xff]  }
  0x12   : > { %v3307_v14 = vld [vmem:[%s3915_s1 + $0x20] sm:$0xff]   ;;  %v3311_v18 = vld [vmem:[%s3915_s1 + $0x18] sm:$0xff]   ;;  %v3315_v22 = vld [vmem:[%s3915_s1 + $0x10] sm:$0xff]  }
  0x13   : > { %2824 = vmatpush3.bf16.msra.mxu0 %v3299_v6  ;;  %v3308_v15 = vld [vmem:[%s3915_s1 + $0xa0] sm:$0xff]   ;;  %v3312_v19 = vld [vmem:[%s3915_s1 + $0x98] sm:$0xff]   ;;  %v3316_v23 = vld [vmem:[%s3915_s1 + $0x90] sm:$0xff]  }
  0x14   : > { %2936 = vmatpush3.bf16.msra.mxu1 %v3300_v7  ;;  %2825 = vmatprep.subr.bf16.mxu0 %v3301_v8  ;;  %v3317_v24 = vld [vmem:[%s3915_s1 + $0x48] sm:$0xff]   ;;  %v3321_v28 = vld [vmem:[%s3915_s1 + $0x40] sm:$0xff]   ;;  %v3325_v40 = vld [vmem:[%s3915_s1 + $0x178] sm:$0xff]  }
  0x15   : > { %2937 = vmatprep.subr.bf16.mxu1 %v3302_v9  ;;  %v3318_v25 = vld [vmem:[%s3915_s1 + $0xc8] sm:$0xff]   ;;  %v3322_v29 = vld [vmem:[%s3915_s1 + $0xc0] sm:$0xff]   ;;  %v3326_v41 = vld [vmem:[%s3915_s1 + $0x138] sm:$0xff]  }
  0x16   : > { %v3319_v26 = vld [vmem:[%s3915_s1 + $0x8] sm:$0xff]   ;;  %v3323_v30 = vld [vmem:[%s3915_s1] sm:$0xff]   ;;  %v3327_v42 = vld [vmem:[%s3915_s1 + $0x1f8] sm:$0xff]  }
  0x17   : > { %2826 = vmatpush3.bf16.msra.mxu0 %v3303_v10  ;;  %v3320_v27 = vld [vmem:[%s3915_s1 + $0x88] sm:$0xff]   ;;  %v3324_v31 = vld [vmem:[%s3915_s1 + $0x80] sm:$0xff]   ;;  %v3328_v43 = vld [vmem:[%s3915_s1 + $0x1b8] sm:$0xff]  }
  0x18   : > { %2938 = vmatpush3.bf16.msra.mxu1 %v3304_v11  ;;  %2827 = vmatprep.subr.bf16.mxu0 %v3305_v12  ;;  %v229_v32 = vld [vmem:[%s3518_s12] sm:$0xff]  ;;  %v230_v34 = vld [vmem:[%s3518_s12 + $0x8] sm:$0xff]  ;;  %v3329_v55 = vld [vmem:[%s3915_s1 + $0x170] sm:$0xff]  }
  0x19   : > { %2939 = vmatprep.subr.bf16.mxu1 %v3306_v13  ;;  %v233_v33 = vld [vmem:[%s3518_s12 + $0x20] sm:$0xff]  ;;  %v234_v37 = vld [vmem:[%s3518_s12 + $0x28] sm:$0xff]  ;;  %v3330_v58 = vld [vmem:[%s3915_s1 + $0x130] sm:$0xff]  }
  0x1a   : > { %v2467_v35 = vcombine.low %v229_v32, %v233_v33  ;;  %v2468_v36 = vcombine.high %v229_v32, %v233_v33  ;;  %v2469_v38 = vcombine.low %v230_v34, %v234_v37  ;;  %v2470_v39 = vcombine.high %v230_v34, %v234_v37  ;;  %v237_v44 = vld [vmem:[%s3518_s12 + $0x40] sm:$0xff]  ;;  %v238_v47 = vld [vmem:[%s3518_s12 + $0x48] sm:$0xff]  ;;  %v3331_v60 = vld [vmem:[%s3915_s1 + $0x1f0] sm:$0xff]  }
  0x1b   : > { %2828 = vmatpush3.bf16.msra.mxu0 %v3307_v14  ;;  %v241_v45 = vld [vmem:[%s3518_s12 + $0x60] sm:$0xff]  ;;  %v242_v48 = vld [vmem:[%s3518_s12 + $0x68] sm:$0xff]  ;;  %v3332_v61 = vld [vmem:[%s3915_s1 + $0x1b0] sm:$0xff]  }
  0x1c   : > { %2940 = vmatpush3.bf16.msra.mxu1 %v3308_v15  ;;  %2829 = vmatprep.subr.bf16.mxu0 %v3309_v16  ;;  %v2476_v46 = vcombine.high %v237_v44, %v241_v45  ;;  %v245_v49 = vld [vmem:[%s3518_s12 + $0x80] sm:$0xff]  ;;  %v2478_v50 = vcombine.high %v238_v47, %v242_v48  ;;  %v246_v52 = vld [vmem:[%s3518_s12 + $0x88] sm:$0xff]  ;;  %v2475_v54 = vcombine.low %v237_v44, %v241_v45  ;;  %v3345_v34 = vld [vmem:[%s3915_s1 + $0x150] sm:$0xff]  }
  0x1d   : > { %2941 = vmatprep.subr.bf16.mxu1 %v3310_v17  ;;  %1548 = vmatprep.mubr.bf16.mxu0 %v2468_v36  ;;  %v249_v51 = vld [vmem:[%s3518_s12 + $0xa0] sm:$0xff]  ;;  %v250_v53 = vld [vmem:[%s3518_s12 + $0xa8] sm:$0xff]  ;;  %v2477_v56 = vcombine.low %v238_v47, %v242_v48  ;;  %v3346_v36 = vld [vmem:[%s3915_s1 + $0x110] sm:$0xff]  }
  0x1e   : > { %1709 = vmatprep.mubr.bf16.mxu1 %v2470_v39  ;;  %v2484_v57 = vcombine.high %v245_v49, %v249_v51  ;;  %v2486_v59 = vcombine.high %v246_v52, %v250_v53  ;;  %v253_v62 = vld [vmem:[%s3518_s12 + $0xc0] sm:$0xff]  ;;  %v254_v0 = vld [vmem:[%s3518_s12 + $0xc8] sm:$0xff]  ;;  %v2483_v3 = vcombine.low %v245_v49, %v249_v51  ;;  %v2485_v5 = vcombine.low %v246_v52, %v250_v53  ;;  %v3347_v37 = vld [vmem:[%s3915_s1 + $0x1d0] sm:$0xff]  }
  0x1f   : > { %2830 = vmatpush3.bf16.msra.mxu0 %v3311_v18  ;;  %v257_v63 = vld [vmem:[%s3518_s12 + $0xe0] sm:$0xff]  ;;  %v258_v1 = vld [vmem:[%s3518_s12 + $0xe8] sm:$0xff]  ;;  %v3348_v39 = vld [vmem:[%s3915_s1 + $0x190] sm:$0xff]  }
  0x20   : > { %2942 = vmatpush3.bf16.msra.mxu1 %v3312_v19  ;;  %2831 = vmatprep.subr.bf16.mxu0 %v3313_v20  ;;  %v3333_v2 = vld [vmem:[%s3915_s1 + $0x168] sm:$0xff]   ;;  %v2492_v6 = vcombine.high %v253_v62, %v257_v63  ;;  %v2494_v8 = vcombine.high %v254_v0, %v258_v1  ;;  %v261_v10 = vld [vmem:[%s3518_s12 + $0x100] sm:$0xff]  ;;  %v2491_v16 = vcombine.low %v253_v62, %v257_v63 }
  0x21   : > { %2943 = vmatprep.subr.bf16.mxu1 %v3314_v21  ;;  %v3334_v4 = vld [vmem:[%s3915_s1 + $0x128] sm:$0xff]   ;;  %v265_v11 = vld [vmem:[%s3518_s12 + $0x120] sm:$0xff]  ;;  %v2493_v18 = vcombine.low %v254_v0, %v258_v1 }
  0x22   : > { %v3335_v7 = vld [vmem:[%s3915_s1 + $0x1e8] sm:$0xff]   ;;  %v3337_v14 = vld [vmem:[%s3915_s1 + $0x160] sm:$0xff]   ;;  %v2500_v19 = vcombine.high %v261_v10, %v265_v11 }
  0x23   : > { %2832 = vmatpush3.bf16.msra.mxu0 %v3315_v22  ;;  %v3336_v9 = vld [vmem:[%s3915_s1 + $0x1a8] sm:$0xff]   ;;  %v3338_v15 = vld [vmem:[%s3915_s1 + $0x120] sm:$0xff]  }
  0x24   : > { %2944 = vmatpush3.bf16.msra.mxu1 %v3316_v23  ;;  %2833 = vmatprep.subr.bf16.mxu0 %v3317_v24  ;;  %v262_v12 = vld [vmem:[%s3518_s12 + $0x108] sm:$0xff]  ;;  %v3339_v17 = vld [vmem:[%s3915_s1 + $0x1e0] sm:$0xff]   ;;  %v3341_v24 = vld [vmem:[%s3915_s1 + $0x158] sm:$0xff]  }
  0x25   : > { %2945 = vmatprep.subr.bf16.mxu1 %v3318_v25  ;;  %v266_v13 = vld [vmem:[%s3518_s12 + $0x128] sm:$0xff]  ;;  %v3340_v20 = vld [vmem:[%s3915_s1 + $0x1a0] sm:$0xff]  }
  0x26   : > { %v2502_v21 = vcombine.high %v262_v12, %v266_v13  ;;  %v269_v22 = vld [vmem:[%s3518_s12 + $0x140] sm:$0xff]  ;;  %v270_v25 = vld [vmem:[%s3518_s12 + $0x148] sm:$0xff] }
  0x27   : > { %2834 = vmatpush3.bf16.msra.mxu0 %v3319_v26  ;;  %v273_v23 = vld [vmem:[%s3518_s12 + $0x160] sm:$0xff]  ;;  %v274_v26 = vld [vmem:[%s3518_s12 + $0x168] sm:$0xff] }
  0x28   : > { %2946 = vmatpush3.bf16.msra.mxu1 %v3320_v27  ;;  %2835 = vmatprep.subr.bf16.mxu0 %v3321_v28  ;;  %v3342_v27 = vld [vmem:[%s3915_s1 + $0x118] sm:$0xff]   ;;  %v2508_v32 = vcombine.high %v269_v22, %v273_v23  ;;  %v2510_v33 = vcombine.high %v270_v25, %v274_v26  ;;  %v3350_v47 = vld [vmem:[%s3915_s1 + $0x108] sm:$0xff]   ;;  %v289_v51 = vld [vmem:[%s3518_s12 + $0x1e0] sm:$0xff] }
  0x29   : > { %2947 = vmatprep.subr.bf16.mxu1 %v3322_v29  ;;  %v3343_v28 = vld [vmem:[%s3915_s1 + $0x1d8] sm:$0xff]   ;;  %v3351_v48 = vld [vmem:[%s3915_s1 + $0x1c8] sm:$0xff]   ;;  %v293_v62 = vld [vmem:[%s3518_s12 + $0x200] sm:$0xff] }
  0x2a   : > { %v3344_v29 = vld [vmem:[%s3915_s1 + $0x198] sm:$0xff]   ;;  %v3352_v49 = vld [vmem:[%s3915_s1 + $0x188] sm:$0xff]   ;;  %v297_v63 = vld [vmem:[%s3518_s12 + $0x220] sm:$0xff] }
  0x2b   : > { %2836 = vmatpush3.bf16.msra.mxu0 %v3323_v30  ;;  %v2499_v30 = vcombine.low %v261_v10, %v265_v11  ;;  %v286_v52 = vld [vmem:[%s3518_s12 + $0x1c8] sm:$0xff]  ;;  %v2531_v10 = vcombine.low %v293_v62, %v297_v63 }
  0x2c   : > { %2948 = vmatpush3.bf16.msra.mxu1 %v3324_v31  ;;  %3045 = vmatprep.subr.bf16.mxu0 %v3325_v40  ;;  %v2501_v31 = vcombine.low %v262_v12, %v266_v13  ;;  %v278_v40 = vld [vmem:[%s3518_s12 + $0x188] sm:$0xff] }
  0x2d   : > { %3157 = vmatprep.subr.bf16.mxu1 %v3327_v42  ;;  %v2507_v42 = vcombine.low %v269_v22, %v273_v23  ;;  %v290_v53 = vld [vmem:[%s3518_s12 + $0x1e8] sm:$0xff]  ;;  %v317_v22 = vld [vmem:[%s3518_s12 + $0x2c0] sm:$0xff] }
  0x2e   : > { %1549 = vmatmul.mubr.bf16.vlgmr.msra.gmra.mxu0 %v2467_v35  ;;  %v277_v35 = vld [vmem:[%s3518_s12 + $0x180] sm:$0xff]  ;;  %v294_v0 = vld [vmem:[%s3518_s12 + $0x208] sm:$0xff] }
  0x2f   : > { %1710 = vmatmul.mubr.bf16.vlgmr.msra.gmra.mxu1 %v2469_v38  ;;  %3046 = vmatpush3.bf16.msra.mxu0 %v3326_v41  ;;  %v281_v38 = vld [vmem:[%s3518_s12 + $0x1a0] sm:$0xff]  ;;  %v282_v41 = vld [vmem:[%s3518_s12 + $0x1a8] sm:$0xff] }
  0x30   : > { %3158 = vmatpush3.bf16.msra.mxu1 %v3328_v43  ;;  %1556 = vmatprep.mubr.bf16.mxu0 %v2476_v46  ;;  %v2509_v43 = vcombine.low %v270_v25, %v274_v26  ;;  %v2516_v44 = vcombine.high %v277_v35, %v281_v38  ;;  %v2518_v45 = vcombine.high %v278_v40, %v282_v41  ;;  %v3349_v46 = vld [vmem:[%s3915_s1 + $0x148] sm:$0xff]   ;;  %v321_v23 = vld [vmem:[%s3518_s12 + $0x2e0] sm:$0xff] }
  0x31   : > { %1717 = vmatprep.mubr.bf16.mxu1 %v2478_v50  ;;  %3047 = vmatprep.subr.bf16.mxu0 %v3329_v55  ;;  %v285_v50 = vld [vmem:[%s3518_s12 + $0x1c0] sm:$0xff]  ;;  %v298_v1 = vld [vmem:[%s3518_s12 + $0x228] sm:$0xff] }
  0x32   : > { %3159 = vmatprep.subr.bf16.mxu1 %v3331_v60  ;;  %v3353_v55 = vld [vmem:[%s3915_s1 + $0x140] sm:$0xff]   ;;  %v2533_v11 = vcombine.low %v294_v0, %v298_v1  ;;  %v322_v25 = vld [vmem:[%s3518_s12 + $0x2e8] sm:$0xff] }
  0x33   : > { %3048 = vmatpush3.bf16.msra.mxu0 %v3330_v58  ;;  %v3354_v58 = vld [vmem:[%s3915_s1 + $0x100] sm:$0xff]  }
  0x34   : > { %3160 = vmatpush3.bf16.msra.mxu1 %v3332_v61  ;;  %3049 = vmatprep.subr.bf16.mxu0 %v3333_v2  ;;  %v3355_v60 = vld [vmem:[%s3915_s1 + $0x1c0] sm:$0xff]   ;;  %v2523_v2 = vcombine.low %v285_v50, %v289_v51 }
  0x35   : > { %3161 = vmatprep.subr.bf16.mxu1 %v3335_v7  ;;  %v3356_v61 = vld [vmem:[%s3915_s1 + $0x180] sm:$0xff]  }
  0x36   : > { %1557 = vmatmul.mubr.bf16.gmra.mxu0 %v2475_v54  ;;  %v2515_v54 = vcombine.low %v277_v35, %v281_v38  ;;  %v305_v7 = vld [vmem:[%s3518_s12 + $0x260] sm:$0xff] }
  0x37   : > { %1718 = vmatmul.mubr.bf16.gmra.mxu1 %v2477_v56  ;;  %1564 = vmatprep.mubr.bf16.mxu0 %v2484_v57  ;;  %v2517_v56 = vcombine.low %v278_v40, %v282_v41  ;;  %v2524_v57 = vcombine.high %v285_v50, %v289_v51  ;;  %v333_v38 = vld [vmem:[%s3518_s12 + $0x340] sm:$0xff]  ;;  %v334_v40 = vld [vmem:[%s3518_s12 + $0x348] sm:$0xff] }
  0x38   : > { %1725 = vmatprep.mubr.bf16.mxu1 %v2486_v59  ;;  %3050 = vmatpush3.bf16.msra.mxu0 %v3334_v4  ;;  %v2526_v59 = vcombine.high %v286_v52, %v290_v53  ;;  %v2532_v4 = vcombine.high %v293_v62, %v297_v63  ;;  %v338_v41 = vld [vmem:[%s3518_s12 + $0x368] sm:$0xff]  ;;  %v231_v62 = vld [vmem:[%s3518_s12 + $0x10] sm:$0xff] }
  0x39   : > { %3162 = vmatpush3.bf16.msra.mxu1 %v3336_v9  ;;  %3051 = vmatprep.subr.bf16.mxu0 %v3337_v14  ;;  %v306_v9 = vld [vmem:[%s3518_s12 + $0x268] sm:$0xff]  ;;  %v309_v14 = vld [vmem:[%s3518_s12 + $0x280] sm:$0xff]  ;;  %v2573_v51 = vcombine.low %v334_v40, %v338_v41  ;;  %v235_v63 = vld [vmem:[%s3518_s12 + $0x30] sm:$0xff] }
  0x3a   : > { %3163 = vmatprep.subr.bf16.mxu1 %v3339_v17  ;;  %v314_v17 = vld [vmem:[%s3518_s12 + $0x2a8] sm:$0xff] }
  0x3c   : > { %3052 = vmatpush3.bf16.msra.mxu0 %v3338_v15  ;;  %v313_v15 = vld [vmem:[%s3518_s12 + $0x2a0] sm:$0xff] }
  0x3d   : > { %3164 = vmatpush3.bf16.msra.mxu1 %v3340_v20  ;;  %3053 = vmatprep.subr.bf16.mxu0 %v3341_v24  ;;  %v2548_v20 = vcombine.high %v309_v14, %v313_v15  ;;  %v318_v24 = vld [vmem:[%s3518_s12 + $0x2c8] sm:$0xff]  ;;  %v2547_v26 = vcombine.low %v309_v14, %v313_v15  ;;  %v247_v14 = vld [vmem:[%s3518_s12 + $0x90] sm:$0xff] }
  0x3e   : > { %1565 = vmatmul.mubr.bf16.gmra.mxu0 %v2483_v3  ;;  %3165 = vmatprep.subr.bf16.mxu1 %v3343_v28  ;;  %v2525_v3 = vcombine.low %v286_v52, %v290_v53  ;;  %v2556_v28 = vcombine.high %v317_v22, %v321_v23  ;;  %v2557_v35 = vcombine.low %v318_v24, %v322_v25  ;;  %v251_v15 = vld [vmem:[%s3518_s12 + $0xb0] sm:$0xff] }
  0x3f   : > { %1726 = vmatmul.mubr.bf16.gmra.mxu1 %v2485_v5  ;;  %1572 = vmatprep.mubr.bf16.mxu0 %v2492_v6  ;;  %v2534_v5 = vcombine.high %v294_v0, %v298_v1  ;;  %v301_v6 = vld [vmem:[%s3518_s12 + $0x240] sm:$0xff]  ;;  %v232_v0 = vld [vmem:[%s3518_s12 + $0x18] sm:$0xff] }
  0x40   : > { %1733 = vmatprep.mubr.bf16.mxu1 %v2494_v8  ;;  %3054 = vmatpush3.bf16.msra.mxu0 %v3342_v27  ;;  %v302_v8 = vld [vmem:[%s3518_s12 + $0x248] sm:$0xff]  ;;  %v2540_v12 = vcombine.high %v301_v6, %v305_v7  ;;  %v236_v1 = vld [vmem:[%s3518_s12 + $0x38] sm:$0xff] }
  0x41   : > { %3166 = vmatpush3.bf16.msra.mxu1 %v3344_v29  ;;  %3055 = vmatprep.subr.bf16.mxu0 %v3345_v34  ;;  %v2542_v13 = vcombine.high %v302_v8, %v306_v9  ;;  %v2558_v29 = vcombine.high %v318_v24, %v322_v25  ;;  %v2555_v34 = vcombine.low %v317_v22, %v321_v23  ;;  %v255_v22 = vld [vmem:[%s3518_s12 + $0xd0] sm:$0xff]  ;;  %v256_v24 = vld [vmem:[%s3518_s12 + $0xd8] sm:$0xff] }
  0x42   : > { %3167 = vmatprep.subr.bf16.mxu1 %v3347_v37  ;;  %v259_v23 = vld [vmem:[%s3518_s12 + $0xf0] sm:$0xff]  ;;  %v260_v25 = vld [vmem:[%s3518_s12 + $0xf8] sm:$0xff] }
  0x44   : > { %3056 = vmatpush3.bf16.msra.mxu0 %v3346_v36 }
  0x45   : > { %3168 = vmatpush3.bf16.msra.mxu1 %v3348_v39  ;;  %3057 = vmatprep.subr.bf16.mxu0 %v3349_v46  ;;  %v337_v39 = vld [vmem:[%s3518_s12 + $0x360] sm:$0xff] }
  0x46   : > { %1573 = vmatmul.mubr.bf16.gmra.mxu0 %v2491_v16  ;;  %3169 = vmatprep.subr.bf16.mxu1 %v3351_v48  ;;  %v310_v16 = vld [vmem:[%s3518_s12 + $0x288] sm:$0xff]  ;;  %v341_v46 = vld [vmem:[%s3518_s12 + $0x380] sm:$0xff]  ;;  %v2571_v50 = vcombine.low %v333_v38, %v337_v39 }
  0x47   : > { %1734 = vmatmul.mubr.bf16.gmra.mxu1 %v2493_v18  ;;  %1580 = vmatprep.mubr.bf16.mxu0 %v2500_v19  ;;  %v2539_v18 = vcombine.low %v301_v6, %v305_v7  ;;  %v2541_v19 = vcombine.low %v302_v8, %v306_v9  ;;  %v2549_v27 = vcombine.low %v310_v16, %v314_v17  ;;  %v342_v48 = vld [vmem:[%s3518_s12 + $0x388] sm:$0xff]  ;;  %v239_v6 = vld [vmem:[%s3518_s12 + $0x50] sm:$0xff]  ;;  %v240_v8 = vld [vmem:[%s3518_s12 + $0x58] sm:$0xff] }
  0x48   : > { %1741 = vmatprep.mubr.bf16.mxu1 %v2502_v21  ;;  %3058 = vmatpush3.bf16.msra.mxu0 %v3350_v47  ;;  %v2550_v21 = vcombine.high %v310_v16, %v314_v17  ;;  %v345_v47 = vld [vmem:[%s3518_s12 + $0x3a0] sm:$0xff]  ;;  %v243_v7 = vld [vmem:[%s3518_s12 + $0x70] sm:$0xff]  ;;  %v244_v9 = vld [vmem:[%s3518_s12 + $0x78] sm:$0xff] }
  0x49   : > { %3170 = vmatpush3.bf16.msra.mxu1 %v3352_v49  ;;  %3059 = vmatprep.subr.bf16.mxu0 %v3353_v55  ;;  %v346_v49 = vld [vmem:[%s3518_s12 + $0x3a8] sm:$0xff]  ;;  %v2580_v52 = vcombine.high %v341_v46, %v345_v47  ;;  %v353_v55 = vld [vmem:[%s3518_s12 + $0x3e0] sm:$0xff]  ;;  %v248_v16 = vld [vmem:[%s3518_s12 + $0x98] sm:$0xff] }
  0x4a   : > { %3171 = vmatprep.subr.bf16.mxu1 %v3355_v60  ;;  %v2582_v53 = vcombine.high %v342_v48, %v346_v49  ;;  %v252_v17 = vld [vmem:[%s3518_s12 + $0xb8] sm:$0xff] }
  0x4c   : > { %3060 = vmatpush3.bf16.msra.mxu0 %v3354_v58  ;;  %v2579_v58 = vcombine.low %v341_v46, %v345_v47  ;;  %v279_v46 = vld [vmem:[%s3518_s12 + $0x190] sm:$0xff] }
  0x4d   : > { %3172 = vmatpush3.bf16.msra.mxu1 %v3356_v61  ;;  %v283_v47 = vld [vmem:[%s3518_s12 + $0x1b0] sm:$0xff] }
  0x4e   : > { %1581 = vmatmul.mubr.bf16.gmra.mxu0 %v2499_v30  ;;  %v325_v30 = vld [vmem:[%s3518_s12 + $0x300] sm:$0xff] }
  0x4f   : > { %1742 = vmatmul.mubr.bf16.gmra.mxu1 %v2501_v31  ;;  %1588 = vmatprep.mubr.bf16.mxu0 %v2508_v32  ;;  %v329_v31 = vld [vmem:[%s3518_s12 + $0x320] sm:$0xff]  ;;  %v326_v32 = vld [vmem:[%s3518_s12 + $0x308] sm:$0xff] }
  0x50   : > { %1749 = vmatprep.mubr.bf16.mxu1 %v2510_v33  ;;  %v330_v33 = vld [vmem:[%s3518_s12 + $0x328] sm:$0xff]  ;;  %v2564_v36 = vcombine.high %v325_v30, %v329_v31 }
  0x51   : > { %v2566_v37 = vcombine.high %v326_v32, %v330_v33 }
  0x56   : > { %1589 = vmatmul.mubr.bf16.gmra.mxu0 %v2507_v42  ;;  %v2563_v42 = vcombine.low %v325_v30, %v329_v31  ;;  %v263_v30 = vld [vmem:[%s3518_s12 + $0x110] sm:$0xff] }
  0x57   : > { %1750 = vmatmul.mubr.bf16.gmra.mxu1 %v2509_v43  ;;  %1596 = vmatprep.mubr.bf16.mxu0 %v2516_v44  ;;  %v2565_v43 = vcombine.low %v326_v32, %v330_v33  ;;  %v2572_v44 = vcombine.high %v333_v38, %v337_v39  ;;  %v267_v31 = vld [vmem:[%s3518_s12 + $0x130] sm:$0xff]  ;;  %v264_v32 = vld [vmem:[%s3518_s12 + $0x118] sm:$0xff] }
  0x58   : > { %1757 = vmatprep.mubr.bf16.mxu1 %v2518_v45  ;;  %v2574_v45 = vcombine.high %v334_v40, %v338_v41  ;;  %v268_v33 = vld [vmem:[%s3518_s12 + $0x138] sm:$0xff]  ;;  %v271_v38 = vld [vmem:[%s3518_s12 + $0x150] sm:$0xff] }
  0x59   : > { %v275_v39 = vld [vmem:[%s3518_s12 + $0x170] sm:$0xff]  ;;  %v272_v40 = vld [vmem:[%s3518_s12 + $0x158] sm:$0xff] }
  0x5a   : > { %v276_v41 = vld [vmem:[%s3518_s12 + $0x178] sm:$0xff] }
  0x5e   : > { %1597 = vmatmul.mubr.bf16.gmra.mxu0 %v2515_v54  ;;  %v349_v54 = vld [vmem:[%s3518_s12 + $0x3c0] sm:$0xff] }
  0x5f   : > { %1758 = vmatmul.mubr.bf16.gmra.mxu1 %v2517_v56  ;;  %1604 = vmatprep.mubr.bf16.mxu0 %v2524_v57  ;;  %v350_v56 = vld [vmem:[%s3518_s12 + $0x3c8] sm:$0xff]  ;;  %v2588_v60 = vcombine.high %v349_v54, %v353_v55 }
  0x60   : > { %1765 = vmatprep.mubr.bf16.mxu1 %v2526_v59  ;;  %v354_v57 = vld [vmem:[%s3518_s12 + $0x3e8] sm:$0xff]  ;;  %v2581_v59 = vcombine.low %v342_v48, %v346_v49  ;;  %v280_v48 = vld [vmem:[%s3518_s12 + $0x198] sm:$0xff] }
  0x61   : > { %v2590_v61 = vcombine.high %v350_v56, %v354_v57  ;;  %v284_v49 = vld [vmem:[%s3518_s12 + $0x1b8] sm:$0xff] }
  0x66   : > { %1605 = vmatmul.mubr.bf16.gmra.mxu0 %v2523_v2  ;;  %v2587_v2 = vcombine.low %v349_v54, %v353_v55  ;;  %v287_v54 = vld [vmem:[%s3518_s12 + $0x1d0] sm:$0xff] }
  0x67   : > { %1766 = vmatmul.mubr.bf16.gmra.mxu1 %v2525_v3  ;;  %1612 = vmatprep.mubr.bf16.mxu0 %v2532_v4  ;;  %v2589_v3 = vcombine.low %v350_v56, %v354_v57  ;;  %v2472_v4 = vcombine.high %v231_v62, %v235_v63  ;;  %v291_v55 = vld [vmem:[%s3518_s12 + $0x1f0] sm:$0xff]  ;;  %v288_v56 = vld [vmem:[%s3518_s12 + $0x1d8] sm:$0xff] }
  0x68   : > { %1773 = vmatprep.mubr.bf16.mxu1 %v2534_v5  ;;  %v2474_v5 = vcombine.high %v232_v0, %v236_v1  ;;  %v292_v57 = vld [vmem:[%s3518_s12 + $0x1f8] sm:$0xff] }
  0x6e   : > { %1613 = vmatmul.mubr.bf16.gmra.mxu0 %v2531_v10  ;;  %v2471_v10 = vcombine.low %v231_v62, %v235_v63  ;;  %v295_v62 = vld [vmem:[%s3518_s12 + $0x210] sm:$0xff] }
  0x6f   : > { %1774 = vmatmul.mubr.bf16.gmra.mxu1 %v2533_v11  ;;  %1620 = vmatprep.mubr.bf16.mxu0 %v2540_v12  ;;  %v2473_v11 = vcombine.low %v232_v0, %v236_v1  ;;  %v2480_v12 = vcombine.high %v239_v6, %v243_v7  ;;  %v299_v63 = vld [vmem:[%s3518_s12 + $0x230] sm:$0xff]  ;;  %v296_v0 = vld [vmem:[%s3518_s12 + $0x218] sm:$0xff] }
  0x70   : > { %1781 = vmatprep.mubr.bf16.mxu1 %v2542_v13  ;;  %v2482_v13 = vcombine.high %v240_v8, %v244_v9  ;;  %v300_v1 = vld [vmem:[%s3518_s12 + $0x238] sm:$0xff] }
  0x76   : > { %1621 = vmatmul.mubr.bf16.gmra.mxu0 %v2539_v18  ;;  %v2479_v18 = vcombine.low %v239_v6, %v243_v7  ;;  %v303_v6 = vld [vmem:[%s3518_s12 + $0x250] sm:$0xff] }
  0x77   : > { %1782 = vmatmul.mubr.bf16.gmra.mxu1 %v2541_v19  ;;  %1628 = vmatprep.mubr.bf16.mxu0 %v2548_v20  ;;  %v2481_v19 = vcombine.low %v240_v8, %v244_v9  ;;  %v2488_v20 = vcombine.high %v247_v14, %v251_v15  ;;  %v307_v7 = vld [vmem:[%s3518_s12 + $0x270] sm:$0xff]  ;;  %v304_v8 = vld [vmem:[%s3518_s12 + $0x258] sm:$0xff] }
  0x78   : > { %1789 = vmatprep.mubr.bf16.mxu1 %v2550_v21  ;;  %v2490_v21 = vcombine.high %v248_v16, %v252_v17  ;;  %v308_v9 = vld [vmem:[%s3518_s12 + $0x278] sm:$0xff] }
  0x7e   : > { %1629 = vmatmul.mubr.bf16.gmra.mxu0 %v2547_v26  ;;  %v2487_v26 = vcombine.low %v247_v14, %v251_v15 }
  0x7f   : > { %1790 = vmatmul.mubr.bf16.gmra.mxu1 %v2549_v27  ;;  %1636 = vmatprep.mubr.bf16.mxu0 %v2556_v28  ;;  %v2489_v27 = vcombine.low %v248_v16, %v252_v17  ;;  %v2496_v28 = vcombine.high %v255_v22, %v259_v23  ;;  %v3729_v16 = vld [vmem:[%s3916_s2] ss:$0 sm:$0xff] }
  0x80   : > { %1797 = vmatprep.mubr.bf16.mxu1 %v2558_v29  ;;  %v2498_v29 = vcombine.high %v256_v24, %v260_v25 }
  0x86   : > { %1637 = vmatmul.mubr.bf16.gmra.mxu0 %v2555_v34  ;;  %v2495_v34 = vcombine.low %v255_v22, %v259_v23  ;;  %v312_v22 = vld [vmem:[%s3518_s12 + $0x298] sm:$0xff] }
  0x87   : > { %1798 = vmatmul.mubr.bf16.gmra.mxu1 %v2557_v35  ;;  %1644 = vmatprep.mubr.bf16.mxu0 %v2564_v36  ;;  %v2497_v35 = vcombine.low %v256_v24, %v260_v25  ;;  %v2504_v36 = vcombine.high %v263_v30, %v267_v31  ;;  %v316_v23 = vld [vmem:[%s3518_s12 + $0x2b8] sm:$0xff] }
  0x88   : > { %1805 = vmatprep.mubr.bf16.mxu1 %v2566_v37  ;;  %v2506_v37 = vcombine.high %v264_v32, %v268_v33 }
  0x8e   : > { %1645 = vmatmul.mubr.bf16.gmra.mxu0 %v2563_v42  ;;  %v2503_v42 = vcombine.low %v263_v30, %v267_v31 }
  0x8f   : > { %1806 = vmatmul.mubr.bf16.gmra.mxu1 %v2565_v43  ;;  %1652 = vmatprep.mubr.bf16.mxu0 %v2572_v44  ;;  %v2505_v43 = vcombine.low %v264_v32, %v268_v33  ;;  %v2512_v44 = vcombine.high %v271_v38, %v275_v39  ;;  %v2554_v32 = vcombine.high %v312_v22, %v316_v23 }
  0x90   : > { %1813 = vmatprep.mubr.bf16.mxu1 %v2574_v45  ;;  %v2514_v45 = vcombine.high %v272_v40, %v276_v41 }
  0x96   : > { %1653 = vmatmul.mubr.bf16.gmra.mxu0 %v2571_v50  ;;  %v2511_v50 = vcombine.low %v271_v38, %v275_v39 }
  0x97   : > { %1814 = vmatmul.mubr.bf16.gmra.mxu1 %v2573_v51  ;;  %1660 = vmatprep.mubr.bf16.mxu0 %v2580_v52  ;;  %v2513_v51 = vcombine.low %v272_v40, %v276_v41  ;;  %v2520_v52 = vcombine.high %v279_v46, %v283_v47  ;;  %v319_v41 = vld [vmem:[%s3518_s12 + $0x2d0] sm:$0xff] }
  0x98   : > { %1821 = vmatprep.mubr.bf16.mxu1 %v2582_v53  ;;  %v2522_v53 = vcombine.high %v280_v48, %v284_v49 }
  0x9e   : > { %1661 = vmatmul.mubr.bf16.gmra.mxu0 %v2579_v58  ;;  %v2519_v58 = vcombine.low %v279_v46, %v283_v47  ;;  %v320_v46 = vld [vmem:[%s3518_s12 + $0x2d8] sm:$0xff] }
  0x9f   : > { %1822 = vmatmul.mubr.bf16.gmra.mxu1 %v2581_v59  ;;  %1668 = vmatprep.mubr.bf16.mxu0 %v2588_v60  ;;  %v2521_v59 = vcombine.low %v280_v48, %v284_v49  ;;  %v2528_v60 = vcombine.high %v287_v54, %v291_v55  ;;  %v324_v47 = vld [vmem:[%s3518_s12 + $0x2f8] sm:$0xff] }
  0xa0   : > { %1829 = vmatprep.mubr.bf16.mxu1 %v2590_v61  ;;  %v2530_v61 = vcombine.high %v288_v56, %v292_v57 }
  0xa6   : > { %1669 = vmatmul.mubr.bf16.gmra.mxu0 %v2587_v2  ;;  %v2527_v2 = vcombine.low %v287_v54, %v291_v55 }
  0xa7   : > { %1830 = vmatmul.mubr.bf16.gmra.mxu1 %v2589_v3  ;;  %1870 = vmatprep.mubr.bf16.mxu0 %v2472_v4  ;;  %v2529_v3 = vcombine.low %v288_v56, %v292_v57  ;;  %v2536_v4 = vcombine.high %v295_v62, %v299_v63  ;;  %v2562_v56 = vcombine.high %v320_v46, %v324_v47 }
  0xa8   : > { %2031 = vmatprep.mubr.bf16.mxu1 %v2474_v5  ;;  %v2538_v5 = vcombine.high %v296_v0, %v300_v1 }
  0xae   : > { %1871 = vmatmul.mubr.bf16.vlgmr.msra.gmra.mxu0 %v2471_v10  ;;  %v2535_v10 = vcombine.low %v295_v62, %v299_v63 }
  0xaf   : > { %2032 = vmatmul.mubr.bf16.vlgmr.msra.gmra.mxu1 %v2473_v11  ;;  %1878 = vmatprep.mubr.bf16.mxu0 %v2480_v12  ;;  %v2537_v11 = vcombine.low %v296_v0, %v300_v1  ;;  %v2544_v12 = vcombine.high %v303_v6, %v307_v7  ;;  %v327_v1 = vld [vmem:[%s3518_s12 + $0x310] sm:$0xff] }
  0xb0   : > { %2039 = vmatprep.mubr.bf16.mxu1 %v2482_v13  ;;  %v2546_v13 = vcombine.high %v304_v8, %v308_v9 }
  0xb6   : > { %1879 = vmatmul.mubr.bf16.gmra.mxu0 %v2479_v18  ;;  %v311_v18 = vld [vmem:[%s3518_s12 + $0x290] sm:$0xff] }
  0xb7   : > { %2040 = vmatmul.mubr.bf16.gmra.mxu1 %v2481_v19  ;;  %1886 = vmatprep.mubr.bf16.mxu0 %v2488_v20  ;;  %v315_v19 = vld [vmem:[%s3518_s12 + $0x2b0] sm:$0xff] }
  0xb8   : > { %2047 = vmatprep.mubr.bf16.mxu1 %v2490_v21  ;;  %v2552_v30 = vcombine.high %v311_v18, %v315_v19 }
  0xbe   : > { %1887 = vmatmul.mubr.bf16.gmra.mxu0 %v2487_v26  ;;  %v2543_v26 = vcombine.low %v303_v6, %v307_v7  ;;  %v328_v6 = vld [vmem:[%s3518_s12 + $0x318] sm:$0xff] }
  0xbf   : > { %2048 = vmatmul.mubr.bf16.gmra.mxu1 %v2489_v27  ;;  %1894 = vmatprep.mubr.bf16.mxu0 %v2496_v28  ;;  %v332_v7 = vld [vmem:[%s3518_s12 + $0x338] sm:$0xff] }
  0xc0   : > { %2055 = vmatprep.mubr.bf16.mxu1 %v2498_v29  ;;  %v2545_v29 = vcombine.low %v304_v8, %v308_v9 }
  0xc6   : > { %1895 = vmatmul.mubr.bf16.gmra.mxu0 %v2495_v34 }
  0xc7   : > { %2056 = vmatmul.mubr.bf16.gmra.mxu1 %v2497_v35  ;;  %1902 = vmatprep.mubr.bf16.mxu0 %v2504_v36 }
  0xc8   : > { %2063 = vmatprep.mubr.bf16.mxu1 %v2506_v37 }
  0xce   : > { %1903 = vmatmul.mubr.bf16.gmra.mxu0 %v2503_v42  ;;  %v323_v42 = vld [vmem:[%s3518_s12 + $0x2f0] sm:$0xff] }
  0xcf   : > { %2064 = vmatmul.mubr.bf16.gmra.mxu1 %v2505_v43  ;;  %1910 = vmatprep.mubr.bf16.mxu0 %v2512_v44  ;;  %v2560_v54 = vcombine.high %v319_v41, %v323_v42 }
  0xd0   : > { %2071 = vmatprep.mubr.bf16.mxu1 %v2514_v45 }
  0xd6   : > { %1911 = vmatmul.mubr.bf16.gmra.mxu0 %v2511_v50  ;;  %v2551_v50 = vcombine.low %v311_v18, %v315_v19 }
  0xd7   : > { %2072 = vmatmul.mubr.bf16.gmra.mxu1 %v2513_v51  ;;  %1918 = vmatprep.mubr.bf16.mxu0 %v2520_v52 }
  0xd8   : > { %2079 = vmatprep.mubr.bf16.mxu1 %v2522_v53  ;;  %v2553_v53 = vcombine.low %v312_v22, %v316_v23 }
  0xde   : > { %1919 = vmatmul.mubr.bf16.gmra.mxu0 %v2519_v58 }
  0xdf   : > { %2080 = vmatmul.mubr.bf16.gmra.mxu1 %v2521_v59  ;;  %1926 = vmatprep.mubr.bf16.mxu0 %v2528_v60 }
  0xe0   : > { %2087 = vmatprep.mubr.bf16.mxu1 %v2530_v61 }
  0xe6   : > { %1927 = vmatmul.mubr.bf16.gmra.mxu0 %v2527_v2  ;;  %v331_v2 = vld [vmem:[%s3518_s12 + $0x330] sm:$0xff] }
  0xe7   : > { %2088 = vmatmul.mubr.bf16.gmra.mxu1 %v2529_v3  ;;  %1934 = vmatprep.mubr.bf16.mxu0 %v2536_v4 }
  0xe8   : > { %2095 = vmatprep.mubr.bf16.mxu1 %v2538_v5 }
  0xee   : > { %v2837_v14 = vpop.f32.mrf.mxu0  ;;  %1935 = vmatmul.mubr.bf16.gmra.mxu0 %v2535_v10  ;;  %v2559_v10 = vcombine.low %v319_v41, %v323_v42 }
  0xef   : > { %v2949_v15 = vpop.f32.mrf.mxu1  ;;  %2096 = vmatmul.mubr.bf16.gmra.mxu1 %v2537_v11  ;;  %1942 = vmatprep.mubr.bf16.mxu0 %v2544_v12 }
  0xf0   : > { %v2838_v17 = vpop.f32.mrf.mxu0  ;;  %2103 = vmatprep.mubr.bf16.mxu1 %v2546_v13  ;;  %v2561_v13 = vcombine.low %v320_v46, %v324_v47 }
  0xf1   : > { %v2839_v20 = vadd.f32 %v2838_v17, %v2837_v14  ;;  %v2950_v21 = vpop.f32.mrf.mxu1  ;;  %v2568_v14 = vcombine.high %v327_v1, %v331_v2  ;;  %v2570_v17 = vcombine.high %v328_v6, %v332_v7 }
  0xf2   : > { %v2951_v24 = vadd.f32 %v2950_v21, %v2949_v15  ;;  %v2840_v25 = vpop.f32.mrf.mxu0 }
  0xf3   : > { %v1551_v27 = vadd.f32 %v2839_v20, %v3729_v16  ;;  %v2952_v28 = vpop.f32.mrf.mxu1 }
  0xf4   : > { %v2841_v31 = vpop.f32.mrf.mxu0 }
  0xf5   : > { %v3736_v33 = vadd.f32 %v2951_v24, %v1551_v27  ;;  %v2842_v34 = vadd.f32 %v2841_v31, %v2840_v25  ;;  %v2953_v35 = vpop.f32.mrf.mxu1  ;;  %v339_v27 = vld [vmem:[%s3518_s12 + $0x370] sm:$0xff]  ;;  %v336_v31 = vld [vmem:[%s3518_s12 + $0x358] sm:$0xff] }
  0xf6   : > { %v2954_v36 = vadd.f32 %v2953_v35, %v2952_v28  ;;  %v2843_v37 = vpop.f32.mrf.mxu0  ;;  %1943 = vmatmul.mubr.bf16.gmra.mxu0 %v2543_v26  ;;  %v335_v26 = vld [vmem:[%s3518_s12 + $0x350] sm:$0xff] }
  0xf7   : > { %v1554_v38 = vadd.f32 %v2842_v34, %v3729_v16  ;;  %v2955_v39 = vpop.f32.mrf.mxu1  ;;  %2104 = vmatmul.mubr.bf16.gmra.mxu1 %v2545_v29  ;;  %1950 = vmatprep.mubr.bf16.mxu0 %v2552_v30 }
  0xf8   : > { %v2844_v40 = vpop.f32.mrf.mxu0  ;;  %2111 = vmatprep.mubr.bf16.mxu1 %v2554_v32  ;;  %v340_v32 = vld [vmem:[%s3518_s12 + $0x378] sm:$0xff] }
  0xf9   : > { %v3741_v43 = vadd.f32 %v2954_v36, %v1554_v38  ;;  %v2845_v44 = vadd.f32 %v2844_v40, %v2843_v37  ;;  %v2956_v45 = vpop.f32.mrf.mxu1  ;;  %v2567_v36 = vcombine.low %v327_v1, %v331_v2  ;;  %v2576_v40 = vcombine.high %v335_v26, %v339_v27 }
  0xfa   : > { %v2957_v48 = vadd.f32 %v2956_v45, %v2955_v39  ;;  %v2846_v49 = vpop.f32.mrf.mxu0  ;;  %v2569_v39 = vcombine.low %v328_v6, %v332_v7  ;;  %v2578_v42 = vcombine.high %v336_v31, %v340_v32  ;;  %v2577_v1 = vcombine.low %v336_v31, %v340_v32 }
  0xfb   : > { %v1559_v51 = vadd.f32 %v2845_v44, %v3729_v16  ;;  %v2958_v52 = vpop.f32.mrf.mxu1 }
  0xfc   : > { %v2847_v55 = vpop.f32.mrf.mxu0 }
  0xfd   : > { %v3746_v57 = vadd.f32 %v2957_v48, %v1559_v51  ;;  %v2848_v58 = vadd.f32 %v2847_v55, %v2846_v49  ;;  %v2959_v59 = vpop.f32.mrf.mxu1 }
  0xfe   : > { %v2960_v60 = vadd.f32 %v2959_v59, %v2958_v52  ;;  %v2849_v61 = vpop.f32.mrf.mxu0  ;;  %1951 = vmatmul.mubr.bf16.gmra.mxu0 %v2551_v50  ;;  %v343_v52 = vld [vmem:[%s3518_s12 + $0x390] sm:$0xff]  ;;  %v348_v59 = vld [vmem:[%s3518_s12 + $0x3b8] sm:$0xff] }
  0xff   : > { %v1562_v62 = vadd.f32 %v2848_v58, %v3729_v16  ;;  %v2961_v63 = vpop.f32.mrf.mxu1  ;;  %2112 = vmatmul.mubr.bf16.gmra.mxu1 %v2553_v53  ;;  %1958 = vmatprep.mubr.bf16.mxu0 %v2560_v54  ;;  %v347_v53 = vld [vmem:[%s3518_s12 + $0x3b0] sm:$0xff]  ;;  %v344_v58 = vld [vmem:[%s3518_s12 + $0x398] sm:$0xff] }
 0x100   : > { %v2850_v0 = vpop.f32.mrf.mxu0  ;;  %2119 = vmatprep.mubr.bf16.mxu1 %v2562_v56  ;;  %v2584_v2 = vcombine.high %v343_v52, %v347_v53 }
 0x101   : > { %v3751_v3 = vadd.f32 %v2960_v60, %v1562_v62  ;;  %v2851_v4 = vadd.f32 %v2850_v0, %v2849_v61  ;;  %v2962_v5 = vpop.f32.mrf.mxu1  ;;  %v2575_v62 = vcombine.low %v335_v26, %v339_v27 }
 0x102   : > { %v2963_v8 = vadd.f32 %v2962_v5, %v2961_v63  ;;  %v2852_v9 = vpop.f32.mrf.mxu0  ;;  %v2586_v5 = vcombine.high %v344_v58, %v348_v59 }
 0x103   : > { %v1567_v11 = vadd.f32 %v2851_v4, %v3729_v16  ;;  %v2964_v12 = vpop.f32.mrf.mxu1 }
 0x104   : > { %v2853_v15 = vpop.f32.mrf.mxu0 }
 0x105   : > { %v3756_v18 = vadd.f32 %v2963_v8, %v1567_v11  ;;  %v2854_v19 = vadd.f32 %v2853_v15, %v2852_v9  ;;  %v2965_v20 = vpop.f32.mrf.mxu1  ;;  %v355_v15 = vld [vmem:[%s3518_s12 + $0x3f0] sm:$0xff] }
 0x106   : > { %v2966_v21 = vadd.f32 %v2965_v20, %v2964_v12  ;;  %v2855_v22 = vpop.f32.mrf.mxu0  ;;  %1959 = vmatmul.mubr.bf16.gmra.mxu0 %v2559_v10 }
 0x107   : > { %v1570_v23 = vadd.f32 %v2854_v19, %v3729_v16  ;;  %v2967_v24 = vpop.f32.mrf.mxu1  ;;  %2120 = vmatmul.mubr.bf16.gmra.mxu1 %v2561_v13  ;;  %1966 = vmatprep.mubr.bf16.mxu0 %v2568_v14  ;;  %v351_v14 = vld [vmem:[%s3518_s12 + $0x3d0] sm:$0xff] }
 0x108   : > { %v2856_v25 = vpop.f32.mrf.mxu0  ;;  %2127 = vmatprep.mubr.bf16.mxu1 %v2570_v17 }
 0x109   : > { %v3761_v28 = vadd.f32 %v2966_v21, %v1570_v23  ;;  %v2857_v29 = vadd.f32 %v2856_v25, %v2855_v22  ;;  %v2968_v30 = vpop.f32.mrf.mxu1  ;;  %v352_v21 = vld [vmem:[%s3518_s12 + $0x3d8] sm:$0xff]  ;;  %v2583_v25 = vcombine.low %v343_v52, %v347_v53 }
 0x10a   : > { %v2969_v34 = vadd.f32 %v2968_v30, %v2967_v24  ;;  %v2858_v35 = vpop.f32.mrf.mxu0  ;;  %v356_v22 = vld [vmem:[%s3518_s12 + $0x3f8] sm:$0xff]  ;;  %v2592_v30 = vcombine.high %v351_v14, %v355_v15  ;;  %s2465_s12 = sshll.u32 %s3923_s25, 2 }
 0x10b   : > { %v1575_v37 = vadd.f32 %v2857_v29, %v3729_v16  ;;  %v2970_v38 = vpop.f32.mrf.mxu1  ;;  %v2585_v29 = vcombine.low %v344_v58, %v348_v59  ;;  %v2594_v32 = vcombine.high %v352_v21, %v356_v22  ;;  %v2593_v52 = vcombine.low %v352_v21, %v356_v22  ;;  %s3858_s17 = scalar_lea.vmem %s3917_s3, %s2465_s12 }
 0x10c   : > { %v2859_v41 = vpop.f32.mrf.mxu0 }
 0x10d   : > { %v3766_v44 = vadd.f32 %v2969_v34, %v1575_v37  ;;  %v2860_v45 = vadd.f32 %v2859_v41, %v2858_v35  ;;  %v2971_v46 = vpop.f32.mrf.mxu1 }
 0x10e   : > { %v2972_v47 = vadd.f32 %v2971_v46, %v2970_v38  ;;  %v2861_v48 = vpop.f32.mrf.mxu0  ;;  %1967 = vmatmul.mubr.bf16.gmra.mxu0 %v2567_v36 }
 0x10f   : > { %v1578_v49 = vadd.f32 %v2860_v45, %v3729_v16  ;;  %v2973_v50 = vpop.f32.mrf.mxu1  ;;  %2128 = vmatmul.mubr.bf16.gmra.mxu1 %v2569_v39  ;;  %1974 = vmatprep.mubr.bf16.mxu0 %v2576_v40 }
 0x110   : > { %v2862_v51 = vpop.f32.mrf.mxu0  ;;  %2135 = vmatprep.mubr.bf16.mxu1 %v2578_v42 }
 0x111   : > { %v3771_v54 = vadd.f32 %v2972_v47, %v1578_v49  ;;  %v2863_v55 = vadd.f32 %v2862_v51, %v2861_v48  ;;  %v2974_v56 = vpop.f32.mrf.mxu1  ;;  %v2591_v49 = vcombine.low %v351_v14, %v355_v15 }
 0x112   : > { %v2975_v60 = vadd.f32 %v2974_v56, %v2973_v50  ;;  %v2864_v61 = vpop.f32.mrf.mxu0 }
 0x113   : > { %v1583_v63 = vadd.f32 %v2863_v55, %v3729_v16  ;;  %v2976_v0 = vpop.f32.mrf.mxu1 }
 0x114   : > { %v2865_v4 = vpop.f32.mrf.mxu0 }
 0x115   : > { %v3776_v6 = vadd.f32 %v2975_v60, %v1583_v63  ;;  %v2866_v7 = vadd.f32 %v2865_v4, %v2864_v61  ;;  %v2977_v8 = vpop.f32.mrf.mxu1 }
 0x116   : > { %v2978_v9 = vadd.f32 %v2977_v8, %v2976_v0  ;;  %v2867_v10 = vpop.f32.mrf.mxu0  ;;  %1975 = vmatmul.mubr.bf16.gmra.mxu0 %v2575_v62 }
 0x117   : > { %v1586_v11 = vadd.f32 %v2866_v7, %v3729_v16  ;;  %v2979_v12 = vpop.f32.mrf.mxu1  ;;  %2136 = vmatmul.mubr.bf16.gmra.mxu1 %v2577_v1  ;;  %1982 = vmatprep.mubr.bf16.mxu0 %v2584_v2 }
 0x118   : > { %v2868_v13 = vpop.f32.mrf.mxu0  ;;  %2143 = vmatprep.mubr.bf16.mxu1 %v2586_v5 }
 0x119   : > { %v3781_v17 = vadd.f32 %v2978_v9, %v1586_v11  ;;  %v2869_v19 = vadd.f32 %v2868_v13, %v2867_v10  ;;  %v2980_v20 = vpop.f32.mrf.mxu1 }
 0x11a   : > { %v2981_v23 = vadd.f32 %v2980_v20, %v2979_v12  ;;  %v2870_v24 = vpop.f32.mrf.mxu0 }
 0x11b   : > { %v1591_v26 = vadd.f32 %v2869_v19, %v3729_v16  ;;  %v2982_v27 = vpop.f32.mrf.mxu1 }
 0x11c   : > { %v2871_v31 = vpop.f32.mrf.mxu0 }
 0x11d   : > { %v3786_v34 = vadd.f32 %v2981_v23, %v1591_v26  ;;  %v2872_v35 = vadd.f32 %v2871_v31, %v2870_v24  ;;  %v2983_v36 = vpop.f32.mrf.mxu1 }
 0x11e   : > { %v2984_v37 = vadd.f32 %v2983_v36, %v2982_v27  ;;  %v2873_v38 = vpop.f32.mrf.mxu0  ;;  %1983 = vmatmul.mubr.bf16.gmra.mxu0 %v2583_v25 }
 0x11f   : > { %v1594_v39 = vadd.f32 %v2872_v35, %v3729_v16  ;;  %v2985_v40 = vpop.f32.mrf.mxu1  ;;  %2144 = vmatmul.mubr.bf16.gmra.mxu1 %v2585_v29  ;;  %1990 = vmatprep.mubr.bf16.mxu0 %v2592_v30 }
 0x120   : > { %v2874_v41 = vpop.f32.mrf.mxu0  ;;  %2151 = vmatprep.mubr.bf16.mxu1 %v2594_v32 }
 0x121   : > { %v3789_v42 = vadd.f32 %v2984_v37, %v1594_v39  ;;  %v2875_v45 = vadd.f32 %v2874_v41, %v2873_v38  ;;  %v2986_v46 = vpop.f32.mrf.mxu1 }
 0x122   : > { %v2987_v47 = vadd.f32 %v2986_v46, %v2985_v40  ;;  %v2876_v48 = vpop.f32.mrf.mxu0 }
 0x123   : > { %v1599_v50 = vadd.f32 %v2875_v45, %v3729_v16  ;;  %v2988_v51 = vpop.f32.mrf.mxu1 }
 0x124   : > { %v2877_v53 = vpop.f32.mrf.mxu0 }
 0x125   : > { %v3792_v55 = vadd.f32 %v2987_v47, %v1599_v50  ;;  %v2878_v56 = vadd.f32 %v2877_v53, %v2876_v48  ;;  %v2989_v58 = vpop.f32.mrf.mxu1 }
 0x126   : > { %v2990_v59 = vadd.f32 %v2989_v58, %v2988_v51  ;;  %v2879_v60 = vpop.f32.mrf.mxu0  ;;  %1991 = vmatmul.mubr.bf16.gmra.mxu0 %v2591_v49 }
 0x127   : > { %v1602_v61 = vadd.f32 %v2878_v56, %v3729_v16  ;;  %v2991_v62 = vpop.f32.mrf.mxu1  ;;  %2152 = vmatmul.mubr.bf16.gmra.mxu1 %v2593_v52 }
 0x128   : > { %v2880_v63 = vpop.f32.mrf.mxu0 }
 0x129   : > { %v3795_v0 = vadd.f32 %v2990_v59, %v1602_v61  ;;  %v2881_v1 = vadd.f32 %v2880_v63, %v2879_v60  ;;  %v2992_v2 = vpop.f32.mrf.mxu1 }
 0x12a   : > { %v2993_v4 = vadd.f32 %v2992_v2, %v2991_v62  ;;  %v2882_v5 = vpop.f32.mrf.mxu0 }
 0x12b   : > { %v1607_v7 = vadd.f32 %v2881_v1, %v3729_v16  ;;  %v2994_v8 = vpop.f32.mrf.mxu1 }
 0x12c   : > { %v2883_v9 = vpop.f32.mrf.mxu0 }
 0x12d   : > { %v3798_v10 = vadd.f32 %v2993_v4, %v1607_v7  ;;  %v2884_v11 = vadd.f32 %v2883_v9, %v2882_v5  ;;  %v2995_v12 = vpop.f32.mrf.mxu1 }
 0x12e   : > { %v2996_v13 = vadd.f32 %v2995_v12, %v2994_v8  ;;  %v2885_v14 = vpop.f32.mrf.mxu0 }
 0x12f   : > { %v1610_v15 = vadd.f32 %v2884_v11, %v3729_v16  ;;  %v2997_v19 = vpop.f32.mrf.mxu1 }
 0x130   : > { %v2886_v20 = vpop.f32.mrf.mxu0 }
 0x131   : > { %v3801_v21 = vadd.f32 %v2996_v13, %v1610_v15  ;;  %v2887_v22 = vadd.f32 %v2886_v20, %v2885_v14  ;;  %v2998_v23 = vpop.f32.mrf.mxu1 }
 0x132   : > { %v2999_v24 = vadd.f32 %v2998_v23, %v2997_v19  ;;  %v2888_v25 = vpop.f32.mrf.mxu0 }
 0x133   : > { %v1615_v26 = vadd.f32 %v2887_v22, %v3729_v16  ;;  %v3000_v27 = vpop.f32.mrf.mxu1 }
 0x134   : > { %v2889_v29 = vpop.f32.mrf.mxu0 }
 0x135   : > { %v3804_v30 = vadd.f32 %v2999_v24, %v1615_v26  ;;  %v2890_v31 = vadd.f32 %v2889_v29, %v2888_v25  ;;  %v3001_v32 = vpop.f32.mrf.mxu1 }
 0x136   : > { %v3002_v35 = vadd.f32 %v3001_v32, %v3000_v27  ;;  %v2891_v36 = vpop.f32.mrf.mxu0 }
 0x137   : > { %v1618_v37 = vadd.f32 %v2890_v31, %v3729_v16  ;;  %v3003_v38 = vpop.f32.mrf.mxu1 }
 0x138   : > { %v2892_v39 = vpop.f32.mrf.mxu0 }
 0x139   : > { %v3807_v40 = vadd.f32 %v3002_v35, %v1618_v37  ;;  %v2893_v41 = vadd.f32 %v2892_v39, %v2891_v36  ;;  %v3004_v45 = vpop.f32.mrf.mxu1 }
 0x13a   : > { %v3005_v46 = vadd.f32 %v3004_v45, %v3003_v38  ;;  %v2894_v47 = vpop.f32.mrf.mxu0 }
 0x13b   : > { %v1623_v48 = vadd.f32 %v2893_v41, %v3729_v16  ;;  %v3006_v49 = vpop.f32.mrf.mxu1 }
 0x13c   : > { %v2895_v50 = vpop.f32.mrf.mxu0 }
 0x13d   : > { %v3810_v51 = vadd.f32 %v3005_v46, %v1623_v48  ;;  %v2896_v52 = vadd.f32 %v2895_v50, %v2894_v47  ;;  %v3007_v53 = vpop.f32.mrf.mxu1 }
 0x13e   : > { %v3008_v56 = vadd.f32 %v3007_v53, %v3006_v49  ;;  %v2897_v58 = vpop.f32.mrf.mxu0 }
 0x13f   : > { %v1626_v59 = vadd.f32 %v2896_v52, %v3729_v16  ;;  %v3009_v60 = vpop.f32.mrf.mxu1 }
 0x140   : > { %v2898_v61 = vpop.f32.mrf.mxu0 }
 0x141   : > { %v3813_v62 = vadd.f32 %v3008_v56, %v1626_v59  ;;  %v2899_v63 = vadd.f32 %v2898_v61, %v2897_v58  ;;  %v3010_v1 = vpop.f32.mrf.mxu1 }
 0x142   : > { %v3011_v2 = vadd.f32 %v3010_v1, %v3009_v60  ;;  %v2900_v4 = vpop.f32.mrf.mxu0 }
 0x143   : > { %v1631_v5 = vadd.f32 %v2899_v63, %v3729_v16  ;;  %v3012_v7 = vpop.f32.mrf.mxu1 }
 0x144   : > { %v2901_v8 = vpop.f32.mrf.mxu0 }
 0x145   : > { %v3816_v9 = vadd.f32 %v3011_v2, %v1631_v5  ;;  %v2902_v11 = vadd.f32 %v2901_v8, %v2900_v4  ;;  %v3013_v12 = vpop.f32.mrf.mxu1 }
 0x146   : > { %v3014_v13 = vadd.f32 %v3013_v12, %v3012_v7  ;;  %v2903_v14 = vpop.f32.mrf.mxu0 }
 0x147   : > { %v1634_v15 = vadd.f32 %v2902_v11, %v3729_v16  ;;  %v3015_v19 = vpop.f32.mrf.mxu1 }
 0x148   : > { %v2904_v20 = vpop.f32.mrf.mxu0 }
 0x149   : > { %v3819_v22 = vadd.f32 %v3014_v13, %v1634_v15  ;;  %v2905_v23 = vadd.f32 %v2904_v20, %v2903_v14  ;;  %v3016_v24 = vpop.f32.mrf.mxu1 }
 0x14a   : > { %v3017_v25 = vadd.f32 %v3016_v24, %v3015_v19  ;;  %v2906_v26 = vpop.f32.mrf.mxu0 }
 0x14b   : > { %v1639_v27 = vadd.f32 %v2905_v23, %v3729_v16  ;;  %v3018_v29 = vpop.f32.mrf.mxu1 }
 0x14c   : > { %v2907_v31 = vpop.f32.mrf.mxu0 }
 0x14d   : > { %v3822_v32 = vadd.f32 %v3017_v25, %v1639_v27  ;;  %v2908_v35 = vadd.f32 %v2907_v31, %v2906_v26  ;;  %v3019_v36 = vpop.f32.mrf.mxu1 }
 0x14e   : > { %v3020_v37 = vadd.f32 %v3019_v36, %v3018_v29  ;;  %v2909_v38 = vpop.f32.mrf.mxu0 }
 0x14f   : > { %v1642_v39 = vadd.f32 %v2908_v35, %v3729_v16  ;;  %v3021_v41 = vpop.f32.mrf.mxu1 }
 0x150   : > { %v2910_v45 = vpop.f32.mrf.mxu0 }
 0x151   : > { %v3825_v46 = vadd.f32 %v3020_v37, %v1642_v39  ;;  %v2911_v47 = vadd.f32 %v2910_v45, %v2909_v38  ;;  %v3022_v48 = vpop.f32.mrf.mxu1 }
 0x152   : > { %v3023_v49 = vadd.f32 %v3022_v48, %v3021_v41  ;;  %v2912_v50 = vpop.f32.mrf.mxu0 }
 0x153   : > { %v1647_v52 = vadd.f32 %v2911_v47, %v3729_v16  ;;  %v3024_v53 = vpop.f32.mrf.mxu1 }
 0x154   : > { %v2913_v56 = vpop.f32.mrf.mxu0 }
 0x155   : > { %v3828_v58 = vadd.f32 %v3023_v49, %v1647_v52  ;;  %v2914_v59 = vadd.f32 %v2913_v56, %v2912_v50  ;;  %v3025_v60 = vpop.f32.mrf.mxu1 }
 0x156   : > { %v3026_v61 = vadd.f32 %v3025_v60, %v3024_v53  ;;  %v2915_v63 = vpop.f32.mrf.mxu0 }
 0x157   : > { %v1650_v1 = vadd.f32 %v2914_v59, %v3729_v16  ;;  %v3027_v2 = vpop.f32.mrf.mxu1 }
 0x158   : > { %v2916_v4 = vpop.f32.mrf.mxu0 }
 0x159   : > { %v3831_v5 = vadd.f32 %v3026_v61, %v1650_v1  ;;  %v2917_v7 = vadd.f32 %v2916_v4, %v2915_v63  ;;  %v3028_v8 = vpop.f32.mrf.mxu1 }
 0x15a   : > { %v3029_v11 = vadd.f32 %v3028_v8, %v3027_v2  ;;  %v2918_v12 = vpop.f32.mrf.mxu0 }
 0x15b   : > { %v1655_v13 = vadd.f32 %v2917_v7, %v3729_v16  ;;  %v3030_v14 = vpop.f32.mrf.mxu1 }
 0x15c   : > { %v2919_v15 = vpop.f32.mrf.mxu0 }
 0x15d   : > { %v3834_v19 = vadd.f32 %v3029_v11, %v1655_v13  ;;  %v2920_v20 = vadd.f32 %v2919_v15, %v2918_v12  ;;  %v3031_v23 = vpop.f32.mrf.mxu1 }
 0x15e   : > { %v3032_v24 = vadd.f32 %v3031_v23, %v3030_v14  ;;  %v2921_v25 = vpop.f32.mrf.mxu0 }
 0x15f   : > { %v1658_v26 = vadd.f32 %v2920_v20, %v3729_v16  ;;  %v3033_v27 = vpop.f32.mrf.mxu1 }
 0x160   : > { %v2922_v29 = vpop.f32.mrf.mxu0 }
 0x161   : > { %v3837_v31 = vadd.f32 %v3032_v24, %v1658_v26  ;;  %v2923_v35 = vadd.f32 %v2922_v29, %v2921_v25  ;;  %v3034_v36 = vpop.f32.mrf.mxu1 }
 0x162   : > { %v3035_v37 = vadd.f32 %v3034_v36, %v3033_v27  ;;  %v2924_v38 = vpop.f32.mrf.mxu0 }
 0x163   : > { %v1663_v39 = vadd.f32 %v2923_v35, %v3729_v16  ;;  %v3036_v41 = vpop.f32.mrf.mxu1 }
 0x164   : > { %v2925_v45 = vpop.f32.mrf.mxu0 }
 0x165   : > { %v3840_v47 = vadd.f32 %v3035_v37, %v1663_v39  ;;  %v2926_v48 = vadd.f32 %v2925_v45, %v2924_v38  ;;  %v3037_v49 = vpop.f32.mrf.mxu1 }
 0x166   : > { %v3038_v50 = vadd.f32 %v3037_v49, %v3036_v41  ;;  %v2927_v52 = vpop.f32.mrf.mxu0 }
 0x167   : > { %v1666_v53 = vadd.f32 %v2926_v48, %v3729_v16  ;;  %v3039_v56 = vpop.f32.mrf.mxu1 }
 0x168   : > { %v2928_v59 = vpop.f32.mrf.mxu0 }
 0x169   : > { %v3843_v60 = vadd.f32 %v3038_v50, %v1666_v53  ;;  %v2929_v61 = vadd.f32 %v2928_v59, %v2927_v52  ;;  %v3040_v63 = vpop.f32.mrf.mxu1 }
 0x16a   : > { %v3041_v1 = vadd.f32 %v3040_v63, %v3039_v56  ;;  %v2930_v2 = vpop.f32.mrf.mxu0 }
 0x16b   : > { %v1671_v4 = vadd.f32 %v2929_v61, %v3729_v16  ;;  %v3042_v7 = vpop.f32.mrf.mxu1 }
 0x16c   : > { %v2931_v8 = vpop.f32.mrf.mxu0 }
 0x16d   : > { %v3846_v11 = vadd.f32 %v3041_v1, %v1671_v4  ;;  %v2932_v12 = vadd.f32 %v2931_v8, %v2930_v2  ;;  %v3043_v13 = vpop.f32.mrf.mxu1 }
 0x16e   : > { %v3044_v14 = vadd.f32 %v3043_v13, %v3042_v7  ;;  %v3061_v15 = vpop.f32.mrf.mxu0 }
 0x16f   : > { %v1674_v20 = vadd.f32 %v2932_v12, %v3729_v16  ;;  %v3173_v23 = vpop.f32.mrf.mxu1 }
 0x170   : > { %v3062_v24 = vpop.f32.mrf.mxu0 }
 0x171   : > { %v3849_v25 = vadd.f32 %v3044_v14, %v1674_v20  ;;  %v3063_v26 = vadd.f32 %v3062_v24, %v3061_v15  ;;  %v3174_v27 = vpop.f32.mrf.mxu1 }
 0x172   : > { %v3064_v29 = vpop.f32.mrf.mxu0  ;;  %v3175_v38 = vadd.f32 %v3174_v27, %v3173_v23 }
 0x173   : > { %v1873_v35 = vadd.f32 %v3063_v26, %v3736_v33  ;;  %v3176_v36 = vpop.f32.mrf.mxu1 }
 0x174   : > { %v3065_v37 = vpop.f32.mrf.mxu0 }
 0x175   : > { %v3066_v39 = vadd.f32 %v3065_v37, %v3064_v29  ;;  %v3177_v41 = vpop.f32.mrf.mxu1  ;;  %v2034_v48 = vadd.f32 %v3175_v38, %v1873_v35 }
 0x176   : > { %v3067_v45 = vpop.f32.mrf.mxu0  ;;  %v3178_v16 = vadd.f32 %v3177_v41, %v3176_v36 }
 0x177   : > { %v1876_v49 = vadd.f32 %v3066_v39, %v3741_v43  ;;  %v3179_v50 = vpop.f32.mrf.mxu1  ;;  %v2160_v63 = vmax.f32 %v2034_v48, 0.0 }
 0x178   : > { %v3068_v52 = vpop.f32.mrf.mxu0 }
 0x179   : > { %v2037_v53 = vadd.f32 %v3178_v16, %v1876_v49  ;;  %v3069_v56 = vadd.f32 %v3068_v52, %v3067_v45  ;;  %v3180_v59 = vpop.f32.mrf.mxu1 }
 0x17a   : > { %v3070_v61 = vpop.f32.mrf.mxu0  ;;  %v3181_v7 = vadd.f32 %v3180_v59, %v3179_v50 }
 0x17b   : > { %v2161_v1 = vmax.f32 %v2037_v53, 0.0  ;;  %v1881_v33 = vadd.f32 %v3069_v56, %v3746_v57  ;;  %v3182_v2 = vpop.f32.mrf.mxu1 }
 0x17c   : > { %v3071_v43 = vpop.f32.mrf.mxu0 }
 0x17d   : > { %v2729_v4 = vpack.c.bf16 %v2161_v1, %v2160_v63  ;;  %v3072_v8 = vadd.f32 %v3071_v43, %v3070_v61  ;;  %v3183_v12 = vpop.f32.mrf.mxu1  ;;  %v2042_v14 = vadd.f32 %v3181_v7, %v1881_v33 }
 0x17e   : > { %v3073_v13 = vpop.f32.mrf.mxu0  ;;  %v3184_v20 = vadd.f32 %v3183_v12, %v3182_v2 }
 0x17f   : > { %2730 = vst [vmem:[%s3858_s17] sm:$0xff] %v2729_v4   ;;  %v1884_v15 = vadd.f32 %v3072_v8, %v3751_v3  ;;  %v3185_v23 = vpop.f32.mrf.mxu1  ;;  %v2162_v35 = vmax.f32 %v2042_v14, 0.0 }
 0x180   : > { %v3074_v57 = vpop.f32.mrf.mxu0 }
 0x181   : > { %v2045_v24 = vadd.f32 %v3184_v20, %v1884_v15  ;;  %v3075_v26 = vadd.f32 %v3074_v57, %v3073_v13  ;;  %v3186_v27 = vpop.f32.mrf.mxu1 }
 0x182   : > { %v3076_v29 = vpop.f32.mrf.mxu0  ;;  %v3187_v45 = vadd.f32 %v3186_v27, %v3185_v23 }
 0x183   : > { %v2163_v36 = vmax.f32 %v2045_v24, 0.0  ;;  %v1889_v37 = vadd.f32 %v3075_v26, %v3756_v18  ;;  %v3188_v38 = vpop.f32.mrf.mxu1 }
 0x184   : > { %v3077_v39 = vpop.f32.mrf.mxu0 }
 0x185   : > { %v2734_v41 = vpack.c.bf16 %v2163_v36, %v2162_v35  ;;  %v3078_v48 = vadd.f32 %v3077_v39, %v3076_v29  ;;  %v3189_v49 = vpop.f32.mrf.mxu1  ;;  %v2050_v3 = vadd.f32 %v3187_v45, %v1889_v37 }
 0x186   : > { %v3079_v16 = vpop.f32.mrf.mxu0  ;;  %v3190_v52 = vadd.f32 %v3189_v49, %v3188_v38 }
 0x187   : > { %2806 = vst [vmem:[%s3858_s17 + $0x8] sm:$0xff] %v2734_v41   ;;  %v1892_v50 = vadd.f32 %v3078_v48, %v3761_v28  ;;  %v3191_v53 = vpop.f32.mrf.mxu1  ;;  %v2164_v18 = vmax.f32 %v2050_v3, 0.0 }
 0x188   : > { %v3080_v56 = vpop.f32.mrf.mxu0 }
 0x189   : > { %v2053_v59 = vadd.f32 %v3190_v52, %v1892_v50  ;;  %v3081_v61 = vadd.f32 %v3080_v56, %v3079_v16  ;;  %v3192_v63 = vpop.f32.mrf.mxu1 }
 0x18a   : > { %v3082_v1 = vpop.f32.mrf.mxu0  ;;  %v3193_v8 = vadd.f32 %v3192_v63, %v3191_v53 }
 0x18b   : > { %v2165_v33 = vmax.f32 %v2053_v59, 0.0  ;;  %v1897_v2 = vadd.f32 %v3081_v61, %v3766_v44  ;;  %v3194_v43 = vpop.f32.mrf.mxu1 }
 0x18c   : > { %v3083_v4 = vpop.f32.mrf.mxu0 }
 0x18d   : > { %v2739_v7 = vpack.c.bf16 %v2165_v33, %v2164_v18  ;;  %v3084_v12 = vadd.f32 %v3083_v4, %v3082_v1  ;;  %v3195_v13 = vpop.f32.mrf.mxu1  ;;  %v2058_v28 = vadd.f32 %v3193_v8, %v1897_v2 }
 0x18e   : > { %v3085_v14 = vpop.f32.mrf.mxu0  ;;  %v3196_v20 = vadd.f32 %v3195_v13, %v3194_v43 }
 0x18f   : > { %2807 = vst [vmem:[%s3858_s17 + $0x10] sm:$0xff] %v2739_v7   ;;  %v1900_v15 = vadd.f32 %v3084_v12, %v3771_v54  ;;  %v3197_v23 = vpop.f32.mrf.mxu1  ;;  %v2166_v44 = vmax.f32 %v2058_v28, 0.0 }
 0x190   : > { %v3086_v57 = vpop.f32.mrf.mxu0 }
 0x191   : > { %v2061_v24 = vadd.f32 %v3196_v20, %v1900_v15  ;;  %v3087_v26 = vadd.f32 %v3086_v57, %v3085_v14  ;;  %v3198_v27 = vpop.f32.mrf.mxu1 }
 0x192   : > { %v3088_v29 = vpop.f32.mrf.mxu0  ;;  %v3199_v41 = vadd.f32 %v3198_v27, %v3197_v23 }
 0x193   : > { %v2167_v35 = vmax.f32 %v2061_v24, 0.0  ;;  %v1905_v36 = vadd.f32 %v3087_v26, %v3776_v6  ;;  %v3200_v37 = vpop.f32.mrf.mxu1 }
 0x194   : > { %v3089_v38 = vpop.f32.mrf.mxu0 }
 0x195   : > { %v2744_v39 = vpack.c.bf16 %v2167_v35, %v2166_v44  ;;  %v3090_v45 = vadd.f32 %v3089_v38, %v3088_v29  ;;  %v3201_v48 = vpop.f32.mrf.mxu1  ;;  %v2066_v54 = vadd.f32 %v3199_v41, %v1905_v36 }
 0x196   : > { %v3091_v49 = vpop.f32.mrf.mxu0  ;;  %v3202_v3 = vadd.f32 %v3201_v48, %v3200_v37 }
 0x197   : > { %2808 = vst [vmem:[%s3858_s17 + $0x18] sm:$0xff] %v2744_v39   ;;  %v1908_v16 = vadd.f32 %v3090_v45, %v3781_v17  ;;  %v3203_v50 = vpop.f32.mrf.mxu1  ;;  %v2168_v6 = vmax.f32 %v2066_v54, 0.0 }
 0x198   : > { %v3092_v52 = vpop.f32.mrf.mxu0 }
 0x199   : > { %v2069_v53 = vadd.f32 %v3202_v3, %v1908_v16  ;;  %v3093_v56 = vadd.f32 %v3092_v52, %v3091_v49  ;;  %v3204_v59 = vpop.f32.mrf.mxu1 }
 0x19a   : > { %v3094_v61 = vpop.f32.mrf.mxu0  ;;  %v3205_v43 = vadd.f32 %v3204_v59, %v3203_v50 }
 0x19b   : > { %v2169_v63 = vmax.f32 %v2069_v53, 0.0  ;;  %v1913_v1 = vadd.f32 %v3093_v56, %v3786_v34  ;;  %v3206_v18 = vpop.f32.mrf.mxu1 }
 0x19c   : > { %v3095_v33 = vpop.f32.mrf.mxu0 }
 0x19d   : > { %v2749_v2 = vpack.c.bf16 %v2169_v63, %v2168_v6  ;;  %v3096_v4 = vadd.f32 %v3095_v33, %v3094_v61  ;;  %v3207_v7 = vpop.f32.mrf.mxu1  ;;  %v2074_v17 = vadd.f32 %v3205_v43, %v1913_v1 }
 0x19e   : > { %v3097_v8 = vpop.f32.mrf.mxu0  ;;  %v3208_v13 = vadd.f32 %v3207_v7, %v3206_v18 }
 0x19f   : > { %2809 = vst [vmem:[%s3858_s17 + $0x20] sm:$0xff] %v2749_v2   ;;  %v1916_v12 = vadd.f32 %v3096_v4, %v3789_v42  ;;  %v3209_v14 = vpop.f32.mrf.mxu1  ;;  %v2170_v34 = vmax.f32 %v2074_v17, 0.0 }
 0x1a0   : > { %v3098_v28 = vpop.f32.mrf.mxu0 }
 0x1a1   : > { %v2077_v15 = vadd.f32 %v3208_v13, %v1916_v12  ;;  %v3099_v20 = vadd.f32 %v3098_v28, %v3097_v8  ;;  %v3210_v23 = vpop.f32.mrf.mxu1 }
 0x1a2   : > { %v3100_v57 = vpop.f32.mrf.mxu0  ;;  %v3211_v35 = vadd.f32 %v3210_v23, %v3209_v14 }
 0x1a3   : > { %v2171_v24 = vmax.f32 %v2077_v15, 0.0  ;;  %v1921_v26 = vadd.f32 %v3099_v20, %v3792_v55  ;;  %v3212_v27 = vpop.f32.mrf.mxu1 }
 0x1a4   : > { %v3101_v29 = vpop.f32.mrf.mxu0 }
 0x1a5   : > { %v2754_v44 = vpack.c.bf16 %v2171_v24, %v2170_v34  ;;  %v3102_v36 = vadd.f32 %v3101_v29, %v3100_v57  ;;  %v3213_v37 = vpop.f32.mrf.mxu1  ;;  %v2082_v42 = vadd.f32 %v3211_v35, %v1921_v26 }
 0x1a6   : > { %v3103_v38 = vpop.f32.mrf.mxu0  ;;  %v3214_v41 = vadd.f32 %v3213_v37, %v3212_v27 }
 0x1a7   : > { %2810 = vst [vmem:[%s3858_s17 + $0x28] sm:$0xff] %v2754_v44   ;;  %v1924_v39 = vadd.f32 %v3102_v36, %v3795_v0  ;;  %v3215_v45 = vpop.f32.mrf.mxu1  ;;  %v2172_v55 = vmax.f32 %v2082_v42, 0.0 }
 0x1a8   : > { %v3104_v48 = vpop.f32.mrf.mxu0 }
 0x1a9   : > { %v2085_v49 = vadd.f32 %v3214_v41, %v1924_v39  ;;  %v3105_v54 = vadd.f32 %v3104_v48, %v3103_v38  ;;  %v3216_v16 = vpop.f32.mrf.mxu1 }
 0x1aa   : > { %v3106_v3 = vpop.f32.mrf.mxu0  ;;  %v3217_v61 = vadd.f32 %v3216_v16, %v3215_v45 }
 0x1ab   : > { %v2173_v50 = vmax.f32 %v2085_v49, 0.0  ;;  %v1929_v52 = vadd.f32 %v3105_v54, %v3798_v10  ;;  %v3218_v53 = vpop.f32.mrf.mxu1 }
 0x1ac   : > { %v3107_v56 = vpop.f32.mrf.mxu0 }
 0x1ad   : > { %v2759_v59 = vpack.c.bf16 %v2173_v50, %v2172_v55  ;;  %v3108_v6 = vadd.f32 %v3107_v56, %v3106_v3  ;;  %v3219_v63 = vpop.f32.mrf.mxu1  ;;  %v2090_v0 = vadd.f32 %v3217_v61, %v1929_v52 }
 0x1ae   : > { %v3109_v1 = vpop.f32.mrf.mxu0  ;;  %v3220_v33 = vadd.f32 %v3219_v63, %v3218_v53 }
 0x1af   : > { %2811 = vst [vmem:[%s3858_s17 + $0x30] sm:$0xff] %v2759_v59   ;;  %v1932_v18 = vadd.f32 %v3108_v6, %v3801_v21  ;;  %v3221_v2 = vpop.f32.mrf.mxu1  ;;  %v2174_v10 = vmax.f32 %v2090_v0, 0.0 }
 0x1b0   : > { %v3110_v43 = vpop.f32.mrf.mxu0 }
 0x1b1   : > { %v2093_v4 = vadd.f32 %v3220_v33, %v1932_v18  ;;  %v3111_v7 = vadd.f32 %v3110_v43, %v3109_v1  ;;  %v3222_v8 = vpop.f32.mrf.mxu1 }
 0x1b2   : > { %v3112_v17 = vpop.f32.mrf.mxu0  ;;  %v3223_v20 = vadd.f32 %v3222_v8, %v3221_v2 }
 0x1b3   : > { %v2175_v12 = vmax.f32 %v2093_v4, 0.0  ;;  %v1937_v13 = vadd.f32 %v3111_v7, %v3804_v30  ;;  %v3224_v14 = vpop.f32.mrf.mxu1 }
 0x1b4   : > { %v3113_v28 = vpop.f32.mrf.mxu0 }
 0x1b5   : > { %v2764_v15 = vpack.c.bf16 %v2175_v12, %v2174_v10  ;;  %v3114_v23 = vadd.f32 %v3113_v28, %v3112_v17  ;;  %v3225_v57 = vpop.f32.mrf.mxu1  ;;  %v2098_v21 = vadd.f32 %v3223_v20, %v1937_v13 }
 0x1b6   : > { %v3115_v34 = vpop.f32.mrf.mxu0  ;;  %v3226_v26 = vadd.f32 %v3225_v57, %v3224_v14 }
 0x1b7   : > { %2812 = vst [vmem:[%s3858_s17 + $0x38] sm:$0xff] %v2764_v15   ;;  %v1940_v24 = vadd.f32 %v3114_v23, %v3807_v40  ;;  %v3227_v27 = vpop.f32.mrf.mxu1  ;;  %v2176_v30 = vmax.f32 %v2098_v21, 0.0 }
 0x1b8   : > { %v3116_v29 = vpop.f32.mrf.mxu0 }
 0x1b9   : > { %v2101_v44 = vadd.f32 %v3226_v26, %v1940_v24  ;;  %v3117_v35 = vadd.f32 %v3116_v29, %v3115_v34  ;;  %v3228_v36 = vpop.f32.mrf.mxu1 }
 0x1ba   : > { %v3118_v37 = vpop.f32.mrf.mxu0  ;;  %v3229_v48 = vadd.f32 %v3228_v36, %v3227_v27 }
 0x1bb   : > { %v2177_v38 = vmax.f32 %v2101_v44, 0.0  ;;  %v1945_v42 = vadd.f32 %v3117_v35, %v3810_v51  ;;  %v3230_v39 = vpop.f32.mrf.mxu1 }
 0x1bc   : > { %v3119_v41 = vpop.f32.mrf.mxu0 }
 0x1bd   : > { %v2769_v45 = vpack.c.bf16 %v2177_v38, %v2176_v30  ;;  %v3120_v49 = vadd.f32 %v3119_v41, %v3118_v37  ;;  %v3231_v54 = vpop.f32.mrf.mxu1  ;;  %v2106_v40 = vadd.f32 %v3229_v48, %v1945_v42 }
 0x1be   : > { %v3121_v16 = vpop.f32.mrf.mxu0  ;;  %v3232_v55 = vadd.f32 %v3231_v54, %v3230_v39 }
 0x1bf   : > { %2813 = vst [vmem:[%s3858_s17 + $0x40] sm:$0xff] %v2769_v45   ;;  %v1948_v3 = vadd.f32 %v3120_v49, %v3813_v62  ;;  %v3233_v50 = vpop.f32.mrf.mxu1  ;;  %v2178_v51 = vmax.f32 %v2106_v40, 0.0 }
 0x1c0   : > { %v3122_v52 = vpop.f32.mrf.mxu0 }
 0x1c1   : > { %v2109_v53 = vadd.f32 %v3232_v55, %v1948_v3  ;;  %v3123_v56 = vadd.f32 %v3122_v52, %v3121_v16  ;;  %v3234_v59 = vpop.f32.mrf.mxu1 }
 0x1c2   : > { %v3124_v61 = vpop.f32.mrf.mxu0  ;;  %v3235_v33 = vadd.f32 %v3234_v59, %v3233_v50 }
 0x1c3   : > { %v2179_v6 = vmax.f32 %v2109_v53, 0.0  ;;  %v1953_v63 = vadd.f32 %v3123_v56, %v3816_v9  ;;  %v3236_v1 = vpop.f32.mrf.mxu1 }
 0x1c4   : > { %v3125_v0 = vpop.f32.mrf.mxu0 }
 0x1c5   : > { %v2774_v18 = vpack.c.bf16 %v2179_v6, %v2178_v51  ;;  %v3126_v2 = vadd.f32 %v3125_v0, %v3124_v61  ;;  %v3237_v43 = vpop.f32.mrf.mxu1  ;;  %v2114_v62 = vadd.f32 %v3235_v33, %v1953_v63 }
 0x1c6   : > { %v3127_v4 = vpop.f32.mrf.mxu0  ;;  %v3238_v8 = vadd.f32 %v3237_v43, %v3236_v1 }
 0x1c7   : > { %2814 = vst [vmem:[%s3858_s17 + $0x48] sm:$0xff] %v2774_v18   ;;  %v1956_v7 = vadd.f32 %v3126_v2, %v3819_v22  ;;  %v3239_v17 = vpop.f32.mrf.mxu1  ;;  %v2180_v9 = vmax.f32 %v2114_v62, 0.0 }
 0x1c8   : > { %v3128_v10 = vpop.f32.mrf.mxu0 }
 0x1c9   : > { %v2117_v12 = vadd.f32 %v3238_v8, %v1956_v7  ;;  %v3129_v13 = vadd.f32 %v3128_v10, %v3127_v4  ;;  %v3240_v14 = vpop.f32.mrf.mxu1 }
 0x1ca   : > { %v3130_v28 = vpop.f32.mrf.mxu0  ;;  %v3241_v21 = vadd.f32 %v3240_v14, %v3239_v17 }
 0x1cb   : > { %v2181_v15 = vmax.f32 %v2117_v12, 0.0  ;;  %v1961_v20 = vadd.f32 %v3129_v13, %v3822_v32  ;;  %v3242_v23 = vpop.f32.mrf.mxu1 }
 0x1cc   : > { %v3131_v57 = vpop.f32.mrf.mxu0 }
 0x1cd   : > { %v2779_v34 = vpack.c.bf16 %v2181_v15, %v2180_v9  ;;  %v3132_v24 = vadd.f32 %v3131_v57, %v3130_v28  ;;  %v3243_v26 = vpop.f32.mrf.mxu1  ;;  %v2122_v22 = vadd.f32 %v3241_v21, %v1961_v20 }
 0x1ce   : > { %v3133_v27 = vpop.f32.mrf.mxu0  ;;  %v3244_v44 = vadd.f32 %v3243_v26, %v3242_v23 }
 0x1cf   : > { %2815 = vst [vmem:[%s3858_s17 + $0x50] sm:$0xff] %v2779_v34   ;;  %v1964_v29 = vadd.f32 %v3132_v24, %v3825_v46  ;;  %v3245_v35 = vpop.f32.mrf.mxu1  ;;  %v2182_v32 = vmax.f32 %v2122_v22, 0.0 }
 0x1d0   : > { %v3134_v36 = vpop.f32.mrf.mxu0 }
 0x1d1   : > { %v2125_v37 = vadd.f32 %v3244_v44, %v1964_v29  ;;  %v3135_v30 = vadd.f32 %v3134_v36, %v3133_v27  ;;  %v3246_v38 = vpop.f32.mrf.mxu1 }
 0x1d2   : > { %v3136_v42 = vpop.f32.mrf.mxu0  ;;  %v3247_v54 = vadd.f32 %v3246_v38, %v3245_v35 }
 0x1d3   : > { %v2183_v39 = vmax.f32 %v2125_v37, 0.0  ;;  %v1969_v41 = vadd.f32 %v3135_v30, %v3828_v58  ;;  %v3248_v45 = vpop.f32.mrf.mxu1 }
 0x1d4   : > { %v3137_v48 = vpop.f32.mrf.mxu0 }
 0x1d5   : > { %v2784_v49 = vpack.c.bf16 %v2183_v39, %v2182_v32  ;;  %v3138_v16 = vadd.f32 %v3137_v48, %v3136_v42  ;;  %v3249_v40 = vpop.f32.mrf.mxu1  ;;  %v2130_v46 = vadd.f32 %v3247_v54, %v1969_v41 }
 0x1d6   : > { %v3139_v3 = vpop.f32.mrf.mxu0  ;;  %v3250_v50 = vadd.f32 %v3249_v40, %v3248_v45 }
 0x1d7   : > { %2816 = vst [vmem:[%s3858_s17 + $0x58] sm:$0xff] %v2784_v49   ;;  %v1972_v55 = vadd.f32 %v3138_v16, %v3831_v5  ;;  %v3251_v52 = vpop.f32.mrf.mxu1  ;;  %v2184_v58 = vmax.f32 %v2130_v46, 0.0 }
 0x1d8   : > { %v3140_v53 = vpop.f32.mrf.mxu0 }
 0x1d9   : > { %v2133_v56 = vadd.f32 %v3250_v50, %v1972_v55  ;;  %v3141_v59 = vadd.f32 %v3140_v53, %v3139_v3  ;;  %v3252_v61 = vpop.f32.mrf.mxu1 }
 0x1da   : > { %v3142_v51 = vpop.f32.mrf.mxu0  ;;  %v3253_v33 = vadd.f32 %v3252_v61, %v3251_v52 }
 0x1db   : > { %v2185_v6 = vmax.f32 %v2133_v56, 0.0  ;;  %v1977_v63 = vadd.f32 %v3141_v59, %v3834_v19  ;;  %v3254_v1 = vpop.f32.mrf.mxu1 }
 0x1dc   : > { %v3143_v0 = vpop.f32.mrf.mxu0 }
 0x1dd   : > { %v2789_v18 = vpack.c.bf16 %v2185_v6, %v2184_v58  ;;  %v3144_v2 = vadd.f32 %v3143_v0, %v3142_v51  ;;  %v3255_v43 = vpop.f32.mrf.mxu1  ;;  %v2138_v5 = vadd.f32 %v3253_v33, %v1977_v63 }
 0x1de   : > { %v3145_v4 = vpop.f32.mrf.mxu0  ;;  %v3256_v7 = vadd.f32 %v3255_v43, %v3254_v1 }
 0x1df   : > { %2817 = vst [vmem:[%s3858_s17 + $0x60] sm:$0xff] %v2789_v18   ;;  %v1980_v62 = vadd.f32 %v3144_v2, %v3837_v31  ;;  %v3257_v8 = vpop.f32.mrf.mxu1  ;;  %v2186_v19 = vmax.f32 %v2138_v5, 0.0 }
 0x1e0   : > { %v3146_v17 = vpop.f32.mrf.mxu0 }
 0x1e1   : > { %v2141_v10 = vadd.f32 %v3256_v7, %v1980_v62  ;;  %v3147_v12 = vadd.f32 %v3146_v17, %v3145_v4  ;;  %v3258_v13 = vpop.f32.mrf.mxu1 }
 0x1e2   : > { %v3148_v14 = vpop.f32.mrf.mxu0  ;;  %v3259_v57 = vadd.f32 %v3258_v13, %v3257_v8 }
 0x1e3   : > { %v2187_v28 = vmax.f32 %v2141_v10, 0.0  ;;  %v1985_v9 = vadd.f32 %v3147_v12, %v3840_v47  ;;  %v3260_v15 = vpop.f32.mrf.mxu1 }
 0x1e4   : > { %v3149_v20 = vpop.f32.mrf.mxu0 }
 0x1e5   : > { %v2794_v23 = vpack.c.bf16 %v2187_v28, %v2186_v19  ;;  %v3150_v34 = vadd.f32 %v3149_v20, %v3148_v14  ;;  %v3261_v21 = vpop.f32.mrf.mxu1  ;;  %v2146_v31 = vadd.f32 %v3259_v57, %v1985_v9 }
 0x1e6   : > { %v3151_v24 = vpop.f32.mrf.mxu0  ;;  %v3262_v27 = vadd.f32 %v3261_v21, %v3260_v15 }
 0x1e7   : > { %2818 = vst [vmem:[%s3858_s17 + $0x68] sm:$0xff] %v2794_v23   ;;  %v1988_v26 = vadd.f32 %v3150_v34, %v3843_v60  ;;  %v3263_v22 = vpop.f32.mrf.mxu1  ;;  %v2188_v47 = vmax.f32 %v2146_v31, 0.0 }
 0x1e8   : > { %v3152_v29 = vpop.f32.mrf.mxu0 }
 0x1e9   : > { %v2149_v44 = vadd.f32 %v3262_v27, %v1988_v26  ;;  %v3153_v35 = vadd.f32 %v3152_v29, %v3151_v24  ;;  %v3264_v36 = vpop.f32.mrf.mxu1 }
 0x1ea   : > { %v3154_v37 = vpop.f32.mrf.mxu0  ;;  %v3265_v41 = vadd.f32 %v3264_v36, %v3263_v22 }
 0x1eb   : > { %v2189_v30 = vmax.f32 %v2149_v44, 0.0  ;;  %v1993_v38 = vadd.f32 %v3153_v35, %v3846_v11  ;;  %v3266_v42 = vpop.f32.mrf.mxu1 }
 0x1ec   : > { %v3155_v32 = vpop.f32.mrf.mxu0 }
 0x1ed   : > { %v2799_v39 = vpack.c.bf16 %v2189_v30, %v2188_v47  ;;  %v3156_v45 = vadd.f32 %v3155_v32, %v3154_v37  ;;  %v3267_v48 = vpop.f32.mrf.mxu1  ;;  %v2154_v60 = vadd.f32 %v3265_v41, %v1993_v38 }
 0x1ee   : > { %v3268_v54 = vadd.f32 %v3267_v48, %v3266_v42 }
 0x1ef   : > { %2819 = vst [vmem:[%s3858_s17 + $0x70] sm:$0xff] %v2799_v39   ;;  %v1996_v49 = vadd.f32 %v3156_v45, %v3849_v25  ;;  %v2190_v40 = vmax.f32 %v2154_v60, 0.0 }
 0x1f1   : > { %v2157_v16 = vadd.f32 %v3268_v54, %v1996_v49 }
 0x1f3   : > { %v2191_v3 = vmax.f32 %v2157_v16, 0.0 }
 0x1f5   : > { %v2804_v46 = vpack.c.bf16 %v2191_v3, %v2190_v40 }
 0x1f7   : > { %2820 = vst [vmem:[%s3858_s17 + $0x78] sm:$0xff] %v2804_v46  }
 0x1f8 PF: > { %s13_s14 = sadd.s32 1, %s3379_s14   ;;  %s3918_s12 = smov %s3375_s13 }
 0x1f9   : > { %p10_p5 = scmp.ge.s32.totalorder %s13_s14, 4   ;;  %s3919_s13 = smov %s3921_s15 }
 0x1fb   :  { %12 = sbr.rel (!%p10_p5) target bundleno = 2 (0x2), region = 68 }

// kernel: encoder_forward.6
= control target key start
LH: loop header
LB: loop body
LE: loop exit
PB: predicated region body
PF: predicated region fallthrough
CT: control target
= control target key end

     0   :  { %s5248_s12 = smov 0   ;;  %s5250_s13 = smov 0   ;;  %s6635_s0 = inlined_call_operand.vmem [shape: bf16[128,2048], index: 0, kind: input, shape index: {}]   ;;  %s6636_s1 = inlined_call_operand.vmem [shape: bf16[2048,256], index: 1, kind: input, shape index: {}]   ;;  %s6637_s2 = inlined_call_operand.vmem [shape: f32[1,256], index: 2, kind: input, shape index: {}]   ;;  %s6638_s3 = inlined_call_operand.vmem [shape: bf16[128,256], index: 3, kind: output, shape index: {}]  }
   0x1   :  { %s5252_s14 = smov 0   ;;  %s5254_s15 = smov 0  }
   0x2   :  { %s5256_s16 = smov 0  }
   0x3 LB: > { %s22_s17 = sadd.s32 1, %s5222_s15  ;;  %s4158_s18 = sadd.s32 4294967295, %s5226_s16   ;;  %s5226_s16 = sphi %s5256_s16, %s13_s16   ;;  %s5222_s15 = sphi %s5254_s15, %s6645_s15   ;;  %s5218_s14 = sphi %s5252_s14, %s6644_s14   ;;  %s5214_s13 = sphi %s5250_s13, %s6643_s13   ;;  %s5210_s12 = sphi %s5248_s12, %s6642_s12  }
   0x4   : > { %p23_p0 = scmp.ge.s32.totalorder %s22_s17, 2  ;;  %p65_p1 = scmp.ne.s32.totalorder %s5214_s13, %s5210_s12 }
   0x5   : > { %p66_p2 = scmp.eq.s32.totalorder %s5226_s16, 0  ;;  %p123_p4 = scmp.eq.s32.totalorder %s4158_s18, 1 }
   0x6   : > { %s6647_s17 = smov (%p23_p0, %s22_s17), 0  ;;  %s58_s20 = sadd.s32 1, %s5214_s13 }
   0x7   : > { %p67_p3 = por %p66_p2, %p65_p1  ;;  %s55_s19 = ssub.s32 %s5222_s15, %s6647_s17 }
   0x8   : > { %p56_p5 = scmp.eq.s32.totalorder %s55_s19, 0  ;;  %p5283_p6 = por %p123_p4, %p65_p1 }
   0x9   : > { %p4162_p7 = scmp.ge.s32.totalorder %s5226_s16, 2 }
   0xa   : > { %s5288_s22 = scalar_select %p56_p5, %s5214_s13, %s58_s20  }
   0xb   : > { %155 = sbr.rel (%p4162_p7) target bundleno = 190 (0xbe), region = 20 }
  0x10   : > { %158 = sbr.rel (!%p67_p3) target bundleno = 190 (0xbe), region = 24  ;;  %s160_s23 = sand.u32 (%p67_p3), 1, %s5214_s13  }
  0x11   : > { %s4164_s24 = sshll.u32 (%p67_p3), %s5222_s15, 2  ;;  %s4163_s25 = sshll.u32 (%p67_p3), %s160_s23, 10 }
  0x12   : > { %s5296_s28 = scalar_lea.vmem (%p67_p3), %s6636_s1, %s4164_s24  ;;  %s5300_s29 = scalar_lea.vmem (%p67_p3), [#allocation2], %s4163_s25 }
  0x13   : > { %v181_v0 = vld [vmem:[%s5296_s28] sm:$0xf] (%p67_p3)  ;;  %v183_v1 = vld [vmem:[%s5296_s28 + $0x8] sm:$0xf] (%p67_p3)  ;;  %v185_v2 = vld [vmem:[%s5296_s28 + $0x10] sm:$0xf] (%p67_p3) }
  0x14   : > { %182 = vst [vmem:[%s5300_s29] sm:$0xf] (%p67_p3), %v181_v0  ;;  %184 = vst [vmem:[%s5300_s29 + $0x4] sm:$0xf] (%p67_p3), %v183_v1  ;;  %v187_v3 = vld [vmem:[%s5296_s28 + $0x18] sm:$0xf] (%p67_p3) }
  0x15   : > { %v189_v4 = vld [vmem:[%s5296_s28 + $0x20] sm:$0xf]  ;;  %186 = vst [vmem:[%s5300_s29 + $0x8] sm:$0xf] %v185_v2  ;;  %188 = vst [vmem:[%s5300_s29 + $0xc] sm:$0xf] %v187_v3 }
  0x16   : > { %190 = vst [vmem:[%s5300_s29 + $0x10] sm:$0xf] %v189_v4  ;;  %v191_v5 = vld [vmem:[%s5296_s28 + $0x28] sm:$0xf]  ;;  %v193_v6 = vld [vmem:[%s5296_s28 + $0x30] sm:$0xf] }
  0x17   : > { %v195_v7 = vld [vmem:[%s5296_s28 + $0x38] sm:$0xf]  ;;  %192 = vst [vmem:[%s5300_s29 + $0x14] sm:$0xf] %v191_v5  ;;  %194 = vst [vmem:[%s5300_s29 + $0x18] sm:$0xf] %v193_v6 }
  0x18   : > { %196 = vst [vmem:[%s5300_s29 + $0x1c] sm:$0xf] %v195_v7  ;;  %v197_v8 = vld [vmem:[%s5296_s28 + $0x40] sm:$0xf]  ;;  %v199_v9 = vld [vmem:[%s5296_s28 + $0x48] sm:$0xf] }
  0x19   : > { %v201_v10 = vld [vmem:[%s5296_s28 + $0x50] sm:$0xf]  ;;  %198 = vst [vmem:[%s5300_s29 + $0x20] sm:$0xf] %v197_v8  ;;  %200 = vst [vmem:[%s5300_s29 + $0x24] sm:$0xf] %v199_v9 }
  0x1a   : > { %202 = vst [vmem:[%s5300_s29 + $0x28] sm:$0xf] %v201_v10  ;;  %v203_v11 = vld [vmem:[%s5296_s28 + $0x58] sm:$0xf]  ;;  %v205_v12 = vld [vmem:[%s5296_s28 + $0x60] sm:$0xf] }
  0x1b   : > { %v207_v13 = vld [vmem:[%s5296_s28 + $0x68] sm:$0xf]  ;;  %204 = vst [vmem:[%s5300_s29 + $0x2c] sm:$0xf] %v203_v11  ;;  %206 = vst [vmem:[%s5300_s29 + $0x30] sm:$0xf] %v205_v12 }
  0x1c   : > { %208 = vst [vmem:[%s5300_s29 + $0x34] sm:$0xf] %v207_v13  ;;  %v209_v14 = vld [vmem:[%s5296_s28 + $0x70] sm:$0xf]  ;;  %v211_v15 = vld [vmem:[%s5296_s28 + $0x78] sm:$0xf] }
  0x1d   : > { %v213_v16 = vld [vmem:[%s5296_s28 + $0x80] sm:$0xf]  ;;  %210 = vst [vmem:[%s5300_s29 + $0x38] sm:$0xf] %v209_v14  ;;  %212 = vst [vmem:[%s5300_s29 + $0x3c] sm:$0xf] %v211_v15 }
  0x1e   : > { %214 = vst [vmem:[%s5300_s29 + $0x40] sm:$0xf] %v213_v16  ;;  %v215_v17 = vld [vmem:[%s5296_s28 + $0x88] sm:$0xf]  ;;  %v217_v18 = vld [vmem:[%s5296_s28 + $0x90] sm:$0xf] }
  0x1f   : > { %v219_v19 = vld [vmem:[%s5296_s28 + $0x98] sm:$0xf]  ;;  %216 = vst [vmem:[%s5300_s29 + $0x44] sm:$0xf] %v215_v17  ;;  %218 = vst [vmem:[%s5300_s29 + $0x48] sm:$0xf] %v217_v18 }
  0x20   : > { %220 = vst [vmem:[%s5300_s29 + $0x4c] sm:$0xf] %v219_v19  ;;  %v221_v20 = vld [vmem:[%s5296_s28 + $0xa0] sm:$0xf]  ;;  %v223_v21 = vld [vmem:[%s5296_s28 + $0xa8] sm:$0xf] }
  0x21   : > { %v225_v22 = vld [vmem:[%s5296_s28 + $0xb0] sm:$0xf]  ;;  %222 = vst [vmem:[%s5300_s29 + $0x50] sm:$0xf] %v221_v20  ;;  %224 = vst [vmem:[%s5300_s29 + $0x54] sm:$0xf] %v223_v21 }
  0x22   : > { %226 = vst [vmem:[%s5300_s29 + $0x58] sm:$0xf] %v225_v22  ;;  %v227_v23 = vld [vmem:[%s5296_s28 + $0xb8] sm:$0xf]  ;;  %v229_v24 = vld [vmem:[%s5296_s28 + $0xc0] sm:$0xf] }
  0x23   : > { %v231_v25 = vld [vmem:[%s5296_s28 + $0xc8] sm:$0xf]  ;;  %228 = vst [vmem:[%s5300_s29 + $0x5c] sm:$0xf] %v227_v23  ;;  %230 = vst [vmem:[%s5300_s29 + $0x60] sm:$0xf] %v229_v24 }
  0x24   : > { %232 = vst [vmem:[%s5300_s29 + $0x64] sm:$0xf] %v231_v25  ;;  %v233_v26 = vld [vmem:[%s5296_s28 + $0xd0] sm:$0xf]  ;;  %v235_v27 = vld [vmem:[%s5296_s28 + $0xd8] sm:$0xf] }
  0x25   : > { %v237_v28 = vld [vmem:[%s5296_s28 + $0xe0] sm:$0xf]  ;;  %234 = vst [vmem:[%s5300_s29 + $0x68] sm:$0xf] %v233_v26  ;;  %236 = vst [vmem:[%s5300_s29 + $0x6c] sm:$0xf] %v235_v27 }
  0x26   : > { %238 = vst [vmem:[%s5300_s29 + $0x70] sm:$0xf] %v237_v28  ;;  %v239_v29 = vld [vmem:[%s5296_s28 + $0xe8] sm:$0xf]  ;;  %v241_v30 = vld [vmem:[%s5296_s28 + $0xf0] sm:$0xf] }
  0x27   : > { %v243_v31 = vld [vmem:[%s5296_s28 + $0xf8] sm:$0xf]  ;;  %240 = vst [vmem:[%s5300_s29 + $0x74] sm:$0xf] %v239_v29  ;;  %242 = vst [vmem:[%s5300_s29 + $0x78] sm:$0xf] %v241_v30 }
  0x28   : > { %244 = vst [vmem:[%s5300_s29 + $0x7c] sm:$0xf] %v243_v31  ;;  %v245_v32 = vld [vmem:[%s5296_s28 + $0x100] sm:$0xf]  ;;  %v247_v33 = vld [vmem:[%s5296_s28 + $0x108] sm:$0xf] }
  0x29   : > { %v249_v34 = vld [vmem:[%s5296_s28 + $0x110] sm:$0xf]  ;;  %246 = vst [vmem:[%s5300_s29 + $0x80] sm:$0xf] %v245_v32  ;;  %248 = vst [vmem:[%s5300_s29 + $0x84] sm:$0xf] %v247_v33 }
  0x2a   : > { %250 = vst [vmem:[%s5300_s29 + $0x88] sm:$0xf] %v249_v34  ;;  %v251_v35 = vld [vmem:[%s5296_s28 + $0x118] sm:$0xf]  ;;  %v253_v36 = vld [vmem:[%s5296_s28 + $0x120] sm:$0xf] }
  0x2b   : > { %v255_v37 = vld [vmem:[%s5296_s28 + $0x128] sm:$0xf]  ;;  %252 = vst [vmem:[%s5300_s29 + $0x8c] sm:$0xf] %v251_v35  ;;  %254 = vst [vmem:[%s5300_s29 + $0x90] sm:$0xf] %v253_v36 }
  0x2c   : > { %256 = vst [vmem:[%s5300_s29 + $0x94] sm:$0xf] %v255_v37  ;;  %v257_v38 = vld [vmem:[%s5296_s28 + $0x130] sm:$0xf]  ;;  %v259_v39 = vld [vmem:[%s5296_s28 + $0x138] sm:$0xf] }
  0x2d   : > { %v261_v40 = vld [vmem:[%s5296_s28 + $0x140] sm:$0xf]  ;;  %258 = vst [vmem:[%s5300_s29 + $0x98] sm:$0xf] %v257_v38  ;;  %260 = vst [vmem:[%s5300_s29 + $0x9c] sm:$0xf] %v259_v39 }
  0x2e   : > { %262 = vst [vmem:[%s5300_s29 + $0xa0] sm:$0xf] %v261_v40  ;;  %v263_v41 = vld [vmem:[%s5296_s28 + $0x148] sm:$0xf]  ;;  %v265_v42 = vld [vmem:[%s5296_s28 + $0x150] sm:$0xf] }
  0x2f   : > { %v267_v43 = vld [vmem:[%s5296_s28 + $0x158] sm:$0xf]  ;;  %264 = vst [vmem:[%s5300_s29 + $0xa4] sm:$0xf] %v263_v41  ;;  %266 = vst [vmem:[%s5300_s29 + $0xa8] sm:$0xf] %v265_v42 }
  0x30   : > { %268 = vst [vmem:[%s5300_s29 + $0xac] sm:$0xf] %v267_v43  ;;  %v269_v44 = vld [vmem:[%s5296_s28 + $0x160] sm:$0xf]  ;;  %v271_v45 = vld [vmem:[%s5296_s28 + $0x168] sm:$0xf] }
  0x31   : > { %v273_v46 = vld [vmem:[%s5296_s28 + $0x170] sm:$0xf]  ;;  %270 = vst [vmem:[%s5300_s29 + $0xb0] sm:$0xf] %v269_v44  ;;  %272 = vst [vmem:[%s5300_s29 + $0xb4] sm:$0xf] %v271_v45 }
  0x32   : > { %274 = vst [vmem:[%s5300_s29 + $0xb8] sm:$0xf] %v273_v46  ;;  %v275_v47 = vld [vmem:[%s5296_s28 + $0x178] sm:$0xf]  ;;  %v277_v48 = vld [vmem:[%s5296_s28 + $0x180] sm:$0xf] }
  0x33   : > { %v279_v49 = vld [vmem:[%s5296_s28 + $0x188] sm:$0xf]  ;;  %276 = vst [vmem:[%s5300_s29 + $0xbc] sm:$0xf] %v275_v47  ;;  %278 = vst [vmem:[%s5300_s29 + $0xc0] sm:$0xf] %v277_v48 }
  0x34   : > { %280 = vst [vmem:[%s5300_s29 + $0xc4] sm:$0xf] %v279_v49  ;;  %v281_v50 = vld [vmem:[%s5296_s28 + $0x190] sm:$0xf]  ;;  %v283_v51 = vld [vmem:[%s5296_s28 + $0x198] sm:$0xf] }
  0x35   : > { %v285_v52 = vld [vmem:[%s5296_s28 + $0x1a0] sm:$0xf]  ;;  %282 = vst [vmem:[%s5300_s29 + $0xc8] sm:$0xf] %v281_v50  ;;  %284 = vst [vmem:[%s5300_s29 + $0xcc] sm:$0xf] %v283_v51 }
  0x36   : > { %286 = vst [vmem:[%s5300_s29 + $0xd0] sm:$0xf] %v285_v52  ;;  %v287_v53 = vld [vmem:[%s5296_s28 + $0x1a8] sm:$0xf]  ;;  %v289_v54 = vld [vmem:[%s5296_s28 + $0x1b0] sm:$0xf] }
  0x37   : > { %v291_v55 = vld [vmem:[%s5296_s28 + $0x1b8] sm:$0xf]  ;;  %288 = vst [vmem:[%s5300_s29 + $0xd4] sm:$0xf] %v287_v53  ;;  %290 = vst [vmem:[%s5300_s29 + $0xd8] sm:$0xf] %v289_v54 }
  0x38   : > { %292 = vst [vmem:[%s5300_s29 + $0xdc] sm:$0xf] %v291_v55  ;;  %v293_v56 = vld [vmem:[%s5296_s28 + $0x1c0] sm:$0xf]  ;;  %v295_v57 = vld [vmem:[%s5296_s28 + $0x1c8] sm:$0xf] }
  0x39   : > { %v297_v58 = vld [vmem:[%s5296_s28 + $0x1d0] sm:$0xf]  ;;  %294 = vst [vmem:[%s5300_s29 + $0xe0] sm:$0xf] %v293_v56  ;;  %296 = vst [vmem:[%s5300_s29 + $0xe4] sm:$0xf] %v295_v57 }
  0x3a   : > { %298 = vst [vmem:[%s5300_s29 + $0xe8] sm:$0xf] %v297_v58  ;;  %v299_v59 = vld [vmem:[%s5296_s28 + $0x1d8] sm:$0xf]  ;;  %v301_v60 = vld [vmem:[%s5296_s28 + $0x1e0] sm:$0xf] }
  0x3b   : > { %v303_v61 = vld [vmem:[%s5296_s28 + $0x1e8] sm:$0xf]  ;;  %300 = vst [vmem:[%s5300_s29 + $0xec] sm:$0xf] %v299_v59  ;;  %302 = vst [vmem:[%s5300_s29 + $0xf0] sm:$0xf] %v301_v60 }
  0x3c   : > { %304 = vst [vmem:[%s5300_s29 + $0xf4] sm:$0xf] %v303_v61  ;;  %v305_v62 = vld [vmem:[%s5296_s28 + $0x1f0] sm:$0xf]  ;;  %v307_v63 = vld [vmem:[%s5296_s28 + $0x1f8] sm:$0xf] }
  0x3d   : > { %v309_v0 = vld [vmem:[%s5296_s28 + $0x200] sm:$0xf]  ;;  %306 = vst [vmem:[%s5300_s29 + $0xf8] sm:$0xf] %v305_v62  ;;  %308 = vst [vmem:[%s5300_s29 + $0xfc] sm:$0xf] %v307_v63 }
  0x3e   : > { %310 = vst [vmem:[%s5300_s29 + $0x100] sm:$0xf] %v309_v0  ;;  %v311_v1 = vld [vmem:[%s5296_s28 + $0x208] sm:$0xf]  ;;  %v313_v2 = vld [vmem:[%s5296_s28 + $0x210] sm:$0xf] }
  0x3f   : > { %v315_v3 = vld [vmem:[%s5296_s28 + $0x218] sm:$0xf]  ;;  %312 = vst [vmem:[%s5300_s29 + $0x104] sm:$0xf] %v311_v1  ;;  %314 = vst [vmem:[%s5300_s29 + $0x108] sm:$0xf] %v313_v2 }
  0x40   : > { %316 = vst [vmem:[%s5300_s29 + $0x10c] sm:$0xf] %v315_v3  ;;  %v317_v4 = vld [vmem:[%s5296_s28 + $0x220] sm:$0xf]  ;;  %v319_v5 = vld [vmem:[%s5296_s28 + $0x228] sm:$0xf] }
  0x41   : > { %v321_v6 = vld [vmem:[%s5296_s28 + $0x230] sm:$0xf]  ;;  %318 = vst [vmem:[%s5300_s29 + $0x110] sm:$0xf] %v317_v4  ;;  %320 = vst [vmem:[%s5300_s29 + $0x114] sm:$0xf] %v319_v5 }
  0x42   : > { %322 = vst [vmem:[%s5300_s29 + $0x118] sm:$0xf] %v321_v6  ;;  %v323_v7 = vld [vmem:[%s5296_s28 + $0x238] sm:$0xf]  ;;  %v325_v8 = vld [vmem:[%s5296_s28 + $0x240] sm:$0xf] }
  0x43   : > { %v327_v9 = vld [vmem:[%s5296_s28 + $0x248] sm:$0xf]  ;;  %324 = vst [vmem:[%s5300_s29 + $0x11c] sm:$0xf] %v323_v7  ;;  %326 = vst [vmem:[%s5300_s29 + $0x120] sm:$0xf] %v325_v8 }
  0x44   : > { %328 = vst [vmem:[%s5300_s29 + $0x124] sm:$0xf] %v327_v9  ;;  %v329_v10 = vld [vmem:[%s5296_s28 + $0x250] sm:$0xf]  ;;  %v331_v11 = vld [vmem:[%s5296_s28 + $0x258] sm:$0xf] }
  0x45   : > { %v333_v12 = vld [vmem:[%s5296_s28 + $0x260] sm:$0xf]  ;;  %330 = vst [vmem:[%s5300_s29 + $0x128] sm:$0xf] %v329_v10  ;;  %332 = vst [vmem:[%s5300_s29 + $0x12c] sm:$0xf] %v331_v11 }
  0x46   : > { %334 = vst [vmem:[%s5300_s29 + $0x130] sm:$0xf] %v333_v12  ;;  %v335_v13 = vld [vmem:[%s5296_s28 + $0x268] sm:$0xf]  ;;  %v337_v14 = vld [vmem:[%s5296_s28 + $0x270] sm:$0xf] }
  0x47   : > { %v339_v15 = vld [vmem:[%s5296_s28 + $0x278] sm:$0xf]  ;;  %336 = vst [vmem:[%s5300_s29 + $0x134] sm:$0xf] %v335_v13  ;;  %338 = vst [vmem:[%s5300_s29 + $0x138] sm:$0xf] %v337_v14 }
  0x48   : > { %340 = vst [vmem:[%s5300_s29 + $0x13c] sm:$0xf] %v339_v15  ;;  %v341_v16 = vld [vmem:[%s5296_s28 + $0x280] sm:$0xf]  ;;  %v343_v17 = vld [vmem:[%s5296_s28 + $0x288] sm:$0xf] }
  0x49   : > { %v345_v18 = vld [vmem:[%s5296_s28 + $0x290] sm:$0xf]  ;;  %342 = vst [vmem:[%s5300_s29 + $0x140] sm:$0xf] %v341_v16  ;;  %344 = vst [vmem:[%s5300_s29 + $0x144] sm:$0xf] %v343_v17 }
  0x4a   : > { %346 = vst [vmem:[%s5300_s29 + $0x148] sm:$0xf] %v345_v18  ;;  %v347_v19 = vld [vmem:[%s5296_s28 + $0x298] sm:$0xf]  ;;  %v349_v20 = vld [vmem:[%s5296_s28 + $0x2a0] sm:$0xf] }
  0x4b   : > { %v351_v21 = vld [vmem:[%s5296_s28 + $0x2a8] sm:$0xf]  ;;  %348 = vst [vmem:[%s5300_s29 + $0x14c] sm:$0xf] %v347_v19  ;;  %350 = vst [vmem:[%s5300_s29 + $0x150] sm:$0xf] %v349_v20 }
  0x4c   : > { %352 = vst [vmem:[%s5300_s29 + $0x154] sm:$0xf] %v351_v21  ;;  %v353_v22 = vld [vmem:[%s5296_s28 + $0x2b0] sm:$0xf]  ;;  %v355_v23 = vld [vmem:[%s5296_s28 + $0x2b8] sm:$0xf] }
  0x4d   : > { %v357_v24 = vld [vmem:[%s5296_s28 + $0x2c0] sm:$0xf]  ;;  %354 = vst [vmem:[%s5300_s29 + $0x158] sm:$0xf] %v353_v22  ;;  %356 = vst [vmem:[%s5300_s29 + $0x15c] sm:$0xf] %v355_v23 }
  0x4e   : > { %358 = vst [vmem:[%s5300_s29 + $0x160] sm:$0xf] %v357_v24  ;;  %v359_v25 = vld [vmem:[%s5296_s28 + $0x2c8] sm:$0xf]  ;;  %v361_v26 = vld [vmem:[%s5296_s28 + $0x2d0] sm:$0xf] }
  0x4f   : > { %v363_v27 = vld [vmem:[%s5296_s28 + $0x2d8] sm:$0xf]  ;;  %360 = vst [vmem:[%s5300_s29 + $0x164] sm:$0xf] %v359_v25  ;;  %362 = vst [vmem:[%s5300_s29 + $0x168] sm:$0xf] %v361_v26 }
  0x50   : > { %364 = vst [vmem:[%s5300_s29 + $0x16c] sm:$0xf] %v363_v27  ;;  %v365_v28 = vld [vmem:[%s5296_s28 + $0x2e0] sm:$0xf]  ;;  %v367_v29 = vld [vmem:[%s5296_s28 + $0x2e8] sm:$0xf] }
  0x51   : > { %v369_v30 = vld [vmem:[%s5296_s28 + $0x2f0] sm:$0xf]  ;;  %366 = vst [vmem:[%s5300_s29 + $0x170] sm:$0xf] %v365_v28  ;;  %368 = vst [vmem:[%s5300_s29 + $0x174] sm:$0xf] %v367_v29 }
  0x52   : > { %370 = vst [vmem:[%s5300_s29 + $0x178] sm:$0xf] %v369_v30  ;;  %v371_v31 = vld [vmem:[%s5296_s28 + $0x2f8] sm:$0xf]  ;;  %v373_v32 = vld [vmem:[%s5296_s28 + $0x300] sm:$0xf] }
  0x53   : > { %v375_v33 = vld [vmem:[%s5296_s28 + $0x308] sm:$0xf]  ;;  %372 = vst [vmem:[%s5300_s29 + $0x17c] sm:$0xf] %v371_v31  ;;  %374 = vst [vmem:[%s5300_s29 + $0x180] sm:$0xf] %v373_v32 }
  0x54   : > { %376 = vst [vmem:[%s5300_s29 + $0x184] sm:$0xf] %v375_v33  ;;  %v377_v34 = vld [vmem:[%s5296_s28 + $0x310] sm:$0xf]  ;;  %v379_v35 = vld [vmem:[%s5296_s28 + $0x318] sm:$0xf] }
  0x55   : > { %v381_v36 = vld [vmem:[%s5296_s28 + $0x320] sm:$0xf]  ;;  %378 = vst [vmem:[%s5300_s29 + $0x188] sm:$0xf] %v377_v34  ;;  %380 = vst [vmem:[%s5300_s29 + $0x18c] sm:$0xf] %v379_v35 }
  0x56   : > { %382 = vst [vmem:[%s5300_s29 + $0x190] sm:$0xf] %v381_v36  ;;  %v383_v37 = vld [vmem:[%s5296_s28 + $0x328] sm:$0xf]  ;;  %v385_v38 = vld [vmem:[%s5296_s28 + $0x330] sm:$0xf] }
  0x57   : > { %v387_v39 = vld [vmem:[%s5296_s28 + $0x338] sm:$0xf]  ;;  %384 = vst [vmem:[%s5300_s29 + $0x194] sm:$0xf] %v383_v37  ;;  %386 = vst [vmem:[%s5300_s29 + $0x198] sm:$0xf] %v385_v38 }
  0x58   : > { %388 = vst [vmem:[%s5300_s29 + $0x19c] sm:$0xf] %v387_v39  ;;  %v389_v40 = vld [vmem:[%s5296_s28 + $0x340] sm:$0xf]  ;;  %v391_v41 = vld [vmem:[%s5296_s28 + $0x348] sm:$0xf] }
  0x59   : > { %v393_v42 = vld [vmem:[%s5296_s28 + $0x350] sm:$0xf]  ;;  %390 = vst [vmem:[%s5300_s29 + $0x1a0] sm:$0xf] %v389_v40  ;;  %392 = vst [vmem:[%s5300_s29 + $0x1a4] sm:$0xf] %v391_v41 }
  0x5a   : > { %394 = vst [vmem:[%s5300_s29 + $0x1a8] sm:$0xf] %v393_v42  ;;  %v395_v43 = vld [vmem:[%s5296_s28 + $0x358] sm:$0xf]  ;;  %v397_v44 = vld [vmem:[%s5296_s28 + $0x360] sm:$0xf] }
  0x5b   : > { %v399_v45 = vld [vmem:[%s5296_s28 + $0x368] sm:$0xf]  ;;  %396 = vst [vmem:[%s5300_s29 + $0x1ac] sm:$0xf] %v395_v43  ;;  %398 = vst [vmem:[%s5300_s29 + $0x1b0] sm:$0xf] %v397_v44 }
  0x5c   : > { %400 = vst [vmem:[%s5300_s29 + $0x1b4] sm:$0xf] %v399_v45  ;;  %v401_v46 = vld [vmem:[%s5296_s28 + $0x370] sm:$0xf]  ;;  %v403_v47 = vld [vmem:[%s5296_s28 + $0x378] sm:$0xf] }
  0x5d   : > { %v405_v48 = vld [vmem:[%s5296_s28 + $0x380] sm:$0xf]  ;;  %402 = vst [vmem:[%s5300_s29 + $0x1b8] sm:$0xf] %v401_v46  ;;  %404 = vst [vmem:[%s5300_s29 + $0x1bc] sm:$0xf] %v403_v47 }
  0x5e   : > { %406 = vst [vmem:[%s5300_s29 + $0x1c0] sm:$0xf] %v405_v48  ;;  %v407_v49 = vld [vmem:[%s5296_s28 + $0x388] sm:$0xf]  ;;  %v409_v50 = vld [vmem:[%s5296_s28 + $0x390] sm:$0xf] }
  0x5f   : > { %v411_v51 = vld [vmem:[%s5296_s28 + $0x398] sm:$0xf]  ;;  %408 = vst [vmem:[%s5300_s29 + $0x1c4] sm:$0xf] %v407_v49  ;;  %410 = vst [vmem:[%s5300_s29 + $0x1c8] sm:$0xf] %v409_v50 }
  0x60   : > { %412 = vst [vmem:[%s5300_s29 + $0x1cc] sm:$0xf] %v411_v51  ;;  %v413_v52 = vld [vmem:[%s5296_s28 + $0x3a0] sm:$0xf]  ;;  %v415_v53 = vld [vmem:[%s5296_s28 + $0x3a8] sm:$0xf] }
  0x61   : > { %v417_v54 = vld [vmem:[%s5296_s28 + $0x3b0] sm:$0xf]  ;;  %414 = vst [vmem:[%s5300_s29 + $0x1d0] sm:$0xf] %v413_v52  ;;  %416 = vst [vmem:[%s5300_s29 + $0x1d4] sm:$0xf] %v415_v53 }
  0x62   : > { %418 = vst [vmem:[%s5300_s29 + $0x1d8] sm:$0xf] %v417_v54  ;;  %v419_v55 = vld [vmem:[%s5296_s28 + $0x3b8] sm:$0xf]  ;;  %v421_v56 = vld [vmem:[%s5296_s28 + $0x3c0] sm:$0xf] }
  0x63   : > { %v423_v57 = vld [vmem:[%s5296_s28 + $0x3c8] sm:$0xf]  ;;  %420 = vst [vmem:[%s5300_s29 + $0x1dc] sm:$0xf] %v419_v55  ;;  %422 = vst [vmem:[%s5300_s29 + $0x1e0] sm:$0xf] %v421_v56 }
  0x64   : > { %424 = vst [vmem:[%s5300_s29 + $0x1e4] sm:$0xf] %v423_v57  ;;  %v425_v58 = vld [vmem:[%s5296_s28 + $0x3d0] sm:$0xf]  ;;  %v427_v59 = vld [vmem:[%s5296_s28 + $0x3d8] sm:$0xf] }
  0x65   : > { %v429_v60 = vld [vmem:[%s5296_s28 + $0x3e0] sm:$0xf]  ;;  %426 = vst [vmem:[%s5300_s29 + $0x1e8] sm:$0xf] %v425_v58  ;;  %428 = vst [vmem:[%s5300_s29 + $0x1ec] sm:$0xf] %v427_v59 }
  0x66   : > { %430 = vst [vmem:[%s5300_s29 + $0x1f0] sm:$0xf] %v429_v60  ;;  %v431_v61 = vld [vmem:[%s5296_s28 + $0x3e8] sm:$0xf]  ;;  %v433_v62 = vld [vmem:[%s5296_s28 + $0x3f0] sm:$0xf] }
  0x67   : > { %v435_v63 = vld [vmem:[%s5296_s28 + $0x3f8] sm:$0xf]  ;;  %432 = vst [vmem:[%s5300_s29 + $0x1f4] sm:$0xf] %v431_v61  ;;  %434 = vst [vmem:[%s5300_s29 + $0x1f8] sm:$0xf] %v433_v62 }
  0x68   : > { %436 = vst [vmem:[%s5300_s29 + $0x1fc] sm:$0xf] %v435_v63  ;;  %v437_v0 = vld [vmem:[%s5296_s28 + $0x400] sm:$0xf]  ;;  %v439_v1 = vld [vmem:[%s5296_s28 + $0x408] sm:$0xf] }
  0x69   : > { %v441_v2 = vld [vmem:[%s5296_s28 + $0x410] sm:$0xf]  ;;  %438 = vst [vmem:[%s5300_s29 + $0x200] sm:$0xf] %v437_v0  ;;  %440 = vst [vmem:[%s5300_s29 + $0x204] sm:$0xf] %v439_v1 }
  0x6a   : > { %442 = vst [vmem:[%s5300_s29 + $0x208] sm:$0xf] %v441_v2  ;;  %v443_v3 = vld [vmem:[%s5296_s28 + $0x418] sm:$0xf]  ;;  %v445_v4 = vld [vmem:[%s5296_s28 + $0x420] sm:$0xf] }
  0x6b   : > { %v447_v5 = vld [vmem:[%s5296_s28 + $0x428] sm:$0xf]  ;;  %444 = vst [vmem:[%s5300_s29 + $0x20c] sm:$0xf] %v443_v3  ;;  %446 = vst [vmem:[%s5300_s29 + $0x210] sm:$0xf] %v445_v4 }
  0x6c   : > { %448 = vst [vmem:[%s5300_s29 + $0x214] sm:$0xf] %v447_v5  ;;  %v449_v6 = vld [vmem:[%s5296_s28 + $0x430] sm:$0xf]  ;;  %v451_v7 = vld [vmem:[%s5296_s28 + $0x438] sm:$0xf] }
  0x6d   : > { %v453_v8 = vld [vmem:[%s5296_s28 + $0x440] sm:$0xf]  ;;  %450 = vst [vmem:[%s5300_s29 + $0x218] sm:$0xf] %v449_v6  ;;  %452 = vst [vmem:[%s5300_s29 + $0x21c] sm:$0xf] %v451_v7 }
  0x6e   : > { %454 = vst [vmem:[%s5300_s29 + $0x220] sm:$0xf] %v453_v8  ;;  %v455_v9 = vld [vmem:[%s5296_s28 + $0x448] sm:$0xf]  ;;  %v457_v10 = vld [vmem:[%s5296_s28 + $0x450] sm:$0xf] }
  0x6f   : > { %v459_v11 = vld [vmem:[%s5296_s28 + $0x458] sm:$0xf]  ;;  %456 = vst [vmem:[%s5300_s29 + $0x224] sm:$0xf] %v455_v9  ;;  %458 = vst [vmem:[%s5300_s29 + $0x228] sm:$0xf] %v457_v10 }
  0x70   : > { %460 = vst [vmem:[%s5300_s29 + $0x22c] sm:$0xf] %v459_v11  ;;  %v461_v12 = vld [vmem:[%s5296_s28 + $0x460] sm:$0xf]  ;;  %v463_v13 = vld [vmem:[%s5296_s28 + $0x468] sm:$0xf] }
  0x71   : > { %v465_v14 = vld [vmem:[%s5296_s28 + $0x470] sm:$0xf]  ;;  %462 = vst [vmem:[%s5300_s29 + $0x230] sm:$0xf] %v461_v12  ;;  %464 = vst [vmem:[%s5300_s29 + $0x234] sm:$0xf] %v463_v13 }
  0x72   : > { %466 = vst [vmem:[%s5300_s29 + $0x238] sm:$0xf] %v465_v14  ;;  %v467_v15 = vld [vmem:[%s5296_s28 + $0x478] sm:$0xf]  ;;  %v469_v16 = vld [vmem:[%s5296_s28 + $0x480] sm:$0xf] }
  0x73   : > { %v471_v17 = vld [vmem:[%s5296_s28 + $0x488] sm:$0xf]  ;;  %468 = vst [vmem:[%s5300_s29 + $0x23c] sm:$0xf] %v467_v15  ;;  %470 = vst [vmem:[%s5300_s29 + $0x240] sm:$0xf] %v469_v16 }
  0x74   : > { %472 = vst [vmem:[%s5300_s29 + $0x244] sm:$0xf] %v471_v17  ;;  %v473_v18 = vld [vmem:[%s5296_s28 + $0x490] sm:$0xf]  ;;  %v475_v19 = vld [vmem:[%s5296_s28 + $0x498] sm:$0xf] }
  0x75   : > { %v477_v20 = vld [vmem:[%s5296_s28 + $0x4a0] sm:$0xf]  ;;  %474 = vst [vmem:[%s5300_s29 + $0x248] sm:$0xf] %v473_v18  ;;  %476 = vst [vmem:[%s5300_s29 + $0x24c] sm:$0xf] %v475_v19 }
  0x76   : > { %478 = vst [vmem:[%s5300_s29 + $0x250] sm:$0xf] %v477_v20  ;;  %v479_v21 = vld [vmem:[%s5296_s28 + $0x4a8] sm:$0xf]  ;;  %v481_v22 = vld [vmem:[%s5296_s28 + $0x4b0] sm:$0xf] }
  0x77   : > { %v483_v23 = vld [vmem:[%s5296_s28 + $0x4b8] sm:$0xf]  ;;  %480 = vst [vmem:[%s5300_s29 + $0x254] sm:$0xf] %v479_v21  ;;  %482 = vst [vmem:[%s5300_s29 + $0x258] sm:$0xf] %v481_v22 }
  0x78   : > { %484 = vst [vmem:[%s5300_s29 + $0x25c] sm:$0xf] %v483_v23  ;;  %v485_v24 = vld [vmem:[%s5296_s28 + $0x4c0] sm:$0xf]  ;;  %v487_v25 = vld [vmem:[%s5296_s28 + $0x4c8] sm:$0xf] }
  0x79   : > { %v489_v26 = vld [vmem:[%s5296_s28 + $0x4d0] sm:$0xf]  ;;  %486 = vst [vmem:[%s5300_s29 + $0x260] sm:$0xf] %v485_v24  ;;  %488 = vst [vmem:[%s5300_s29 + $0x264] sm:$0xf] %v487_v25 }
  0x7a   : > { %490 = vst [vmem:[%s5300_s29 + $0x268] sm:$0xf] %v489_v26  ;;  %v491_v27 = vld [vmem:[%s5296_s28 + $0x4d8] sm:$0xf]  ;;  %v493_v28 = vld [vmem:[%s5296_s28 + $0x4e0] sm:$0xf] }
  0x7b   : > { %v495_v29 = vld [vmem:[%s5296_s28 + $0x4e8] sm:$0xf]  ;;  %492 = vst [vmem:[%s5300_s29 + $0x26c] sm:$0xf] %v491_v27  ;;  %494 = vst [vmem:[%s5300_s29 + $0x270] sm:$0xf] %v493_v28 }
  0x7c   : > { %496 = vst [vmem:[%s5300_s29 + $0x274] sm:$0xf] %v495_v29  ;;  %v497_v30 = vld [vmem:[%s5296_s28 + $0x4f0] sm:$0xf]  ;;  %v499_v31 = vld [vmem:[%s5296_s28 + $0x4f8] sm:$0xf] }
  0x7d   : > { %v501_v32 = vld [vmem:[%s5296_s28 + $0x500] sm:$0xf]  ;;  %498 = vst [vmem:[%s5300_s29 + $0x278] sm:$0xf] %v497_v30  ;;  %500 = vst [vmem:[%s5300_s29 + $0x27c] sm:$0xf] %v499_v31 }
  0x7e   : > { %502 = vst [vmem:[%s5300_s29 + $0x280] sm:$0xf] %v501_v32  ;;  %v503_v33 = vld [vmem:[%s5296_s28 + $0x508] sm:$0xf]  ;;  %v505_v34 = vld [vmem:[%s5296_s28 + $0x510] sm:$0xf] }
  0x7f   : > { %v507_v35 = vld [vmem:[%s5296_s28 + $0x518] sm:$0xf]  ;;  %504 = vst [vmem:[%s5300_s29 + $0x284] sm:$0xf] %v503_v33  ;;  %506 = vst [vmem:[%s5300_s29 + $0x288] sm:$0xf] %v505_v34 }
  0x80   : > { %508 = vst [vmem:[%s5300_s29 + $0x28c] sm:$0xf] %v507_v35  ;;  %v509_v36 = vld [vmem:[%s5296_s28 + $0x520] sm:$0xf]  ;;  %v511_v37 = vld [vmem:[%s5296_s28 + $0x528] sm:$0xf] }
  0x81   : > { %v513_v38 = vld [vmem:[%s5296_s28 + $0x530] sm:$0xf]  ;;  %510 = vst [vmem:[%s5300_s29 + $0x290] sm:$0xf] %v509_v36  ;;  %512 = vst [vmem:[%s5300_s29 + $0x294] sm:$0xf] %v511_v37 }
  0x82   : > { %514 = vst [vmem:[%s5300_s29 + $0x298] sm:$0xf] %v513_v38  ;;  %v515_v39 = vld [vmem:[%s5296_s28 + $0x538] sm:$0xf]  ;;  %v517_v40 = vld [vmem:[%s5296_s28 + $0x540] sm:$0xf] }
  0x83   : > { %v519_v41 = vld [vmem:[%s5296_s28 + $0x548] sm:$0xf]  ;;  %516 = vst [vmem:[%s5300_s29 + $0x29c] sm:$0xf] %v515_v39  ;;  %518 = vst [vmem:[%s5300_s29 + $0x2a0] sm:$0xf] %v517_v40 }
  0x84   : > { %520 = vst [vmem:[%s5300_s29 + $0x2a4] sm:$0xf] %v519_v41  ;;  %v521_v42 = vld [vmem:[%s5296_s28 + $0x550] sm:$0xf]  ;;  %v523_v43 = vld [vmem:[%s5296_s28 + $0x558] sm:$0xf] }
  0x85   : > { %v525_v44 = vld [vmem:[%s5296_s28 + $0x560] sm:$0xf]  ;;  %522 = vst [vmem:[%s5300_s29 + $0x2a8] sm:$0xf] %v521_v42  ;;  %524 = vst [vmem:[%s5300_s29 + $0x2ac] sm:$0xf] %v523_v43 }
  0x86   : > { %526 = vst [vmem:[%s5300_s29 + $0x2b0] sm:$0xf] %v525_v44  ;;  %v527_v45 = vld [vmem:[%s5296_s28 + $0x568] sm:$0xf]  ;;  %v529_v46 = vld [vmem:[%s5296_s28 + $0x570] sm:$0xf] }
  0x87   : > { %v531_v47 = vld [vmem:[%s5296_s28 + $0x578] sm:$0xf]  ;;  %528 = vst [vmem:[%s5300_s29 + $0x2b4] sm:$0xf] %v527_v45  ;;  %530 = vst [vmem:[%s5300_s29 + $0x2b8] sm:$0xf] %v529_v46 }
  0x88   : > { %532 = vst [vmem:[%s5300_s29 + $0x2bc] sm:$0xf] %v531_v47  ;;  %v533_v48 = vld [vmem:[%s5296_s28 + $0x580] sm:$0xf]  ;;  %v535_v49 = vld [vmem:[%s5296_s28 + $0x588] sm:$0xf] }
  0x89   : > { %v537_v50 = vld [vmem:[%s5296_s28 + $0x590] sm:$0xf]  ;;  %534 = vst [vmem:[%s5300_s29 + $0x2c0] sm:$0xf] %v533_v48  ;;  %536 = vst [vmem:[%s5300_s29 + $0x2c4] sm:$0xf] %v535_v49 }
  0x8a   : > { %538 = vst [vmem:[%s5300_s29 + $0x2c8] sm:$0xf] %v537_v50  ;;  %v539_v51 = vld [vmem:[%s5296_s28 + $0x598] sm:$0xf]  ;;  %v541_v52 = vld [vmem:[%s5296_s28 + $0x5a0] sm:$0xf] }
  0x8b   : > { %v543_v53 = vld [vmem:[%s5296_s28 + $0x5a8] sm:$0xf]  ;;  %540 = vst [vmem:[%s5300_s29 + $0x2cc] sm:$0xf] %v539_v51  ;;  %542 = vst [vmem:[%s5300_s29 + $0x2d0] sm:$0xf] %v541_v52 }
  0x8c   : > { %544 = vst [vmem:[%s5300_s29 + $0x2d4] sm:$0xf] %v543_v53  ;;  %v545_v54 = vld [vmem:[%s5296_s28 + $0x5b0] sm:$0xf]  ;;  %v547_v55 = vld [vmem:[%s5296_s28 + $0x5b8] sm:$0xf] }
  0x8d   : > { %v549_v56 = vld [vmem:[%s5296_s28 + $0x5c0] sm:$0xf]  ;;  %546 = vst [vmem:[%s5300_s29 + $0x2d8] sm:$0xf] %v545_v54  ;;  %548 = vst [vmem:[%s5300_s29 + $0x2dc] sm:$0xf] %v547_v55 }
  0x8e   : > { %550 = vst [vmem:[%s5300_s29 + $0x2e0] sm:$0xf] %v549_v56  ;;  %v551_v57 = vld [vmem:[%s5296_s28 + $0x5c8] sm:$0xf]  ;;  %v553_v58 = vld [vmem:[%s5296_s28 + $0x5d0] sm:$0xf] }
  0x8f   : > { %v555_v59 = vld [vmem:[%s5296_s28 + $0x5d8] sm:$0xf]  ;;  %552 = vst [vmem:[%s5300_s29 + $0x2e4] sm:$0xf] %v551_v57  ;;  %554 = vst [vmem:[%s5300_s29 + $0x2e8] sm:$0xf] %v553_v58 }
  0x90   : > { %556 = vst [vmem:[%s5300_s29 + $0x2ec] sm:$0xf] %v555_v59  ;;  %v557_v60 = vld [vmem:[%s5296_s28 + $0x5e0] sm:$0xf]  ;;  %v559_v61 = vld [vmem:[%s5296_s28 + $0x5e8] sm:$0xf] }
  0x91   : > { %v561_v62 = vld [vmem:[%s5296_s28 + $0x5f0] sm:$0xf]  ;;  %558 = vst [vmem:[%s5300_s29 + $0x2f0] sm:$0xf] %v557_v60  ;;  %560 = vst [vmem:[%s5300_s29 + $0x2f4] sm:$0xf] %v559_v61 }
  0x92   : > { %562 = vst [vmem:[%s5300_s29 + $0x2f8] sm:$0xf] %v561_v62  ;;  %v563_v63 = vld [vmem:[%s5296_s28 + $0x5f8] sm:$0xf]  ;;  %v565_v0 = vld [vmem:[%s5296_s28 + $0x600] sm:$0xf] }
  0x93   : > { %v567_v1 = vld [vmem:[%s5296_s28 + $0x608] sm:$0xf]  ;;  %564 = vst [vmem:[%s5300_s29 + $0x2fc] sm:$0xf] %v563_v63  ;;  %566 = vst [vmem:[%s5300_s29 + $0x300] sm:$0xf] %v565_v0 }
  0x94   : > { %568 = vst [vmem:[%s5300_s29 + $0x304] sm:$0xf] %v567_v1  ;;  %v569_v2 = vld [vmem:[%s5296_s28 + $0x610] sm:$0xf]  ;;  %v571_v3 = vld [vmem:[%s5296_s28 + $0x618] sm:$0xf] }
  0x95   : > { %v573_v4 = vld [vmem:[%s5296_s28 + $0x620] sm:$0xf]  ;;  %570 = vst [vmem:[%s5300_s29 + $0x308] sm:$0xf] %v569_v2  ;;  %572 = vst [vmem:[%s5300_s29 + $0x30c] sm:$0xf] %v571_v3 }
  0x96   : > { %574 = vst [vmem:[%s5300_s29 + $0x310] sm:$0xf] %v573_v4  ;;  %v575_v5 = vld [vmem:[%s5296_s28 + $0x628] sm:$0xf]  ;;  %v577_v6 = vld [vmem:[%s5296_s28 + $0x630] sm:$0xf] }
  0x97   : > { %v579_v7 = vld [vmem:[%s5296_s28 + $0x638] sm:$0xf]  ;;  %576 = vst [vmem:[%s5300_s29 + $0x314] sm:$0xf] %v575_v5  ;;  %578 = vst [vmem:[%s5300_s29 + $0x318] sm:$0xf] %v577_v6 }
  0x98   : > { %580 = vst [vmem:[%s5300_s29 + $0x31c] sm:$0xf] %v579_v7  ;;  %v581_v8 = vld [vmem:[%s5296_s28 + $0x640] sm:$0xf]  ;;  %v583_v9 = vld [vmem:[%s5296_s28 + $0x648] sm:$0xf] }
  0x99   : > { %v585_v10 = vld [vmem:[%s5296_s28 + $0x650] sm:$0xf]  ;;  %582 = vst [vmem:[%s5300_s29 + $0x320] sm:$0xf] %v581_v8  ;;  %584 = vst [vmem:[%s5300_s29 + $0x324] sm:$0xf] %v583_v9 }
  0x9a   : > { %586 = vst [vmem:[%s5300_s29 + $0x328] sm:$0xf] %v585_v10  ;;  %v587_v11 = vld [vmem:[%s5296_s28 + $0x658] sm:$0xf]  ;;  %v589_v12 = vld [vmem:[%s5296_s28 + $0x660] sm:$0xf] }
  0x9b   : > { %v591_v13 = vld [vmem:[%s5296_s28 + $0x668] sm:$0xf]  ;;  %588 = vst [vmem:[%s5300_s29 + $0x32c] sm:$0xf] %v587_v11  ;;  %590 = vst [vmem:[%s5300_s29 + $0x330] sm:$0xf] %v589_v12 }
  0x9c   : > { %592 = vst [vmem:[%s5300_s29 + $0x334] sm:$0xf] %v591_v13  ;;  %v593_v14 = vld [vmem:[%s5296_s28 + $0x670] sm:$0xf]  ;;  %v595_v15 = vld [vmem:[%s5296_s28 + $0x678] sm:$0xf] }
  0x9d   : > { %v597_v16 = vld [vmem:[%s5296_s28 + $0x680] sm:$0xf]  ;;  %594 = vst [vmem:[%s5300_s29 + $0x338] sm:$0xf] %v593_v14  ;;  %596 = vst [vmem:[%s5300_s29 + $0x33c] sm:$0xf] %v595_v15 }
  0x9e   : > { %598 = vst [vmem:[%s5300_s29 + $0x340] sm:$0xf] %v597_v16  ;;  %v599_v17 = vld [vmem:[%s5296_s28 + $0x688] sm:$0xf]  ;;  %v601_v18 = vld [vmem:[%s5296_s28 + $0x690] sm:$0xf] }
  0x9f   : > { %v603_v19 = vld [vmem:[%s5296_s28 + $0x698] sm:$0xf]  ;;  %600 = vst [vmem:[%s5300_s29 + $0x344] sm:$0xf] %v599_v17  ;;  %602 = vst [vmem:[%s5300_s29 + $0x348] sm:$0xf] %v601_v18 }
  0xa0   : > { %604 = vst [vmem:[%s5300_s29 + $0x34c] sm:$0xf] %v603_v19  ;;  %v605_v20 = vld [vmem:[%s5296_s28 + $0x6a0] sm:$0xf]  ;;  %v607_v21 = vld [vmem:[%s5296_s28 + $0x6a8] sm:$0xf] }
  0xa1   : > { %v609_v22 = vld [vmem:[%s5296_s28 + $0x6b0] sm:$0xf]  ;;  %606 = vst [vmem:[%s5300_s29 + $0x350] sm:$0xf] %v605_v20  ;;  %608 = vst [vmem:[%s5300_s29 + $0x354] sm:$0xf] %v607_v21 }
  0xa2   : > { %610 = vst [vmem:[%s5300_s29 + $0x358] sm:$0xf] %v609_v22  ;;  %v611_v23 = vld [vmem:[%s5296_s28 + $0x6b8] sm:$0xf]  ;;  %v613_v24 = vld [vmem:[%s5296_s28 + $0x6c0] sm:$0xf] }
  0xa3   : > { %v615_v25 = vld [vmem:[%s5296_s28 + $0x6c8] sm:$0xf]  ;;  %612 = vst [vmem:[%s5300_s29 + $0x35c] sm:$0xf] %v611_v23  ;;  %614 = vst [vmem:[%s5300_s29 + $0x360] sm:$0xf] %v613_v24 }
  0xa4   : > { %616 = vst [vmem:[%s5300_s29 + $0x364] sm:$0xf] %v615_v25  ;;  %v617_v26 = vld [vmem:[%s5296_s28 + $0x6d0] sm:$0xf]  ;;  %v619_v27 = vld [vmem:[%s5296_s28 + $0x6d8] sm:$0xf] }
  0xa5   : > { %v621_v28 = vld [vmem:[%s5296_s28 + $0x6e0] sm:$0xf]  ;;  %618 = vst [vmem:[%s5300_s29 + $0x368] sm:$0xf] %v617_v26  ;;  %620 = vst [vmem:[%s5300_s29 + $0x36c] sm:$0xf] %v619_v27 }
  0xa6   : > { %622 = vst [vmem:[%s5300_s29 + $0x370] sm:$0xf] %v621_v28  ;;  %v623_v29 = vld [vmem:[%s5296_s28 + $0x6e8] sm:$0xf]  ;;  %v625_v30 = vld [vmem:[%s5296_s28 + $0x6f0] sm:$0xf] }
  0xa7   : > { %v627_v31 = vld [vmem:[%s5296_s28 + $0x6f8] sm:$0xf]  ;;  %624 = vst [vmem:[%s5300_s29 + $0x374] sm:$0xf] %v623_v29  ;;  %626 = vst [vmem:[%s5300_s29 + $0x378] sm:$0xf] %v625_v30 }
  0xa8   : > { %628 = vst [vmem:[%s5300_s29 + $0x37c] sm:$0xf] %v627_v31  ;;  %v629_v32 = vld [vmem:[%s5296_s28 + $0x700] sm:$0xf]  ;;  %v631_v33 = vld [vmem:[%s5296_s28 + $0x708] sm:$0xf] }
  0xa9   : > { %v633_v34 = vld [vmem:[%s5296_s28 + $0x710] sm:$0xf]  ;;  %630 = vst [vmem:[%s5300_s29 + $0x380] sm:$0xf] %v629_v32  ;;  %632 = vst [vmem:[%s5300_s29 + $0x384] sm:$0xf] %v631_v33 }
  0xaa   : > { %634 = vst [vmem:[%s5300_s29 + $0x388] sm:$0xf] %v633_v34  ;;  %v635_v35 = vld [vmem:[%s5296_s28 + $0x718] sm:$0xf]  ;;  %v637_v36 = vld [vmem:[%s5296_s28 + $0x720] sm:$0xf] }
  0xab   : > { %v639_v37 = vld [vmem:[%s5296_s28 + $0x728] sm:$0xf]  ;;  %636 = vst [vmem:[%s5300_s29 + $0x38c] sm:$0xf] %v635_v35  ;;  %638 = vst [vmem:[%s5300_s29 + $0x390] sm:$0xf] %v637_v36 }
  0xac   : > { %640 = vst [vmem:[%s5300_s29 + $0x394] sm:$0xf] %v639_v37  ;;  %v641_v38 = vld [vmem:[%s5296_s28 + $0x730] sm:$0xf]  ;;  %v643_v39 = vld [vmem:[%s5296_s28 + $0x738] sm:$0xf] }
  0xad   : > { %v645_v40 = vld [vmem:[%s5296_s28 + $0x740] sm:$0xf]  ;;  %642 = vst [vmem:[%s5300_s29 + $0x398] sm:$0xf] %v641_v38  ;;  %644 = vst [vmem:[%s5300_s29 + $0x39c] sm:$0xf] %v643_v39 }
  0xae   : > { %646 = vst [vmem:[%s5300_s29 + $0x3a0] sm:$0xf] %v645_v40  ;;  %v647_v41 = vld [vmem:[%s5296_s28 + $0x748] sm:$0xf]  ;;  %v649_v42 = vld [vmem:[%s5296_s28 + $0x750] sm:$0xf] }
  0xaf   : > { %v651_v43 = vld [vmem:[%s5296_s28 + $0x758] sm:$0xf]  ;;  %648 = vst [vmem:[%s5300_s29 + $0x3a4] sm:$0xf] %v647_v41  ;;  %650 = vst [vmem:[%s5300_s29 + $0x3a8] sm:$0xf] %v649_v42 }
  0xb0   : > { %652 = vst [vmem:[%s5300_s29 + $0x3ac] sm:$0xf] %v651_v43  ;;  %v653_v44 = vld [vmem:[%s5296_s28 + $0x760] sm:$0xf]  ;;  %v655_v45 = vld [vmem:[%s5296_s28 + $0x768] sm:$0xf] }
  0xb1   : > { %v657_v46 = vld [vmem:[%s5296_s28 + $0x770] sm:$0xf]  ;;  %654 = vst [vmem:[%s5300_s29 + $0x3b0] sm:$0xf] %v653_v44  ;;  %656 = vst [vmem:[%s5300_s29 + $0x3b4] sm:$0xf] %v655_v45 }
  0xb2   : > { %658 = vst [vmem:[%s5300_s29 + $0x3b8] sm:$0xf] %v657_v46  ;;  %v659_v47 = vld [vmem:[%s5296_s28 + $0x778] sm:$0xf]  ;;  %v661_v48 = vld [vmem:[%s5296_s28 + $0x780] sm:$0xf] }
  0xb3   : > { %v663_v49 = vld [vmem:[%s5296_s28 + $0x788] sm:$0xf]  ;;  %660 = vst [vmem:[%s5300_s29 + $0x3bc] sm:$0xf] %v659_v47  ;;  %662 = vst [vmem:[%s5300_s29 + $0x3c0] sm:$0xf] %v661_v48 }
  0xb4   : > { %664 = vst [vmem:[%s5300_s29 + $0x3c4] sm:$0xf] %v663_v49  ;;  %v665_v50 = vld [vmem:[%s5296_s28 + $0x790] sm:$0xf]  ;;  %v667_v51 = vld [vmem:[%s5296_s28 + $0x798] sm:$0xf] }
  0xb5   : > { %v669_v52 = vld [vmem:[%s5296_s28 + $0x7a0] sm:$0xf]  ;;  %666 = vst [vmem:[%s5300_s29 + $0x3c8] sm:$0xf] %v665_v50  ;;  %668 = vst [vmem:[%s5300_s29 + $0x3cc] sm:$0xf] %v667_v51 }
  0xb6   : > { %670 = vst [vmem:[%s5300_s29 + $0x3d0] sm:$0xf] %v669_v52  ;;  %v671_v53 = vld [vmem:[%s5296_s28 + $0x7a8] sm:$0xf]  ;;  %v673_v54 = vld [vmem:[%s5296_s28 + $0x7b0] sm:$0xf] }
  0xb7   : > { %v675_v55 = vld [vmem:[%s5296_s28 + $0x7b8] sm:$0xf]  ;;  %672 = vst [vmem:[%s5300_s29 + $0x3d4] sm:$0xf] %v671_v53  ;;  %674 = vst [vmem:[%s5300_s29 + $0x3d8] sm:$0xf] %v673_v54 }
  0xb8   : > { %676 = vst [vmem:[%s5300_s29 + $0x3dc] sm:$0xf] %v675_v55  ;;  %v677_v56 = vld [vmem:[%s5296_s28 + $0x7c0] sm:$0xf]  ;;  %v679_v57 = vld [vmem:[%s5296_s28 + $0x7c8] sm:$0xf] }
  0xb9   : > { %v681_v58 = vld [vmem:[%s5296_s28 + $0x7d0] sm:$0xf]  ;;  %678 = vst [vmem:[%s5300_s29 + $0x3e0] sm:$0xf] %v677_v56  ;;  %680 = vst [vmem:[%s5300_s29 + $0x3e4] sm:$0xf] %v679_v57 }
  0xba   : > { %682 = vst [vmem:[%s5300_s29 + $0x3e8] sm:$0xf] %v681_v58  ;;  %v683_v59 = vld [vmem:[%s5296_s28 + $0x7d8] sm:$0xf]  ;;  %v685_v60 = vld [vmem:[%s5296_s28 + $0x7e0] sm:$0xf] }
  0xbb   : > { %v687_v61 = vld [vmem:[%s5296_s28 + $0x7e8] sm:$0xf]  ;;  %684 = vst [vmem:[%s5300_s29 + $0x3ec] sm:$0xf] %v683_v59  ;;  %686 = vst [vmem:[%s5300_s29 + $0x3f0] sm:$0xf] %v685_v60 }
  0xbc   : > { %688 = vst [vmem:[%s5300_s29 + $0x3f4] sm:$0xf] %v687_v61  ;;  %v689_v62 = vld [vmem:[%s5296_s28 + $0x7f0] sm:$0xf]  ;;  %v691_v63 = vld [vmem:[%s5296_s28 + $0x7f8] sm:$0xf] }
  0xbd   : > { %690 = vst [vmem:[%s5300_s29 + $0x3f8] sm:$0xf] %v689_v62  ;;  %692 = vst [vmem:[%s5300_s29 + $0x3fc] sm:$0xf] %v691_v63 }
  0xbe PF: > { %p4165_p8 = scmp.ge.s32.totalorder %s5226_s16, 1  ;;  %p1233_p9 = scmp.lt.s32.totalorder %s5226_s16, 3 }
  0xc0   : > { %p1234_p10 = pnand %p4165_p8, %p1233_p9 }
  0xc2   : > { %1237 = sbr.rel (%p1234_p10) target bundleno = 702 (0x2be), region = 69 }
  0xc7   : > { %s1240_s30 = sand.u32 1, %s5210_s12   ;;  %v5818_v0 = vld [vmem:[%s6635_s0] sm:$0xff]  ;;  %v5828_v2 = vld [vmem:[%s6635_s0 + $0x8] sm:$0xff]  ;;  %p1278_p11 = scmp.lt.s32.totalorder %s5218_s14, 1 }
  0xc8   : > { %v5823_v1 = vld [vmem:[%s6635_s0 + $0x40] sm:$0xff]  ;;  %s4166_s10 = sshll.u32 %s1240_s30, 10  ;;  %v5837_v4 = vld [vmem:[%s6635_s0 + $0x48] sm:$0xff]  ;;  %s4167_s5 = sshll.u32 %s1240_s30, 6 }
  0xc9   : > { %v4170_v3 = vcombine.high %v5818_v0, %v5823_v1  ;;  %v4172_v5 = vcombine.high %v5828_v2, %v5837_v4  ;;  %s5841_s19 = scalar_lea.vmem [#allocation2], %s4166_s10  ;;  %v1299_v35 = vld [vmem:[%s6635_s0 + $0x80] sm:$0xff]  ;;  %v1300_v38 = vld [vmem:[%s6635_s0 + $0x88] sm:$0xff]  ;;  %v4169_v42 = vcombine.low %v5818_v0, %v5823_v1  ;;  %v4171_v43 = vcombine.low %v5828_v2, %v5837_v4  ;;  %s6554_s12 = scalar_lea.vmem [#allocation3], %s4167_s5 }
  0xca   : > { %v5060_v6 = vld [vmem:[%s5841_s19 + $0x78] sm:$0xff]   ;;  %v5064_v10 = vld [vmem:[%s5841_s19 + $0x70] sm:$0xff]   ;;  %v5068_v14 = vld [vmem:[%s5841_s19 + $0x68] sm:$0xff]   ;;  %s1279_s29 = scalar_select %p1278_p11, %s5218_s14, 1 }
  0xcb   : > { %3114 = vmatprep.mubr.bf16.mxu0 %v4170_v3  ;;  %v5061_v7 = vld [vmem:[%s5841_s19 + $0xf8] sm:$0xff]   ;;  %3211 = vmatprep.mubr.bf16.mxu1 %v4172_v5  ;;  %v5065_v11 = vld [vmem:[%s5841_s19 + $0xf0] sm:$0xff]   ;;  %v5069_v15 = vld [vmem:[%s5841_s19 + $0xe8] sm:$0xff]   ;;  %s4442_s30 = sshll.u32 (%p5283_p6), %s5218_s14, 2 }
  0xcc   : > { %4508 = vmatprep.subr.bf16.mxu0 %v5060_v6  ;;  %v5062_v8 = vld [vmem:[%s5841_s19 + $0x38] sm:$0xff]   ;;  %4572 = vmatprep.subr.bf16.mxu1 %v5061_v7  ;;  %v5066_v12 = vld [vmem:[%s5841_s19 + $0x30] sm:$0xff]   ;;  %v5070_v16 = vld [vmem:[%s5841_s19 + $0x28] sm:$0xff]   ;;  %s1280_s10 = scalar_lea.vmem %s6637_s2, %s1279_s29  ;;  %s3965_s8 = scalar_lea.vmem (%p5283_p6), %s6638_s3, %s4442_s30 }
  0xcd   : > { %v5063_v9 = vld [vmem:[%s5841_s19 + $0xb8] sm:$0xff]   ;;  %4509 = vmatpush3.bf16.msra.mxu0 %v5062_v8  ;;  %v5067_v13 = vld [vmem:[%s5841_s19 + $0xb0] sm:$0xff]   ;;  %v5071_v17 = vld [vmem:[%s5841_s19 + $0xa8] sm:$0xff]  }
  0xce   : > { %4573 = vmatpush3.bf16.msra.mxu1 %v5063_v9  ;;  %4510 = vmatprep.subr.bf16.mxu0 %v5064_v10  ;;  %v5072_v18 = vld [vmem:[%s5841_s19 + $0x60] sm:$0xff]   ;;  %v5076_v22 = vld [vmem:[%s5841_s19 + $0x58] sm:$0xff]   ;;  %v5080_v26 = vld [vmem:[%s5841_s19 + $0x50] sm:$0xff]  }
  0xcf   : > { %4574 = vmatprep.subr.bf16.mxu1 %v5065_v11  ;;  %v5073_v19 = vld [vmem:[%s5841_s19 + $0xe0] sm:$0xff]   ;;  %v5077_v23 = vld [vmem:[%s5841_s19 + $0xd8] sm:$0xff]   ;;  %v5081_v27 = vld [vmem:[%s5841_s19 + $0xd0] sm:$0xff]  }
  0xd0   : > { %v5074_v20 = vld [vmem:[%s5841_s19 + $0x20] sm:$0xff]   ;;  %v5078_v24 = vld [vmem:[%s5841_s19 + $0x18] sm:$0xff]   ;;  %v5082_v28 = vld [vmem:[%s5841_s19 + $0x10] sm:$0xff]  }
  0xd1   : > { %4511 = vmatpush3.bf16.msra.mxu0 %v5066_v12  ;;  %v5075_v21 = vld [vmem:[%s5841_s19 + $0xa0] sm:$0xff]   ;;  %v5079_v25 = vld [vmem:[%s5841_s19 + $0x98] sm:$0xff]   ;;  %v5083_v29 = vld [vmem:[%s5841_s19 + $0x90] sm:$0xff]  }
  0xd2   : > { %4575 = vmatpush3.bf16.msra.mxu1 %v5067_v13  ;;  %4512 = vmatprep.subr.bf16.mxu0 %v5068_v14  ;;  %v5084_v30 = vld [vmem:[%s5841_s19 + $0x48] sm:$0xff]   ;;  %v5088_v34 = vld [vmem:[%s5841_s19 + $0x40] sm:$0xff]   ;;  %v5092_v44 = vld [vmem:[%s5841_s19 + $0x178] sm:$0xff]  }
  0xd3   : > { %4576 = vmatprep.subr.bf16.mxu1 %v5069_v15  ;;  %v5085_v31 = vld [vmem:[%s5841_s19 + $0xc8] sm:$0xff]   ;;  %v1307_v36 = vld [vmem:[%s6635_s0 + $0xc0] sm:$0xff]  ;;  %v5093_v45 = vld [vmem:[%s5841_s19 + $0x138] sm:$0xff]  }
  0xd4   : > { %v5086_v32 = vld [vmem:[%s5841_s19 + $0x8] sm:$0xff]   ;;  %v5089_v37 = vld [vmem:[%s5841_s19 + $0xc0] sm:$0xff]   ;;  %v4186_v46 = vcombine.high %v1299_v35, %v1307_v36  ;;  %v5094_v47 = vld [vmem:[%s5841_s19 + $0x1f8] sm:$0xff]   ;;  %v4185_v54 = vcombine.low %v1299_v35, %v1307_v36 }
  0xd5   : > { %4513 = vmatpush3.bf16.msra.mxu0 %v5070_v16  ;;  %v5087_v33 = vld [vmem:[%s5841_s19 + $0x88] sm:$0xff]   ;;  %v5090_v40 = vld [vmem:[%s5841_s19] sm:$0xff]   ;;  %v5095_v49 = vld [vmem:[%s5841_s19 + $0x1b8] sm:$0xff]  }
  0xd6   : > { %4577 = vmatpush3.bf16.msra.mxu1 %v5071_v17  ;;  %4514 = vmatprep.subr.bf16.mxu0 %v5072_v18  ;;  %v1308_v39 = vld [vmem:[%s6635_s0 + $0xc8] sm:$0xff]  ;;  %v5091_v41 = vld [vmem:[%s5841_s19 + $0x80] sm:$0xff]   ;;  %v5096_v50 = vld [vmem:[%s5841_s19 + $0x170] sm:$0xff]  }
  0xd7   : > { %4578 = vmatprep.subr.bf16.mxu1 %v5073_v19  ;;  %v4188_v48 = vcombine.high %v1300_v38, %v1308_v39  ;;  %v1315_v51 = vld [vmem:[%s6635_s0 + $0x100] sm:$0xff]  ;;  %v5097_v52 = vld [vmem:[%s5841_s19 + $0x130] sm:$0xff]   ;;  %v4187_v56 = vcombine.low %v1300_v38, %v1308_v39  ;;  %v1316_v58 = vld [vmem:[%s6635_s0 + $0x108] sm:$0xff] }
  0xd8   : > { %v5098_v53 = vld [vmem:[%s5841_s19 + $0x1f0] sm:$0xff]   ;;  %v1323_v57 = vld [vmem:[%s6635_s0 + $0x140] sm:$0xff]  ;;  %v1324_v59 = vld [vmem:[%s6635_s0 + $0x148] sm:$0xff] }
  0xd9   : > { %4515 = vmatpush3.bf16.msra.mxu0 %v5074_v20  ;;  %v5099_v55 = vld [vmem:[%s5841_s19 + $0x1b0] sm:$0xff]   ;;  %v4202_v60 = vcombine.high %v1315_v51, %v1323_v57  ;;  %v4204_v61 = vcombine.high %v1316_v58, %v1324_v59  ;;  %v5100_v62 = vld [vmem:[%s5841_s19 + $0x168] sm:$0xff]   ;;  %v1331_v2 = vld [vmem:[%s6635_s0 + $0x180] sm:$0xff]  ;;  %v4201_v6 = vcombine.low %v1315_v51, %v1323_v57  ;;  %v4203_v8 = vcombine.low %v1316_v58, %v1324_v59 }
  0xda   : > { %4579 = vmatpush3.bf16.msra.mxu1 %v5075_v21  ;;  %4516 = vmatprep.subr.bf16.mxu0 %v5076_v22  ;;  %v5101_v63 = vld [vmem:[%s5841_s19 + $0x128] sm:$0xff]   ;;  %v1339_v3 = vld [vmem:[%s6635_s0 + $0x1c0] sm:$0xff]  ;;  %v5108_v18 = vld [vmem:[%s5841_s19 + $0x158] sm:$0xff]  }
  0xdb   : > { %4580 = vmatprep.subr.bf16.mxu1 %v5077_v23  ;;  %v5102_v0 = vld [vmem:[%s5841_s19 + $0x1e8] sm:$0xff]   ;;  %v5104_v7 = vld [vmem:[%s5841_s19 + $0x160] sm:$0xff]   ;;  %v4218_v9 = vcombine.high %v1331_v2, %v1339_v3  ;;  %v5109_v19 = vld [vmem:[%s5841_s19 + $0x118] sm:$0xff]   ;;  %v4217_v21 = vcombine.low %v1331_v2, %v1339_v3 }
  0xdc   : > { %v5103_v1 = vld [vmem:[%s5841_s19 + $0x1a8] sm:$0xff]   ;;  %v5105_v10 = vld [vmem:[%s5841_s19 + $0x120] sm:$0xff]   ;;  %v5110_v20 = vld [vmem:[%s5841_s19 + $0x1d8] sm:$0xff]  }
  0xdd   : > { %4517 = vmatpush3.bf16.msra.mxu0 %v5078_v24  ;;  %v1332_v4 = vld [vmem:[%s6635_s0 + $0x188] sm:$0xff]  ;;  %v5106_v12 = vld [vmem:[%s5841_s19 + $0x1e0] sm:$0xff]   ;;  %v5111_v22 = vld [vmem:[%s5841_s19 + $0x198] sm:$0xff]  }
  0xde   : > { %4581 = vmatpush3.bf16.msra.mxu1 %v5079_v25  ;;  %4518 = vmatprep.subr.bf16.mxu0 %v5080_v26  ;;  %v1340_v5 = vld [vmem:[%s6635_s0 + $0x1c8] sm:$0xff]  ;;  %v5107_v13 = vld [vmem:[%s5841_s19 + $0x1a0] sm:$0xff]   ;;  %v5112_v26 = vld [vmem:[%s5841_s19 + $0x150] sm:$0xff]  }
  0xdf   : > { %4582 = vmatprep.subr.bf16.mxu1 %v5081_v27  ;;  %v4220_v11 = vcombine.high %v1332_v4, %v1340_v5  ;;  %v1347_v14 = vld [vmem:[%s6635_s0 + $0x200] sm:$0xff]  ;;  %v1348_v16 = vld [vmem:[%s6635_s0 + $0x208] sm:$0xff]  ;;  %v4219_v23 = vcombine.low %v1332_v4, %v1340_v5  ;;  %v5113_v27 = vld [vmem:[%s5841_s19 + $0x110] sm:$0xff]  }
  0xe0   : > { %v1355_v15 = vld [vmem:[%s6635_s0 + $0x240] sm:$0xff]  ;;  %v1356_v17 = vld [vmem:[%s6635_s0 + $0x248] sm:$0xff]  ;;  %v1286_v2 = vld [vmem:[%s6635_s0 + $0x18] sm:$0xff] }
  0xe1   : > { %4519 = vmatpush3.bf16.msra.mxu0 %v5082_v28  ;;  %v4234_v24 = vcombine.high %v1347_v14, %v1355_v15  ;;  %v4236_v25 = vcombine.high %v1348_v16, %v1356_v17  ;;  %v5114_v28 = vld [vmem:[%s5841_s19 + $0x1d0] sm:$0xff]   ;;  %v5116_v35 = vld [vmem:[%s5841_s19 + $0x148] sm:$0xff]   ;;  %v4235_v36 = vcombine.low %v1348_v16, %v1356_v17  ;;  %v1403_v57 = vld [vmem:[%s6635_s0 + $0x3c0] sm:$0xff] }
  0xe2   : > { %4583 = vmatpush3.bf16.msra.mxu1 %v5083_v29  ;;  %4520 = vmatprep.subr.bf16.mxu0 %v5084_v30  ;;  %v5115_v29 = vld [vmem:[%s5841_s19 + $0x190] sm:$0xff]   ;;  %v1363_v30 = vld [vmem:[%s6635_s0 + $0x280] sm:$0xff]  ;;  %v5117_v38 = vld [vmem:[%s5841_s19 + $0x108] sm:$0xff]  }
  0xe3   : > { %4584 = vmatprep.subr.bf16.mxu1 %v5085_v31  ;;  %v1371_v31 = vld [vmem:[%s6635_s0 + $0x2c0] sm:$0xff]  ;;  %v1396_v58 = vld [vmem:[%s6635_s0 + $0x388] sm:$0xff]  ;;  %v1294_v3 = vld [vmem:[%s6635_s0 + $0x58] sm:$0xff] }
  0xe4   : > { %v1404_v59 = vld [vmem:[%s6635_s0 + $0x3c8] sm:$0xff] }
  0xe5   : > { %4521 = vmatpush3.bf16.msra.mxu0 %v5086_v32  ;;  %v1364_v32 = vld [vmem:[%s6635_s0 + $0x288] sm:$0xff]  ;;  %v4283_v5 = vcombine.low %v1396_v58, %v1404_v59 }
  0xe6   : > { %4585 = vmatpush3.bf16.msra.mxu1 %v5087_v33  ;;  %4522 = vmatprep.subr.bf16.mxu0 %v5088_v34  ;;  %v1372_v33 = vld [vmem:[%s6635_s0 + $0x2c8] sm:$0xff]  ;;  %v4233_v34 = vcombine.low %v1347_v14, %v1355_v15  ;;  %v5125_v14 = vld [vmem:[%s5841_s19 + $0x238] sm:$0xff]  }
  0xe7   : > { %4586 = vmatprep.subr.bf16.mxu1 %v5089_v37  ;;  %v4250_v37 = vcombine.high %v1363_v30, %v1371_v31  ;;  %v4252_v39 = vcombine.high %v1364_v32, %v1372_v33  ;;  %v4251_v51 = vcombine.low %v1364_v32, %v1372_v33  ;;  %v5127_v15 = vld [vmem:[%s5841_s19 + $0x2b8] sm:$0xff]   ;;  %v5135_v33 = vld [vmem:[%s5841_s19 + $0x2a8] sm:$0xff]  }
  0xe9   : > { %4523 = vmatpush3.bf16.msra.mxu0 %v5090_v40  ;;  %v5118_v40 = vld [vmem:[%s5841_s19 + $0x1c8] sm:$0xff]  }
  0xea   : > { %4587 = vmatpush3.bf16.msra.mxu1 %v5091_v41  ;;  %4636 = vmatprep.subr.bf16.mxu0 %v5092_v44  ;;  %v5119_v41 = vld [vmem:[%s5841_s19 + $0x188] sm:$0xff]  }
  0xeb   : > { %4700 = vmatprep.subr.bf16.mxu1 %v5094_v47  ;;  %v1380_v44 = vld [vmem:[%s6635_s0 + $0x308] sm:$0xff]  ;;  %v5121_v47 = vld [vmem:[%s5841_s19 + $0x100] sm:$0xff]  }
  0xec   : > { %3115 = vmatmul.mubr.bf16.vlgmr.msra.gmra.mxu0 %v4169_v42  ;;  %v1379_v42 = vld [vmem:[%s6635_s0 + $0x300] sm:$0xff] }
  0xed   : > { %3212 = vmatmul.mubr.bf16.vlgmr.msra.gmra.mxu1 %v4171_v43  ;;  %4637 = vmatpush3.bf16.msra.mxu0 %v5093_v45  ;;  %v1387_v43 = vld [vmem:[%s6635_s0 + $0x340] sm:$0xff]  ;;  %v1388_v45 = vld [vmem:[%s6635_s0 + $0x348] sm:$0xff] }
  0xee   : > { %3122 = vmatprep.mubr.bf16.mxu0 %v4186_v46  ;;  %4701 = vmatpush3.bf16.msra.mxu1 %v5095_v49  ;;  %v5120_v46 = vld [vmem:[%s5841_s19 + $0x140] sm:$0xff]   ;;  %v4249_v49 = vcombine.low %v1363_v30, %v1371_v31  ;;  %v5133_v31 = vld [vmem:[%s5841_s19 + $0x228] sm:$0xff]  }
  0xef   : > { %3219 = vmatprep.mubr.bf16.mxu1 %v4188_v48  ;;  %4638 = vmatprep.subr.bf16.mxu0 %v5096_v50  ;;  %v5122_v48 = vld [vmem:[%s5841_s19 + $0x1c0] sm:$0xff]  }
  0xf0   : > { %4702 = vmatprep.subr.bf16.mxu1 %v5098_v53  ;;  %v5123_v50 = vld [vmem:[%s5841_s19 + $0x180] sm:$0xff]   ;;  %v4268_v53 = vcombine.high %v1380_v44, %v1388_v45 }
  0xf1   : > { %4639 = vmatpush3.bf16.msra.mxu0 %v5097_v52  ;;  %v4266_v52 = vcombine.high %v1379_v42, %v1387_v43 }
  0xf2   : > { %4703 = vmatpush3.bf16.msra.mxu1 %v5099_v55  ;;  %4640 = vmatprep.subr.bf16.mxu0 %v5100_v62  ;;  %v5126_v55 = vld [vmem:[%s5841_s19 + $0x2f8] sm:$0xff]  }
  0xf3   : > { %4704 = vmatprep.subr.bf16.mxu1 %v5102_v0  ;;  %v1285_v0 = vld [vmem:[%s6635_s0 + $0x10] sm:$0xff] }
  0xf4   : > { %3123 = vmatmul.mubr.bf16.gmra.mxu0 %v4185_v54  ;;  %v5124_v54 = vld [vmem:[%s5841_s19 + $0x278] sm:$0xff]  }
  0xf5   : > { %3220 = vmatmul.mubr.bf16.gmra.mxu1 %v4187_v56  ;;  %3130 = vmatprep.mubr.bf16.mxu0 %v4202_v60  ;;  %v1395_v56 = vld [vmem:[%s6635_s0 + $0x380] sm:$0xff]  ;;  %v4265_v60 = vcombine.low %v1379_v42, %v1387_v43  ;;  %v5140_v42 = vld [vmem:[%s5841_s19 + $0x258] sm:$0xff]  }
  0xf6   : > { %3227 = vmatprep.mubr.bf16.mxu1 %v4204_v61  ;;  %4641 = vmatpush3.bf16.msra.mxu0 %v5101_v63  ;;  %v4267_v61 = vcombine.low %v1380_v44, %v1388_v45  ;;  %v4282_v62 = vcombine.high %v1395_v56, %v1403_v57  ;;  %v4284_v63 = vcombine.high %v1396_v58, %v1404_v59  ;;  %v5142_v44 = vld [vmem:[%s5841_s19 + $0x2d8] sm:$0xff]   ;;  %v5148_v58 = vld [vmem:[%s5841_s19 + $0x248] sm:$0xff]  }
  0xf7   : > { %4705 = vmatpush3.bf16.msra.mxu1 %v5103_v1  ;;  %4642 = vmatprep.subr.bf16.mxu0 %v5104_v7  ;;  %v1293_v1 = vld [vmem:[%s6635_s0 + $0x50] sm:$0xff]  ;;  %v4281_v4 = vcombine.low %v1395_v56, %v1403_v57  ;;  %v4176_v7 = vcombine.high %v1286_v2, %v1294_v3 }
  0xf8   : > { %4706 = vmatprep.subr.bf16.mxu1 %v5106_v12  ;;  %v1310_v12 = vld [vmem:[%s6635_s0 + $0xd8] sm:$0xff]  ;;  %v5145_v56 = vld [vmem:[%s5841_s19 + $0x210] sm:$0xff]  }
  0xf9   : > { %v5147_v57 = vld [vmem:[%s5841_s19 + $0x290] sm:$0xff]  }
  0xfa   : > { %4643 = vmatpush3.bf16.msra.mxu0 %v5105_v10  ;;  %v1302_v10 = vld [vmem:[%s6635_s0 + $0x98] sm:$0xff] }
  0xfb   : > { %4707 = vmatpush3.bf16.msra.mxu1 %v5107_v13  ;;  %4644 = vmatprep.subr.bf16.mxu0 %v5108_v18  ;;  %v4175_v13 = vcombine.low %v1286_v2, %v1294_v3  ;;  %v4192_v17 = vcombine.high %v1302_v10, %v1310_v12  ;;  %v5128_v18 = vld [vmem:[%s5841_s19 + $0x270] sm:$0xff]   ;;  %v5152_v2 = vld [vmem:[%s5841_s19 + $0x240] sm:$0xff]  }
  0xfc   : > { %3131 = vmatmul.mubr.bf16.gmra.mxu0 %v4201_v6  ;;  %4708 = vmatprep.subr.bf16.mxu1 %v5110_v20  ;;  %v4174_v6 = vcombine.high %v1285_v0, %v1293_v1  ;;  %v5130_v20 = vld [vmem:[%s5841_s19 + $0x2f0] sm:$0xff]  }
  0xfd   : > { %3228 = vmatmul.mubr.bf16.gmra.mxu1 %v4203_v8  ;;  %3138 = vmatprep.mubr.bf16.mxu0 %v4218_v9  ;;  %v1301_v8 = vld [vmem:[%s6635_s0 + $0x90] sm:$0xff] }
  0xfe   : > { %3235 = vmatprep.mubr.bf16.mxu1 %v4220_v11  ;;  %4645 = vmatpush3.bf16.msra.mxu0 %v5109_v19  ;;  %v1309_v9 = vld [vmem:[%s6635_s0 + $0xd0] sm:$0xff]  ;;  %v4173_v11 = vcombine.low %v1285_v0, %v1293_v1  ;;  %v5151_v1 = vld [vmem:[%s5841_s19 + $0x288] sm:$0xff]  }
  0xff   : > { %4709 = vmatpush3.bf16.msra.mxu1 %v5111_v22  ;;  %4646 = vmatprep.subr.bf16.mxu0 %v5112_v26  ;;  %v4190_v16 = vcombine.high %v1301_v8, %v1309_v9  ;;  %v5129_v19 = vld [vmem:[%s5841_s19 + $0x230] sm:$0xff]   ;;  %v5132_v26 = vld [vmem:[%s5841_s19 + $0x268] sm:$0xff]  }
 0x100   : > { %4710 = vmatprep.subr.bf16.mxu1 %v5114_v28  ;;  %v1317_v22 = vld [vmem:[%s6635_s0 + $0x110] sm:$0xff]  ;;  %v4189_v28 = vcombine.low %v1301_v8, %v1309_v9  ;;  %v5153_v8 = vld [vmem:[%s5841_s19 + $0x200] sm:$0xff]  }
 0x101   : > { %v1365_v3 = vld [vmem:[%s6635_s0 + $0x290] sm:$0xff]  ;;  %v5155_v9 = vld [vmem:[%s5841_s19 + $0x280] sm:$0xff]  }
 0x102   : > { %4647 = vmatpush3.bf16.msra.mxu0 %v5113_v27  ;;  %v5134_v27 = vld [vmem:[%s5841_s19 + $0x2e8] sm:$0xff]  }
 0x103   : > { %4711 = vmatpush3.bf16.msra.mxu1 %v5115_v29  ;;  %4648 = vmatprep.subr.bf16.mxu0 %v5116_v35  ;;  %v4191_v29 = vcombine.low %v1302_v10, %v1310_v12  ;;  %v1333_v35 = vld [vmem:[%s6635_s0 + $0x190] sm:$0xff]  ;;  %v5156_v10 = vld [vmem:[%s5841_s19 + $0x378] sm:$0xff]  }
 0x104   : > { %3139 = vmatmul.mubr.bf16.gmra.mxu0 %v4217_v21  ;;  %4712 = vmatprep.subr.bf16.mxu1 %v5118_v40  ;;  %v5131_v21 = vld [vmem:[%s5841_s19 + $0x2b0] sm:$0xff]   ;;  %v5137_v40 = vld [vmem:[%s5841_s19 + $0x220] sm:$0xff]   ;;  %v5158_v12 = vld [vmem:[%s5841_s19 + $0x3f8] sm:$0xff]  }
 0x105   : > { %3236 = vmatmul.mubr.bf16.gmra.mxu1 %v4219_v23  ;;  %3146 = vmatprep.mubr.bf16.mxu0 %v4234_v24  ;;  %v1325_v23 = vld [vmem:[%s6635_s0 + $0x150] sm:$0xff]  ;;  %v1318_v24 = vld [vmem:[%s6635_s0 + $0x118] sm:$0xff] }
 0x106   : > { %3243 = vmatprep.mubr.bf16.mxu1 %v4236_v25  ;;  %4649 = vmatpush3.bf16.msra.mxu0 %v5117_v38  ;;  %v1326_v25 = vld [vmem:[%s6635_s0 + $0x158] sm:$0xff]  ;;  %v4206_v30 = vcombine.high %v1317_v22, %v1325_v23  ;;  %v4205_v43 = vcombine.low %v1317_v22, %v1325_v23 }
 0x107   : > { %4713 = vmatpush3.bf16.msra.mxu1 %v5119_v41  ;;  %4650 = vmatprep.subr.bf16.mxu0 %v5120_v46  ;;  %v4208_v32 = vcombine.high %v1318_v24, %v1326_v25  ;;  %v1334_v38 = vld [vmem:[%s6635_s0 + $0x198] sm:$0xff]  ;;  %v5139_v41 = vld [vmem:[%s5841_s19 + $0x2a0] sm:$0xff]   ;;  %v4207_v45 = vcombine.low %v1318_v24, %v1326_v25  ;;  %v1397_v24 = vld [vmem:[%s6635_s0 + $0x390] sm:$0xff] }
 0x108   : > { %4714 = vmatprep.subr.bf16.mxu1 %v5122_v48  ;;  %v5141_v48 = vld [vmem:[%s5841_s19 + $0x218] sm:$0xff]   ;;  %v1405_v25 = vld [vmem:[%s6635_s0 + $0x3d0] sm:$0xff] }
 0x10a   : > { %4651 = vmatpush3.bf16.msra.mxu0 %v5121_v47 }
 0x10b   : > { %4715 = vmatpush3.bf16.msra.mxu1 %v5123_v50  ;;  %4764 = vmatprep.subr.bf16.mxu0 %v5124_v54  ;;  %v5144_v50 = vld [vmem:[%s5841_s19 + $0x250] sm:$0xff]   ;;  %v1350_v54 = vld [vmem:[%s6635_s0 + $0x218] sm:$0xff] }
 0x10c   : > { %3147 = vmatmul.mubr.bf16.gmra.mxu0 %v4233_v34  ;;  %4828 = vmatprep.subr.bf16.mxu1 %v5126_v55  ;;  %v5136_v34 = vld [vmem:[%s5841_s19 + $0x260] sm:$0xff]   ;;  %v1358_v55 = vld [vmem:[%s6635_s0 + $0x258] sm:$0xff] }
 0x10d   : > { %3244 = vmatmul.mubr.bf16.gmra.mxu1 %v4235_v36  ;;  %3154 = vmatprep.mubr.bf16.mxu0 %v4250_v37  ;;  %v1341_v36 = vld [vmem:[%s6635_s0 + $0x1d0] sm:$0xff]  ;;  %v5138_v37 = vld [vmem:[%s5841_s19 + $0x2e0] sm:$0xff]   ;;  %v4240_v0 = vcombine.high %v1350_v54, %v1358_v55 }
 0x10e   : > { %3251 = vmatprep.mubr.bf16.mxu1 %v4252_v39  ;;  %v1342_v39 = vld [vmem:[%s6635_s0 + $0x1d8] sm:$0xff]  ;;  %v4222_v46 = vcombine.high %v1333_v35, %v1341_v36  ;;  %v4221_v59 = vcombine.low %v1333_v35, %v1341_v36  ;;  %v1296_v35 = vld [vmem:[%s6635_s0 + $0x68] sm:$0xff]  ;;  %v4285_v36 = vcombine.low %v1397_v24, %v1405_v25 }
 0x10f   : > { %v4224_v47 = vcombine.high %v1334_v38, %v1342_v39 }
 0x114   : > { %3155 = vmatmul.mubr.bf16.gmra.mxu0 %v4249_v49  ;;  %v5143_v49 = vld [vmem:[%s5841_s19 + $0x298] sm:$0xff]  }
 0x115   : > { %3252 = vmatmul.mubr.bf16.gmra.mxu1 %v4251_v51  ;;  %3162 = vmatprep.mubr.bf16.mxu0 %v4266_v52  ;;  %v1349_v51 = vld [vmem:[%s6635_s0 + $0x210] sm:$0xff] }
 0x116   : > { %3259 = vmatprep.mubr.bf16.mxu1 %v4268_v53  ;;  %v1357_v52 = vld [vmem:[%s6635_s0 + $0x250] sm:$0xff] }
 0x117   : > { %v5146_v53 = vld [vmem:[%s5841_s19 + $0x2d0] sm:$0xff]  }
 0x11c   : > { %3163 = vmatmul.mubr.bf16.gmra.mxu0 %v4265_v60  ;;  %v5150_v60 = vld [vmem:[%s5841_s19 + $0x2c8] sm:$0xff]  }
 0x11d   : > { %3260 = vmatmul.mubr.bf16.gmra.mxu1 %v4267_v61  ;;  %3170 = vmatprep.mubr.bf16.mxu0 %v4282_v62  ;;  %v4223_v61 = vcombine.low %v1334_v38, %v1342_v39  ;;  %v4238_v62 = vcombine.high %v1349_v51, %v1357_v52 }
 0x11e   : > { %3267 = vmatprep.mubr.bf16.mxu1 %v4284_v63  ;;  %v5149_v63 = vld [vmem:[%s5841_s19 + $0x208] sm:$0xff]  }
 0x124   : > { %3171 = vmatmul.mubr.bf16.gmra.mxu0 %v4281_v4  ;;  %v1373_v4 = vld [vmem:[%s6635_s0 + $0x2d0] sm:$0xff] }
 0x125   : > { %3268 = vmatmul.mubr.bf16.gmra.mxu1 %v4283_v5  ;;  %3308 = vmatprep.mubr.bf16.mxu0 %v4174_v6  ;;  %v5154_v5 = vld [vmem:[%s5841_s19 + $0x2c0] sm:$0xff]   ;;  %v1366_v6 = vld [vmem:[%s6635_s0 + $0x298] sm:$0xff] }
 0x126   : > { %3405 = vmatprep.mubr.bf16.mxu1 %v4176_v7  ;;  %v1374_v7 = vld [vmem:[%s6635_s0 + $0x2d8] sm:$0xff] }
 0x12c   : > { %3309 = vmatmul.mubr.bf16.vlgmr.msra.gmra.mxu0 %v4173_v11  ;;  %v4237_v11 = vcombine.low %v1349_v51, %v1357_v52  ;;  %v5162_v51 = vld [vmem:[%s5841_s19 + $0x3f0] sm:$0xff]  }
 0x12d   : > { %3406 = vmatmul.mubr.bf16.vlgmr.msra.gmra.mxu1 %v4175_v13  ;;  %4765 = vmatpush3.bf16.msra.mxu0 %v5125_v14  ;;  %v4239_v13 = vcombine.low %v1350_v54, %v1358_v55  ;;  %v4254_v14 = vcombine.high %v1365_v3, %v1373_v4  ;;  %v5161_v52 = vld [vmem:[%s5841_s19 + $0x330] sm:$0xff]   ;;  %v1319_v54 = vld [vmem:[%s6635_s0 + $0x120] sm:$0xff] }
 0x12e   : > { %4829 = vmatpush3.bf16.msra.mxu1 %v5127_v15  ;;  %3316 = vmatprep.mubr.bf16.mxu0 %v4190_v16  ;;  %v4256_v15 = vcombine.high %v1366_v6, %v1374_v7  ;;  %v1381_v16 = vld [vmem:[%s6635_s0 + $0x310] sm:$0xff]  ;;  %v1327_v55 = vld [vmem:[%s6635_s0 + $0x160] sm:$0xff] }
 0x12f   : > { %3413 = vmatprep.mubr.bf16.mxu1 %v4192_v17  ;;  %4766 = vmatprep.subr.bf16.mxu0 %v5128_v18  ;;  %v1389_v17 = vld [vmem:[%s6635_s0 + $0x350] sm:$0xff]  ;;  %v1382_v18 = vld [vmem:[%s6635_s0 + $0x318] sm:$0xff] }
 0x130   : > { %4830 = vmatprep.subr.bf16.mxu1 %v5130_v20  ;;  %v4253_v20 = vcombine.low %v1365_v3, %v1373_v4  ;;  %v4270_v22 = vcombine.high %v1381_v16, %v1389_v17  ;;  %v5170_v3 = vld [vmem:[%s5841_s19 + $0x3e0] sm:$0xff]  }
 0x131   : > { %4767 = vmatpush3.bf16.msra.mxu0 %v5129_v19  ;;  %v1390_v19 = vld [vmem:[%s6635_s0 + $0x358] sm:$0xff]  ;;  %v1335_v4 = vld [vmem:[%s6635_s0 + $0x1a0] sm:$0xff] }
 0x132   : > { %4831 = vmatpush3.bf16.msra.mxu1 %v5131_v21  ;;  %4768 = vmatprep.subr.bf16.mxu0 %v5132_v26  ;;  %v4255_v21 = vcombine.low %v1366_v6, %v1374_v7  ;;  %v4272_v23 = vcombine.high %v1382_v18, %v1390_v19  ;;  %v1398_v26 = vld [vmem:[%s6635_s0 + $0x398] sm:$0xff]  ;;  %v1336_v6 = vld [vmem:[%s6635_s0 + $0x1a8] sm:$0xff]  ;;  %v5169_v7 = vld [vmem:[%s5841_s19 + $0x320] sm:$0xff]  }
 0x133   : > { %4832 = vmatprep.subr.bf16.mxu1 %v5134_v27  ;;  %v1406_v27 = vld [vmem:[%s6635_s0 + $0x3d8] sm:$0xff] }
 0x134   : > { %3317 = vmatmul.mubr.bf16.gmra.mxu0 %v4189_v28  ;;  %v4269_v28 = vcombine.low %v1381_v16, %v1389_v17  ;;  %v5173_v16 = vld [vmem:[%s5841_s19 + $0x318] sm:$0xff]  }
 0x135   : > { %3414 = vmatmul.mubr.bf16.gmra.mxu1 %v4191_v29  ;;  %3324 = vmatprep.mubr.bf16.mxu0 %v4206_v30  ;;  %v4271_v29 = vcombine.low %v1382_v18, %v1390_v19  ;;  %v4286_v30 = vcombine.high %v1397_v24, %v1405_v25  ;;  %v5175_v17 = vld [vmem:[%s5841_s19 + $0x398] sm:$0xff]   ;;  %v5176_v18 = vld [vmem:[%s5841_s19 + $0x350] sm:$0xff]   ;;  %v1360_v24 = vld [vmem:[%s6635_s0 + $0x268] sm:$0xff] }
 0x136   : > { %3421 = vmatprep.mubr.bf16.mxu1 %v4208_v32  ;;  %4769 = vmatpush3.bf16.msra.mxu0 %v5133_v31  ;;  %v4288_v31 = vcombine.high %v1398_v26, %v1406_v27  ;;  %v1287_v32 = vld [vmem:[%s6635_s0 + $0x20] sm:$0xff]  ;;  %v5178_v19 = vld [vmem:[%s5841_s19 + $0x3d0] sm:$0xff]  }
 0x137   : > { %4833 = vmatpush3.bf16.msra.mxu1 %v5135_v33  ;;  %4770 = vmatprep.subr.bf16.mxu0 %v5136_v34  ;;  %v1295_v33 = vld [vmem:[%s6635_s0 + $0x60] sm:$0xff]  ;;  %v1288_v34 = vld [vmem:[%s6635_s0 + $0x28] sm:$0xff]  ;;  %v5179_v25 = vld [vmem:[%s5841_s19 + $0x390] sm:$0xff]  }
 0x138   : > { %4834 = vmatprep.subr.bf16.mxu1 %v5138_v37  ;;  %v4287_v37 = vcombine.low %v1398_v26, %v1406_v27  ;;  %v4178_v38 = vcombine.high %v1287_v32, %v1295_v33  ;;  %v4180_v39 = vcombine.high %v1288_v34, %v1296_v35  ;;  %v5180_v26 = vld [vmem:[%s5841_s19 + $0x348] sm:$0xff]  }
 0x13a   : > { %4771 = vmatpush3.bf16.msra.mxu0 %v5137_v40  ;;  %v1303_v40 = vld [vmem:[%s6635_s0 + $0xa0] sm:$0xff] }
 0x13b   : > { %4835 = vmatpush3.bf16.msra.mxu1 %v5139_v41  ;;  %4772 = vmatprep.subr.bf16.mxu0 %v5140_v42  ;;  %v1311_v41 = vld [vmem:[%s6635_s0 + $0xe0] sm:$0xff]  ;;  %v4177_v42 = vcombine.low %v1287_v32, %v1295_v33  ;;  %v5181_v32 = vld [vmem:[%s5841_s19 + $0x308] sm:$0xff]  }
 0x13c   : > { %3325 = vmatmul.mubr.bf16.gmra.mxu0 %v4205_v43  ;;  %4836 = vmatprep.subr.bf16.mxu1 %v5142_v44  ;;  %v1304_v43 = vld [vmem:[%s6635_s0 + $0xa8] sm:$0xff] }
 0x13d   : > { %3422 = vmatmul.mubr.bf16.gmra.mxu1 %v4207_v45  ;;  %3332 = vmatprep.mubr.bf16.mxu0 %v4222_v46  ;;  %v1312_v44 = vld [vmem:[%s6635_s0 + $0xe8] sm:$0xff]  ;;  %v4179_v45 = vcombine.low %v1288_v34, %v1296_v35  ;;  %v5157_v46 = vld [vmem:[%s5841_s19 + $0x338] sm:$0xff]   ;;  %v5184_v34 = vld [vmem:[%s5841_s19 + $0x340] sm:$0xff]  }
 0x13e   : > { %3429 = vmatprep.mubr.bf16.mxu1 %v4224_v47  ;;  %4773 = vmatpush3.bf16.msra.mxu0 %v5141_v48  ;;  %v5159_v47 = vld [vmem:[%s5841_s19 + $0x3b8] sm:$0xff]   ;;  %v4194_v48 = vcombine.high %v1303_v40, %v1311_v41  ;;  %v5183_v33 = vld [vmem:[%s5841_s19 + $0x388] sm:$0xff]   ;;  %v5186_v35 = vld [vmem:[%s5841_s19 + $0x3c0] sm:$0xff]  }
 0x13f   : > { %4837 = vmatpush3.bf16.msra.mxu1 %v5143_v49  ;;  %4774 = vmatprep.subr.bf16.mxu0 %v5144_v50  ;;  %v4196_v49 = vcombine.high %v1304_v43, %v1312_v44  ;;  %v5160_v50 = vld [vmem:[%s5841_s19 + $0x370] sm:$0xff]  }
 0x140   : > { %4838 = vmatprep.subr.bf16.mxu1 %v5146_v53  ;;  %v5163_v53 = vld [vmem:[%s5841_s19 + $0x3b0] sm:$0xff]  }
 0x142   : > { %4775 = vmatpush3.bf16.msra.mxu0 %v5145_v56  ;;  %v5164_v56 = vld [vmem:[%s5841_s19 + $0x368] sm:$0xff]  }
 0x143   : > { %4839 = vmatpush3.bf16.msra.mxu1 %v5147_v57  ;;  %4776 = vmatprep.subr.bf16.mxu0 %v5148_v58  ;;  %v1320_v57 = vld [vmem:[%s6635_s0 + $0x128] sm:$0xff] }
 0x144   : > { %3333 = vmatmul.mubr.bf16.gmra.mxu0 %v4221_v59  ;;  %4840 = vmatprep.subr.bf16.mxu1 %v5150_v60  ;;  %v1328_v58 = vld [vmem:[%s6635_s0 + $0x168] sm:$0xff]  ;;  %v4193_v60 = vcombine.low %v1303_v40, %v1311_v41  ;;  %v5187_v41 = vld [vmem:[%s5841_s19 + $0x380] sm:$0xff]  }
 0x145   : > { %3430 = vmatmul.mubr.bf16.gmra.mxu1 %v4223_v61  ;;  %3340 = vmatprep.mubr.bf16.mxu0 %v4238_v62  ;;  %v5166_v59 = vld [vmem:[%s5841_s19 + $0x3e8] sm:$0xff]   ;;  %v4195_v61 = vcombine.low %v1304_v43, %v1312_v44  ;;  %v4210_v62 = vcombine.high %v1319_v54, %v1327_v55 }
 0x146   : > { %3437 = vmatprep.mubr.bf16.mxu1 %v4240_v0  ;;  %4777 = vmatpush3.bf16.msra.mxu0 %v5149_v63  ;;  %v4212_v63 = vcombine.high %v1320_v57, %v1328_v58  ;;  %v5165_v0 = vld [vmem:[%s5841_s19 + $0x328] sm:$0xff]  }
 0x147   : > { %4841 = vmatpush3.bf16.msra.mxu1 %v5151_v1  ;;  %4778 = vmatprep.subr.bf16.mxu0 %v5152_v2  ;;  %v5167_v1 = vld [vmem:[%s5841_s19 + $0x3a8] sm:$0xff]   ;;  %v5168_v2 = vld [vmem:[%s5841_s19 + $0x360] sm:$0xff]  }
 0x148   : > { %4842 = vmatprep.subr.bf16.mxu1 %v5154_v5  ;;  %v1343_v5 = vld [vmem:[%s6635_s0 + $0x1e0] sm:$0xff]  ;;  %v1376_v40 = vld [vmem:[%s6635_s0 + $0x2e8] sm:$0xff] }
 0x149   : > { %v4225_v27 = vcombine.low %v1335_v4, %v1343_v5 }
 0x14a   : > { %4779 = vmatpush3.bf16.msra.mxu0 %v5153_v8  ;;  %v1344_v8 = vld [vmem:[%s6635_s0 + $0x1e8] sm:$0xff] }
 0x14b   : > { %4843 = vmatpush3.bf16.msra.mxu1 %v5155_v9  ;;  %4892 = vmatprep.subr.bf16.mxu0 %v5156_v10  ;;  %v5171_v9 = vld [vmem:[%s5841_s19 + $0x3a0] sm:$0xff]   ;;  %v5172_v10 = vld [vmem:[%s5841_s19 + $0x358] sm:$0xff]  }
 0x14c   : > { %3341 = vmatmul.mubr.bf16.gmra.mxu0 %v4237_v11  ;;  %4956 = vmatprep.subr.bf16.mxu1 %v5158_v12  ;;  %v4209_v11 = vcombine.low %v1319_v54, %v1327_v55  ;;  %v5174_v12 = vld [vmem:[%s5841_s19 + $0x3d8] sm:$0xff]   ;;  %v1399_v54 = vld [vmem:[%s6635_s0 + $0x3a0] sm:$0xff] }
 0x14d   : > { %3438 = vmatmul.mubr.bf16.gmra.mxu1 %v4239_v13  ;;  %3348 = vmatprep.mubr.bf16.mxu0 %v4254_v14  ;;  %v4211_v13 = vcombine.low %v1320_v57, %v1328_v58  ;;  %v4226_v14 = vcombine.high %v1335_v4, %v1343_v5  ;;  %v1407_v55 = vld [vmem:[%s6635_s0 + $0x3e0] sm:$0xff]  ;;  %v1408_v57 = vld [vmem:[%s6635_s0 + $0x3e8] sm:$0xff] }
 0x14e   : > { %3445 = vmatprep.mubr.bf16.mxu1 %v4256_v15  ;;  %v4228_v15 = vcombine.high %v1336_v6, %v1344_v8 }
 0x154   : > { %3349 = vmatmul.mubr.bf16.gmra.mxu0 %v4253_v20  ;;  %v1351_v20 = vld [vmem:[%s6635_s0 + $0x220] sm:$0xff] }
 0x155   : > { %3446 = vmatmul.mubr.bf16.gmra.mxu1 %v4255_v21  ;;  %3356 = vmatprep.mubr.bf16.mxu0 %v4270_v22  ;;  %v1359_v21 = vld [vmem:[%s6635_s0 + $0x260] sm:$0xff]  ;;  %v1352_v22 = vld [vmem:[%s6635_s0 + $0x228] sm:$0xff] }
 0x156   : > { %3453 = vmatprep.mubr.bf16.mxu1 %v4272_v23  ;;  %v5177_v23 = vld [vmem:[%s5841_s19 + $0x310] sm:$0xff]   ;;  %v4243_v43 = vcombine.low %v1352_v22, %v1360_v24 }
 0x15c   : > { %3357 = vmatmul.mubr.bf16.gmra.mxu0 %v4269_v28  ;;  %v5182_v28 = vld [vmem:[%s5841_s19 + $0x3c8] sm:$0xff]  }
 0x15d   : > { %3454 = vmatmul.mubr.bf16.gmra.mxu1 %v4271_v29  ;;  %3364 = vmatprep.mubr.bf16.mxu0 %v4286_v30  ;;  %v4227_v29 = vcombine.low %v1336_v6, %v1344_v8  ;;  %v4242_v30 = vcombine.high %v1351_v20, %v1359_v21  ;;  %v1305_v6 = vld [vmem:[%s6635_s0 + $0xb0] sm:$0xff]  ;;  %v1306_v8 = vld [vmem:[%s6635_s0 + $0xb8] sm:$0xff] }
 0x15e   : > { %3461 = vmatprep.mubr.bf16.mxu1 %v4288_v31  ;;  %v4244_v31 = vcombine.high %v1352_v22, %v1360_v24  ;;  %v1322_v22 = vld [vmem:[%s6635_s0 + $0x138] sm:$0xff] }
 0x164   : > { %3365 = vmatmul.mubr.bf16.gmra.mxu0 %v4285_v36  ;;  %v1367_v36 = vld [vmem:[%s6635_s0 + $0x2a0] sm:$0xff] }
 0x165   : > { %3462 = vmatmul.mubr.bf16.gmra.mxu1 %v4287_v37  ;;  %3502 = vmatprep.mubr.bf16.mxu0 %v4178_v38  ;;  %v1375_v37 = vld [vmem:[%s6635_s0 + $0x2e0] sm:$0xff] }
 0x166   : > { %3599 = vmatprep.mubr.bf16.mxu1 %v4180_v39  ;;  %v5185_v38 = vld [vmem:[%s5841_s19 + $0x300] sm:$0xff]   ;;  %v1368_v39 = vld [vmem:[%s6635_s0 + $0x2a8] sm:$0xff]  ;;  %v4258_v44 = vcombine.high %v1367_v36, %v1375_v37 }
 0x16c   : > { %3503 = vmatmul.mubr.bf16.vlgmr.msra.gmra.mxu0 %v4177_v42  ;;  %v4241_v42 = vcombine.low %v1351_v20, %v1359_v21 }
 0x16d   : > { %3600 = vmatmul.mubr.bf16.vlgmr.msra.gmra.mxu1 %v4179_v45  ;;  %4893 = vmatpush3.bf16.msra.mxu0 %v5157_v46  ;;  %v4260_v45 = vcombine.high %v1368_v39, %v1376_v40  ;;  %v1383_v46 = vld [vmem:[%s6635_s0 + $0x320] sm:$0xff] }
 0x16e   : > { %4957 = vmatpush3.bf16.msra.mxu1 %v5159_v47  ;;  %3510 = vmatprep.mubr.bf16.mxu0 %v4194_v48  ;;  %v1391_v47 = vld [vmem:[%s6635_s0 + $0x360] sm:$0xff]  ;;  %v1384_v48 = vld [vmem:[%s6635_s0 + $0x328] sm:$0xff] }
 0x16f   : > { %3607 = vmatprep.mubr.bf16.mxu1 %v4196_v49  ;;  %4894 = vmatprep.subr.bf16.mxu0 %v5160_v50  ;;  %v1392_v49 = vld [vmem:[%s6635_s0 + $0x368] sm:$0xff]  ;;  %v4257_v50 = vcombine.low %v1367_v36, %v1375_v37  ;;  %v4273_v58 = vcombine.low %v1383_v46, %v1391_v47 }
 0x170   : > { %4958 = vmatprep.subr.bf16.mxu1 %v5162_v51  ;;  %v4259_v51 = vcombine.low %v1368_v39, %v1376_v40 }
 0x171   : > { %4895 = vmatpush3.bf16.msra.mxu0 %v5161_v52  ;;  %v4274_v52 = vcombine.high %v1383_v46, %v1391_v47  ;;  %v1338_v46 = vld [vmem:[%s6635_s0 + $0x1b8] sm:$0xff] }
 0x172   : > { %4959 = vmatpush3.bf16.msra.mxu1 %v5163_v53  ;;  %4896 = vmatprep.subr.bf16.mxu0 %v5164_v56  ;;  %v4276_v53 = vcombine.high %v1384_v48, %v1392_v49  ;;  %v1400_v56 = vld [vmem:[%s6635_s0 + $0x3a8] sm:$0xff]  ;;  %v1346_v47 = vld [vmem:[%s6635_s0 + $0x1f8] sm:$0xff] }
 0x173   : > { %4960 = vmatprep.subr.bf16.mxu1 %v5166_v59  ;;  %v4275_v59 = vcombine.low %v1384_v48, %v1392_v49 }
 0x174   : > { %3511 = vmatmul.mubr.bf16.gmra.mxu0 %v4193_v60  ;;  %v4290_v60 = vcombine.high %v1399_v54, %v1407_v55 }
 0x175   : > { %3608 = vmatmul.mubr.bf16.gmra.mxu1 %v4195_v61  ;;  %3518 = vmatprep.mubr.bf16.mxu0 %v4210_v62  ;;  %v4292_v61 = vcombine.high %v1400_v56, %v1408_v57  ;;  %v1289_v62 = vld [vmem:[%s6635_s0 + $0x30] sm:$0xff] }
 0x176   : > { %3615 = vmatprep.mubr.bf16.mxu1 %v4212_v63  ;;  %4897 = vmatpush3.bf16.msra.mxu0 %v5165_v0  ;;  %v1297_v63 = vld [vmem:[%s6635_s0 + $0x70] sm:$0xff]  ;;  %v1290_v0 = vld [vmem:[%s6635_s0 + $0x38] sm:$0xff] }
 0x177   : > { %4961 = vmatpush3.bf16.msra.mxu1 %v5167_v1  ;;  %4898 = vmatprep.subr.bf16.mxu0 %v5168_v2  ;;  %v1298_v1 = vld [vmem:[%s6635_s0 + $0x78] sm:$0xff]  ;;  %v4289_v2 = vcombine.low %v1399_v54, %v1407_v55  ;;  %v4182_v4 = vcombine.high %v1289_v62, %v1297_v63 }
 0x178   : > { %4962 = vmatprep.subr.bf16.mxu1 %v5170_v3  ;;  %v4291_v3 = vcombine.low %v1400_v56, %v1408_v57  ;;  %v4184_v5 = vcombine.high %v1290_v0, %v1298_v1  ;;  %v4232_v56 = vcombine.high %v1338_v46, %v1346_v47 }
 0x17a   : > { %4899 = vmatpush3.bf16.msra.mxu0 %v5169_v7  ;;  %v1313_v7 = vld [vmem:[%s6635_s0 + $0xf0] sm:$0xff] }
 0x17b   : > { %4963 = vmatpush3.bf16.msra.mxu1 %v5171_v9  ;;  %4900 = vmatprep.subr.bf16.mxu0 %v5172_v10  ;;  %v1314_v9 = vld [vmem:[%s6635_s0 + $0xf8] sm:$0xff]  ;;  %v4181_v10 = vcombine.low %v1289_v62, %v1297_v63 }
 0x17c   : > { %3519 = vmatmul.mubr.bf16.gmra.mxu0 %v4209_v11  ;;  %4964 = vmatprep.subr.bf16.mxu1 %v5174_v12  ;;  %v4183_v11 = vcombine.low %v1290_v0, %v1298_v1  ;;  %v4198_v12 = vcombine.high %v1305_v6, %v1313_v7  ;;  %v1353_v1 = vld [vmem:[%s6635_s0 + $0x230] sm:$0xff] }
 0x17d   : > { %3616 = vmatmul.mubr.bf16.gmra.mxu1 %v4211_v13  ;;  %3526 = vmatprep.mubr.bf16.mxu0 %v4226_v14  ;;  %v4200_v13 = vcombine.high %v1306_v8, %v1314_v9 }
 0x17e   : > { %3623 = vmatprep.mubr.bf16.mxu1 %v4228_v15  ;;  %4901 = vmatpush3.bf16.msra.mxu0 %v5173_v16  ;;  %v6280_v16 = vld [vmem:[%s1280_s10] ss:$0 sm:$0xff] }
 0x17f   : > { %4965 = vmatpush3.bf16.msra.mxu1 %v5175_v17  ;;  %4902 = vmatprep.subr.bf16.mxu0 %v5176_v18  ;;  %v1321_v18 = vld [vmem:[%s6635_s0 + $0x130] sm:$0xff] }
 0x180   : > { %4966 = vmatprep.subr.bf16.mxu1 %v5178_v19  ;;  %v1329_v19 = vld [vmem:[%s6635_s0 + $0x170] sm:$0xff] }
 0x182   : > { %4903 = vmatpush3.bf16.msra.mxu0 %v5177_v23  ;;  %v1330_v23 = vld [vmem:[%s6635_s0 + $0x178] sm:$0xff] }
 0x183   : > { %4967 = vmatpush3.bf16.msra.mxu1 %v5179_v25  ;;  %4904 = vmatprep.subr.bf16.mxu0 %v5180_v26  ;;  %v4197_v26 = vcombine.low %v1305_v6, %v1313_v7  ;;  %v1354_v6 = vld [vmem:[%s6635_s0 + $0x238] sm:$0xff] }
 0x184   : > { %3527 = vmatmul.mubr.bf16.gmra.mxu0 %v4225_v27  ;;  %4968 = vmatprep.subr.bf16.mxu1 %v5182_v28  ;;  %v1362_v7 = vld [vmem:[%s6635_s0 + $0x278] sm:$0xff] }
 0x185   : > { %3624 = vmatmul.mubr.bf16.gmra.mxu1 %v4227_v29  ;;  %3534 = vmatprep.mubr.bf16.mxu0 %v4242_v30  ;;  %v4199_v29 = vcombine.low %v1306_v8, %v1314_v9  ;;  %v4214_v30 = vcombine.high %v1321_v18, %v1329_v19 }
 0x186   : > { %3631 = vmatprep.mubr.bf16.mxu1 %v4244_v31  ;;  %4905 = vmatpush3.bf16.msra.mxu0 %v5181_v32  ;;  %v4216_v32 = vcombine.high %v1322_v22, %v1330_v23 }
 0x187   : > { %4969 = vmatpush3.bf16.msra.mxu1 %v5183_v33  ;;  %4906 = vmatprep.subr.bf16.mxu0 %v5184_v34 }
 0x188   : > { %4970 = vmatprep.subr.bf16.mxu1 %v5186_v35 }
 0x18a   : > { %4907 = vmatpush3.bf16.msra.mxu0 %v5185_v38 }
 0x18b   : > { %4971 = vmatpush3.bf16.msra.mxu1 %v5187_v41  ;;  %v1337_v41 = vld [vmem:[%s6635_s0 + $0x1b0] sm:$0xff] }
 0x18c   : > { %3535 = vmatmul.mubr.bf16.gmra.mxu0 %v4241_v42  ;;  %v1345_v42 = vld [vmem:[%s6635_s0 + $0x1f0] sm:$0xff] }
 0x18d   : > { %3632 = vmatmul.mubr.bf16.gmra.mxu1 %v4243_v43  ;;  %3542 = vmatprep.mubr.bf16.mxu0 %v4258_v44  ;;  %v4230_v54 = vcombine.high %v1337_v41, %v1345_v42 }
 0x18e   : > { %3639 = vmatprep.mubr.bf16.mxu1 %v4260_v45 }
 0x194   : > { %3543 = vmatmul.mubr.bf16.gmra.mxu0 %v4257_v50  ;;  %v4213_v50 = vcombine.low %v1321_v18, %v1329_v19 }
 0x195   : > { %3640 = vmatmul.mubr.bf16.gmra.mxu1 %v4259_v51  ;;  %3550 = vmatprep.mubr.bf16.mxu0 %v4274_v52 }
 0x196   : > { %3647 = vmatprep.mubr.bf16.mxu1 %v4276_v53  ;;  %v4215_v53 = vcombine.low %v1322_v22, %v1330_v23 }
 0x19c   : > { %3551 = vmatmul.mubr.bf16.gmra.mxu0 %v4273_v58 }
 0x19d   : > { %3648 = vmatmul.mubr.bf16.gmra.mxu1 %v4275_v59  ;;  %3558 = vmatprep.mubr.bf16.mxu0 %v4290_v60 }
 0x19e   : > { %3655 = vmatprep.mubr.bf16.mxu1 %v4292_v61 }
 0x1a4   : > { %3559 = vmatmul.mubr.bf16.gmra.mxu0 %v4289_v2  ;;  %v1361_v2 = vld [vmem:[%s6635_s0 + $0x270] sm:$0xff] }
 0x1a5   : > { %3656 = vmatmul.mubr.bf16.gmra.mxu1 %v4291_v3  ;;  %3696 = vmatprep.mubr.bf16.mxu0 %v4182_v4 }
 0x1a6   : > { %3793 = vmatprep.mubr.bf16.mxu1 %v4184_v5 }
 0x1ac   : > { %v4524_v14 = vpop.f32.mrf.mxu0  ;;  %3697 = vmatmul.mubr.bf16.vlgmr.msra.gmra.mxu0 %v4181_v10  ;;  %v4229_v10 = vcombine.low %v1337_v41, %v1345_v42 }
 0x1ad   : > { %v4588_v15 = vpop.f32.mrf.mxu1  ;;  %3794 = vmatmul.mubr.bf16.vlgmr.msra.gmra.mxu1 %v4183_v11  ;;  %3704 = vmatprep.mubr.bf16.mxu0 %v4198_v12 }
 0x1ae   : > { %v4525_v17 = vpop.f32.mrf.mxu0  ;;  %3801 = vmatprep.mubr.bf16.mxu1 %v4200_v13  ;;  %v4231_v13 = vcombine.low %v1338_v46, %v1346_v47 }
 0x1af   : > { %v4526_v20 = vadd.f32 %v4525_v17, %v4524_v14  ;;  %v4589_v21 = vpop.f32.mrf.mxu1  ;;  %v4246_v14 = vcombine.high %v1353_v1, %v1361_v2  ;;  %v4248_v17 = vcombine.high %v1354_v6, %v1362_v7 }
 0x1b0   : > { %v4590_v24 = vadd.f32 %v4589_v21, %v4588_v15  ;;  %v4527_v25 = vpop.f32.mrf.mxu0 }
 0x1b1   : > { %v3117_v27 = vadd.f32 %v4526_v20, %v6280_v16  ;;  %v4591_v28 = vpop.f32.mrf.mxu1 }
 0x1b2   : > { %v4528_v31 = vpop.f32.mrf.mxu0 }
 0x1b3   : > { %v6295_v33 = vadd.f32 %v4590_v24, %v3117_v27  ;;  %v4529_v34 = vadd.f32 %v4528_v31, %v4527_v25  ;;  %v4592_v35 = vpop.f32.mrf.mxu1  ;;  %v1377_v27 = vld [vmem:[%s6635_s0 + $0x2f0] sm:$0xff]  ;;  %v1370_v31 = vld [vmem:[%s6635_s0 + $0x2b8] sm:$0xff] }
 0x1b4   : > { %v4593_v36 = vadd.f32 %v4592_v35, %v4591_v28  ;;  %v4530_v37 = vpop.f32.mrf.mxu0  ;;  %3705 = vmatmul.mubr.bf16.gmra.mxu0 %v4197_v26  ;;  %v1369_v26 = vld [vmem:[%s6635_s0 + $0x2b0] sm:$0xff] }
 0x1b5   : > { %v3120_v38 = vadd.f32 %v4529_v34, %v6280_v16  ;;  %v4594_v39 = vpop.f32.mrf.mxu1  ;;  %3802 = vmatmul.mubr.bf16.gmra.mxu1 %v4199_v29  ;;  %3712 = vmatprep.mubr.bf16.mxu0 %v4214_v30 }
 0x1b6   : > { %v4531_v40 = vpop.f32.mrf.mxu0  ;;  %3809 = vmatprep.mubr.bf16.mxu1 %v4216_v32  ;;  %v1378_v32 = vld [vmem:[%s6635_s0 + $0x2f8] sm:$0xff] }
 0x1b7   : > { %v6304_v43 = vadd.f32 %v4593_v36, %v3120_v38  ;;  %v4532_v44 = vadd.f32 %v4531_v40, %v4530_v37  ;;  %v4595_v45 = vpop.f32.mrf.mxu1  ;;  %v4245_v36 = vcombine.low %v1353_v1, %v1361_v2  ;;  %v4262_v40 = vcombine.high %v1369_v26, %v1377_v27 }
 0x1b8   : > { %v4596_v48 = vadd.f32 %v4595_v45, %v4594_v39  ;;  %v4533_v49 = vpop.f32.mrf.mxu0  ;;  %v4247_v39 = vcombine.low %v1354_v6, %v1362_v7  ;;  %v4264_v42 = vcombine.high %v1370_v31, %v1378_v32  ;;  %v4263_v1 = vcombine.low %v1370_v31, %v1378_v32 }
 0x1b9   : > { %v3125_v51 = vadd.f32 %v4532_v44, %v6280_v16  ;;  %v4597_v52 = vpop.f32.mrf.mxu1 }
 0x1ba   : > { %v4534_v55 = vpop.f32.mrf.mxu0 }
 0x1bb   : > { %v6313_v57 = vadd.f32 %v4596_v48, %v3125_v51  ;;  %v4535_v58 = vadd.f32 %v4534_v55, %v4533_v49  ;;  %v4598_v59 = vpop.f32.mrf.mxu1 }
 0x1bc   : > { %v4599_v60 = vadd.f32 %v4598_v59, %v4597_v52  ;;  %v4536_v61 = vpop.f32.mrf.mxu0  ;;  %3713 = vmatmul.mubr.bf16.gmra.mxu0 %v4213_v50  ;;  %v1385_v52 = vld [vmem:[%s6635_s0 + $0x330] sm:$0xff]  ;;  %v1394_v59 = vld [vmem:[%s6635_s0 + $0x378] sm:$0xff] }
 0x1bd   : > { %v3128_v62 = vadd.f32 %v4535_v58, %v6280_v16  ;;  %v4600_v63 = vpop.f32.mrf.mxu1  ;;  %3810 = vmatmul.mubr.bf16.gmra.mxu1 %v4215_v53  ;;  %3720 = vmatprep.mubr.bf16.mxu0 %v4230_v54  ;;  %v1393_v53 = vld [vmem:[%s6635_s0 + $0x370] sm:$0xff]  ;;  %v1386_v58 = vld [vmem:[%s6635_s0 + $0x338] sm:$0xff] }
 0x1be   : > { %v4537_v0 = vpop.f32.mrf.mxu0  ;;  %3817 = vmatprep.mubr.bf16.mxu1 %v4232_v56  ;;  %v4278_v2 = vcombine.high %v1385_v52, %v1393_v53 }
 0x1bf   : > { %v6322_v3 = vadd.f32 %v4599_v60, %v3128_v62  ;;  %v4538_v4 = vadd.f32 %v4537_v0, %v4536_v61  ;;  %v4601_v5 = vpop.f32.mrf.mxu1  ;;  %v4261_v62 = vcombine.low %v1369_v26, %v1377_v27 }
 0x1c0   : > { %v4602_v8 = vadd.f32 %v4601_v5, %v4600_v63  ;;  %v4539_v9 = vpop.f32.mrf.mxu0  ;;  %v4280_v5 = vcombine.high %v1386_v58, %v1394_v59 }
 0x1c1   : > { %v3133_v11 = vadd.f32 %v4538_v4, %v6280_v16  ;;  %v4603_v12 = vpop.f32.mrf.mxu1 }
 0x1c2   : > { %v4540_v15 = vpop.f32.mrf.mxu0 }
 0x1c3   : > { %v6331_v18 = vadd.f32 %v4602_v8, %v3133_v11  ;;  %v4541_v19 = vadd.f32 %v4540_v15, %v4539_v9  ;;  %v4604_v20 = vpop.f32.mrf.mxu1  ;;  %v1409_v15 = vld [vmem:[%s6635_s0 + $0x3f0] sm:$0xff] }
 0x1c4   : > { %v4605_v21 = vadd.f32 %v4604_v20, %v4603_v12  ;;  %v4542_v22 = vpop.f32.mrf.mxu0  ;;  %3721 = vmatmul.mubr.bf16.gmra.mxu0 %v4229_v10 }
 0x1c5   : > { %v3136_v23 = vadd.f32 %v4541_v19, %v6280_v16  ;;  %v4606_v24 = vpop.f32.mrf.mxu1  ;;  %3818 = vmatmul.mubr.bf16.gmra.mxu1 %v4231_v13  ;;  %3728 = vmatprep.mubr.bf16.mxu0 %v4246_v14  ;;  %v1401_v14 = vld [vmem:[%s6635_s0 + $0x3b0] sm:$0xff] }
 0x1c6   : > { %v4543_v25 = vpop.f32.mrf.mxu0  ;;  %3825 = vmatprep.mubr.bf16.mxu1 %v4248_v17 }
 0x1c7   : > { %v6340_v28 = vadd.f32 %v4605_v21, %v3136_v23  ;;  %v4544_v29 = vadd.f32 %v4543_v25, %v4542_v22  ;;  %v4607_v30 = vpop.f32.mrf.mxu1  ;;  %v1402_v21 = vld [vmem:[%s6635_s0 + $0x3b8] sm:$0xff]  ;;  %v4277_v25 = vcombine.low %v1385_v52, %v1393_v53 }
 0x1c8   : > { %v4608_v34 = vadd.f32 %v4607_v30, %v4606_v24  ;;  %v4545_v35 = vpop.f32.mrf.mxu0  ;;  %v1410_v22 = vld [vmem:[%s6635_s0 + $0x3f8] sm:$0xff]  ;;  %v4294_v30 = vcombine.high %v1401_v14, %v1409_v15 }
 0x1c9   : > { %v3141_v37 = vadd.f32 %v4544_v29, %v6280_v16  ;;  %v4609_v38 = vpop.f32.mrf.mxu1  ;;  %v4279_v29 = vcombine.low %v1386_v58, %v1394_v59  ;;  %v4296_v32 = vcombine.high %v1402_v21, %v1410_v22  ;;  %v4295_v52 = vcombine.low %v1402_v21, %v1410_v22 }
 0x1ca   : > { %v4546_v41 = vpop.f32.mrf.mxu0 }
 0x1cb   : > { %v6349_v44 = vadd.f32 %v4608_v34, %v3141_v37  ;;  %v4547_v45 = vadd.f32 %v4546_v41, %v4545_v35  ;;  %v4610_v46 = vpop.f32.mrf.mxu1 }
 0x1cc   : > { %v4611_v47 = vadd.f32 %v4610_v46, %v4609_v38  ;;  %v4548_v48 = vpop.f32.mrf.mxu0  ;;  %3729 = vmatmul.mubr.bf16.gmra.mxu0 %v4245_v36 }
 0x1cd   : > { %v3144_v49 = vadd.f32 %v4547_v45, %v6280_v16  ;;  %v4612_v50 = vpop.f32.mrf.mxu1  ;;  %3826 = vmatmul.mubr.bf16.gmra.mxu1 %v4247_v39  ;;  %3736 = vmatprep.mubr.bf16.mxu0 %v4262_v40 }
 0x1ce   : > { %v4549_v51 = vpop.f32.mrf.mxu0  ;;  %3833 = vmatprep.mubr.bf16.mxu1 %v4264_v42 }
 0x1cf   : > { %v6358_v54 = vadd.f32 %v4611_v47, %v3144_v49  ;;  %v4550_v55 = vadd.f32 %v4549_v51, %v4548_v48  ;;  %v4613_v56 = vpop.f32.mrf.mxu1  ;;  %v4293_v49 = vcombine.low %v1401_v14, %v1409_v15 }
 0x1d0   : > { %v4614_v60 = vadd.f32 %v4613_v56, %v4612_v50  ;;  %v4551_v61 = vpop.f32.mrf.mxu0 }
 0x1d1   : > { %v3149_v63 = vadd.f32 %v4550_v55, %v6280_v16  ;;  %v4615_v0 = vpop.f32.mrf.mxu1 }
 0x1d2   : > { %v4552_v4 = vpop.f32.mrf.mxu0 }
 0x1d3   : > { %v6367_v6 = vadd.f32 %v4614_v60, %v3149_v63  ;;  %v4553_v7 = vadd.f32 %v4552_v4, %v4551_v61  ;;  %v4616_v8 = vpop.f32.mrf.mxu1 }
 0x1d4   : > { %v4617_v9 = vadd.f32 %v4616_v8, %v4615_v0  ;;  %v4554_v10 = vpop.f32.mrf.mxu0  ;;  %3737 = vmatmul.mubr.bf16.gmra.mxu0 %v4261_v62 }
 0x1d5   : > { %v3152_v11 = vadd.f32 %v4553_v7, %v6280_v16  ;;  %v4618_v12 = vpop.f32.mrf.mxu1  ;;  %3834 = vmatmul.mubr.bf16.gmra.mxu1 %v4263_v1  ;;  %3744 = vmatprep.mubr.bf16.mxu0 %v4278_v2 }
 0x1d6   : > { %v4555_v13 = vpop.f32.mrf.mxu0  ;;  %3841 = vmatprep.mubr.bf16.mxu1 %v4280_v5 }
 0x1d7   : > { %v6376_v17 = vadd.f32 %v4617_v9, %v3152_v11  ;;  %v4556_v19 = vadd.f32 %v4555_v13, %v4554_v10  ;;  %v4619_v20 = vpop.f32.mrf.mxu1 }
 0x1d8   : > { %v4620_v23 = vadd.f32 %v4619_v20, %v4618_v12  ;;  %v4557_v24 = vpop.f32.mrf.mxu0 }
 0x1d9   : > { %v3157_v26 = vadd.f32 %v4556_v19, %v6280_v16  ;;  %v4621_v27 = vpop.f32.mrf.mxu1 }
 0x1da   : > { %v4558_v31 = vpop.f32.mrf.mxu0 }
 0x1db   : > { %v6385_v34 = vadd.f32 %v4620_v23, %v3157_v26  ;;  %v4559_v35 = vadd.f32 %v4558_v31, %v4557_v24  ;;  %v4622_v36 = vpop.f32.mrf.mxu1 }
 0x1dc   : > { %v4623_v37 = vadd.f32 %v4622_v36, %v4621_v27  ;;  %v4560_v38 = vpop.f32.mrf.mxu0  ;;  %3745 = vmatmul.mubr.bf16.gmra.mxu0 %v4277_v25 }
 0x1dd   : > { %v3160_v39 = vadd.f32 %v4559_v35, %v6280_v16  ;;  %v4624_v40 = vpop.f32.mrf.mxu1  ;;  %3842 = vmatmul.mubr.bf16.gmra.mxu1 %v4279_v29  ;;  %3752 = vmatprep.mubr.bf16.mxu0 %v4294_v30 }
 0x1de   : > { %v4561_v41 = vpop.f32.mrf.mxu0  ;;  %3849 = vmatprep.mubr.bf16.mxu1 %v4296_v32 }
 0x1df   : > { %v6388_v42 = vadd.f32 %v4623_v37, %v3160_v39  ;;  %v4562_v45 = vadd.f32 %v4561_v41, %v4560_v38  ;;  %v4625_v46 = vpop.f32.mrf.mxu1 }
 0x1e0   : > { %v4626_v47 = vadd.f32 %v4625_v46, %v4624_v40  ;;  %v4563_v48 = vpop.f32.mrf.mxu0 }
 0x1e1   : > { %v3165_v50 = vadd.f32 %v4562_v45, %v6280_v16  ;;  %v4627_v51 = vpop.f32.mrf.mxu1 }
 0x1e2   : > { %v4564_v53 = vpop.f32.mrf.mxu0 }
 0x1e3   : > { %v6391_v55 = vadd.f32 %v4626_v47, %v3165_v50  ;;  %v4565_v56 = vadd.f32 %v4564_v53, %v4563_v48  ;;  %v4628_v58 = vpop.f32.mrf.mxu1 }
 0x1e4   : > { %v4629_v59 = vadd.f32 %v4628_v58, %v4627_v51  ;;  %v4566_v60 = vpop.f32.mrf.mxu0  ;;  %3753 = vmatmul.mubr.bf16.gmra.mxu0 %v4293_v49 }
 0x1e5   : > { %v3168_v61 = vadd.f32 %v4565_v56, %v6280_v16  ;;  %v4630_v62 = vpop.f32.mrf.mxu1  ;;  %3850 = vmatmul.mubr.bf16.gmra.mxu1 %v4295_v52 }
 0x1e6   : > { %v4567_v63 = vpop.f32.mrf.mxu0 }
 0x1e7   : > { %v6394_v0 = vadd.f32 %v4629_v59, %v3168_v61  ;;  %v4568_v1 = vadd.f32 %v4567_v63, %v4566_v60  ;;  %v4631_v2 = vpop.f32.mrf.mxu1 }
 0x1e8   : > { %v4632_v4 = vadd.f32 %v4631_v2, %v4630_v62  ;;  %v4569_v5 = vpop.f32.mrf.mxu0 }
 0x1e9   : > { %v3173_v7 = vadd.f32 %v4568_v1, %v6280_v16  ;;  %v4633_v8 = vpop.f32.mrf.mxu1 }
 0x1ea   : > { %v4570_v9 = vpop.f32.mrf.mxu0 }
 0x1eb   : > { %v6397_v10 = vadd.f32 %v4632_v4, %v3173_v7  ;;  %v4571_v11 = vadd.f32 %v4570_v9, %v4569_v5  ;;  %v4634_v12 = vpop.f32.mrf.mxu1 }
 0x1ec   : > { %v4635_v13 = vadd.f32 %v4634_v12, %v4633_v8  ;;  %v4652_v14 = vpop.f32.mrf.mxu0 }
 0x1ed   : > { %v3176_v15 = vadd.f32 %v4571_v11, %v6280_v16  ;;  %v4716_v19 = vpop.f32.mrf.mxu1 }
 0x1ee   : > { %v4653_v20 = vpop.f32.mrf.mxu0 }
 0x1ef   : > { %v6400_v21 = vadd.f32 %v4635_v13, %v3176_v15  ;;  %v4654_v22 = vadd.f32 %v4653_v20, %v4652_v14  ;;  %v4717_v23 = vpop.f32.mrf.mxu1 }
 0x1f0   : > { %v4718_v24 = vadd.f32 %v4717_v23, %v4716_v19  ;;  %v4655_v25 = vpop.f32.mrf.mxu0 }
 0x1f1   : > { %v3311_v26 = vadd.f32 %v4654_v22, %v6295_v33  ;;  %v4719_v27 = vpop.f32.mrf.mxu1 }
 0x1f2   : > { %v4656_v29 = vpop.f32.mrf.mxu0 }
 0x1f3   : > { %v6403_v30 = vadd.f32 %v4718_v24, %v3311_v26  ;;  %v4657_v31 = vadd.f32 %v4656_v29, %v4655_v25  ;;  %v4720_v32 = vpop.f32.mrf.mxu1 }
 0x1f4   : > { %v4721_v35 = vadd.f32 %v4720_v32, %v4719_v27  ;;  %v4658_v36 = vpop.f32.mrf.mxu0 }
 0x1f5   : > { %v3314_v16 = vadd.f32 %v4657_v31, %v6304_v43  ;;  %v4722_v37 = vpop.f32.mrf.mxu1 }
 0x1f6   : > { %v4659_v38 = vpop.f32.mrf.mxu0 }
 0x1f7   : > { %v6406_v39 = vadd.f32 %v4721_v35, %v3314_v16  ;;  %v4660_v40 = vadd.f32 %v4659_v38, %v4658_v36  ;;  %v4723_v41 = vpop.f32.mrf.mxu1 }
 0x1f8   : > { %v4724_v45 = vadd.f32 %v4723_v41, %v4722_v37  ;;  %v4661_v46 = vpop.f32.mrf.mxu0 }
 0x1f9   : > { %v3319_v33 = vadd.f32 %v4660_v40, %v6313_v57  ;;  %v4725_v47 = vpop.f32.mrf.mxu1 }
 0x1fa   : > { %v4662_v48 = vpop.f32.mrf.mxu0 }
 0x1fb   : > { %v6409_v49 = vadd.f32 %v4724_v45, %v3319_v33  ;;  %v4663_v50 = vadd.f32 %v4662_v48, %v4661_v46  ;;  %v4726_v51 = vpop.f32.mrf.mxu1 }
 0x1fc   : > { %v4727_v52 = vadd.f32 %v4726_v51, %v4725_v47  ;;  %v4664_v53 = vpop.f32.mrf.mxu0 }
 0x1fd   : > { %v3322_v43 = vadd.f32 %v4663_v50, %v6322_v3  ;;  %v4728_v56 = vpop.f32.mrf.mxu1 }
 0x1fe   : > { %v4665_v58 = vpop.f32.mrf.mxu0 }
 0x1ff   : > { %v6412_v59 = vadd.f32 %v4727_v52, %v3322_v43  ;;  %v4666_v60 = vadd.f32 %v4665_v58, %v4664_v53  ;;  %v4729_v61 = vpop.f32.mrf.mxu1 }
 0x200   : > { %v4730_v62 = vadd.f32 %v4729_v61, %v4728_v56  ;;  %v4667_v63 = vpop.f32.mrf.mxu0 }
 0x201   : > { %v3327_v57 = vadd.f32 %v4666_v60, %v6331_v18  ;;  %v4731_v1 = vpop.f32.mrf.mxu1 }
 0x202   : > { %v4668_v2 = vpop.f32.mrf.mxu0 }
 0x203   : > { %v6415_v4 = vadd.f32 %v4730_v62, %v3327_v57  ;;  %v4669_v5 = vadd.f32 %v4668_v2, %v4667_v63  ;;  %v4732_v7 = vpop.f32.mrf.mxu1 }
 0x204   : > { %v4733_v8 = vadd.f32 %v4732_v7, %v4731_v1  ;;  %v4670_v9 = vpop.f32.mrf.mxu0 }
 0x205   : > { %v3330_v3 = vadd.f32 %v4669_v5, %v6340_v28  ;;  %v4734_v11 = vpop.f32.mrf.mxu1 }
 0x206   : > { %v4671_v12 = vpop.f32.mrf.mxu0 }
 0x207   : > { %v6418_v13 = vadd.f32 %v4733_v8, %v3330_v3  ;;  %v4672_v14 = vadd.f32 %v4671_v12, %v4670_v9  ;;  %v4735_v15 = vpop.f32.mrf.mxu1 }
 0x208   : > { %v4736_v19 = vadd.f32 %v4735_v15, %v4734_v11  ;;  %v4673_v20 = vpop.f32.mrf.mxu0 }
 0x209   : > { %v3335_v18 = vadd.f32 %v4672_v14, %v6349_v44  ;;  %v4737_v22 = vpop.f32.mrf.mxu1 }
 0x20a   : > { %v4674_v23 = vpop.f32.mrf.mxu0 }
 0x20b   : > { %v6421_v24 = vadd.f32 %v4736_v19, %v3335_v18  ;;  %v4675_v25 = vadd.f32 %v4674_v23, %v4673_v20  ;;  %v4738_v26 = vpop.f32.mrf.mxu1 }
 0x20c   : > { %v4739_v27 = vadd.f32 %v4738_v26, %v4737_v22  ;;  %v4676_v29 = vpop.f32.mrf.mxu0 }
 0x20d   : > { %v3338_v28 = vadd.f32 %v4675_v25, %v6358_v54  ;;  %v4740_v31 = vpop.f32.mrf.mxu1 }
 0x20e   : > { %v4677_v32 = vpop.f32.mrf.mxu0 }
 0x20f   : > { %v6424_v35 = vadd.f32 %v4739_v27, %v3338_v28  ;;  %v4678_v36 = vadd.f32 %v4677_v32, %v4676_v29  ;;  %v4741_v16 = vpop.f32.mrf.mxu1 }
 0x210   : > { %v4742_v37 = vadd.f32 %v4741_v16, %v4740_v31  ;;  %v4679_v38 = vpop.f32.mrf.mxu0 }
 0x211   : > { %v3343_v44 = vadd.f32 %v4678_v36, %v6367_v6  ;;  %v4743_v40 = vpop.f32.mrf.mxu1 }
 0x212   : > { %v4680_v41 = vpop.f32.mrf.mxu0 }
 0x213   : > { %v6427_v45 = vadd.f32 %v4742_v37, %v3343_v44  ;;  %v4681_v46 = vadd.f32 %v4680_v41, %v4679_v38  ;;  %v4744_v33 = vpop.f32.mrf.mxu1 }
 0x214   : > { %v4745_v47 = vadd.f32 %v4744_v33, %v4743_v40  ;;  %v4682_v48 = vpop.f32.mrf.mxu0 }
 0x215   : > { %v3346_v54 = vadd.f32 %v4681_v46, %v6376_v17  ;;  %v4746_v50 = vpop.f32.mrf.mxu1 }
 0x216   : > { %v4683_v51 = vpop.f32.mrf.mxu0 }
 0x217   : > { %v6430_v52 = vadd.f32 %v4745_v47, %v3346_v54  ;;  %v4684_v53 = vadd.f32 %v4683_v51, %v4682_v48  ;;  %v4747_v43 = vpop.f32.mrf.mxu1 }
 0x218   : > { %v4748_v56 = vadd.f32 %v4747_v43, %v4746_v50  ;;  %v4685_v58 = vpop.f32.mrf.mxu0 }
 0x219   : > { %v3351_v6 = vadd.f32 %v4684_v53, %v6385_v34  ;;  %v4749_v60 = vpop.f32.mrf.mxu1 }
 0x21a   : > { %v4686_v61 = vpop.f32.mrf.mxu0 }
 0x21b   : > { %v6433_v62 = vadd.f32 %v4748_v56, %v3351_v6  ;;  %v4687_v63 = vadd.f32 %v4686_v61, %v4685_v58  ;;  %v4750_v57 = vpop.f32.mrf.mxu1 }
 0x21c   : > { %v4751_v1 = vadd.f32 %v4750_v57, %v4749_v60  ;;  %v4688_v2 = vpop.f32.mrf.mxu0 }
 0x21d   : > { %v3354_v17 = vadd.f32 %v4687_v63, %v6388_v42  ;;  %v4752_v5 = vpop.f32.mrf.mxu1 }
 0x21e   : > { %v4689_v7 = vpop.f32.mrf.mxu0 }
 0x21f   : > { %v6436_v8 = vadd.f32 %v4751_v1, %v3354_v17  ;;  %v4690_v9 = vadd.f32 %v4689_v7, %v4688_v2  ;;  %v4753_v3 = vpop.f32.mrf.mxu1 }
 0x220   : > { %v4754_v11 = vadd.f32 %v4753_v3, %v4752_v5  ;;  %v4691_v12 = vpop.f32.mrf.mxu0 }
 0x221   : > { %v3359_v34 = vadd.f32 %v4690_v9, %v6391_v55  ;;  %v4755_v14 = vpop.f32.mrf.mxu1 }
 0x222   : > { %v4692_v15 = vpop.f32.mrf.mxu0 }
 0x223   : > { %v6439_v19 = vadd.f32 %v4754_v11, %v3359_v34  ;;  %v4693_v20 = vadd.f32 %v4692_v15, %v4691_v12  ;;  %v4756_v18 = vpop.f32.mrf.mxu1 }
 0x224   : > { %v4757_v22 = vadd.f32 %v4756_v18, %v4755_v14  ;;  %v4694_v23 = vpop.f32.mrf.mxu0 }
 0x225   : > { %v3362_v42 = vadd.f32 %v4693_v20, %v6394_v0  ;;  %v4758_v25 = vpop.f32.mrf.mxu1 }
 0x226   : > { %v4695_v26 = vpop.f32.mrf.mxu0 }
 0x227   : > { %v6442_v27 = vadd.f32 %v4757_v22, %v3362_v42  ;;  %v4696_v29 = vadd.f32 %v4695_v26, %v4694_v23  ;;  %v4759_v28 = vpop.f32.mrf.mxu1 }
 0x228   : > { %v4760_v31 = vadd.f32 %v4759_v28, %v4758_v25  ;;  %v4697_v32 = vpop.f32.mrf.mxu0 }
 0x229   : > { %v3367_v55 = vadd.f32 %v4696_v29, %v6397_v10  ;;  %v4761_v36 = vpop.f32.mrf.mxu1 }
 0x22a   : > { %v4698_v16 = vpop.f32.mrf.mxu0 }
 0x22b   : > { %v6445_v37 = vadd.f32 %v4760_v31, %v3367_v55  ;;  %v4699_v38 = vadd.f32 %v4698_v16, %v4697_v32  ;;  %v4762_v44 = vpop.f32.mrf.mxu1 }
 0x22c   : > { %v4763_v40 = vadd.f32 %v4762_v44, %v4761_v36  ;;  %v4780_v41 = vpop.f32.mrf.mxu0 }
 0x22d   : > { %v3370_v0 = vadd.f32 %v4699_v38, %v6400_v21  ;;  %v4844_v46 = vpop.f32.mrf.mxu1 }
 0x22e   : > { %v4781_v33 = vpop.f32.mrf.mxu0 }
 0x22f   : > { %v6448_v47 = vadd.f32 %v4763_v40, %v3370_v0  ;;  %v4782_v48 = vadd.f32 %v4781_v33, %v4780_v41  ;;  %v4845_v54 = vpop.f32.mrf.mxu1 }
 0x230   : > { %v4846_v50 = vadd.f32 %v4845_v54, %v4844_v46  ;;  %v6450_v51 = vpop.f32.mrf.mxu0 }
 0x231   : > { %v3505_v10 = vadd.f32 %v4782_v48, %v6403_v30  ;;  %v6453_v53 = vpop.f32.mrf.mxu1 }
 0x232   : > { %v6455_v43 = vpop.f32.mrf.mxu0 }
 0x233   : > { %v6457_v56 = vadd.f32 %v4846_v50, %v3505_v10  ;;  %v6459_v58 = vpop.f32.mrf.mxu1 }
 0x234   : > { %v4786_v21 = vpop.f32.mrf.mxu0 }
 0x235   : > { %v4850_v6 = vpop.f32.mrf.mxu1 }
 0x236   : > { %v4787_v60 = vpop.f32.mrf.mxu0 }
 0x237   : > { %v4788_v61 = vadd.f32 %v4787_v60, %v4786_v21  ;;  %v4851_v63 = vpop.f32.mrf.mxu1 }
 0x238   : > { %v4852_v57 = vadd.f32 %v4851_v63, %v4850_v6  ;;  %v6461_v1 = vpop.f32.mrf.mxu0 }
 0x239   : > { %v3513_v2 = vadd.f32 %v4788_v61, %v6409_v49  ;;  %v6464_v17 = vpop.f32.mrf.mxu1 }
 0x23a   : > { %v6466_v30 = vpop.f32.mrf.mxu0 }
 0x23b   : > { %v6468_v5 = vadd.f32 %v4852_v57, %v3513_v2  ;;  %v6470_v7 = vpop.f32.mrf.mxu1 }
 0x23c   : > { %v4792_v9 = vpop.f32.mrf.mxu0 }
 0x23d   : > { %v4856_v3 = vpop.f32.mrf.mxu1 }
 0x23e   : > { %v4793_v11 = vpop.f32.mrf.mxu0 }
 0x23f   : > { %v4794_v12 = vadd.f32 %v4793_v11, %v4792_v9  ;;  %v4857_v34 = vpop.f32.mrf.mxu1 }
 0x240   : > { %v4858_v14 = vadd.f32 %v4857_v34, %v4856_v3  ;;  %v6472_v15 = vpop.f32.mrf.mxu0 }
 0x241   : > { %v3521_v20 = vadd.f32 %v4794_v12, %v6415_v4  ;;  %v6475_v18 = vpop.f32.mrf.mxu1 }
 0x242   : > { %v6477_v49 = vpop.f32.mrf.mxu0 }
 0x243   : > { %v6479_v22 = vadd.f32 %v4858_v14, %v3521_v20  ;;  %v6481_v23 = vpop.f32.mrf.mxu1 }
 0x244   : > { %v4798_v42 = vpop.f32.mrf.mxu0 }
 0x245   : > { %v4862_v25 = vpop.f32.mrf.mxu1 }
 0x246   : > { %v4799_v26 = vpop.f32.mrf.mxu0 }
 0x247   : > { %v4800_v29 = vadd.f32 %v4799_v26, %v4798_v42  ;;  %v4863_v28 = vpop.f32.mrf.mxu1 }
 0x248   : > { %v4864_v31 = vadd.f32 %v4863_v28, %v4862_v25  ;;  %v6483_v32 = vpop.f32.mrf.mxu0 }
 0x249   : > { %v3529_v55 = vadd.f32 %v4800_v29, %v6421_v24  ;;  %v6486_v36 = vpop.f32.mrf.mxu1 }
 0x24a   : > { %v6488_v4 = vpop.f32.mrf.mxu0 }
 0x24b   : > { %v6490_v16 = vadd.f32 %v4864_v31, %v3529_v55  ;;  %v6492_v38 = vpop.f32.mrf.mxu1 }
 0x24c   : > { %v4804_v44 = vpop.f32.mrf.mxu0 }
 0x24d   : > { %v4868_v40 = vpop.f32.mrf.mxu1 }
 0x24e   : > { %v4805_v41 = vpop.f32.mrf.mxu0 }
 0x24f   : > { %v4806_v0 = vadd.f32 %v4805_v41, %v4804_v44  ;;  %v4869_v46 = vpop.f32.mrf.mxu1 }
 0x250   : > { %v4870_v33 = vadd.f32 %v4869_v46, %v4868_v40  ;;  %v6494_v48 = vpop.f32.mrf.mxu0 }
 0x251   : > { %v3537_v54 = vadd.f32 %v4806_v0, %v6427_v45  ;;  %v6497_v50 = vpop.f32.mrf.mxu1 }
 0x252   : > { %v6499_v24 = vpop.f32.mrf.mxu0 }
 0x253   : > { %v6501_v10 = vadd.f32 %v4870_v33, %v3537_v54  ;;  %v6503_v21 = vpop.f32.mrf.mxu1 }
 0x254   : > { %v4810_v6 = vpop.f32.mrf.mxu0 }
 0x255   : > { %v4874_v60 = vpop.f32.mrf.mxu1 }
 0x256   : > { %v4811_v61 = vpop.f32.mrf.mxu0 }
 0x257   : > { %v4812_v63 = vadd.f32 %v4811_v61, %v4810_v6  ;;  %v4875_v57 = vpop.f32.mrf.mxu1 }
 0x258   : > { %v4876_v2 = vadd.f32 %v4875_v57, %v4874_v60  ;;  %v6505_v9 = vpop.f32.mrf.mxu0  ;;  %v4785_v57 = vadd.f32 %v6455_v43, %v6450_v51 }
 0x259   : > { %v3545_v3 = vadd.f32 %v4812_v63, %v6433_v62  ;;  %v6508_v11 = vpop.f32.mrf.mxu1 }
 0x25a   : > { %v6510_v45 = vpop.f32.mrf.mxu0 }
 0x25b   : > { %v6512_v12 = vadd.f32 %v4876_v2, %v3545_v3  ;;  %v6514_v34 = vpop.f32.mrf.mxu1 }
 0x25c   : > { %v4816_v14 = vpop.f32.mrf.mxu0 }
 0x25d   : > { %v4880_v20 = vpop.f32.mrf.mxu1 }
 0x25e   : > { %v4817_v42 = vpop.f32.mrf.mxu0 }
 0x25f   : > { %v4818_v25 = vadd.f32 %v4817_v42, %v4816_v14  ;;  %v4881_v26 = vpop.f32.mrf.mxu1 }
 0x260   : > { %v4882_v29 = vadd.f32 %v4881_v26, %v4880_v20  ;;  %v6516_v28 = vpop.f32.mrf.mxu0 }
 0x261   : > { %v3553_v31 = vadd.f32 %v4818_v25, %v6439_v19  ;;  %v6519_v55 = vpop.f32.mrf.mxu1  ;;  %v3508_v25 = vadd.f32 %v4785_v57, %v6406_v39 }
 0x262   : > { %v6521_v62 = vpop.f32.mrf.mxu0 }
 0x263   : > { %v6523_v44 = vadd.f32 %v4882_v29, %v3553_v31  ;;  %v6525_v40 = vpop.f32.mrf.mxu1 }
 0x264   : > { %v4822_v41 = vpop.f32.mrf.mxu0 }
 0x265   : > { %v4886_v0 = vpop.f32.mrf.mxu1 }
 0x266   : > { %v4823_v46 = vpop.f32.mrf.mxu0 }
 0x267   : > { %v4824_v33 = vadd.f32 %v4823_v46, %v4822_v41  ;;  %v4887_v54 = vpop.f32.mrf.mxu1  ;;  %v4791_v46 = vadd.f32 %v6466_v30, %v6461_v1  ;;  %v4855_v1 = vadd.f32 %v6470_v7, %v6464_v17 }
 0x268   : > { %v4888_v6 = vadd.f32 %v4887_v54, %v4886_v0  ;;  %v6527_v60 = vpop.f32.mrf.mxu0 }
 0x269   : > { %v3561_v61 = vadd.f32 %v4824_v33, %v6445_v37  ;;  %v6530_v63 = vpop.f32.mrf.mxu1  ;;  %v4849_v37 = vadd.f32 %v6459_v58, %v6453_v53  ;;  %v3516_v53 = vadd.f32 %v4791_v46, %v6412_v59 }
 0x26a   : > { %v6532_v19 = vpop.f32.mrf.mxu0 }
 0x26b   : > { %v6536_v2 = vadd.f32 %v4888_v6, %v3561_v61  ;;  %v6538_v3 = vpop.f32.mrf.mxu1  ;;  %v3605_v43 = vadd.f32 %v4849_v37, %v3508_v25  ;;  %v4797_v37 = vadd.f32 %v6477_v49, %v6472_v15 }
 0x26c   : > { %v4908_v14 = vpop.f32.mrf.mxu0 }
 0x26d   : > { %6640 = vst [vmem:[#allocation4_spill] sm:$0xff] %v6536_v2  ;;  %v4972_v20 = vpop.f32.mrf.mxu1 }
 0x26e   : > { %v4909_v42 = vpop.f32.mrf.mxu0 }
 0x26f   : > { %v4910_v26 = vadd.f32 %v4909_v42, %v4908_v14  ;;  %v4973_v29 = vpop.f32.mrf.mxu1 }
 0x270   : > { %v4911_v31 = vpop.f32.mrf.mxu0  ;;  %v4974_v33 = vadd.f32 %v4973_v29, %v4972_v20 }
 0x271   : > { %v3699_v41 = vadd.f32 %v4910_v26, %v6457_v56  ;;  %v4975_v0 = vpop.f32.mrf.mxu1 }
 0x272   : > { %v4912_v51 = vpop.f32.mrf.mxu0 }
 0x273   : > { %v4913_v54 = vadd.f32 %v4912_v51, %v4911_v31  ;;  %v4976_v6 = vpop.f32.mrf.mxu1  ;;  %v3796_v39 = vadd.f32 %v4974_v33, %v3699_v41 }
 0x274   : > { %v4914_v61 = vpop.f32.mrf.mxu0  ;;  %v4977_v14 = vadd.f32 %v4976_v6, %v4975_v0  ;;  %v3613_v0 = vadd.f32 %v4855_v1, %v3516_v53 }
 0x275   : > { %v3702_v57 = vadd.f32 %v4913_v54, %v3605_v43  ;;  %v4978_v42 = vpop.f32.mrf.mxu1  ;;  %v3858_v30 = vmax.f32 %v3796_v39, 0.0  ;;  %v4861_v39 = vadd.f32 %v6481_v23, %v6475_v18 }
 0x276   : > { %v4915_v2 = vpop.f32.mrf.mxu0 }
 0x277   : > { %v3799_v56 = vadd.f32 %v4977_v14, %v3702_v57  ;;  %v4916_v58 = vadd.f32 %v4915_v2, %v4914_v61  ;;  %v4979_v26 = vpop.f32.mrf.mxu1 }
 0x278   : > { %v4917_v25 = vpop.f32.mrf.mxu0  ;;  %v4980_v51 = vadd.f32 %v4979_v26, %v4978_v42 }
 0x279   : > { %v3859_v20 = vmax.f32 %v3799_v56, 0.0  ;;  %v3707_v29 = vadd.f32 %v4916_v58, %v6468_v5  ;;  %v4981_v31 = vpop.f32.mrf.mxu1  ;;  %v3524_v5 = vadd.f32 %v4797_v37, %v6418_v13 }
 0x27a   : > { %v4918_v41 = vpop.f32.mrf.mxu0 }
 0x27b   : > { %v4464_v59 = vpack.c.bf16 %v3859_v20, %v3858_v30  ;;  %v4919_v43 = vadd.f32 %v4918_v41, %v4917_v25  ;;  %v4982_v46 = vpop.f32.mrf.mxu1  ;;  %v3804_v17 = vadd.f32 %v4980_v51, %v3707_v29  ;;  %v3621_v58 = vadd.f32 %v4861_v39, %v3524_v5 }
 0x27c   : > { %v4920_v2 = vpop.f32.mrf.mxu0  ;;  %v4983_v33 = vadd.f32 %v4982_v46, %v4981_v31  ;;  %v4803_v25 = vadd.f32 %v6488_v4, %v6483_v32  ;;  %v4867_v32 = vadd.f32 %v6492_v38, %v6486_v36 }
 0x27d   : > { %4465 = vst [vmem:[%s6554_s12] sm:$0xff] %v4464_v59   ;;  %v3710_v7 = vadd.f32 %v4919_v43, %v3613_v0  ;;  %v4984_v54 = vpop.f32.mrf.mxu1  ;;  %v3860_v14 = vmax.f32 %v3804_v17, 0.0 }
 0x27e   : > { %v4921_v6 = vpop.f32.mrf.mxu0  ;;  %v3532_v0 = vadd.f32 %v4803_v25, %v6424_v35 }
 0x27f   : > { %v3807_v61 = vadd.f32 %v4983_v33, %v3710_v7  ;;  %v4922_v15 = vadd.f32 %v4921_v6, %v4920_v2  ;;  %v4985_v49 = vpop.f32.mrf.mxu1  ;;  %v4809_v7 = vadd.f32 %v6499_v24, %v6494_v48  ;;  %v4873_v48 = vadd.f32 %v6503_v21, %v6497_v50 }
 0x280   : > { %v4923_v57 = vpop.f32.mrf.mxu0  ;;  %v4986_v1 = vadd.f32 %v4985_v49, %v4984_v54  ;;  %v3629_v54 = vadd.f32 %v4867_v32, %v3532_v0 }
 0x281   : > { %v3861_v42 = vmax.f32 %v3807_v61, 0.0  ;;  %v3715_v53 = vadd.f32 %v4922_v15, %v6479_v22  ;;  %v4987_v56 = vpop.f32.mrf.mxu1  ;;  %v3540_v38 = vadd.f32 %v4809_v7, %v6430_v52 }
 0x282   : > { %v4924_v26 = vpop.f32.mrf.mxu0 }
 0x283   : > { %v4469_v13 = vpack.c.bf16 %v3861_v42, %v3860_v14  ;;  %v4925_v30 = vadd.f32 %v4924_v26, %v4923_v57  ;;  %v4988_v20 = vpop.f32.mrf.mxu1  ;;  %v3812_v31 = vadd.f32 %v4986_v1, %v3715_v53 }
 0x284   : > { %v4926_v29 = vpop.f32.mrf.mxu0  ;;  %v4989_v18 = vadd.f32 %v4988_v20, %v4987_v56 }
 0x285   : > { %4501 = vst [vmem:[%s6554_s12 + $0x8] sm:$0xff] %v4469_v13   ;;  %v3718_v37 = vadd.f32 %v4925_v30, %v3621_v58  ;;  %v4990_v23 = vpop.f32.mrf.mxu1  ;;  %v3862_v4 = vmax.f32 %v3812_v31, 0.0  ;;  %v3637_v13 = vadd.f32 %v4873_v48, %v3540_v38  ;;  %v4815_v30 = vadd.f32 %v6510_v45, %v6505_v9 }
 0x286   : > { %v4927_v41 = vpop.f32.mrf.mxu0  ;;  %v4879_v9 = vadd.f32 %v6514_v34, %v6508_v11 }
 0x287   : > { %v3815_v22 = vadd.f32 %v4989_v18, %v3718_v37  ;;  %v4928_v59 = vadd.f32 %v4927_v41, %v4926_v29  ;;  %v4991_v51 = vpop.f32.mrf.mxu1  ;;  %v3548_v0 = vadd.f32 %v4815_v30, %v6436_v8 }
 0x288   : > { %v4929_v43 = vpop.f32.mrf.mxu0  ;;  %v4992_v35 = vadd.f32 %v4991_v51, %v4990_v23 }
 0x289   : > { %v3863_v46 = vmax.f32 %v3815_v22, 0.0  ;;  %v3723_v2 = vadd.f32 %v4928_v59, %v6490_v16  ;;  %v4993_v17 = vpop.f32.mrf.mxu1 }
 0x28a   : > { %v4930_v33 = vpop.f32.mrf.mxu0 }
 0x28b   : > { %v4474_v5 = vpack.c.bf16 %v3863_v46, %v3862_v4  ;;  %v4931_v6 = vadd.f32 %v4930_v33, %v4929_v43  ;;  %v4994_v61 = vpop.f32.mrf.mxu1  ;;  %v3820_v49 = vadd.f32 %v4992_v35, %v3723_v2  ;;  %v4821_v46 = vadd.f32 %v6521_v62, %v6516_v28 }
 0x28c   : > { %v4932_v15 = vpop.f32.mrf.mxu0  ;;  %v4995_v57 = vadd.f32 %v4994_v61, %v4993_v17  ;;  %v3645_v17 = vadd.f32 %v4879_v9, %v3548_v0  ;;  %v4885_v28 = vadd.f32 %v6525_v40, %v6519_v55 }
 0x28d   : > { %4502 = vst [vmem:[%s6554_s12 + $0x10] sm:$0xff] %v4474_v5   ;;  %v3726_v39 = vadd.f32 %v4931_v6, %v3629_v54  ;;  %v4996_v36 = vpop.f32.mrf.mxu1  ;;  %v3864_v56 = vmax.f32 %v3820_v49, 0.0  ;;  %v3556_v34 = vadd.f32 %v4821_v46, %v6442_v27 }
 0x28e   : > { %v4933_v14 = vpop.f32.mrf.mxu0 }
 0x28f   : > { %v3823_v16 = vadd.f32 %v4995_v57, %v3726_v39  ;;  %v4934_v42 = vadd.f32 %v4933_v14, %v4932_v15  ;;  %v4997_v53 = vpop.f32.mrf.mxu1 }
 0x290   : > { %v4935_v24 = vpop.f32.mrf.mxu0  ;;  %v4998_v20 = vadd.f32 %v4997_v53, %v4996_v36  ;;  %v4827_v53 = vadd.f32 %v6532_v19, %v6527_v60  ;;  %v4891_v60 = vadd.f32 %v6538_v3, %v6530_v63  ;;  %v3982_v3 = vld [vmem:[%s6554_s12] sm:$0xf] (%p5283_p6) }
 0x291   : > { %v3865_v58 = vmax.f32 %v3823_v16, 0.0  ;;  %v3731_v26 = vadd.f32 %v4934_v42, %v6501_v10  ;;  %v4999_v25 = vpop.f32.mrf.mxu1  ;;  %v3653_v16 = vadd.f32 %v4885_v28, %v3556_v34  ;;  %3983 = vst [vmem:[%s3965_s8] sm:$0xf] (%p5283_p6), %v3982_v3 }
 0x292   : > { %v4936_v1 = vpop.f32.mrf.mxu0 }
 0x293   : > { %v4479_v52 = vpack.c.bf16 %v3865_v58, %v3864_v56  ;;  %v4937_v29 = vadd.f32 %v4936_v1, %v4935_v24  ;;  %v5000_v31 = vpop.f32.mrf.mxu1  ;;  %v3828_v18 = vadd.f32 %v4998_v20, %v3731_v26  ;;  %v3564_v1 = vadd.f32 %v4827_v53, %v6448_v47 }
 0x294   : > { %v4938_v37 = vpop.f32.mrf.mxu0  ;;  %v5001_v50 = vadd.f32 %v5000_v31, %v4999_v25  ;;  %v6641_v31 = vld [vmem:[#allocation4_spill] sm:$0xff]  ;;  %v3990_v46 = vld [vmem:[%s6554_s12 + $0x10] sm:$0xf] (%p5283_p6) }
 0x295   : > { %4503 = vst [vmem:[%s6554_s12 + $0x18] sm:$0xff] %v4479_v52   ;;  %v3734_v23 = vadd.f32 %v4937_v29, %v3637_v13  ;;  %v5002_v21 = vpop.f32.mrf.mxu1  ;;  %v3866_v45 = vmax.f32 %v3828_v18, 0.0  ;;  %3991 = vst [vmem:[%s3965_s8 + $0x20] sm:$0xf] (%p5283_p6), %v3990_v46 }
 0x296   : > { %v4939_v41 = vpop.f32.mrf.mxu0 }
 0x297   : > { %v3831_v10 = vadd.f32 %v5001_v50, %v3734_v23  ;;  %v4940_v22 = vadd.f32 %v4939_v41, %v4938_v37  ;;  %v5003_v59 = vpop.f32.mrf.mxu1  ;;  %v3661_v50 = vadd.f32 %v4891_v60, %v3564_v1 }
 0x298   : > { %v4941_v51 = vpop.f32.mrf.mxu0  ;;  %v5004_v8 = vadd.f32 %v5003_v59, %v5002_v21 }
 0x299   : > { %v3867_v43 = vmax.f32 %v3831_v10, 0.0  ;;  %v3739_v32 = vadd.f32 %v4940_v22, %v6512_v12  ;;  %v5005_v4 = vpop.f32.mrf.mxu1 }
 0x29a   : > { %v4942_v2 = vpop.f32.mrf.mxu0 }
 0x29b   : > { %v4484_v7 = vpack.c.bf16 %v3867_v43, %v3866_v45  ;;  %v4943_v33 = vadd.f32 %v4942_v2, %v4941_v51  ;;  %v5006_v54 = vpop.f32.mrf.mxu1  ;;  %v3836_v35 = vadd.f32 %v5004_v8, %v3739_v32  ;;  %v3984_v43 = vld [vmem:[%s6554_s12 + $0x4] sm:$0xf] (%p5283_p6)  ;;  %v3986_v32 = vld [vmem:[%s6554_s12 + $0x8] sm:$0xf] (%p5283_p6)  ;;  %v3992_v2 = vld [vmem:[%s6554_s12 + $0x14] sm:$0xf] (%p5283_p6) }
 0x29c   : > { %v4944_v5 = vpop.f32.mrf.mxu0  ;;  %v5007_v61 = vadd.f32 %v5006_v54, %v5005_v4  ;;  %v3988_v4 = vld [vmem:[%s6554_s12 + $0xc] sm:$0xf] (%p5283_p6)  ;;  %3985 = vst [vmem:[%s3965_s8 + $0x8] sm:$0xf] (%p5283_p6), %v3984_v43  ;;  %3987 = vst [vmem:[%s3965_s8 + $0x10] sm:$0xf] (%p5283_p6), %v3986_v32 }
 0x29d   : > { %4504 = vst [vmem:[%s6554_s12 + $0x20] sm:$0xff] %v4484_v7   ;;  %v3742_v6 = vadd.f32 %v4943_v33, %v3645_v17  ;;  %v5008_v11 = vpop.f32.mrf.mxu1  ;;  %v3868_v57 = vmax.f32 %v3836_v35, 0.0  ;;  %3989 = vst [vmem:[%s3965_s8 + $0x18] sm:$0xf] (%p5283_p6), %v3988_v4  ;;  %v3994_v17 = vld [vmem:[%s6554_s12 + $0x18] sm:$0xf] (%p5283_p6) }
 0x29e   : > { %v4945_v15 = vpop.f32.mrf.mxu0  ;;  %v3996_v7 = vld [vmem:[%s6554_s12 + $0x1c] sm:$0xf] (%p5283_p6)  ;;  %3993 = vst [vmem:[%s3965_s8 + $0x28] sm:$0xf] (%p5283_p6), %v3992_v2  ;;  %3995 = vst [vmem:[%s3965_s8 + $0x30] sm:$0xf] (%p5283_p6), %v3994_v17 }
 0x29f   : > { %v3839_v12 = vadd.f32 %v5007_v61, %v3742_v6  ;;  %v4946_v49 = vadd.f32 %v4945_v15, %v4944_v5  ;;  %v5009_v39 = vpop.f32.mrf.mxu1  ;;  %3997 = vst [vmem:[%s3965_s8 + $0x38] sm:$0xf] (%p5283_p6), %v3996_v7 }
 0x2a0   : > { %v4947_v62 = vpop.f32.mrf.mxu0  ;;  %v5010_v48 = vadd.f32 %v5009_v39, %v5008_v11 }
 0x2a1   : > { %v3869_v36 = vmax.f32 %v3839_v12, 0.0  ;;  %v3747_v38 = vadd.f32 %v4946_v49, %v6523_v44  ;;  %v5011_v14 = vpop.f32.mrf.mxu1 }
 0x2a2   : > { %v4948_v42 = vpop.f32.mrf.mxu0 }
 0x2a3   : > { %v4489_v27 = vpack.c.bf16 %v3869_v36, %v3868_v57  ;;  %v4949_v24 = vadd.f32 %v4948_v42, %v4947_v62  ;;  %v5012_v56 = vpop.f32.mrf.mxu1  ;;  %v3844_v26 = vadd.f32 %v5010_v48, %v3747_v38 }
 0x2a4   : > { %v4950_v58 = vpop.f32.mrf.mxu0  ;;  %v5013_v55 = vadd.f32 %v5012_v56, %v5011_v14  ;;  %v3998_v8 = vld [vmem:[%s6554_s12 + $0x20] sm:$0xf] (%p5283_p6)  ;;  %v4000_v33 = vld [vmem:[%s6554_s12 + $0x24] sm:$0xf] (%p5283_p6) }
 0x2a5   : > { %4505 = vst [vmem:[%s6554_s12 + $0x28] sm:$0xff] %v4489_v27   ;;  %v3750_v25 = vadd.f32 %v4949_v24, %v3653_v16  ;;  %v5014_v40 = vpop.f32.mrf.mxu1  ;;  %v3870_v19 = vmax.f32 %v3844_v26, 0.0  ;;  %3999 = vst [vmem:[%s3965_s8 + $0x40] sm:$0xf] (%p5283_p6), %v3998_v8 }
 0x2a6   : > { %v4951_v13 = vpop.f32.mrf.mxu0  ;;  %4001 = vst [vmem:[%s3965_s8 + $0x48] sm:$0xf] (%p5283_p6), %v4000_v33 }
 0x2a7   : > { %v3847_v44 = vadd.f32 %v5013_v55, %v3750_v25  ;;  %v4952_v30 = vadd.f32 %v4951_v13, %v4950_v58  ;;  %v5015_v52 = vpop.f32.mrf.mxu1 }
 0x2a8   : > { %v4953_v20 = vpop.f32.mrf.mxu0  ;;  %v5016_v41 = vadd.f32 %v5015_v52, %v5014_v40 }
 0x2a9   : > { %v3871_v29 = vmax.f32 %v3847_v44, 0.0  ;;  %v3755_v37 = vadd.f32 %v4952_v30, %v6641_v31  ;;  %v5017_v18 = vpop.f32.mrf.mxu1 }
 0x2aa   : > { %v4954_v23 = vpop.f32.mrf.mxu0 }
 0x2ab   : > { %v4494_v21 = vpack.c.bf16 %v3871_v29, %v3870_v19  ;;  %v4955_v0 = vadd.f32 %v4954_v23, %v4953_v20  ;;  %v5018_v47 = vpop.f32.mrf.mxu1  ;;  %v3852_v10 = vadd.f32 %v5016_v41, %v3755_v37 }
 0x2ac   : > { %v5019_v59 = vadd.f32 %v5018_v47, %v5017_v18  ;;  %v4002_v54 = vld [vmem:[%s6554_s12 + $0x28] sm:$0xf] (%p5283_p6)  ;;  %v4004_v5 = vld [vmem:[%s6554_s12 + $0x2c] sm:$0xf] (%p5283_p6) }
 0x2ad   : > { %4506 = vst [vmem:[%s6554_s12 + $0x30] sm:$0xff] %v4494_v21   ;;  %v3758_v22 = vadd.f32 %v4955_v0, %v3661_v50  ;;  %v3872_v9 = vmax.f32 %v3852_v10, 0.0  ;;  %4003 = vst [vmem:[%s3965_s8 + $0x50] sm:$0xf] (%p5283_p6), %v4002_v54 }
 0x2ae   : > { %4005 = vst [vmem:[%s3965_s8 + $0x58] sm:$0xf] (%p5283_p6), %v4004_v5 }
 0x2af   : > { %v3855_v51 = vadd.f32 %v5019_v59, %v3758_v22 }
 0x2b1   : > { %v3873_v45 = vmax.f32 %v3855_v51, 0.0  ;;  %3960 = sbr.rel (!%p5283_p6) target bundleno = 702 (0x2be), region = 77 }
 0x2b3   : > { %v4499_v63 = vpack.c.bf16 %v3873_v45, %v3872_v9 }
 0x2b4   : > { %v4006_v35 = vld [vmem:[%s6554_s12 + $0x30] sm:$0xf] (%p5283_p6)  ;;  %v4008_v6 = vld [vmem:[%s6554_s12 + $0x34] sm:$0xf] (%p5283_p6) }
 0x2b5   : > { %4507 = vst [vmem:[%s6554_s12 + $0x38] sm:$0xff] %v4499_v63   ;;  %4007 = vst [vmem:[%s3965_s8 + $0x60] sm:$0xf] (%p5283_p6), %v4006_v35 }
 0x2b6   : > { %4009 = vst [vmem:[%s3965_s8 + $0x68] sm:$0xf] %v4008_v6 }
 0x2bc   : > { %v4010_v61 = vld [vmem:[%s6554_s12 + $0x38] sm:$0xf]  ;;  %v4012_v11 = vld [vmem:[%s6554_s12 + $0x3c] sm:$0xf] }
 0x2bd   : > { %4011 = vst [vmem:[%s3965_s8 + $0x70] sm:$0xf] %v4010_v61  ;;  %4013 = vst [vmem:[%s3965_s8 + $0x78] sm:$0xf] %v4012_v11 }
 0x2be PF: > { %s13_s16 = sadd.s32 1, %s5226_s16   ;;  %s6642_s12 = smov %s5214_s13 }
 0x2bf   : > { %p10_p12 = scmp.ge.s32.totalorder %s13_s16, 4   ;;  %s6643_s13 = smov %s5288_s22 }
 0x2c0   : > { %s6644_s14 = smov %s5222_s15  ;;  %s6645_s15 = smov %s6647_s17 }
 0x2c1   :  { %12 = sbr.rel (!%p10_p12) target bundleno = 3 (0x3), region = 155 }

// kernel: encoder_forward.7
= control target key start
LH: loop header
LB: loop body
LE: loop exit
PB: predicated region body
PF: predicated region fallthrough
CT: control target
= control target key end

     0   :  { %v2107_v28 = vlaneseq  ;;  %v15231_v36 = vmov 1966171168   ;;  %s18629_s0 = inlined_call_operand.vmem [shape: bf16[2,16384], index: 0, kind: input, shape index: {}]   ;;  %s18630_s1 = inlined_call_operand.vmem [shape: bf16[16384,128], index: 1, kind: input, shape index: {}]   ;;  %s18631_s2 = inlined_call_operand.vmem [shape: f32[1,128], index: 2, kind: input, shape index: {}]   ;;  %s18632_s3 = inlined_call_operand.hbm [shape: f32[2,128], index: 3, kind: output, shape index: {}]  }
   0x1   :  { %v14169_v0 = vld [vmem:[%s18630_s1 + $0x78] sm:$0xff]   ;;  %v14173_v4 = vld [vmem:[%s18630_s1 + $0x70] sm:$0xff]   ;;  %v14177_v8 = vld [vmem:[%s18630_s1 + $0x68] sm:$0xff]   ;;  %v2105_v37 = vunpack.c.l.s4 %v15231_v36 }
   0x2   :  { %v14170_v1 = vld [vmem:[%s18630_s1 + $0xf8] sm:$0xff]   ;;  %12759 = vmatprep.subr.bf16.mxu0 %v14169_v0  ;;  %v14174_v5 = vld [vmem:[%s18630_s1 + $0xf0] sm:$0xff]   ;;  %v14178_v9 = vld [vmem:[%s18630_s1 + $0xe8] sm:$0xff]   ;;  %v2108_v33 = vshrl.u32 %v2107_v28, 7 }
   0x3   :  { %v14171_v2 = vld [vmem:[%s18630_s1 + $0x38] sm:$0xff]   ;;  %12781 = vmatprep.subr.bf16.mxu1 %v14170_v1  ;;  %v14175_v6 = vld [vmem:[%s18630_s1 + $0x30] sm:$0xff]   ;;  %v14179_v10 = vld [vmem:[%s18630_s1 + $0x28] sm:$0xff]   ;;  %v2106_v40 = vunpack.c.0.s8 %v2105_v37 }
   0x4   :  { %v14172_v3 = vld [vmem:[%s18630_s1 + $0xb8] sm:$0xff]   ;;  %12760 = vmatpush3.bf16.msra.mxu0 %v14171_v2  ;;  %v14176_v7 = vld [vmem:[%s18630_s1 + $0xb0] sm:$0xff]   ;;  %v14180_v11 = vld [vmem:[%s18630_s1 + $0xa8] sm:$0xff]  }
   0x5   :  { %12782 = vmatpush3.bf16.msra.mxu1 %v14172_v3  ;;  %12761 = vmatprep.subr.bf16.mxu0 %v14173_v4  ;;  %v14181_v12 = vld [vmem:[%s18630_s1 + $0x60] sm:$0xff]   ;;  %v14185_v16 = vld [vmem:[%s18630_s1 + $0x58] sm:$0xff]   ;;  %v14189_v20 = vld [vmem:[%s18630_s1 + $0x50] sm:$0xff]   ;;  %v15358_v41 = vsub.s32 %v2106_v40, %v2108_v33 }
   0x6   :  { %12783 = vmatprep.subr.bf16.mxu1 %v14174_v5  ;;  %v14182_v13 = vld [vmem:[%s18630_s1 + $0xe0] sm:$0xff]   ;;  %v14186_v17 = vld [vmem:[%s18630_s1 + $0xd8] sm:$0xff]   ;;  %v14190_v21 = vld [vmem:[%s18630_s1 + $0xd0] sm:$0xff]  }
   0x7   :  { %v14183_v14 = vld [vmem:[%s18630_s1 + $0x20] sm:$0xff]   ;;  %v14187_v18 = vld [vmem:[%s18630_s1 + $0x18] sm:$0xff]   ;;  %v14191_v22 = vld [vmem:[%s18630_s1 + $0x10] sm:$0xff]  }
   0x8   :  { %12762 = vmatpush3.bf16.msra.mxu0 %v14175_v6  ;;  %v14184_v15 = vld [vmem:[%s18630_s1 + $0xa0] sm:$0xff]   ;;  %v14188_v19 = vld [vmem:[%s18630_s1 + $0x98] sm:$0xff]   ;;  %v14192_v23 = vld [vmem:[%s18630_s1 + $0x90] sm:$0xff]  }
   0x9   :  { %12784 = vmatpush3.bf16.msra.mxu1 %v14176_v7  ;;  %12763 = vmatprep.subr.bf16.mxu0 %v14177_v8  ;;  %v14193_v24 = vld [vmem:[%s18630_s1 + $0x48] sm:$0xff]   ;;  %v14197_v29 = vld [vmem:[%s18630_s1 + $0x40] sm:$0xff]   ;;  %v14202_v35 = vld [vmem:[%s18630_s1 + $0x178] sm:$0xff]  }
   0xa   :  { %12785 = vmatprep.subr.bf16.mxu1 %v14178_v9  ;;  %v14194_v25 = vld [vmem:[%s18630_s1 + $0xc8] sm:$0xff]   ;;  %v14198_v30 = vld [vmem:[%s18630_s1 + $0xc0] sm:$0xff]   ;;  %v14203_v38 = vld [vmem:[%s18630_s1 + $0x1f8] sm:$0xff]  }
   0xb   :  { %v14195_v26 = vld [vmem:[%s18630_s1 + $0x8] sm:$0xff]   ;;  %v14199_v31 = vld [vmem:[%s18630_s1] sm:$0xff]   ;;  %v14204_v47 = vld [vmem:[%s18630_s1 + $0x138] sm:$0xff]  }
   0xc   :  { %12764 = vmatpush3.bf16.msra.mxu0 %v14179_v10  ;;  %v14196_v27 = vld [vmem:[%s18630_s1 + $0x88] sm:$0xff]   ;;  %v14200_v32 = vld [vmem:[%s18630_s1 + $0x80] sm:$0xff]   ;;  %v14205_v49 = vld [vmem:[%s18630_s1 + $0x1b8] sm:$0xff]  }
   0xd   :  { %12786 = vmatpush3.bf16.msra.mxu1 %v14180_v11  ;;  %12765 = vmatprep.subr.bf16.mxu0 %v14181_v12  ;;  %v16_v34 = vld [vmem:[%s18629_s0] sm:$0xff]  ;;  %v14206_v52 = vld [vmem:[%s18630_s1 + $0x170] sm:$0xff]   ;;  %v14210_v58 = vld [vmem:[%s18630_s1 + $0x168] sm:$0xff]  }
   0xe   :  { %12787 = vmatprep.subr.bf16.mxu1 %v14182_v13  ;;  %v2103_v39 = vcombine.high %v16_v34, %v16_v34  ;;  %v2110_v42 = vrot.slane %v16_v34, %v15358_v41  ;;  %v14207_v54 = vld [vmem:[%s18630_s1 + $0x1f0] sm:$0xff]   ;;  %v14211_v59 = vld [vmem:[%s18630_s1 + $0x1e8] sm:$0xff]   ;;  %v14214_v62 = vld [vmem:[%s18630_s1 + $0x160] sm:$0xff]  }
   0xf   :  { %v14208_v55 = vld [vmem:[%s18630_s1 + $0x130] sm:$0xff]   ;;  %v14212_v60 = vld [vmem:[%s18630_s1 + $0x128] sm:$0xff]   ;;  %v14215_v63 = vld [vmem:[%s18630_s1 + $0x1e0] sm:$0xff]  }
  0x10   :  { %12766 = vmatpush3.bf16.msra.mxu0 %v14183_v14  ;;  %v15362_v43 = vrot.slane %v2103_v39, %v15358_v41  ;;  %v2118_v44 = vcombine.high %v2110_v42, %v2110_v42  ;;  %v2126_v45 = vrot.slane %v2110_v42, %v15358_v41  ;;  %v14209_v57 = vld [vmem:[%s18630_s1 + $0x1b0] sm:$0xff]   ;;  %v14213_v61 = vld [vmem:[%s18630_s1 + $0x1a8] sm:$0xff]   ;;  %v14216_v0 = vld [vmem:[%s18630_s1 + $0x120] sm:$0xff]  }
  0x11   :  { %12788 = vmatpush3.bf16.msra.mxu1 %v14184_v15  ;;  %12767 = vmatprep.subr.bf16.mxu0 %v14185_v16  ;;  %v14217_v1 = vld [vmem:[%s18630_s1 + $0x1a0] sm:$0xff]   ;;  %v14218_v2 = vld [vmem:[%s18630_s1 + $0x158] sm:$0xff]   ;;  %v14222_v6 = vld [vmem:[%s18630_s1 + $0x150] sm:$0xff]  }
  0x12   :  { %12789 = vmatprep.subr.bf16.mxu1 %v14186_v17  ;;  %v2119_v46 = vcombine.high %v15362_v43, %v15362_v43  ;;  %v2140_v48 = vrot.slane %v2118_v44, %v15358_v41  ;;  %v2148_v51 = vcombine.high %v2126_v45, %v2126_v45  ;;  %v14219_v3 = vld [vmem:[%s18630_s1 + $0x1d8] sm:$0xff]   ;;  %v14223_v7 = vld [vmem:[%s18630_s1 + $0x1d0] sm:$0xff]   ;;  %v14226_v10 = vld [vmem:[%s18630_s1 + $0x148] sm:$0xff]  }
  0x13   :  { %v14220_v4 = vld [vmem:[%s18630_s1 + $0x118] sm:$0xff]   ;;  %v14224_v8 = vld [vmem:[%s18630_s1 + $0x110] sm:$0xff]   ;;  %v14227_v11 = vld [vmem:[%s18630_s1 + $0x1c8] sm:$0xff]  }
  0x14   :  { %12768 = vmatpush3.bf16.msra.mxu0 %v14187_v18  ;;  %v2147_v50 = vrot.slane %v2119_v46, %v15358_v41  ;;  %9191 = vmatprep.mubr.bf16.mxu0 %v2140_v48  ;;  %v2150_v53 = vcombine.high %v2140_v48, %v2140_v48  ;;  %v14221_v5 = vld [vmem:[%s18630_s1 + $0x198] sm:$0xff]   ;;  %v14225_v9 = vld [vmem:[%s18630_s1 + $0x190] sm:$0xff]   ;;  %v14228_v12 = vld [vmem:[%s18630_s1 + $0x108] sm:$0xff]   ;;  %v2133_v18 = vrot.slane %v15362_v43, %v15358_v41 }
  0x15   :  { %12790 = vmatpush3.bf16.msra.mxu1 %v14188_v19  ;;  %12769 = vmatprep.subr.bf16.mxu0 %v14189_v20  ;;  %v14229_v13 = vld [vmem:[%s18630_s1 + $0x188] sm:$0xff]   ;;  %v14230_v14 = vld [vmem:[%s18630_s1 + $0x140] sm:$0xff]   ;;  %v14234_v19 = vld [vmem:[%s18630_s1 + $0x278] sm:$0xff]  }
  0x16   :  { %12791 = vmatprep.subr.bf16.mxu1 %v14190_v21  ;;  %v2151_v56 = vcombine.high %v2147_v50, %v2147_v50  ;;  %9231 = vmatprep.mubr.bf16.mxu1 %v2150_v53  ;;  %v14231_v15 = vld [vmem:[%s18630_s1 + $0x1c0] sm:$0xff]   ;;  %v14235_v20 = vld [vmem:[%s18630_s1 + $0x2f8] sm:$0xff]   ;;  %v14242_v28 = vld [vmem:[%s18630_s1 + $0x268] sm:$0xff]  }
  0x17   :  { %v14232_v16 = vld [vmem:[%s18630_s1 + $0x100] sm:$0xff]   ;;  %v14236_v21 = vld [vmem:[%s18630_s1 + $0x238] sm:$0xff]   ;;  %v14254_v40 = vld [vmem:[%s18630_s1 + $0x250] sm:$0xff]  }
  0x18   :  { %12770 = vmatpush3.bf16.msra.mxu0 %v14191_v22  ;;  %v14233_v17 = vld [vmem:[%s18630_s1 + $0x180] sm:$0xff]   ;;  %v14237_v22 = vld [vmem:[%s18630_s1 + $0x2b8] sm:$0xff]   ;;  %v14255_v42 = vld [vmem:[%s18630_s1 + $0x2d0] sm:$0xff]  }
  0x19   :  { %12792 = vmatpush3.bf16.msra.mxu1 %v14192_v23  ;;  %12771 = vmatprep.subr.bf16.mxu0 %v14193_v24  ;;  %v2149_v23 = vcombine.high %v2133_v18, %v2133_v18  ;;  %v14238_v24 = vld [vmem:[%s18630_s1 + $0x270] sm:$0xff]   ;;  %v14247_v33 = vld [vmem:[%s18630_s1 + $0x2e0] sm:$0xff]   ;;  %v14250_v36 = vld [vmem:[%s18630_s1 + $0x258] sm:$0xff]  }
  0x1a   :  { %12793 = vmatprep.subr.bf16.mxu1 %v14194_v25  ;;  %v14239_v25 = vld [vmem:[%s18630_s1 + $0x2f0] sm:$0xff]   ;;  %v14248_v34 = vld [vmem:[%s18630_s1 + $0x220] sm:$0xff]   ;;  %v14251_v37 = vld [vmem:[%s18630_s1 + $0x2d8] sm:$0xff]  }
  0x1b   :  { %v14253_v39 = vld [vmem:[%s18630_s1 + $0x298] sm:$0xff]   ;;  %v14256_v43 = vld [vmem:[%s18630_s1 + $0x210] sm:$0xff]   ;;  %v17_v46 = vld [vmem:[%s18629_s0 + $0x8] sm:$0xff] }
  0x1c   :  { %12772 = vmatpush3.bf16.msra.mxu0 %v14195_v26  ;;  %v14240_v26 = vld [vmem:[%s18630_s1 + $0x230] sm:$0xff]   ;;  %v2159_v48 = vrot.slane %v17_v46, %v15358_v41 }
  0x1d   :  { %12794 = vmatpush3.bf16.msra.mxu1 %v14196_v27  ;;  %12773 = vmatprep.subr.bf16.mxu0 %v14197_v29  ;;  %v14241_v27 = vld [vmem:[%s18630_s1 + $0x2b0] sm:$0xff]   ;;  %v14243_v29 = vld [vmem:[%s18630_s1 + $0x2e8] sm:$0xff]  }
  0x1e   :  { %12795 = vmatprep.subr.bf16.mxu1 %v14198_v30  ;;  %v14244_v30 = vld [vmem:[%s18630_s1 + $0x228] sm:$0xff]   ;;  %v14257_v44 = vld [vmem:[%s18630_s1 + $0x290] sm:$0xff]  }
  0x20   :  { %12774 = vmatpush3.bf16.msra.mxu0 %v14199_v31  ;;  %v14245_v31 = vld [vmem:[%s18630_s1 + $0x2a8] sm:$0xff]  }
  0x21   :  { %12796 = vmatpush3.bf16.msra.mxu1 %v14200_v32  ;;  %12803 = vmatprep.subr.bf16.mxu0 %v14202_v35  ;;  %v14246_v32 = vld [vmem:[%s18630_s1 + $0x260] sm:$0xff]  }
  0x22   :  { %12825 = vmatprep.subr.bf16.mxu1 %v14203_v38  ;;  %v14249_v35 = vld [vmem:[%s18630_s1 + $0x2a0] sm:$0xff]   ;;  %v14252_v38 = vld [vmem:[%s18630_s1 + $0x218] sm:$0xff]  }
  0x23   :  { %9192 = vmatmul.mubr.bf16.vlgmr.msra.gmra.mxu0 %v2126_v45  ;;  %v14258_v45 = vld [vmem:[%s18630_s1 + $0x248] sm:$0xff]  }
  0x24   :  { %12804 = vmatpush3.bf16.msra.mxu0 %v14204_v47  ;;  %9232 = vmatmul.mubr.bf16.vlgmr.msra.gmra.mxu1 %v2148_v51  ;;  %v14259_v47 = vld [vmem:[%s18630_s1 + $0x2c8] sm:$0xff]  }
  0x25   :  { %12805 = vmatprep.subr.bf16.mxu0 %v14206_v52  ;;  %12826 = vmatpush3.bf16.msra.mxu1 %v14205_v49  ;;  %v2152_v49 = vcombine.high %v17_v46, %v17_v46  ;;  %v14261_v51 = vld [vmem:[%s18630_s1 + $0x288] sm:$0xff]   ;;  %v2167_v52 = vcombine.high %v2159_v48, %v2159_v48 }
  0x26   :  { %9271 = vmatprep.mubr.bf16.mxu0 %v2147_v50  ;;  %12827 = vmatprep.subr.bf16.mxu1 %v14207_v54  ;;  %v14260_v50 = vld [vmem:[%s18630_s1 + $0x208] sm:$0xff]   ;;  %v14262_v54 = vld [vmem:[%s18630_s1 + $0x240] sm:$0xff]  }
  0x27   :  { %9311 = vmatprep.mubr.bf16.mxu1 %v2151_v56  ;;  %v15550_v53 = vrot.slane %v2152_v49, %v15358_v41  ;;  %v2189_v56 = vrot.slane %v2167_v52, %v15358_v41  ;;  %v14309_v46 = vld [vmem:[%s18630_s1 + $0x428] sm:$0xff]   ;;  %v14312_v49 = vld [vmem:[%s18630_s1 + $0x4e0] sm:$0xff]   ;;  %v14315_v52 = vld [vmem:[%s18630_s1 + $0x458] sm:$0xff]  }
  0x28   :  { %12806 = vmatpush3.bf16.msra.mxu0 %v14208_v55  ;;  %v14263_v55 = vld [vmem:[%s18630_s1 + $0x2c0] sm:$0xff]  }
  0x29   :  { %12807 = vmatprep.subr.bf16.mxu0 %v14210_v58  ;;  %12828 = vmatpush3.bf16.msra.mxu1 %v14209_v57  ;;  %v2168_v57 = vcombine.high %v15550_v53, %v15550_v53  ;;  %v14264_v58 = vld [vmem:[%s18630_s1 + $0x200] sm:$0xff]  }
  0x2a   :  { %12829 = vmatprep.subr.bf16.mxu1 %v14211_v59  ;;  %v14265_v59 = vld [vmem:[%s18630_s1 + $0x280] sm:$0xff]  }
  0x2c   :  { %12808 = vmatpush3.bf16.msra.mxu0 %v14212_v60  ;;  %v2199_v60 = vcombine.high %v2189_v56, %v2189_v56 }
  0x2d   :  { %12809 = vmatprep.subr.bf16.mxu0 %v14214_v62  ;;  %12830 = vmatpush3.bf16.msra.mxu1 %v14213_v61  ;;  %v2175_v61 = vrot.slane %v2159_v48, %v15358_v41  ;;  %v14266_v62 = vld [vmem:[%s18630_s1 + $0x378] sm:$0xff]   ;;  %v14311_v48 = vld [vmem:[%s18630_s1 + $0x460] sm:$0xff]  }
  0x2e   :  { %12831 = vmatprep.subr.bf16.mxu1 %v14215_v63  ;;  %v14267_v63 = vld [vmem:[%s18630_s1 + $0x3f8] sm:$0xff]  }
  0x30   :  { %12810 = vmatpush3.bf16.msra.mxu0 %v14216_v0  ;;  %v2196_v0 = vrot.slane %v2168_v57, %v15358_v41  ;;  %v14320_v57 = vld [vmem:[%s18630_s1 + $0x4d0] sm:$0xff]  }
  0x31   :  { %12811 = vmatprep.subr.bf16.mxu0 %v14218_v2  ;;  %12832 = vmatpush3.bf16.msra.mxu1 %v14217_v1  ;;  %v14268_v1 = vld [vmem:[%s18630_s1 + $0x338] sm:$0xff]  }
  0x32   :  { %12833 = vmatprep.subr.bf16.mxu1 %v14219_v3  ;;  %v14269_v2 = vld [vmem:[%s18630_s1 + $0x3b8] sm:$0xff]   ;;  %v2197_v3 = vcombine.high %v2175_v61, %v2175_v61 }
  0x34   :  { %12812 = vmatpush3.bf16.msra.mxu0 %v14220_v4  ;;  %v14270_v4 = vld [vmem:[%s18630_s1 + $0x370] sm:$0xff]  }
  0x35   :  { %12813 = vmatprep.subr.bf16.mxu0 %v14222_v6  ;;  %12834 = vmatpush3.bf16.msra.mxu1 %v14221_v5  ;;  %v14271_v5 = vld [vmem:[%s18630_s1 + $0x3f0] sm:$0xff]   ;;  %v2200_v6 = vcombine.high %v2196_v0, %v2196_v0 }
  0x36   :  { %12835 = vmatprep.subr.bf16.mxu1 %v14223_v7  ;;  %v14272_v7 = vld [vmem:[%s18630_s1 + $0x330] sm:$0xff]  }
  0x38   :  { %12814 = vmatpush3.bf16.msra.mxu0 %v14224_v8  ;;  %v14273_v8 = vld [vmem:[%s18630_s1 + $0x3b0] sm:$0xff]  }
  0x39   :  { %12815 = vmatprep.subr.bf16.mxu0 %v14226_v10  ;;  %12836 = vmatpush3.bf16.msra.mxu1 %v14225_v9  ;;  %v14274_v9 = vld [vmem:[%s18630_s1 + $0x368] sm:$0xff]  }
  0x3a   :  { %12837 = vmatprep.subr.bf16.mxu1 %v14227_v11  ;;  %v14275_v10 = vld [vmem:[%s18630_s1 + $0x3e8] sm:$0xff]  }
  0x3b   :  { %v14276_v11 = vld [vmem:[%s18630_s1 + $0x328] sm:$0xff]  }
  0x3c   :  { %12816 = vmatpush3.bf16.msra.mxu0 %v14228_v12  ;;  %v14277_v12 = vld [vmem:[%s18630_s1 + $0x3a8] sm:$0xff]  }
  0x3d   :  { %12817 = vmatprep.subr.bf16.mxu0 %v14230_v14  ;;  %12838 = vmatpush3.bf16.msra.mxu1 %v14229_v13  ;;  %v14278_v13 = vld [vmem:[%s18630_s1 + $0x360] sm:$0xff]  }
  0x3e   :  { %12839 = vmatprep.subr.bf16.mxu1 %v14231_v15  ;;  %v14279_v14 = vld [vmem:[%s18630_s1 + $0x3e0] sm:$0xff]  }
  0x3f   :  { %v14280_v15 = vld [vmem:[%s18630_s1 + $0x320] sm:$0xff]  }
  0x40   :  { %12818 = vmatpush3.bf16.msra.mxu0 %v14232_v16  ;;  %v14281_v16 = vld [vmem:[%s18630_s1 + $0x3a0] sm:$0xff]  }
  0x41   :  { %12847 = vmatprep.subr.bf16.mxu0 %v14234_v19  ;;  %12840 = vmatpush3.bf16.msra.mxu1 %v14233_v17  ;;  %v14282_v17 = vld [vmem:[%s18630_s1 + $0x358] sm:$0xff]  }
  0x42   :  { %12869 = vmatprep.subr.bf16.mxu1 %v14235_v20  ;;  %v14284_v19 = vld [vmem:[%s18630_s1 + $0x318] sm:$0xff]  }
  0x43   :  { %9272 = vmatmul.mubr.bf16.vlgmr.msra.gmra.mxu0 %v2133_v18  ;;  %v14283_v18 = vld [vmem:[%s18630_s1 + $0x3d8] sm:$0xff]  }
  0x44   :  { %12848 = vmatpush3.bf16.msra.mxu0 %v14236_v21  ;;  %9312 = vmatmul.mubr.bf16.vlgmr.msra.gmra.mxu1 %v2149_v23  ;;  %v14285_v20 = vld [vmem:[%s18630_s1 + $0x398] sm:$0xff]   ;;  %v14286_v21 = vld [vmem:[%s18630_s1 + $0x350] sm:$0xff]  }
  0x45   :  { %12849 = vmatprep.subr.bf16.mxu0 %v14238_v24  ;;  %12870 = vmatpush3.bf16.msra.mxu1 %v14237_v22  ;;  %v14287_v22 = vld [vmem:[%s18630_s1 + $0x3d0] sm:$0xff]  }
  0x46   :  { %12871 = vmatprep.subr.bf16.mxu1 %v14239_v25  ;;  %9351 = vmatprep.mubr.bf16.mxu0 %v2189_v56  ;;  %v14288_v23 = vld [vmem:[%s18630_s1 + $0x310] sm:$0xff]   ;;  %v14290_v25 = vld [vmem:[%s18630_s1 + $0x348] sm:$0xff]  }
  0x47   :  { %9391 = vmatprep.mubr.bf16.mxu1 %v2199_v60  ;;  %v14289_v24 = vld [vmem:[%s18630_s1 + $0x390] sm:$0xff]   ;;  %v14323_v60 = vld [vmem:[%s18630_s1 + $0x448] sm:$0xff]  }
  0x48   :  { %12850 = vmatpush3.bf16.msra.mxu0 %v14240_v26  ;;  %v14291_v26 = vld [vmem:[%s18630_s1 + $0x3c8] sm:$0xff]   ;;  %v14319_v56 = vld [vmem:[%s18630_s1 + $0x450] sm:$0xff]  }
  0x49   :  { %12851 = vmatprep.subr.bf16.mxu0 %v14242_v28  ;;  %12872 = vmatpush3.bf16.msra.mxu1 %v14241_v27  ;;  %v14292_v27 = vld [vmem:[%s18630_s1 + $0x308] sm:$0xff]  }
  0x4a   :  { %12873 = vmatprep.subr.bf16.mxu1 %v14243_v29  ;;  %v14293_v28 = vld [vmem:[%s18630_s1 + $0x388] sm:$0xff]   ;;  %v14294_v29 = vld [vmem:[%s18630_s1 + $0x340] sm:$0xff]  }
  0x4c   :  { %12852 = vmatpush3.bf16.msra.mxu0 %v14244_v30  ;;  %v14295_v30 = vld [vmem:[%s18630_s1 + $0x3c0] sm:$0xff]  }
  0x4d   :  { %12853 = vmatprep.subr.bf16.mxu0 %v14246_v32  ;;  %12874 = vmatpush3.bf16.msra.mxu1 %v14245_v31  ;;  %v14296_v31 = vld [vmem:[%s18630_s1 + $0x300] sm:$0xff]  }
  0x4e   :  { %12875 = vmatprep.subr.bf16.mxu1 %v14247_v33  ;;  %v14297_v32 = vld [vmem:[%s18630_s1 + $0x380] sm:$0xff]   ;;  %v2182_v33 = vrot.slane %v15550_v53, %v15358_v41  ;;  %v14316_v53 = vld [vmem:[%s18630_s1 + $0x4d8] sm:$0xff]  }
  0x50   :  { %12854 = vmatpush3.bf16.msra.mxu0 %v14248_v34  ;;  %v14299_v34 = vld [vmem:[%s18630_s1 + $0x478] sm:$0xff]  }
  0x51   :  { %12855 = vmatprep.subr.bf16.mxu0 %v14250_v36  ;;  %12876 = vmatpush3.bf16.msra.mxu1 %v14249_v35  ;;  %v14300_v35 = vld [vmem:[%s18630_s1 + $0x4f8] sm:$0xff]  }
  0x52   :  { %12877 = vmatprep.subr.bf16.mxu1 %v14251_v37  ;;  %v14301_v36 = vld [vmem:[%s18630_s1 + $0x438] sm:$0xff]  }
  0x53   :  { %v14302_v37 = vld [vmem:[%s18630_s1 + $0x4b8] sm:$0xff]  }
  0x54   :  { %12856 = vmatpush3.bf16.msra.mxu0 %v14252_v38  ;;  %v2198_v38 = vcombine.high %v2182_v33, %v2182_v33 }
  0x55   :  { %12857 = vmatprep.subr.bf16.mxu0 %v14254_v40  ;;  %12878 = vmatpush3.bf16.msra.mxu1 %v14253_v39  ;;  %v14303_v39 = vld [vmem:[%s18630_s1 + $0x470] sm:$0xff]  }
  0x56   :  { %12879 = vmatprep.subr.bf16.mxu1 %v14255_v42  ;;  %v14304_v40 = vld [vmem:[%s18630_s1 + $0x4f0] sm:$0xff]  }
  0x57   :  { %v14305_v42 = vld [vmem:[%s18630_s1 + $0x430] sm:$0xff]  }
  0x58   :  { %12858 = vmatpush3.bf16.msra.mxu0 %v14256_v43  ;;  %v14306_v43 = vld [vmem:[%s18630_s1 + $0x4b0] sm:$0xff]  }
  0x59   :  { %12859 = vmatprep.subr.bf16.mxu0 %v14258_v45  ;;  %12880 = vmatpush3.bf16.msra.mxu1 %v14257_v44  ;;  %v14307_v44 = vld [vmem:[%s18630_s1 + $0x468] sm:$0xff]  }
  0x5a   :  { %12881 = vmatprep.subr.bf16.mxu1 %v14259_v47  ;;  %v14308_v45 = vld [vmem:[%s18630_s1 + $0x4e8] sm:$0xff]  }
  0x5b   :  { %v14310_v47 = vld [vmem:[%s18630_s1 + $0x4a8] sm:$0xff]  }
  0x5c   :  { %12860 = vmatpush3.bf16.msra.mxu0 %v14260_v50  ;;  %v14313_v50 = vld [vmem:[%s18630_s1 + $0x420] sm:$0xff]  }
  0x5d   :  { %12861 = vmatprep.subr.bf16.mxu0 %v14262_v54  ;;  %12882 = vmatpush3.bf16.msra.mxu1 %v14261_v51  ;;  %v14314_v51 = vld [vmem:[%s18630_s1 + $0x4a0] sm:$0xff]   ;;  %v14317_v54 = vld [vmem:[%s18630_s1 + $0x418] sm:$0xff]  }
  0x5e   :  { %12883 = vmatprep.subr.bf16.mxu1 %v14263_v55  ;;  %v14318_v55 = vld [vmem:[%s18630_s1 + $0x498] sm:$0xff]  }
  0x60   :  { %12862 = vmatpush3.bf16.msra.mxu0 %v14264_v58  ;;  %v14321_v58 = vld [vmem:[%s18630_s1 + $0x410] sm:$0xff]  }
  0x61   :  { %12891 = vmatprep.subr.bf16.mxu0 %v14266_v62  ;;  %12884 = vmatpush3.bf16.msra.mxu1 %v14265_v59  ;;  %v14322_v59 = vld [vmem:[%s18630_s1 + $0x490] sm:$0xff]   ;;  %v14324_v62 = vld [vmem:[%s18630_s1 + $0x4c8] sm:$0xff]  }
  0x62   :  { %12913 = vmatprep.subr.bf16.mxu1 %v14267_v63 }
  0x63   :  { %9352 = vmatmul.mubr.bf16.vlgmr.msra.gmra.mxu0 %v2175_v61  ;;  %v18_v61 = vld [vmem:[%s18629_s0 + $0x10] sm:$0xff] }
  0x64   :  { %12892 = vmatpush3.bf16.msra.mxu0 %v14268_v1  ;;  %9431 = vmatprep.mubr.bf16.mxu0 %v2196_v0  ;;  %v2208_v63 = vrot.slane %v18_v61, %v15358_v41  ;;  %v2201_v0 = vcombine.high %v18_v61, %v18_v61  ;;  %v14325_v1 = vld [vmem:[%s18630_s1 + $0x408] sm:$0xff]  }
  0x65   :  { %9392 = vmatmul.mubr.bf16.vlgmr.msra.gmra.mxu1 %v2197_v3  ;;  %12893 = vmatprep.subr.bf16.mxu0 %v14270_v4  ;;  %v14374_v61 = vld [vmem:[%s18630_s1 + $0x628] sm:$0xff]  }
  0x66   :  { %12914 = vmatpush3.bf16.msra.mxu1 %v14269_v2  ;;  %9471 = vmatprep.mubr.bf16.mxu1 %v2200_v6  ;;  %v14326_v2 = vld [vmem:[%s18630_s1 + $0x488] sm:$0xff]   ;;  %v2216_v3 = vcombine.high %v2208_v63, %v2208_v63  ;;  %v15756_v4 = vrot.slane %v2201_v0, %v15358_v41  ;;  %v14328_v6 = vld [vmem:[%s18630_s1 + $0x4c0] sm:$0xff]  }
  0x67   :  { %12915 = vmatprep.subr.bf16.mxu1 %v14271_v5  ;;  %v14327_v5 = vld [vmem:[%s18630_s1 + $0x440] sm:$0xff]  }
  0x68   :  { %12894 = vmatpush3.bf16.msra.mxu0 %v14272_v7  ;;  %v2238_v7 = vrot.slane %v2216_v3, %v15358_v41  ;;  %v14377_v0 = vld [vmem:[%s18630_s1 + $0x6e0] sm:$0xff]   ;;  %v14380_v3 = vld [vmem:[%s18630_s1 + $0x658] sm:$0xff]  }
  0x69   :  { %12895 = vmatprep.subr.bf16.mxu0 %v14274_v9  ;;  %v14329_v9 = vld [vmem:[%s18630_s1 + $0x400] sm:$0xff]  }
  0x6a   :  { %12916 = vmatpush3.bf16.msra.mxu1 %v14273_v8  ;;  %v2217_v8 = vcombine.high %v15756_v4, %v15756_v4 }
  0x6b   :  { %12917 = vmatprep.subr.bf16.mxu1 %v14275_v10  ;;  %v14330_v10 = vld [vmem:[%s18630_s1 + $0x480] sm:$0xff]  }
  0x6c   :  { %12896 = vmatpush3.bf16.msra.mxu0 %v14276_v11  ;;  %v2248_v11 = vcombine.high %v2238_v7, %v2238_v7 }
  0x6d   :  { %12897 = vmatprep.subr.bf16.mxu0 %v14278_v13  ;;  %v14331_v13 = vld [vmem:[%s18630_s1 + $0x578] sm:$0xff]  }
  0x6e   :  { %12918 = vmatpush3.bf16.msra.mxu1 %v14277_v12  ;;  %v2224_v12 = vrot.slane %v2208_v63, %v15358_v41  ;;  %v14376_v63 = vld [vmem:[%s18630_s1 + $0x660] sm:$0xff]  }
  0x6f   :  { %12919 = vmatprep.subr.bf16.mxu1 %v14279_v14  ;;  %v14332_v14 = vld [vmem:[%s18630_s1 + $0x5f8] sm:$0xff]  }
  0x70   :  { %12898 = vmatpush3.bf16.msra.mxu0 %v14280_v15  ;;  %v2245_v15 = vrot.slane %v2217_v8, %v15358_v41  ;;  %v14385_v8 = vld [vmem:[%s18630_s1 + $0x6d0] sm:$0xff]  }
  0x71   :  { %12899 = vmatprep.subr.bf16.mxu0 %v14282_v17  ;;  %v14334_v17 = vld [vmem:[%s18630_s1 + $0x5b8] sm:$0xff]  }
  0x72   :  { %12920 = vmatpush3.bf16.msra.mxu1 %v14281_v16  ;;  %v14333_v16 = vld [vmem:[%s18630_s1 + $0x538] sm:$0xff]  }
  0x73   :  { %12921 = vmatprep.subr.bf16.mxu1 %v14283_v18  ;;  %v2246_v18 = vcombine.high %v2224_v12, %v2224_v12 }
  0x74   :  { %12900 = vmatpush3.bf16.msra.mxu0 %v14284_v19  ;;  %v14335_v19 = vld [vmem:[%s18630_s1 + $0x570] sm:$0xff]  }
  0x75   :  { %12901 = vmatprep.subr.bf16.mxu0 %v14286_v21  ;;  %v2249_v21 = vcombine.high %v2245_v15, %v2245_v15 }
  0x76   :  { %12922 = vmatpush3.bf16.msra.mxu1 %v14285_v20  ;;  %v14336_v20 = vld [vmem:[%s18630_s1 + $0x5f0] sm:$0xff]  }
  0x77   :  { %12923 = vmatprep.subr.bf16.mxu1 %v14287_v22  ;;  %v14337_v22 = vld [vmem:[%s18630_s1 + $0x530] sm:$0xff]  }
  0x78   :  { %12902 = vmatpush3.bf16.msra.mxu0 %v14288_v23  ;;  %v14338_v23 = vld [vmem:[%s18630_s1 + $0x5b0] sm:$0xff]  }
  0x79   :  { %12903 = vmatprep.subr.bf16.mxu0 %v14290_v25  ;;  %v14340_v25 = vld [vmem:[%s18630_s1 + $0x5e8] sm:$0xff]  }
  0x7a   :  { %12924 = vmatpush3.bf16.msra.mxu1 %v14289_v24  ;;  %v14339_v24 = vld [vmem:[%s18630_s1 + $0x568] sm:$0xff]  }
  0x7b   :  { %12925 = vmatprep.subr.bf16.mxu1 %v14291_v26  ;;  %v14341_v26 = vld [vmem:[%s18630_s1 + $0x528] sm:$0xff]  }
  0x7c   :  { %12904 = vmatpush3.bf16.msra.mxu0 %v14292_v27  ;;  %v14342_v27 = vld [vmem:[%s18630_s1 + $0x5a8] sm:$0xff]  }
  0x7d   :  { %12905 = vmatprep.subr.bf16.mxu0 %v14294_v29  ;;  %v14344_v29 = vld [vmem:[%s18630_s1 + $0x5e0] sm:$0xff]  }
  0x7e   :  { %12926 = vmatpush3.bf16.msra.mxu1 %v14293_v28  ;;  %v14343_v28 = vld [vmem:[%s18630_s1 + $0x560] sm:$0xff]  }
  0x7f   :  { %12927 = vmatprep.subr.bf16.mxu1 %v14295_v30  ;;  %v14345_v30 = vld [vmem:[%s18630_s1 + $0x520] sm:$0xff]  }
  0x80   :  { %12906 = vmatpush3.bf16.msra.mxu0 %v14296_v31  ;;  %v14346_v31 = vld [vmem:[%s18630_s1 + $0x5a0] sm:$0xff]  }
  0x81   :  { %12935 = vmatprep.subr.bf16.mxu0 %v14299_v34  ;;  %v14349_v34 = vld [vmem:[%s18630_s1 + $0x518] sm:$0xff]  }
  0x82   :  { %12928 = vmatpush3.bf16.msra.mxu1 %v14297_v32  ;;  %v14347_v32 = vld [vmem:[%s18630_s1 + $0x558] sm:$0xff]  }
  0x83   :  { %9432 = vmatmul.mubr.bf16.vlgmr.msra.gmra.mxu0 %v2182_v33  ;;  %12957 = vmatprep.subr.bf16.mxu1 %v14300_v35  ;;  %v14348_v33 = vld [vmem:[%s18630_s1 + $0x5d8] sm:$0xff]  }
  0x84   :  { %12936 = vmatpush3.bf16.msra.mxu0 %v14301_v36  ;;  %9511 = vmatprep.mubr.bf16.mxu0 %v2238_v7  ;;  %v14350_v35 = vld [vmem:[%s18630_s1 + $0x598] sm:$0xff]   ;;  %v14351_v36 = vld [vmem:[%s18630_s1 + $0x550] sm:$0xff]  }
  0x85   :  { %9472 = vmatmul.mubr.bf16.vlgmr.msra.gmra.mxu1 %v2198_v38  ;;  %12937 = vmatprep.subr.bf16.mxu0 %v14303_v39  ;;  %v14353_v38 = vld [vmem:[%s18630_s1 + $0x510] sm:$0xff]  }
  0x86   :  { %12958 = vmatpush3.bf16.msra.mxu1 %v14302_v37  ;;  %9551 = vmatprep.mubr.bf16.mxu1 %v2248_v11  ;;  %v14352_v37 = vld [vmem:[%s18630_s1 + $0x5d0] sm:$0xff]   ;;  %v14388_v11 = vld [vmem:[%s18630_s1 + $0x648] sm:$0xff]  }
  0x87   :  { %12959 = vmatprep.subr.bf16.mxu1 %v14304_v40  ;;  %v14354_v39 = vld [vmem:[%s18630_s1 + $0x590] sm:$0xff]   ;;  %v14355_v40 = vld [vmem:[%s18630_s1 + $0x548] sm:$0xff]  }
  0x88   :  { %12938 = vmatpush3.bf16.msra.mxu0 %v14305_v42  ;;  %v14356_v42 = vld [vmem:[%s18630_s1 + $0x5c8] sm:$0xff]   ;;  %v14384_v7 = vld [vmem:[%s18630_s1 + $0x650] sm:$0xff]  }
  0x89   :  { %12939 = vmatprep.subr.bf16.mxu0 %v14307_v44  ;;  %v14358_v44 = vld [vmem:[%s18630_s1 + $0x588] sm:$0xff]  }
  0x8a   :  { %12960 = vmatpush3.bf16.msra.mxu1 %v14306_v43  ;;  %v14357_v43 = vld [vmem:[%s18630_s1 + $0x508] sm:$0xff]  }
  0x8b   :  { %12961 = vmatprep.subr.bf16.mxu1 %v14308_v45  ;;  %v14359_v45 = vld [vmem:[%s18630_s1 + $0x540] sm:$0xff]  }
  0x8c   :  { %12940 = vmatpush3.bf16.msra.mxu0 %v14309_v46  ;;  %v14360_v46 = vld [vmem:[%s18630_s1 + $0x5c0] sm:$0xff]  }
  0x8d   :  { %12941 = vmatprep.subr.bf16.mxu0 %v14311_v48  ;;  %v14362_v48 = vld [vmem:[%s18630_s1 + $0x580] sm:$0xff]  }
  0x8e   :  { %12962 = vmatpush3.bf16.msra.mxu1 %v14310_v47  ;;  %v14361_v47 = vld [vmem:[%s18630_s1 + $0x500] sm:$0xff]  }
  0x8f   :  { %12963 = vmatprep.subr.bf16.mxu1 %v14312_v49  ;;  %v2231_v49 = vrot.slane %v15756_v4, %v15358_v41  ;;  %v14381_v4 = vld [vmem:[%s18630_s1 + $0x6d8] sm:$0xff]  }
  0x90   :  { %12942 = vmatpush3.bf16.msra.mxu0 %v14313_v50  ;;  %v14364_v50 = vld [vmem:[%s18630_s1 + $0x678] sm:$0xff]  }
  0x91   :  { %12943 = vmatprep.subr.bf16.mxu0 %v14315_v52  ;;  %v14366_v52 = vld [vmem:[%s18630_s1 + $0x638] sm:$0xff]  }
  0x92   :  { %12964 = vmatpush3.bf16.msra.mxu1 %v14314_v51  ;;  %v14365_v51 = vld [vmem:[%s18630_s1 + $0x6f8] sm:$0xff]  }
  0x93   :  { %12965 = vmatprep.subr.bf16.mxu1 %v14316_v53  ;;  %v14367_v53 = vld [vmem:[%s18630_s1 + $0x6b8] sm:$0xff]  }
  0x94   :  { %12944 = vmatpush3.bf16.msra.mxu0 %v14317_v54  ;;  %v2247_v54 = vcombine.high %v2231_v49, %v2231_v49 }
  0x95   :  { %12945 = vmatprep.subr.bf16.mxu0 %v14319_v56  ;;  %v14369_v56 = vld [vmem:[%s18630_s1 + $0x6f0] sm:$0xff]  }
  0x96   :  { %12966 = vmatpush3.bf16.msra.mxu1 %v14318_v55  ;;  %v14368_v55 = vld [vmem:[%s18630_s1 + $0x670] sm:$0xff]  }
  0x97   :  { %12967 = vmatprep.subr.bf16.mxu1 %v14320_v57  ;;  %v14370_v57 = vld [vmem:[%s18630_s1 + $0x630] sm:$0xff]  }
  0x98   :  { %12946 = vmatpush3.bf16.msra.mxu0 %v14321_v58  ;;  %v14371_v58 = vld [vmem:[%s18630_s1 + $0x6b0] sm:$0xff]  }
  0x99   :  { %12947 = vmatprep.subr.bf16.mxu0 %v14323_v60  ;;  %v14373_v60 = vld [vmem:[%s18630_s1 + $0x6e8] sm:$0xff]  }
  0x9a   :  { %12968 = vmatpush3.bf16.msra.mxu1 %v14322_v59  ;;  %v14372_v59 = vld [vmem:[%s18630_s1 + $0x668] sm:$0xff]  }
  0x9b   :  { %12969 = vmatprep.subr.bf16.mxu1 %v14324_v62  ;;  %v14375_v62 = vld [vmem:[%s18630_s1 + $0x6a8] sm:$0xff]  }
  0x9c   :  { %12948 = vmatpush3.bf16.msra.mxu0 %v14325_v1  ;;  %v14378_v1 = vld [vmem:[%s18630_s1 + $0x620] sm:$0xff]  }
  0x9d   :  { %12949 = vmatprep.subr.bf16.mxu0 %v14327_v5  ;;  %v14382_v5 = vld [vmem:[%s18630_s1 + $0x618] sm:$0xff]  }
  0x9e   :  { %12970 = vmatpush3.bf16.msra.mxu1 %v14326_v2  ;;  %v14379_v2 = vld [vmem:[%s18630_s1 + $0x6a0] sm:$0xff]  }
  0x9f   :  { %12971 = vmatprep.subr.bf16.mxu1 %v14328_v6  ;;  %v14383_v6 = vld [vmem:[%s18630_s1 + $0x698] sm:$0xff]  }
  0xa0   :  { %12950 = vmatpush3.bf16.msra.mxu0 %v14329_v9  ;;  %v14386_v9 = vld [vmem:[%s18630_s1 + $0x610] sm:$0xff]  }
  0xa1   :  { %12979 = vmatprep.subr.bf16.mxu0 %v14331_v13  ;;  %v14389_v13 = vld [vmem:[%s18630_s1 + $0x6c8] sm:$0xff]  }
  0xa2   :  { %12972 = vmatpush3.bf16.msra.mxu1 %v14330_v10  ;;  %v14387_v10 = vld [vmem:[%s18630_s1 + $0x690] sm:$0xff]  }
  0xa3   :  { %9512 = vmatmul.mubr.bf16.vlgmr.msra.gmra.mxu0 %v2224_v12  ;;  %13001 = vmatprep.subr.bf16.mxu1 %v14332_v14  ;;  %v19_v12 = vld [vmem:[%s18629_s0 + $0x18] sm:$0xff] }
  0xa4   :  { %12980 = vmatpush3.bf16.msra.mxu0 %v14333_v16  ;;  %9591 = vmatprep.mubr.bf16.mxu0 %v2245_v15  ;;  %v2257_v14 = vrot.slane %v19_v12, %v15358_v41  ;;  %v2250_v15 = vcombine.high %v19_v12, %v19_v12  ;;  %v14390_v16 = vld [vmem:[%s18630_s1 + $0x608] sm:$0xff]   ;;  %v14427_v12 = vld [vmem:[%s18630_s1 + $0x780] sm:$0xff]  }
  0xa5   :  { %9552 = vmatmul.mubr.bf16.vlgmr.msra.gmra.mxu1 %v2246_v18  ;;  %12981 = vmatprep.subr.bf16.mxu0 %v14335_v19 }
  0xa6   :  { %13002 = vmatpush3.bf16.msra.mxu1 %v14334_v17  ;;  %9631 = vmatprep.mubr.bf16.mxu1 %v2249_v21  ;;  %v14392_v17 = vld [vmem:[%s18630_s1 + $0x640] sm:$0xff]   ;;  %v2265_v18 = vcombine.high %v2257_v14, %v2257_v14  ;;  %v15962_v19 = vrot.slane %v2250_v15, %v15358_v41  ;;  %v14430_v15 = vld [vmem:[%s18630_s1 + $0x8f8] sm:$0xff]  }
  0xa7   :  { %13003 = vmatprep.subr.bf16.mxu1 %v14336_v20  ;;  %v14391_v20 = vld [vmem:[%s18630_s1 + $0x688] sm:$0xff]   ;;  %v14393_v21 = vld [vmem:[%s18630_s1 + $0x6c0] sm:$0xff]  }
  0xa8   :  { %12982 = vmatpush3.bf16.msra.mxu0 %v14337_v22  ;;  %v14394_v22 = vld [vmem:[%s18630_s1 + $0x600] sm:$0xff]  }
  0xa9   :  { %12983 = vmatprep.subr.bf16.mxu0 %v14339_v24  ;;  %v2266_v24 = vcombine.high %v15962_v19, %v15962_v19 }
  0xaa   :  { %13004 = vmatpush3.bf16.msra.mxu1 %v14338_v23  ;;  %v2287_v23 = vrot.slane %v2265_v18, %v15358_v41 }
  0xab   :  { %13005 = vmatprep.subr.bf16.mxu1 %v14340_v25  ;;  %v14395_v25 = vld [vmem:[%s18630_s1 + $0x680] sm:$0xff]  }
  0xac   :  { %12984 = vmatpush3.bf16.msra.mxu0 %v14341_v26  ;;  %v2297_v26 = vcombine.high %v2287_v23, %v2287_v23 }
  0xad   :  { %12985 = vmatprep.subr.bf16.mxu0 %v14343_v28  ;;  %v14396_v28 = vld [vmem:[%s18630_s1 + $0x778] sm:$0xff]  }
  0xae   :  { %13006 = vmatpush3.bf16.msra.mxu1 %v14342_v27  ;;  %v2273_v27 = vrot.slane %v2257_v14, %v15358_v41  ;;  %v14429_v14 = vld [vmem:[%s18630_s1 + $0x878] sm:$0xff]  }
  0xaf   :  { %13007 = vmatprep.subr.bf16.mxu1 %v14344_v29  ;;  %v14397_v29 = vld [vmem:[%s18630_s1 + $0x7f8] sm:$0xff]  }
  0xb0   :  { %12986 = vmatpush3.bf16.msra.mxu0 %v14345_v30  ;;  %v2294_v30 = vrot.slane %v2266_v24, %v15358_v41 }
  0xb1   :  { %12987 = vmatprep.subr.bf16.mxu0 %v14347_v32  ;;  %v14399_v32 = vld [vmem:[%s18630_s1 + $0x7b8] sm:$0xff]  }
  0xb2   :  { %13008 = vmatpush3.bf16.msra.mxu1 %v14346_v31  ;;  %v14398_v31 = vld [vmem:[%s18630_s1 + $0x738] sm:$0xff]  }
  0xb3   :  { %13009 = vmatprep.subr.bf16.mxu1 %v14348_v33  ;;  %v2295_v33 = vcombine.high %v2273_v27, %v2273_v27 }
  0xb4   :  { %12988 = vmatpush3.bf16.msra.mxu0 %v14349_v34  ;;  %v14400_v34 = vld [vmem:[%s18630_s1 + $0x770] sm:$0xff]  }
  0xb5   :  { %12989 = vmatprep.subr.bf16.mxu0 %v14351_v36  ;;  %v2298_v36 = vcombine.high %v2294_v30, %v2294_v30 }
  0xb6   :  { %13010 = vmatpush3.bf16.msra.mxu1 %v14350_v35  ;;  %v14401_v35 = vld [vmem:[%s18630_s1 + $0x7f0] sm:$0xff]  }
  0xb7   :  { %13011 = vmatprep.subr.bf16.mxu1 %v14352_v37 }
  0xb8   :  { %12990 = vmatpush3.bf16.msra.mxu0 %v14353_v38  ;;  %v11734_v38 = vld [vmem:[%s18631_s2] ss:$0 sm:$0xff] }
  0xb9   :  { %12991 = vmatprep.subr.bf16.mxu0 %v14355_v40  ;;  %v14403_v40 = vld [vmem:[%s18630_s1 + $0x7b0] sm:$0xff]  }
  0xba   :  { %13012 = vmatpush3.bf16.msra.mxu1 %v14354_v39  ;;  %v14402_v39 = vld [vmem:[%s18630_s1 + $0x730] sm:$0xff]  }
  0xbb   :  { %13013 = vmatprep.subr.bf16.mxu1 %v14356_v42 }
  0xbc   :  { %12992 = vmatpush3.bf16.msra.mxu0 %v14357_v43 }
  0xbd   :  { %12993 = vmatprep.subr.bf16.mxu0 %v14359_v45 }
  0xbe   :  { %13014 = vmatpush3.bf16.msra.mxu1 %v14358_v44  ;;  %v14404_v44 = vld [vmem:[%s18630_s1 + $0x768] sm:$0xff]  }
  0xbf   :  { %13015 = vmatprep.subr.bf16.mxu1 %v14360_v46  ;;  %v14405_v46 = vld [vmem:[%s18630_s1 + $0x7e8] sm:$0xff]  }
  0xc0   :  { %12994 = vmatpush3.bf16.msra.mxu0 %v14361_v47 }
  0xc1   :  { %13023 = vmatprep.subr.bf16.mxu0 %v14364_v50 }
  0xc2   :  { %13016 = vmatpush3.bf16.msra.mxu1 %v14362_v48 }
  0xc3   :  { %9592 = vmatmul.mubr.bf16.vlgmr.msra.gmra.mxu0 %v2231_v49  ;;  %13045 = vmatprep.subr.bf16.mxu1 %v14365_v51  ;;  %v14406_v49 = vld [vmem:[%s18630_s1 + $0x728] sm:$0xff]  }
  0xc4   :  { %13024 = vmatpush3.bf16.msra.mxu0 %v14366_v52  ;;  %9671 = vmatprep.mubr.bf16.mxu0 %v2287_v23  ;;  %v14407_v52 = vld [vmem:[%s18630_s1 + $0x7a8] sm:$0xff]   ;;  %v14436_v23 = vld [vmem:[%s18630_s1 + $0x8b0] sm:$0xff]  }
  0xc5   :  { %9632 = vmatmul.mubr.bf16.vlgmr.msra.gmra.mxu1 %v2247_v54  ;;  %13025 = vmatprep.subr.bf16.mxu0 %v14368_v55  ;;  %v14408_v55 = vld [vmem:[%s18630_s1 + $0x760] sm:$0xff]  }
  0xc6   :  { %13046 = vmatpush3.bf16.msra.mxu1 %v14367_v53  ;;  %9711 = vmatprep.mubr.bf16.mxu1 %v2297_v26  ;;  %v14437_v26 = vld [vmem:[%s18630_s1 + $0x868] sm:$0xff]  }
  0xc7   :  { %13047 = vmatprep.subr.bf16.mxu1 %v14369_v56 }
  0xc8   :  { %13026 = vmatpush3.bf16.msra.mxu0 %v14370_v57  ;;  %v14409_v57 = vld [vmem:[%s18630_s1 + $0x7e0] sm:$0xff]  }
  0xc9   :  { %13027 = vmatprep.subr.bf16.mxu0 %v14372_v59  ;;  %v14410_v59 = vld [vmem:[%s18630_s1 + $0x720] sm:$0xff]  }
  0xca   :  { %13048 = vmatpush3.bf16.msra.mxu1 %v14371_v58 }
  0xcb   :  { %13049 = vmatprep.subr.bf16.mxu1 %v14373_v60  ;;  %v14411_v60 = vld [vmem:[%s18630_s1 + $0x7a0] sm:$0xff]  }
  0xcc   :  { %13028 = vmatpush3.bf16.msra.mxu0 %v14374_v61  ;;  %v14412_v61 = vld [vmem:[%s18630_s1 + $0x758] sm:$0xff]  }
  0xcd   :  { %13029 = vmatprep.subr.bf16.mxu0 %v14376_v63  ;;  %v14414_v63 = vld [vmem:[%s18630_s1 + $0x718] sm:$0xff]  }
  0xce   :  { %13050 = vmatpush3.bf16.msra.mxu1 %v14375_v62  ;;  %v14413_v62 = vld [vmem:[%s18630_s1 + $0x7d8] sm:$0xff]  }
  0xcf   :  { %13051 = vmatprep.subr.bf16.mxu1 %v14377_v0  ;;  %v14415_v0 = vld [vmem:[%s18630_s1 + $0x798] sm:$0xff]  }
  0xd0   :  { %13030 = vmatpush3.bf16.msra.mxu0 %v14378_v1  ;;  %v14416_v1 = vld [vmem:[%s18630_s1 + $0x750] sm:$0xff]  }
  0xd1   :  { %13031 = vmatprep.subr.bf16.mxu0 %v14380_v3  ;;  %v14418_v3 = vld [vmem:[%s18630_s1 + $0x710] sm:$0xff]  }
  0xd2   :  { %13052 = vmatpush3.bf16.msra.mxu1 %v14379_v2  ;;  %v14417_v2 = vld [vmem:[%s18630_s1 + $0x7d0] sm:$0xff]  }
  0xd3   :  { %13053 = vmatprep.subr.bf16.mxu1 %v14381_v4  ;;  %v14419_v4 = vld [vmem:[%s18630_s1 + $0x790] sm:$0xff]  }
  0xd4   :  { %13032 = vmatpush3.bf16.msra.mxu0 %v14382_v5  ;;  %v14420_v5 = vld [vmem:[%s18630_s1 + $0x748] sm:$0xff]  }
  0xd5   :  { %13033 = vmatprep.subr.bf16.mxu0 %v14384_v7  ;;  %v14422_v7 = vld [vmem:[%s18630_s1 + $0x708] sm:$0xff]  }
  0xd6   :  { %13054 = vmatpush3.bf16.msra.mxu1 %v14383_v6  ;;  %v14421_v6 = vld [vmem:[%s18630_s1 + $0x7c8] sm:$0xff]  }
  0xd7   :  { %13055 = vmatprep.subr.bf16.mxu1 %v14385_v8  ;;  %v14423_v8 = vld [vmem:[%s18630_s1 + $0x788] sm:$0xff]  }
  0xd8   :  { %13034 = vmatpush3.bf16.msra.mxu0 %v14386_v9  ;;  %v14424_v9 = vld [vmem:[%s18630_s1 + $0x740] sm:$0xff]  }
  0xd9   :  { %13035 = vmatprep.subr.bf16.mxu0 %v14388_v11  ;;  %v14426_v11 = vld [vmem:[%s18630_s1 + $0x700] sm:$0xff]  }
  0xda   :  { %13056 = vmatpush3.bf16.msra.mxu1 %v14387_v10  ;;  %v14425_v10 = vld [vmem:[%s18630_s1 + $0x7c0] sm:$0xff]  }
  0xdb   :  { %13057 = vmatprep.subr.bf16.mxu1 %v14389_v13  ;;  %v2280_v13 = vrot.slane %v15962_v19, %v15358_v41  ;;  %v14433_v19 = vld [vmem:[%s18630_s1 + $0x870] sm:$0xff]  }
  0xdc   :  { %13036 = vmatpush3.bf16.msra.mxu0 %v14390_v16  ;;  %v14431_v16 = vld [vmem:[%s18630_s1 + $0x838] sm:$0xff]  }
  0xdd   :  { %13037 = vmatprep.subr.bf16.mxu0 %v14392_v17  ;;  %v14432_v17 = vld [vmem:[%s18630_s1 + $0x8b8] sm:$0xff]   ;;  %v2296_v18 = vcombine.high %v2280_v13, %v2280_v13 }
  0xde   :  { %13058 = vmatpush3.bf16.msra.mxu1 %v14391_v20  ;;  %v14434_v20 = vld [vmem:[%s18630_s1 + $0x8f0] sm:$0xff]  }
  0xdf   :  { %13059 = vmatprep.subr.bf16.mxu1 %v14393_v21 }
  0xe0   :  { %13038 = vmatpush3.bf16.msra.mxu0 %v14394_v22  ;;  %v14435_v22 = vld [vmem:[%s18630_s1 + $0x830] sm:$0xff]  }
  0xe1   :  { %13067 = vmatprep.subr.bf16.mxu0 %v14396_v28  ;;  %v14438_v28 = vld [vmem:[%s18630_s1 + $0x8e8] sm:$0xff]  }
  0xe2   :  { %13060 = vmatpush3.bf16.msra.mxu1 %v14395_v25 }
  0xe3   :  { %v12775_v37 = vpop.f32.mrf.mxu0  ;;  %9672 = vmatmul.mubr.bf16.vlgmr.msra.gmra.mxu0 %v2273_v27  ;;  %13089 = vmatprep.subr.bf16.mxu1 %v14397_v29 }
  0xe4   :  { %13068 = vmatpush3.bf16.msra.mxu0 %v14398_v31  ;;  %9751 = vmatprep.mubr.bf16.mxu0 %v2294_v30  ;;  %v12797_v42 = vpop.f32.mrf.mxu1  ;;  %v14439_v31 = vld [vmem:[%s18630_s1 + $0x828] sm:$0xff]  }
  0xe5   :  { %9712 = vmatmul.mubr.bf16.vlgmr.msra.gmra.mxu1 %v2295_v33  ;;  %v12776_v43 = vpop.f32.mrf.mxu0  ;;  %13069 = vmatprep.subr.bf16.mxu0 %v14400_v34  ;;  %v14440_v34 = vld [vmem:[%s18630_s1 + $0x8a8] sm:$0xff]  }
  0xe6   :  { %13090 = vmatpush3.bf16.msra.mxu1 %v14399_v32  ;;  %v12777_v45 = vadd.f32 %v12776_v43, %v12775_v37  ;;  %9791 = vmatprep.mubr.bf16.mxu1 %v2298_v36  ;;  %v12798_v47 = vpop.f32.mrf.mxu1  ;;  %v14441_v37 = vld [vmem:[%s18630_s1 + $0x860] sm:$0xff]  }
  0xe7   :  { %v12778_v48 = vpop.f32.mrf.mxu0  ;;  %13091 = vmatprep.subr.bf16.mxu1 %v14401_v35  ;;  %v12799_v51 = vadd.f32 %v12798_v47, %v12797_v42  ;;  %v14443_v42 = vld [vmem:[%s18630_s1 + $0x820] sm:$0xff]   ;;  %v14448_v47 = vld [vmem:[%s18630_s1 + $0x898] sm:$0xff]  }
  0xe8   :  { %v9194_v50 = vadd.f32 %v12777_v45, %v11734_v38  ;;  %13070 = vmatpush3.bf16.msra.mxu0 %v14402_v39  ;;  %v12800_v53 = vpop.f32.mrf.mxu1  ;;  %v14442_v39 = vld [vmem:[%s18630_s1 + $0x8e0] sm:$0xff]   ;;  %v14446_v45 = vld [vmem:[%s18630_s1 + $0x8d8] sm:$0xff]   ;;  %v14449_v48 = vld [vmem:[%s18630_s1 + $0x850] sm:$0xff]  }
  0xe9   :  { %v12779_v54 = vpop.f32.mrf.mxu0  ;;  %13071 = vmatprep.subr.bf16.mxu0 %v14404_v44  ;;  %v14444_v43 = vld [vmem:[%s18630_s1 + $0x8a0] sm:$0xff]   ;;  %v14445_v44 = vld [vmem:[%s18630_s1 + $0x858] sm:$0xff]   ;;  %v14454_v53 = vld [vmem:[%s18630_s1 + $0x8c8] sm:$0xff]  }
  0xea   :  { %v16023_v56 = vadd.f32 %v12799_v51, %v9194_v50  ;;  %13092 = vmatpush3.bf16.msra.mxu1 %v14403_v40  ;;  %v12801_v58 = vpop.f32.mrf.mxu1  ;;  %v14451_v50 = vld [vmem:[%s18630_s1 + $0x810] sm:$0xff]   ;;  %v20_v54 = vld [vmem:[%s18629_s0 + $0x20] sm:$0xff] }
  0xeb   :  { %13093 = vmatprep.subr.bf16.mxu1 %v14405_v46  ;;  %v14447_v46 = vld [vmem:[%s18630_s1 + $0x818] sm:$0xff]   ;;  %v14452_v51 = vld [vmem:[%s18630_s1 + $0x890] sm:$0xff]   ;;  %v14456_v58 = vld [vmem:[%s18630_s1 + $0x888] sm:$0xff]  }
  0xec   :  { %13072 = vmatpush3.bf16.msra.mxu0 %v14406_v49  ;;  %v14450_v49 = vld [vmem:[%s18630_s1 + $0x8d0] sm:$0xff]  }
  0xed   :  { %13073 = vmatprep.subr.bf16.mxu0 %v14408_v55  ;;  %v14455_v55 = vld [vmem:[%s18630_s1 + $0x808] sm:$0xff]  }
  0xee   :  { %13094 = vmatpush3.bf16.msra.mxu1 %v14407_v52  ;;  %v14453_v52 = vld [vmem:[%s18630_s1 + $0x848] sm:$0xff]  }
  0xef   :  { %13095 = vmatprep.subr.bf16.mxu1 %v14409_v57  ;;  %v2299_v57 = vcombine.high %v20_v54, %v20_v54 }
  0xf0   :  { %13074 = vmatpush3.bf16.msra.mxu0 %v14410_v59  ;;  %v14457_v59 = vld [vmem:[%s18630_s1 + $0x840] sm:$0xff]  }
  0xf1   :  { %13075 = vmatprep.subr.bf16.mxu0 %v14412_v61  ;;  %v16179_v61 = vrot.slane %v2299_v57, %v15358_v41  ;;  %v14497_v57 = vld [vmem:[%s18630_s1 + $0xab8] sm:$0xff]  }
  0xf2   :  { %13096 = vmatpush3.bf16.msra.mxu1 %v14411_v60 }
  0xf3   :  { %13097 = vmatprep.subr.bf16.mxu1 %v14413_v62  ;;  %v14458_v62 = vld [vmem:[%s18630_s1 + $0x8c0] sm:$0xff]  }
  0xf4   :  { %13076 = vmatpush3.bf16.msra.mxu0 %v14414_v63  ;;  %v14459_v63 = vld [vmem:[%s18630_s1 + $0x800] sm:$0xff]  }
  0xf5   :  { %13077 = vmatprep.subr.bf16.mxu0 %v14416_v1  ;;  %v2315_v1 = vcombine.high %v16179_v61, %v16179_v61 }
  0xf6   :  { %13098 = vmatpush3.bf16.msra.mxu1 %v14415_v0 }
  0xf7   :  { %13099 = vmatprep.subr.bf16.mxu1 %v14417_v2  ;;  %v14460_v2 = vld [vmem:[%s18630_s1 + $0x880] sm:$0xff]  }
  0xf8   :  { %13078 = vmatpush3.bf16.msra.mxu0 %v14418_v3 }
  0xf9   :  { %13079 = vmatprep.subr.bf16.mxu0 %v14420_v5  ;;  %v14461_v5 = vld [vmem:[%s18630_s1 + $0x978] sm:$0xff]  }
  0xfa   :  { %13100 = vmatpush3.bf16.msra.mxu1 %v14419_v4 }
  0xfb   :  { %13101 = vmatprep.subr.bf16.mxu1 %v14421_v6  ;;  %v14462_v6 = vld [vmem:[%s18630_s1 + $0x9f8] sm:$0xff]  }
  0xfc   :  { %13080 = vmatpush3.bf16.msra.mxu0 %v14422_v7  ;;  %v2343_v7 = vrot.slane %v2315_v1, %v15358_v41 }
  0xfd   :  { %13081 = vmatprep.subr.bf16.mxu0 %v14424_v9  ;;  %v14464_v9 = vld [vmem:[%s18630_s1 + $0x9b8] sm:$0xff]  }
  0xfe   :  { %13102 = vmatpush3.bf16.msra.mxu1 %v14423_v8  ;;  %v14463_v8 = vld [vmem:[%s18630_s1 + $0x938] sm:$0xff]  }
  0xff   :  { %13103 = vmatprep.subr.bf16.mxu1 %v14425_v10 }
 0x100   :  { %13082 = vmatpush3.bf16.msra.mxu0 %v14426_v11  ;;  %v14465_v11 = vld [vmem:[%s18630_s1 + $0x970] sm:$0xff]  }
 0x101   :  { %13111 = vmatprep.subr.bf16.mxu0 %v14429_v14 }
 0x102   :  { %13104 = vmatpush3.bf16.msra.mxu1 %v14427_v12  ;;  %v14466_v12 = vld [vmem:[%s18630_s1 + $0x9f0] sm:$0xff]  }
 0x103   :  { %v12819_v21 = vpop.f32.mrf.mxu0  ;;  %9752 = vmatmul.mubr.bf16.vlgmr.msra.gmra.mxu0 %v2280_v13  ;;  %13133 = vmatprep.subr.bf16.mxu1 %v14430_v15  ;;  %v2347_v13 = vcombine.high %v2343_v7, %v2343_v7  ;;  %v14467_v15 = vld [vmem:[%s18630_s1 + $0x930] sm:$0xff]  }
 0x104   :  { %13112 = vmatpush3.bf16.msra.mxu0 %v14431_v16  ;;  %v12841_v24 = vpop.f32.mrf.mxu1  ;;  %v14468_v16 = vld [vmem:[%s18630_s1 + $0x9b0] sm:$0xff]  }
 0x105   :  { %9792 = vmatmul.mubr.bf16.vlgmr.msra.gmra.mxu1 %v2296_v18  ;;  %v12820_v25 = vpop.f32.mrf.mxu0  ;;  %13113 = vmatprep.subr.bf16.mxu0 %v14433_v19  ;;  %v14469_v19 = vld [vmem:[%s18630_s1 + $0x968] sm:$0xff]  }
 0x106   :  { %13134 = vmatpush3.bf16.msra.mxu1 %v14432_v17  ;;  %v12821_v27 = vadd.f32 %v12820_v25, %v12819_v21  ;;  %v12842_v29 = vpop.f32.mrf.mxu1  ;;  %v14470_v21 = vld [vmem:[%s18630_s1 + $0x9e8] sm:$0xff]  }
 0x107   :  { %v12822_v30 = vpop.f32.mrf.mxu0  ;;  %13135 = vmatprep.subr.bf16.mxu1 %v14434_v20  ;;  %v12843_v33 = vadd.f32 %v12842_v29, %v12841_v24  ;;  %v14471_v24 = vld [vmem:[%s18630_s1 + $0x928] sm:$0xff]  }
 0x108   :  { %v9274_v32 = vadd.f32 %v12821_v27, %v16023_v56  ;;  %13114 = vmatpush3.bf16.msra.mxu0 %v14435_v22  ;;  %v12844_v35 = vpop.f32.mrf.mxu1  ;;  %v2306_v56 = vrot.slane %v20_v54, %v15358_v41  ;;  %v14472_v27 = vld [vmem:[%s18630_s1 + $0x9a8] sm:$0xff]   ;;  %v14473_v30 = vld [vmem:[%s18630_s1 + $0x960] sm:$0xff]   ;;  %v14494_v54 = vld [vmem:[%s18630_s1 + $0xa78] sm:$0xff]  }
 0x109   :  { %v12823_v36 = vpop.f32.mrf.mxu0  ;;  %13115 = vmatprep.subr.bf16.mxu0 %v14437_v26  ;;  %v14476_v35 = vld [vmem:[%s18630_s1 + $0x9a0] sm:$0xff]  }
 0x10a   :  { %v16124_v38 = vadd.f32 %v12843_v33, %v9274_v32  ;;  %13136 = vmatpush3.bf16.msra.mxu1 %v14436_v23  ;;  %v12845_v40 = vpop.f32.mrf.mxu1  ;;  %v2314_v60 = vcombine.high %v2306_v56, %v2306_v56  ;;  %v2322_v4 = vrot.slane %v2306_v56, %v15358_v41  ;;  %v14474_v32 = vld [vmem:[%s18630_s1 + $0x9e0] sm:$0xff]   ;;  %v14477_v36 = vld [vmem:[%s18630_s1 + $0x958] sm:$0xff]  }
 0x10b   :  { %13137 = vmatprep.subr.bf16.mxu1 %v14438_v28  ;;  %v14481_v40 = vld [vmem:[%s18630_s1 + $0x950] sm:$0xff]   ;;  %v14496_v56 = vld [vmem:[%s18630_s1 + $0xa38] sm:$0xff]  }
 0x10c   :  { %13116 = vmatpush3.bf16.msra.mxu0 %v14439_v31  ;;  %v2336_v0 = vrot.slane %v2314_v60, %v15358_v41  ;;  %v2344_v10 = vcombine.high %v2322_v4, %v2322_v4  ;;  %v14499_v60 = vld [vmem:[%s18630_s1 + $0xaf0] sm:$0xff]  }
 0x10d   :  { %13117 = vmatprep.subr.bf16.mxu0 %v14441_v37  ;;  %v14478_v37 = vld [vmem:[%s18630_s1 + $0x9d8] sm:$0xff]  }
 0x10e   :  { %13138 = vmatpush3.bf16.msra.mxu1 %v14440_v34  ;;  %9831 = vmatprep.mubr.bf16.mxu0 %v2336_v0  ;;  %v2346_v3 = vcombine.high %v2336_v0, %v2336_v0  ;;  %v14475_v34 = vld [vmem:[%s18630_s1 + $0x920] sm:$0xff]  }
 0x10f   :  { %13139 = vmatprep.subr.bf16.mxu1 %v14442_v39  ;;  %v14480_v39 = vld [vmem:[%s18630_s1 + $0x998] sm:$0xff]  }
 0x110   :  { %13118 = vmatpush3.bf16.msra.mxu0 %v14443_v42  ;;  %9871 = vmatprep.mubr.bf16.mxu1 %v2346_v3  ;;  %v14482_v42 = vld [vmem:[%s18630_s1 + $0x9d0] sm:$0xff]  }
 0x111   :  { %13119 = vmatprep.subr.bf16.mxu0 %v14445_v44  ;;  %v14484_v44 = vld [vmem:[%s18630_s1 + $0x990] sm:$0xff]  }
 0x112   :  { %13140 = vmatpush3.bf16.msra.mxu1 %v14444_v43  ;;  %v14483_v43 = vld [vmem:[%s18630_s1 + $0x910] sm:$0xff]  }
 0x113   :  { %13141 = vmatprep.subr.bf16.mxu1 %v14446_v45  ;;  %v14485_v45 = vld [vmem:[%s18630_s1 + $0x948] sm:$0xff]  }
 0x114   :  { %13120 = vmatpush3.bf16.msra.mxu0 %v14447_v46  ;;  %v14486_v46 = vld [vmem:[%s18630_s1 + $0x9c8] sm:$0xff]  }
 0x115   :  { %13121 = vmatprep.subr.bf16.mxu0 %v14449_v48  ;;  %v14488_v48 = vld [vmem:[%s18630_s1 + $0x988] sm:$0xff]  }
 0x116   :  { %13142 = vmatpush3.bf16.msra.mxu1 %v14448_v47  ;;  %v14487_v47 = vld [vmem:[%s18630_s1 + $0x908] sm:$0xff]  }
 0x117   :  { %13143 = vmatprep.subr.bf16.mxu1 %v14450_v49  ;;  %v14489_v49 = vld [vmem:[%s18630_s1 + $0x940] sm:$0xff]  }
 0x118   :  { %13122 = vmatpush3.bf16.msra.mxu0 %v14451_v50  ;;  %v14490_v50 = vld [vmem:[%s18630_s1 + $0x9c0] sm:$0xff]  }
 0x119   :  { %13123 = vmatprep.subr.bf16.mxu0 %v14453_v52  ;;  %v14492_v52 = vld [vmem:[%s18630_s1 + $0x980] sm:$0xff]  }
 0x11a   :  { %13144 = vmatpush3.bf16.msra.mxu1 %v14452_v51  ;;  %v14491_v51 = vld [vmem:[%s18630_s1 + $0x900] sm:$0xff]  }
 0x11b   :  { %13145 = vmatprep.subr.bf16.mxu1 %v14454_v53  ;;  %v2329_v53 = vrot.slane %v16179_v61, %v15358_v41 }
 0x11c   :  { %13124 = vmatpush3.bf16.msra.mxu0 %v14455_v55  ;;  %v14495_v55 = vld [vmem:[%s18630_s1 + $0xaf8] sm:$0xff]  }
 0x11d   :  { %13125 = vmatprep.subr.bf16.mxu0 %v14457_v59  ;;  %v14498_v59 = vld [vmem:[%s18630_s1 + $0xa70] sm:$0xff]  }
 0x11e   :  { %13146 = vmatpush3.bf16.msra.mxu1 %v14456_v58  ;;  %v2345_v58 = vcombine.high %v2329_v53, %v2329_v53 }
 0x11f   :  { %13147 = vmatprep.subr.bf16.mxu1 %v14458_v62  ;;  %v14500_v62 = vld [vmem:[%s18630_s1 + $0xa30] sm:$0xff]  }
 0x120   :  { %13126 = vmatpush3.bf16.msra.mxu0 %v14459_v63  ;;  %v14501_v63 = vld [vmem:[%s18630_s1 + $0xab0] sm:$0xff]  }
 0x121   :  { %13155 = vmatprep.subr.bf16.mxu0 %v14461_v5 }
 0x122   :  { %13148 = vmatpush3.bf16.msra.mxu1 %v14460_v2  ;;  %v14502_v2 = vld [vmem:[%s18630_s1 + $0xa68] sm:$0xff]  }
 0x123   :  { %v12863_v14 = vpop.f32.mrf.mxu0  ;;  %9832 = vmatmul.mubr.bf16.vlgmr.msra.gmra.mxu0 %v2322_v4  ;;  %13177 = vmatprep.subr.bf16.mxu1 %v14462_v6  ;;  %v14503_v4 = vld [vmem:[%s18630_s1 + $0xae8] sm:$0xff]  }
 0x124   :  { %13156 = vmatpush3.bf16.msra.mxu0 %v14463_v8  ;;  %9911 = vmatprep.mubr.bf16.mxu0 %v2343_v7  ;;  %v14504_v7 = vld [vmem:[%s18630_s1 + $0xa28] sm:$0xff]  }
 0x125   :  { %v12885_v17 = vpop.f32.mrf.mxu1  ;;  %9872 = vmatmul.mubr.bf16.vlgmr.msra.gmra.mxu1 %v2344_v10  ;;  %v12864_v18 = vpop.f32.mrf.mxu0  ;;  %13157 = vmatprep.subr.bf16.mxu0 %v14465_v11  ;;  %v14505_v10 = vld [vmem:[%s18630_s1 + $0xaa8] sm:$0xff]  }
 0x126   :  { %13178 = vmatpush3.bf16.msra.mxu1 %v14464_v9  ;;  %v12865_v20 = vadd.f32 %v12864_v18, %v12863_v14  ;;  %9951 = vmatprep.mubr.bf16.mxu1 %v2347_v13  ;;  %v14506_v13 = vld [vmem:[%s18630_s1 + $0xa60] sm:$0xff]  }
 0x127   :  { %v12886_v22 = vpop.f32.mrf.mxu1  ;;  %v12866_v23 = vpop.f32.mrf.mxu0  ;;  %13179 = vmatprep.subr.bf16.mxu1 %v14466_v12  ;;  %v14509_v18 = vld [vmem:[%s18630_s1 + $0xaa0] sm:$0xff]  }
 0x128   :  { %v9354_v25 = vadd.f32 %v12865_v20, %v16124_v38  ;;  %v12887_v26 = vadd.f32 %v12886_v22, %v12885_v17  ;;  %13158 = vmatpush3.bf16.msra.mxu0 %v14467_v15  ;;  %v14479_v38 = vld [vmem:[%s18630_s1 + $0x918] sm:$0xff]   ;;  %v14507_v15 = vld [vmem:[%s18630_s1 + $0xae0] sm:$0xff]   ;;  %v14514_v23 = vld [vmem:[%s18630_s1 + $0xa50] sm:$0xff]  }
 0x129   :  { %v12888_v28 = vpop.f32.mrf.mxu1  ;;  %v12867_v29 = vpop.f32.mrf.mxu0  ;;  %13159 = vmatprep.subr.bf16.mxu0 %v14469_v19  ;;  %v14508_v17 = vld [vmem:[%s18630_s1 + $0xa20] sm:$0xff]   ;;  %v14510_v19 = vld [vmem:[%s18630_s1 + $0xa58] sm:$0xff]  }
 0x12a   :  { %v16235_v31 = vadd.f32 %v12887_v26, %v9354_v25  ;;  %13180 = vmatpush3.bf16.msra.mxu1 %v14468_v16  ;;  %v14511_v20 = vld [vmem:[%s18630_s1 + $0xad8] sm:$0xff]   ;;  %v14516_v25 = vld [vmem:[%s18630_s1 + $0xa10] sm:$0xff]   ;;  %v14519_v28 = vld [vmem:[%s18630_s1 + $0xac8] sm:$0xff]  }
 0x12b   :  { %v12889_v33 = vpop.f32.mrf.mxu1  ;;  %13181 = vmatprep.subr.bf16.mxu1 %v14470_v21  ;;  %v14512_v21 = vld [vmem:[%s18630_s1 + $0xa18] sm:$0xff]   ;;  %v14517_v26 = vld [vmem:[%s18630_s1 + $0xa90] sm:$0xff]   ;;  %v14520_v29 = vld [vmem:[%s18630_s1 + $0xa08] sm:$0xff]  }
 0x12c   :  { %13160 = vmatpush3.bf16.msra.mxu0 %v14471_v24  ;;  %v14513_v22 = vld [vmem:[%s18630_s1 + $0xa98] sm:$0xff]   ;;  %v14515_v24 = vld [vmem:[%s18630_s1 + $0xad0] sm:$0xff]  }
 0x12d   :  { %13161 = vmatprep.subr.bf16.mxu0 %v14473_v30  ;;  %v21_v30 = vld [vmem:[%s18629_s0 + $0x28] sm:$0xff] }
 0x12e   :  { %13182 = vmatpush3.bf16.msra.mxu1 %v14472_v27  ;;  %v14518_v27 = vld [vmem:[%s18630_s1 + $0xa48] sm:$0xff]   ;;  %v2348_v33 = vcombine.high %v21_v30, %v21_v30 }
 0x12f   :  { %13183 = vmatprep.subr.bf16.mxu1 %v14474_v32  ;;  %v2355_v32 = vrot.slane %v21_v30, %v15358_v41  ;;  %v14560_v30 = vld [vmem:[%s18630_s1 + $0xcf8] sm:$0xff]  }
 0x130   :  { %13162 = vmatpush3.bf16.msra.mxu0 %v14475_v34  ;;  %v14522_v34 = vld [vmem:[%s18630_s1 + $0xa40] sm:$0xff]  }
 0x131   :  { %13163 = vmatprep.subr.bf16.mxu0 %v14477_v36  ;;  %v2363_v36 = vcombine.high %v2355_v32, %v2355_v32 }
 0x132   :  { %13184 = vmatpush3.bf16.msra.mxu1 %v14476_v35  ;;  %v14523_v35 = vld [vmem:[%s18630_s1 + $0xac0] sm:$0xff]  }
 0x133   :  { %13185 = vmatprep.subr.bf16.mxu1 %v14478_v37  ;;  %v16394_v37 = vrot.slane %v2348_v33, %v15358_v41 }
 0x134   :  { %13164 = vmatpush3.bf16.msra.mxu0 %v14479_v38  ;;  %v14524_v38 = vld [vmem:[%s18630_s1 + $0xa00] sm:$0xff]  }
 0x135   :  { %13165 = vmatprep.subr.bf16.mxu0 %v14481_v40  ;;  %v2385_v40 = vrot.slane %v2363_v36, %v15358_v41 }
 0x136   :  { %13186 = vmatpush3.bf16.msra.mxu1 %v14480_v39  ;;  %v14525_v39 = vld [vmem:[%s18630_s1 + $0xa80] sm:$0xff]  }
 0x137   :  { %13187 = vmatprep.subr.bf16.mxu1 %v14482_v42  ;;  %v2364_v42 = vcombine.high %v16394_v37, %v16394_v37 }
 0x138   :  { %13166 = vmatpush3.bf16.msra.mxu0 %v14483_v43  ;;  %v2371_v43 = vrot.slane %v2355_v32, %v15358_v41  ;;  %v14562_v32 = vld [vmem:[%s18630_s1 + $0xcb8] sm:$0xff]  }
 0x139   :  { %13167 = vmatprep.subr.bf16.mxu0 %v14485_v45  ;;  %v2395_v45 = vcombine.high %v2385_v40, %v2385_v40 }
 0x13a   :  { %13188 = vmatpush3.bf16.msra.mxu1 %v14484_v44  ;;  %v14526_v44 = vld [vmem:[%s18630_s1 + $0xb78] sm:$0xff]  }
 0x13b   :  { %13189 = vmatprep.subr.bf16.mxu1 %v14486_v46  ;;  %v14527_v46 = vld [vmem:[%s18630_s1 + $0xbf8] sm:$0xff]  }
 0x13c   :  { %13168 = vmatpush3.bf16.msra.mxu0 %v14487_v47  ;;  %v2392_v47 = vrot.slane %v2364_v42, %v15358_v41  ;;  %v14567_v42 = vld [vmem:[%s18630_s1 + $0xc68] sm:$0xff]  }
 0x13d   :  { %13169 = vmatprep.subr.bf16.mxu0 %v14489_v49  ;;  %v14529_v49 = vld [vmem:[%s18630_s1 + $0xbb8] sm:$0xff]  }
 0x13e   :  { %13190 = vmatpush3.bf16.msra.mxu1 %v14488_v48  ;;  %v14528_v48 = vld [vmem:[%s18630_s1 + $0xb38] sm:$0xff]  }
 0x13f   :  { %13191 = vmatprep.subr.bf16.mxu1 %v14490_v50  ;;  %v2393_v50 = vcombine.high %v2371_v43, %v2371_v43 }
 0x140   :  { %13170 = vmatpush3.bf16.msra.mxu0 %v14491_v51  ;;  %v14530_v51 = vld [vmem:[%s18630_s1 + $0xb70] sm:$0xff]  }
 0x141   :  { %13199 = vmatprep.subr.bf16.mxu0 %v14494_v54 }
 0x142   :  { %13192 = vmatpush3.bf16.msra.mxu1 %v14492_v52  ;;  %v14531_v52 = vld [vmem:[%s18630_s1 + $0xbf0] sm:$0xff]  }
 0x143   :  { %v12907_v61 = vpop.f32.mrf.mxu0  ;;  %9912 = vmatmul.mubr.bf16.vlgmr.msra.gmra.mxu0 %v2329_v53  ;;  %13221 = vmatprep.subr.bf16.mxu1 %v14495_v55  ;;  %v2396_v53 = vcombine.high %v2392_v47, %v2392_v47  ;;  %v14532_v55 = vld [vmem:[%s18630_s1 + $0xb30] sm:$0xff]  }
 0x144   :  { %13200 = vmatpush3.bf16.msra.mxu0 %v14496_v56  ;;  %9991 = vmatprep.mubr.bf16.mxu0 %v2385_v40  ;;  %v14533_v56 = vld [vmem:[%s18630_s1 + $0xbb0] sm:$0xff]  }
 0x145   :  { %v12929_v0 = vpop.f32.mrf.mxu1  ;;  %9952 = vmatmul.mubr.bf16.vlgmr.msra.gmra.mxu1 %v2345_v58  ;;  %v12908_v1 = vpop.f32.mrf.mxu0  ;;  %13201 = vmatprep.subr.bf16.mxu0 %v14498_v59  ;;  %v14534_v59 = vld [vmem:[%s18630_s1 + $0xb68] sm:$0xff]  }
 0x146   :  { %13222 = vmatpush3.bf16.msra.mxu1 %v14497_v57  ;;  %v12909_v3 = vadd.f32 %v12908_v1, %v12907_v61  ;;  %10031 = vmatprep.mubr.bf16.mxu1 %v2395_v45  ;;  %v14535_v61 = vld [vmem:[%s18630_s1 + $0xbe8] sm:$0xff]  }
 0x147   :  { %v12930_v5 = vpop.f32.mrf.mxu1  ;;  %v12910_v6 = vpop.f32.mrf.mxu0  ;;  %13223 = vmatprep.subr.bf16.mxu1 %v14499_v60 }
 0x148   :  { %v9434_v8 = vadd.f32 %v12909_v3, %v16235_v31  ;;  %v12931_v9 = vadd.f32 %v12930_v5, %v12929_v0  ;;  %13202 = vmatpush3.bf16.msra.mxu0 %v14500_v62  ;;  %v14521_v31 = vld [vmem:[%s18630_s1 + $0xa88] sm:$0xff]   ;;  %v14538_v6 = vld [vmem:[%s18630_s1 + $0xb60] sm:$0xff]  }
 0x149   :  { %v12932_v11 = vpop.f32.mrf.mxu1  ;;  %v12911_v12 = vpop.f32.mrf.mxu0  ;;  %13203 = vmatprep.subr.bf16.mxu0 %v14502_v2  ;;  %v14536_v0 = vld [vmem:[%s18630_s1 + $0xb28] sm:$0xff]  }
 0x14a   :  { %v16336_v14 = vadd.f32 %v12931_v9, %v9434_v8  ;;  %13224 = vmatpush3.bf16.msra.mxu1 %v14501_v63  ;;  %v14537_v3 = vld [vmem:[%s18630_s1 + $0xba8] sm:$0xff]   ;;  %v14539_v8 = vld [vmem:[%s18630_s1 + $0xbe0] sm:$0xff]   ;;  %v14542_v12 = vld [vmem:[%s18630_s1 + $0xb58] sm:$0xff]  }
 0x14b   :  { %v12933_v16 = vpop.f32.mrf.mxu1  ;;  %13225 = vmatprep.subr.bf16.mxu1 %v14503_v4  ;;  %v14541_v11 = vld [vmem:[%s18630_s1 + $0xba0] sm:$0xff]  }
 0x14c   :  { %13204 = vmatpush3.bf16.msra.mxu0 %v14504_v7  ;;  %v14546_v16 = vld [vmem:[%s18630_s1 + $0xb50] sm:$0xff]  }
 0x14d   :  { %13205 = vmatprep.subr.bf16.mxu0 %v14506_v13  ;;  %v14543_v13 = vld [vmem:[%s18630_s1 + $0xbd8] sm:$0xff]  }
 0x14e   :  { %13226 = vmatpush3.bf16.msra.mxu1 %v14505_v10  ;;  %v14540_v10 = vld [vmem:[%s18630_s1 + $0xb20] sm:$0xff]  }
 0x14f   :  { %13227 = vmatprep.subr.bf16.mxu1 %v14507_v15  ;;  %v14545_v15 = vld [vmem:[%s18630_s1 + $0xb98] sm:$0xff]  }
 0x150   :  { %13206 = vmatpush3.bf16.msra.mxu0 %v14508_v17  ;;  %v14547_v17 = vld [vmem:[%s18630_s1 + $0xbd0] sm:$0xff]  }
 0x151   :  { %13207 = vmatprep.subr.bf16.mxu0 %v14510_v19  ;;  %v14549_v19 = vld [vmem:[%s18630_s1 + $0xb90] sm:$0xff]  }
 0x152   :  { %13228 = vmatpush3.bf16.msra.mxu1 %v14509_v18  ;;  %v14548_v18 = vld [vmem:[%s18630_s1 + $0xb10] sm:$0xff]  }
 0x153   :  { %13229 = vmatprep.subr.bf16.mxu1 %v14511_v20  ;;  %v14550_v20 = vld [vmem:[%s18630_s1 + $0xb48] sm:$0xff]  }
 0x154   :  { %13208 = vmatpush3.bf16.msra.mxu0 %v14512_v21  ;;  %v14551_v21 = vld [vmem:[%s18630_s1 + $0xbc8] sm:$0xff]  }
 0x155   :  { %13209 = vmatprep.subr.bf16.mxu0 %v14514_v23  ;;  %v14553_v23 = vld [vmem:[%s18630_s1 + $0xb88] sm:$0xff]  }
 0x156   :  { %13230 = vmatpush3.bf16.msra.mxu1 %v14513_v22  ;;  %v14552_v22 = vld [vmem:[%s18630_s1 + $0xb08] sm:$0xff]  }
 0x157   :  { %13231 = vmatprep.subr.bf16.mxu1 %v14515_v24  ;;  %v14554_v24 = vld [vmem:[%s18630_s1 + $0xb40] sm:$0xff]  }
 0x158   :  { %13210 = vmatpush3.bf16.msra.mxu0 %v14516_v25  ;;  %v14555_v25 = vld [vmem:[%s18630_s1 + $0xbc0] sm:$0xff]  }
 0x159   :  { %13211 = vmatprep.subr.bf16.mxu0 %v14518_v27  ;;  %v14557_v27 = vld [vmem:[%s18630_s1 + $0xb80] sm:$0xff]  }
 0x15a   :  { %13232 = vmatpush3.bf16.msra.mxu1 %v14517_v26  ;;  %v14556_v26 = vld [vmem:[%s18630_s1 + $0xb00] sm:$0xff]  }
 0x15b   :  { %13233 = vmatprep.subr.bf16.mxu1 %v14519_v28  ;;  %v2378_v28 = vrot.slane %v16394_v37, %v15358_v41  ;;  %v14565_v37 = vld [vmem:[%s18630_s1 + $0xc30] sm:$0xff]  }
 0x15c   :  { %13212 = vmatpush3.bf16.msra.mxu0 %v14520_v29  ;;  %v14559_v29 = vld [vmem:[%s18630_s1 + $0xc78] sm:$0xff]  }
 0x15d   :  { %13213 = vmatprep.subr.bf16.mxu0 %v14522_v34  ;;  %v2394_v33 = vcombine.high %v2378_v28, %v2378_v28  ;;  %v14563_v34 = vld [vmem:[%s18630_s1 + $0xc70] sm:$0xff]  }
 0x15e   :  { %13234 = vmatpush3.bf16.msra.mxu1 %v14521_v31  ;;  %v14561_v31 = vld [vmem:[%s18630_s1 + $0xc38] sm:$0xff]  }
 0x15f   :  { %13235 = vmatprep.subr.bf16.mxu1 %v14523_v35  ;;  %v14564_v35 = vld [vmem:[%s18630_s1 + $0xcf0] sm:$0xff]  }
 0x160   :  { %13214 = vmatpush3.bf16.msra.mxu0 %v14524_v38  ;;  %v14566_v38 = vld [vmem:[%s18630_s1 + $0xcb0] sm:$0xff]  }
 0x161   :  { %13243 = vmatprep.subr.bf16.mxu0 %v14526_v44  ;;  %v14568_v44 = vld [vmem:[%s18630_s1 + $0xce8] sm:$0xff]  }
 0x162   :  { %13236 = vmatpush3.bf16.msra.mxu1 %v14525_v39 }
 0x163   :  { %v12951_v54 = vpop.f32.mrf.mxu0  ;;  %9992 = vmatmul.mubr.bf16.vlgmr.msra.gmra.mxu0 %v2371_v43  ;;  %13265 = vmatprep.subr.bf16.mxu1 %v14527_v46 }
 0x164   :  { %13244 = vmatpush3.bf16.msra.mxu0 %v14528_v48  ;;  %10071 = vmatprep.mubr.bf16.mxu0 %v2392_v47  ;;  %v14569_v47 = vld [vmem:[%s18630_s1 + $0xc28] sm:$0xff]  }
 0x165   :  { %v12973_v57 = vpop.f32.mrf.mxu1  ;;  %10032 = vmatmul.mubr.bf16.vlgmr.msra.gmra.mxu1 %v2393_v50  ;;  %v12952_v58 = vpop.f32.mrf.mxu0  ;;  %13245 = vmatprep.subr.bf16.mxu0 %v14530_v51  ;;  %v14570_v50 = vld [vmem:[%s18630_s1 + $0xca8] sm:$0xff]  }
 0x166   :  { %13266 = vmatpush3.bf16.msra.mxu1 %v14529_v49  ;;  %v12953_v60 = vadd.f32 %v12952_v58, %v12951_v54  ;;  %10111 = vmatprep.mubr.bf16.mxu1 %v2396_v53  ;;  %v14571_v53 = vld [vmem:[%s18630_s1 + $0xc60] sm:$0xff]  }
 0x167   :  { %v12974_v62 = vpop.f32.mrf.mxu1  ;;  %v12954_v63 = vpop.f32.mrf.mxu0  ;;  %13267 = vmatprep.subr.bf16.mxu1 %v14531_v52  ;;  %v14574_v58 = vld [vmem:[%s18630_s1 + $0xca0] sm:$0xff]  }
 0x168   :  { %v9514_v1 = vadd.f32 %v12953_v60, %v16336_v14  ;;  %v12975_v2 = vadd.f32 %v12974_v62, %v12973_v57  ;;  %13246 = vmatpush3.bf16.msra.mxu0 %v14532_v55  ;;  %v14544_v14 = vld [vmem:[%s18630_s1 + $0xb18] sm:$0xff]   ;;  %v14572_v55 = vld [vmem:[%s18630_s1 + $0xce0] sm:$0xff]   ;;  %v14579_v63 = vld [vmem:[%s18630_s1 + $0xc50] sm:$0xff]  }
 0x169   :  { %v12976_v4 = vpop.f32.mrf.mxu1  ;;  %v12955_v5 = vpop.f32.mrf.mxu0  ;;  %13247 = vmatprep.subr.bf16.mxu0 %v14534_v59  ;;  %v14573_v57 = vld [vmem:[%s18630_s1 + $0xc20] sm:$0xff]   ;;  %v14575_v59 = vld [vmem:[%s18630_s1 + $0xc58] sm:$0xff]  }
 0x16a   :  { %v16447_v7 = vadd.f32 %v12975_v2, %v9514_v1  ;;  %13268 = vmatpush3.bf16.msra.mxu1 %v14533_v56  ;;  %v14576_v60 = vld [vmem:[%s18630_s1 + $0xcd8] sm:$0xff]   ;;  %v14581_v1 = vld [vmem:[%s18630_s1 + $0xc10] sm:$0xff]   ;;  %v14584_v4 = vld [vmem:[%s18630_s1 + $0xcc8] sm:$0xff]  }
 0x16b   :  { %v12977_v9 = vpop.f32.mrf.mxu1  ;;  %13269 = vmatprep.subr.bf16.mxu1 %v14535_v61  ;;  %v14577_v61 = vld [vmem:[%s18630_s1 + $0xc18] sm:$0xff]   ;;  %v14582_v2 = vld [vmem:[%s18630_s1 + $0xc90] sm:$0xff]   ;;  %v14585_v5 = vld [vmem:[%s18630_s1 + $0xc08] sm:$0xff]  }
 0x16c   :  { %13248 = vmatpush3.bf16.msra.mxu0 %v14536_v0  ;;  %v14578_v62 = vld [vmem:[%s18630_s1 + $0xc98] sm:$0xff]   ;;  %v14580_v0 = vld [vmem:[%s18630_s1 + $0xcd0] sm:$0xff]  }
 0x16d   :  { %13249 = vmatprep.subr.bf16.mxu0 %v14538_v6  ;;  %v22_v6 = vld [vmem:[%s18629_s0 + $0x30] sm:$0xff] }
 0x16e   :  { %13270 = vmatpush3.bf16.msra.mxu1 %v14537_v3  ;;  %v14583_v3 = vld [vmem:[%s18630_s1 + $0xc48] sm:$0xff]   ;;  %v2397_v9 = vcombine.high %v22_v6, %v22_v6 }
 0x16f   :  { %13271 = vmatprep.subr.bf16.mxu1 %v14539_v8  ;;  %v2404_v8 = vrot.slane %v22_v6, %v15358_v41  ;;  %v14625_v6 = vld [vmem:[%s18630_s1 + $0xef8] sm:$0xff]  }
 0x170   :  { %13250 = vmatpush3.bf16.msra.mxu0 %v14540_v10  ;;  %v14587_v10 = vld [vmem:[%s18630_s1 + $0xc40] sm:$0xff]  }
 0x171   :  { %13251 = vmatprep.subr.bf16.mxu0 %v14542_v12  ;;  %v2412_v12 = vcombine.high %v2404_v8, %v2404_v8 }
 0x172   :  { %13272 = vmatpush3.bf16.msra.mxu1 %v14541_v11  ;;  %v14588_v11 = vld [vmem:[%s18630_s1 + $0xcc0] sm:$0xff]  }
 0x173   :  { %13273 = vmatprep.subr.bf16.mxu1 %v14543_v13  ;;  %v16606_v13 = vrot.slane %v2397_v9, %v15358_v41 }
 0x174   :  { %13252 = vmatpush3.bf16.msra.mxu0 %v14544_v14  ;;  %v14589_v14 = vld [vmem:[%s18630_s1 + $0xc00] sm:$0xff]  }
 0x175   :  { %13253 = vmatprep.subr.bf16.mxu0 %v14546_v16  ;;  %v2434_v16 = vrot.slane %v2412_v12, %v15358_v41 }
 0x176   :  { %13274 = vmatpush3.bf16.msra.mxu1 %v14545_v15  ;;  %v14590_v15 = vld [vmem:[%s18630_s1 + $0xc80] sm:$0xff]  }
 0x177   :  { %13275 = vmatprep.subr.bf16.mxu1 %v14547_v17  ;;  %v2413_v17 = vcombine.high %v16606_v13, %v16606_v13 }
 0x178   :  { %13254 = vmatpush3.bf16.msra.mxu0 %v14548_v18  ;;  %v2420_v18 = vrot.slane %v2404_v8, %v15358_v41  ;;  %v14627_v8 = vld [vmem:[%s18630_s1 + $0xeb8] sm:$0xff]  }
 0x179   :  { %13255 = vmatprep.subr.bf16.mxu0 %v14550_v20  ;;  %v2444_v20 = vcombine.high %v2434_v16, %v2434_v16 }
 0x17a   :  { %13276 = vmatpush3.bf16.msra.mxu1 %v14549_v19  ;;  %v14591_v19 = vld [vmem:[%s18630_s1 + $0xd78] sm:$0xff]  }
 0x17b   :  { %13277 = vmatprep.subr.bf16.mxu1 %v14551_v21  ;;  %v14592_v21 = vld [vmem:[%s18630_s1 + $0xdf8] sm:$0xff]  }
 0x17c   :  { %13256 = vmatpush3.bf16.msra.mxu0 %v14552_v22  ;;  %v2441_v22 = vrot.slane %v2413_v17, %v15358_v41  ;;  %v14632_v17 = vld [vmem:[%s18630_s1 + $0xe68] sm:$0xff]  }
 0x17d   :  { %13257 = vmatprep.subr.bf16.mxu0 %v14554_v24  ;;  %v14594_v24 = vld [vmem:[%s18630_s1 + $0xdb8] sm:$0xff]  }
 0x17e   :  { %13278 = vmatpush3.bf16.msra.mxu1 %v14553_v23  ;;  %v14593_v23 = vld [vmem:[%s18630_s1 + $0xd38] sm:$0xff]  }
 0x17f   :  { %13279 = vmatprep.subr.bf16.mxu1 %v14555_v25  ;;  %v2442_v25 = vcombine.high %v2420_v18, %v2420_v18 }
 0x180   :  { %13258 = vmatpush3.bf16.msra.mxu0 %v14556_v26  ;;  %v14595_v26 = vld [vmem:[%s18630_s1 + $0xd70] sm:$0xff]  }
 0x181   :  { %13287 = vmatprep.subr.bf16.mxu0 %v14559_v29 }
 0x182   :  { %13280 = vmatpush3.bf16.msra.mxu1 %v14557_v27  ;;  %v14596_v27 = vld [vmem:[%s18630_s1 + $0xdf0] sm:$0xff]  }
 0x183   :  { %v12995_v36 = vpop.f32.mrf.mxu0  ;;  %10072 = vmatmul.mubr.bf16.vlgmr.msra.gmra.mxu0 %v2378_v28  ;;  %13309 = vmatprep.subr.bf16.mxu1 %v14560_v30  ;;  %v2445_v28 = vcombine.high %v2441_v22, %v2441_v22  ;;  %v14597_v30 = vld [vmem:[%s18630_s1 + $0xd30] sm:$0xff]  }
 0x184   :  { %13288 = vmatpush3.bf16.msra.mxu0 %v14561_v31  ;;  %10151 = vmatprep.mubr.bf16.mxu0 %v2434_v16  ;;  %v14598_v31 = vld [vmem:[%s18630_s1 + $0xdb0] sm:$0xff]  }
 0x185   :  { %v13017_v39 = vpop.f32.mrf.mxu1  ;;  %10112 = vmatmul.mubr.bf16.vlgmr.msra.gmra.mxu1 %v2394_v33  ;;  %v12996_v40 = vpop.f32.mrf.mxu0  ;;  %13289 = vmatprep.subr.bf16.mxu0 %v14563_v34  ;;  %v14599_v34 = vld [vmem:[%s18630_s1 + $0xd68] sm:$0xff]  }
 0x186   :  { %13310 = vmatpush3.bf16.msra.mxu1 %v14562_v32  ;;  %v12997_v43 = vadd.f32 %v12996_v40, %v12995_v36  ;;  %10191 = vmatprep.mubr.bf16.mxu1 %v2444_v20  ;;  %v14600_v36 = vld [vmem:[%s18630_s1 + $0xde8] sm:$0xff]  }
 0x187   :  { %v13018_v45 = vpop.f32.mrf.mxu1  ;;  %v12998_v46 = vpop.f32.mrf.mxu0  ;;  %13311 = vmatprep.subr.bf16.mxu1 %v14564_v35 }
 0x188   :  { %v9594_v48 = vadd.f32 %v12997_v43, %v16447_v7  ;;  %v13019_v49 = vadd.f32 %v13018_v45, %v13017_v39  ;;  %13290 = vmatpush3.bf16.msra.mxu0 %v14565_v37  ;;  %v14586_v7 = vld [vmem:[%s18630_s1 + $0xc88] sm:$0xff]   ;;  %v14603_v46 = vld [vmem:[%s18630_s1 + $0xd60] sm:$0xff]  }
 0x189   :  { %v13020_v51 = vpop.f32.mrf.mxu1  ;;  %v12999_v52 = vpop.f32.mrf.mxu0  ;;  %13291 = vmatprep.subr.bf16.mxu0 %v14567_v42  ;;  %v14601_v39 = vld [vmem:[%s18630_s1 + $0xd28] sm:$0xff]  }
 0x18a   :  { %v16548_v54 = vadd.f32 %v13019_v49, %v9594_v48  ;;  %13312 = vmatpush3.bf16.msra.mxu1 %v14566_v38  ;;  %v14602_v43 = vld [vmem:[%s18630_s1 + $0xda8] sm:$0xff]   ;;  %v14604_v48 = vld [vmem:[%s18630_s1 + $0xde0] sm:$0xff]   ;;  %v14607_v52 = vld [vmem:[%s18630_s1 + $0xd58] sm:$0xff]  }
 0x18b   :  { %v13021_v56 = vpop.f32.mrf.mxu1  ;;  %13313 = vmatprep.subr.bf16.mxu1 %v14568_v44  ;;  %v14606_v51 = vld [vmem:[%s18630_s1 + $0xda0] sm:$0xff]  }
 0x18c   :  { %13292 = vmatpush3.bf16.msra.mxu0 %v14569_v47  ;;  %v14611_v56 = vld [vmem:[%s18630_s1 + $0xd50] sm:$0xff]  }
 0x18d   :  { %13293 = vmatprep.subr.bf16.mxu0 %v14571_v53  ;;  %v14608_v53 = vld [vmem:[%s18630_s1 + $0xdd8] sm:$0xff]  }
 0x18e   :  { %13314 = vmatpush3.bf16.msra.mxu1 %v14570_v50  ;;  %v14605_v50 = vld [vmem:[%s18630_s1 + $0xd20] sm:$0xff]  }
 0x18f   :  { %13315 = vmatprep.subr.bf16.mxu1 %v14572_v55  ;;  %v14610_v55 = vld [vmem:[%s18630_s1 + $0xd98] sm:$0xff]  }
 0x190   :  { %13294 = vmatpush3.bf16.msra.mxu0 %v14573_v57  ;;  %v14612_v57 = vld [vmem:[%s18630_s1 + $0xdd0] sm:$0xff]  }
 0x191   :  { %13295 = vmatprep.subr.bf16.mxu0 %v14575_v59  ;;  %v14614_v59 = vld [vmem:[%s18630_s1 + $0xd90] sm:$0xff]  }
 0x192   :  { %13316 = vmatpush3.bf16.msra.mxu1 %v14574_v58  ;;  %v14613_v58 = vld [vmem:[%s18630_s1 + $0xd10] sm:$0xff]  }
 0x193   :  { %13317 = vmatprep.subr.bf16.mxu1 %v14576_v60  ;;  %v14615_v60 = vld [vmem:[%s18630_s1 + $0xd48] sm:$0xff]  }
 0x194   :  { %13296 = vmatpush3.bf16.msra.mxu0 %v14577_v61  ;;  %v14616_v61 = vld [vmem:[%s18630_s1 + $0xdc8] sm:$0xff]  }
 0x195   :  { %13297 = vmatprep.subr.bf16.mxu0 %v14579_v63  ;;  %v14618_v63 = vld [vmem:[%s18630_s1 + $0xd88] sm:$0xff]  }
 0x196   :  { %13318 = vmatpush3.bf16.msra.mxu1 %v14578_v62  ;;  %v14617_v62 = vld [vmem:[%s18630_s1 + $0xd08] sm:$0xff]  }
 0x197   :  { %13319 = vmatprep.subr.bf16.mxu1 %v14580_v0  ;;  %v14619_v0 = vld [vmem:[%s18630_s1 + $0xd40] sm:$0xff]  }
 0x198   :  { %13298 = vmatpush3.bf16.msra.mxu0 %v14581_v1  ;;  %v14620_v1 = vld [vmem:[%s18630_s1 + $0xdc0] sm:$0xff]  }
 0x199   :  { %13299 = vmatprep.subr.bf16.mxu0 %v14583_v3  ;;  %v14622_v3 = vld [vmem:[%s18630_s1 + $0xd80] sm:$0xff]  }
 0x19a   :  { %13320 = vmatpush3.bf16.msra.mxu1 %v14582_v2  ;;  %v14621_v2 = vld [vmem:[%s18630_s1 + $0xd00] sm:$0xff]  }
 0x19b   :  { %13321 = vmatprep.subr.bf16.mxu1 %v14584_v4  ;;  %v2427_v4 = vrot.slane %v16606_v13, %v15358_v41  ;;  %v14630_v13 = vld [vmem:[%s18630_s1 + $0xe30] sm:$0xff]  }
 0x19c   :  { %13300 = vmatpush3.bf16.msra.mxu0 %v14585_v5  ;;  %v14624_v5 = vld [vmem:[%s18630_s1 + $0xe78] sm:$0xff]  }
 0x19d   :  { %13301 = vmatprep.subr.bf16.mxu0 %v14587_v10  ;;  %v2443_v9 = vcombine.high %v2427_v4, %v2427_v4  ;;  %v14628_v10 = vld [vmem:[%s18630_s1 + $0xe70] sm:$0xff]  }
 0x19e   :  { %13322 = vmatpush3.bf16.msra.mxu1 %v14586_v7  ;;  %v14626_v7 = vld [vmem:[%s18630_s1 + $0xe38] sm:$0xff]  }
 0x19f   :  { %13323 = vmatprep.subr.bf16.mxu1 %v14588_v11  ;;  %v14629_v11 = vld [vmem:[%s18630_s1 + $0xef0] sm:$0xff]  }
 0x1a0   :  { %13302 = vmatpush3.bf16.msra.mxu0 %v14589_v14  ;;  %v14631_v14 = vld [vmem:[%s18630_s1 + $0xeb0] sm:$0xff]  }
 0x1a1   :  { %13331 = vmatprep.subr.bf16.mxu0 %v14591_v19  ;;  %v14633_v19 = vld [vmem:[%s18630_s1 + $0xee8] sm:$0xff]  }
 0x1a2   :  { %13324 = vmatpush3.bf16.msra.mxu1 %v14590_v15 }
 0x1a3   :  { %v13039_v29 = vpop.f32.mrf.mxu0  ;;  %10152 = vmatmul.mubr.bf16.vlgmr.msra.gmra.mxu0 %v2420_v18  ;;  %13353 = vmatprep.subr.bf16.mxu1 %v14592_v21 }
 0x1a4   :  { %13332 = vmatpush3.bf16.msra.mxu0 %v14593_v23  ;;  %10231 = vmatprep.mubr.bf16.mxu0 %v2441_v22  ;;  %v14634_v22 = vld [vmem:[%s18630_s1 + $0xe28] sm:$0xff]  }
 0x1a5   :  { %v13061_v32 = vpop.f32.mrf.mxu1  ;;  %10192 = vmatmul.mubr.bf16.vlgmr.msra.gmra.mxu1 %v2442_v25  ;;  %v13040_v33 = vpop.f32.mrf.mxu0  ;;  %13333 = vmatprep.subr.bf16.mxu0 %v14595_v26  ;;  %v14635_v25 = vld [vmem:[%s18630_s1 + $0xea8] sm:$0xff]  }
 0x1a6   :  { %13354 = vmatpush3.bf16.msra.mxu1 %v14594_v24  ;;  %v13041_v35 = vadd.f32 %v13040_v33, %v13039_v29  ;;  %10271 = vmatprep.mubr.bf16.mxu1 %v2445_v28  ;;  %v14636_v28 = vld [vmem:[%s18630_s1 + $0xe60] sm:$0xff]  }
 0x1a7   :  { %v13062_v37 = vpop.f32.mrf.mxu1  ;;  %v13042_v38 = vpop.f32.mrf.mxu0  ;;  %13355 = vmatprep.subr.bf16.mxu1 %v14596_v27  ;;  %v14639_v33 = vld [vmem:[%s18630_s1 + $0xea0] sm:$0xff]  }
 0x1a8   :  { %v9674_v40 = vadd.f32 %v13041_v35, %v16548_v54  ;;  %v13063_v42 = vadd.f32 %v13062_v37, %v13061_v32  ;;  %13334 = vmatpush3.bf16.msra.mxu0 %v14597_v30  ;;  %v14609_v54 = vld [vmem:[%s18630_s1 + $0xd18] sm:$0xff]   ;;  %v14637_v30 = vld [vmem:[%s18630_s1 + $0xee0] sm:$0xff]   ;;  %v14644_v38 = vld [vmem:[%s18630_s1 + $0xe50] sm:$0xff]  }
 0x1a9   :  { %v13064_v44 = vpop.f32.mrf.mxu1  ;;  %v13043_v45 = vpop.f32.mrf.mxu0  ;;  %13335 = vmatprep.subr.bf16.mxu0 %v14599_v34  ;;  %v14638_v32 = vld [vmem:[%s18630_s1 + $0xe20] sm:$0xff]   ;;  %v14640_v34 = vld [vmem:[%s18630_s1 + $0xe58] sm:$0xff]  }
 0x1aa   :  { %v16659_v47 = vadd.f32 %v13063_v42, %v9674_v40  ;;  %13356 = vmatpush3.bf16.msra.mxu1 %v14598_v31  ;;  %v14641_v35 = vld [vmem:[%s18630_s1 + $0xed8] sm:$0xff]   ;;  %v14646_v40 = vld [vmem:[%s18630_s1 + $0xe10] sm:$0xff]   ;;  %v14649_v44 = vld [vmem:[%s18630_s1 + $0xec8] sm:$0xff]  }
 0x1ab   :  { %v13065_v49 = vpop.f32.mrf.mxu1  ;;  %13357 = vmatprep.subr.bf16.mxu1 %v14600_v36  ;;  %v14642_v36 = vld [vmem:[%s18630_s1 + $0xe18] sm:$0xff]   ;;  %v14647_v42 = vld [vmem:[%s18630_s1 + $0xe90] sm:$0xff]   ;;  %v14650_v45 = vld [vmem:[%s18630_s1 + $0xe08] sm:$0xff]  }
 0x1ac   :  { %13336 = vmatpush3.bf16.msra.mxu0 %v14601_v39  ;;  %v14643_v37 = vld [vmem:[%s18630_s1 + $0xe98] sm:$0xff]   ;;  %v14645_v39 = vld [vmem:[%s18630_s1 + $0xed0] sm:$0xff]  }
 0x1ad   :  { %13337 = vmatprep.subr.bf16.mxu0 %v14603_v46  ;;  %v23_v46 = vld [vmem:[%s18629_s0 + $0x38] sm:$0xff] }
 0x1ae   :  { %13358 = vmatpush3.bf16.msra.mxu1 %v14602_v43  ;;  %v14648_v43 = vld [vmem:[%s18630_s1 + $0xe48] sm:$0xff]   ;;  %v2446_v49 = vcombine.high %v23_v46, %v23_v46 }
 0x1af   :  { %13359 = vmatprep.subr.bf16.mxu1 %v14604_v48  ;;  %v2453_v48 = vrot.slane %v23_v46, %v15358_v41  ;;  %v14690_v46 = vld [vmem:[%s18630_s1 + $0x10f8] sm:$0xff]  }
 0x1b0   :  { %13338 = vmatpush3.bf16.msra.mxu0 %v14605_v50  ;;  %v14652_v50 = vld [vmem:[%s18630_s1 + $0xe40] sm:$0xff]  }
 0x1b1   :  { %13339 = vmatprep.subr.bf16.mxu0 %v14607_v52  ;;  %v2461_v52 = vcombine.high %v2453_v48, %v2453_v48 }
 0x1b2   :  { %13360 = vmatpush3.bf16.msra.mxu1 %v14606_v51  ;;  %v14653_v51 = vld [vmem:[%s18630_s1 + $0xec0] sm:$0xff]  }
 0x1b3   :  { %13361 = vmatprep.subr.bf16.mxu1 %v14608_v53  ;;  %v16818_v53 = vrot.slane %v2446_v49, %v15358_v41 }
 0x1b4   :  { %13340 = vmatpush3.bf16.msra.mxu0 %v14609_v54  ;;  %v14654_v54 = vld [vmem:[%s18630_s1 + $0xe00] sm:$0xff]  }
 0x1b5   :  { %13341 = vmatprep.subr.bf16.mxu0 %v14611_v56  ;;  %v2483_v56 = vrot.slane %v2461_v52, %v15358_v41 }
 0x1b6   :  { %13362 = vmatpush3.bf16.msra.mxu1 %v14610_v55  ;;  %v14655_v55 = vld [vmem:[%s18630_s1 + $0xe80] sm:$0xff]  }
 0x1b7   :  { %13363 = vmatprep.subr.bf16.mxu1 %v14612_v57  ;;  %v2462_v57 = vcombine.high %v16818_v53, %v16818_v53 }
 0x1b8   :  { %13342 = vmatpush3.bf16.msra.mxu0 %v14613_v58  ;;  %v2469_v58 = vrot.slane %v2453_v48, %v15358_v41  ;;  %v14692_v48 = vld [vmem:[%s18630_s1 + $0x10b8] sm:$0xff]  }
 0x1b9   :  { %13343 = vmatprep.subr.bf16.mxu0 %v14615_v60  ;;  %v2493_v60 = vcombine.high %v2483_v56, %v2483_v56 }
 0x1ba   :  { %13364 = vmatpush3.bf16.msra.mxu1 %v14614_v59  ;;  %v14656_v59 = vld [vmem:[%s18630_s1 + $0xf78] sm:$0xff]  }
 0x1bb   :  { %13365 = vmatprep.subr.bf16.mxu1 %v14616_v61  ;;  %v14657_v61 = vld [vmem:[%s18630_s1 + $0xff8] sm:$0xff]  }
 0x1bc   :  { %13344 = vmatpush3.bf16.msra.mxu0 %v14617_v62  ;;  %v2490_v62 = vrot.slane %v2462_v57, %v15358_v41  ;;  %v14697_v57 = vld [vmem:[%s18630_s1 + $0x1068] sm:$0xff]  }
 0x1bd   :  { %13345 = vmatprep.subr.bf16.mxu0 %v14619_v0  ;;  %v14659_v0 = vld [vmem:[%s18630_s1 + $0xfb8] sm:$0xff]  }
 0x1be   :  { %13366 = vmatpush3.bf16.msra.mxu1 %v14618_v63  ;;  %v14658_v63 = vld [vmem:[%s18630_s1 + $0xf38] sm:$0xff]  }
 0x1bf   :  { %13367 = vmatprep.subr.bf16.mxu1 %v14620_v1  ;;  %v2491_v1 = vcombine.high %v2469_v58, %v2469_v58 }
 0x1c0   :  { %13346 = vmatpush3.bf16.msra.mxu0 %v14621_v2  ;;  %v14660_v2 = vld [vmem:[%s18630_s1 + $0xf70] sm:$0xff]  }
 0x1c1   :  { %13375 = vmatprep.subr.bf16.mxu0 %v14624_v5 }
 0x1c2   :  { %13368 = vmatpush3.bf16.msra.mxu1 %v14622_v3  ;;  %v14661_v3 = vld [vmem:[%s18630_s1 + $0xff0] sm:$0xff]  }
 0x1c3   :  { %v13083_v12 = vpop.f32.mrf.mxu0  ;;  %10232 = vmatmul.mubr.bf16.vlgmr.msra.gmra.mxu0 %v2427_v4  ;;  %13397 = vmatprep.subr.bf16.mxu1 %v14625_v6  ;;  %v2494_v4 = vcombine.high %v2490_v62, %v2490_v62  ;;  %v14662_v6 = vld [vmem:[%s18630_s1 + $0xf30] sm:$0xff]  }
 0x1c4   :  { %13376 = vmatpush3.bf16.msra.mxu0 %v14626_v7  ;;  %10311 = vmatprep.mubr.bf16.mxu0 %v2483_v56  ;;  %v14663_v7 = vld [vmem:[%s18630_s1 + $0xfb0] sm:$0xff]  }
 0x1c5   :  { %v13105_v15 = vpop.f32.mrf.mxu1  ;;  %10272 = vmatmul.mubr.bf16.vlgmr.msra.gmra.mxu1 %v2443_v9  ;;  %v13084_v16 = vpop.f32.mrf.mxu0  ;;  %13377 = vmatprep.subr.bf16.mxu0 %v14628_v10  ;;  %v14664_v10 = vld [vmem:[%s18630_s1 + $0xf68] sm:$0xff]  }
 0x1c6   :  { %13398 = vmatpush3.bf16.msra.mxu1 %v14627_v8  ;;  %v13085_v18 = vadd.f32 %v13084_v16, %v13083_v12  ;;  %10351 = vmatprep.mubr.bf16.mxu1 %v2493_v60  ;;  %v14665_v12 = vld [vmem:[%s18630_s1 + $0xfe8] sm:$0xff]  }
 0x1c7   :  { %v13106_v20 = vpop.f32.mrf.mxu1  ;;  %v13086_v21 = vpop.f32.mrf.mxu0  ;;  %13399 = vmatprep.subr.bf16.mxu1 %v14629_v11 }
 0x1c8   :  { %v9754_v23 = vadd.f32 %v13085_v18, %v16659_v47  ;;  %v13107_v24 = vadd.f32 %v13106_v20, %v13105_v15  ;;  %13378 = vmatpush3.bf16.msra.mxu0 %v14630_v13  ;;  %v14651_v47 = vld [vmem:[%s18630_s1 + $0xe88] sm:$0xff]   ;;  %v14668_v21 = vld [vmem:[%s18630_s1 + $0xf60] sm:$0xff]  }
 0x1c9   :  { %v13108_v26 = vpop.f32.mrf.mxu1  ;;  %v13087_v27 = vpop.f32.mrf.mxu0  ;;  %13379 = vmatprep.subr.bf16.mxu0 %v14632_v17  ;;  %v14666_v15 = vld [vmem:[%s18630_s1 + $0xf28] sm:$0xff]  }
 0x1ca   :  { %v16760_v29 = vadd.f32 %v13107_v24, %v9754_v23  ;;  %13400 = vmatpush3.bf16.msra.mxu1 %v14631_v14  ;;  %v14667_v18 = vld [vmem:[%s18630_s1 + $0xfa8] sm:$0xff]   ;;  %v14669_v23 = vld [vmem:[%s18630_s1 + $0xfe0] sm:$0xff]   ;;  %v14672_v27 = vld [vmem:[%s18630_s1 + $0xf58] sm:$0xff]  }
 0x1cb   :  { %v13109_v31 = vpop.f32.mrf.mxu1  ;;  %13401 = vmatprep.subr.bf16.mxu1 %v14633_v19  ;;  %v14671_v26 = vld [vmem:[%s18630_s1 + $0xfa0] sm:$0xff]  }
 0x1cc   :  { %13380 = vmatpush3.bf16.msra.mxu0 %v14634_v22  ;;  %v14676_v31 = vld [vmem:[%s18630_s1 + $0xf50] sm:$0xff]  }
 0x1cd   :  { %13381 = vmatprep.subr.bf16.mxu0 %v14636_v28  ;;  %v14673_v28 = vld [vmem:[%s18630_s1 + $0xfd8] sm:$0xff]  }
 0x1ce   :  { %13402 = vmatpush3.bf16.msra.mxu1 %v14635_v25  ;;  %v14670_v25 = vld [vmem:[%s18630_s1 + $0xf20] sm:$0xff]  }
 0x1cf   :  { %13403 = vmatprep.subr.bf16.mxu1 %v14637_v30  ;;  %v14675_v30 = vld [vmem:[%s18630_s1 + $0xf98] sm:$0xff]  }
 0x1d0   :  { %13382 = vmatpush3.bf16.msra.mxu0 %v14638_v32  ;;  %v14677_v32 = vld [vmem:[%s18630_s1 + $0xfd0] sm:$0xff]  }
 0x1d1   :  { %13383 = vmatprep.subr.bf16.mxu0 %v14640_v34  ;;  %v14679_v34 = vld [vmem:[%s18630_s1 + $0xf90] sm:$0xff]  }
 0x1d2   :  { %13404 = vmatpush3.bf16.msra.mxu1 %v14639_v33  ;;  %v14678_v33 = vld [vmem:[%s18630_s1 + $0xf10] sm:$0xff]  }
 0x1d3   :  { %13405 = vmatprep.subr.bf16.mxu1 %v14641_v35  ;;  %v14680_v35 = vld [vmem:[%s18630_s1 + $0xf48] sm:$0xff]  }
 0x1d4   :  { %13384 = vmatpush3.bf16.msra.mxu0 %v14642_v36  ;;  %v14681_v36 = vld [vmem:[%s18630_s1 + $0xfc8] sm:$0xff]  }
 0x1d5   :  { %13385 = vmatprep.subr.bf16.mxu0 %v14644_v38  ;;  %v14683_v38 = vld [vmem:[%s18630_s1 + $0xf88] sm:$0xff]  }
 0x1d6   :  { %13406 = vmatpush3.bf16.msra.mxu1 %v14643_v37  ;;  %v14682_v37 = vld [vmem:[%s18630_s1 + $0xf08] sm:$0xff]  }
 0x1d7   :  { %13407 = vmatprep.subr.bf16.mxu1 %v14645_v39  ;;  %v14684_v39 = vld [vmem:[%s18630_s1 + $0xf40] sm:$0xff]  }
 0x1d8   :  { %13386 = vmatpush3.bf16.msra.mxu0 %v14646_v40  ;;  %v14685_v40 = vld [vmem:[%s18630_s1 + $0xfc0] sm:$0xff]  }
 0x1d9   :  { %13387 = vmatprep.subr.bf16.mxu0 %v14648_v43  ;;  %v14687_v43 = vld [vmem:[%s18630_s1 + $0xf80] sm:$0xff]  }
 0x1da   :  { %13408 = vmatpush3.bf16.msra.mxu1 %v14647_v42  ;;  %v14686_v42 = vld [vmem:[%s18630_s1 + $0xf00] sm:$0xff]  }
 0x1db   :  { %13409 = vmatprep.subr.bf16.mxu1 %v14649_v44  ;;  %v2476_v44 = vrot.slane %v16818_v53, %v15358_v41  ;;  %v14695_v53 = vld [vmem:[%s18630_s1 + $0x1030] sm:$0xff]  }
 0x1dc   :  { %13388 = vmatpush3.bf16.msra.mxu0 %v14650_v45  ;;  %v14689_v45 = vld [vmem:[%s18630_s1 + $0x1078] sm:$0xff]  }
 0x1dd   :  { %13389 = vmatprep.subr.bf16.mxu0 %v14652_v50  ;;  %v2492_v49 = vcombine.high %v2476_v44, %v2476_v44  ;;  %v14693_v50 = vld [vmem:[%s18630_s1 + $0x1070] sm:$0xff]  }
 0x1de   :  { %13410 = vmatpush3.bf16.msra.mxu1 %v14651_v47  ;;  %v14691_v47 = vld [vmem:[%s18630_s1 + $0x1038] sm:$0xff]  }
 0x1df   :  { %13411 = vmatprep.subr.bf16.mxu1 %v14653_v51  ;;  %v14694_v51 = vld [vmem:[%s18630_s1 + $0x10f0] sm:$0xff]  }
 0x1e0   :  { %13390 = vmatpush3.bf16.msra.mxu0 %v14654_v54  ;;  %v14696_v54 = vld [vmem:[%s18630_s1 + $0x10b0] sm:$0xff]  }
 0x1e1   :  { %13419 = vmatprep.subr.bf16.mxu0 %v14656_v59  ;;  %v14698_v59 = vld [vmem:[%s18630_s1 + $0x10e8] sm:$0xff]  }
 0x1e2   :  { %13412 = vmatpush3.bf16.msra.mxu1 %v14655_v55 }
 0x1e3   :  { %v13127_v5 = vpop.f32.mrf.mxu0  ;;  %10312 = vmatmul.mubr.bf16.vlgmr.msra.gmra.mxu0 %v2469_v58  ;;  %13441 = vmatprep.subr.bf16.mxu1 %v14657_v61 }
 0x1e4   :  { %13420 = vmatpush3.bf16.msra.mxu0 %v14658_v63  ;;  %10391 = vmatprep.mubr.bf16.mxu0 %v2490_v62  ;;  %v14699_v62 = vld [vmem:[%s18630_s1 + $0x1028] sm:$0xff]  }
 0x1e5   :  { %v13149_v8 = vpop.f32.mrf.mxu1  ;;  %10352 = vmatmul.mubr.bf16.vlgmr.msra.gmra.mxu1 %v2491_v1  ;;  %v13128_v9 = vpop.f32.mrf.mxu0  ;;  %13421 = vmatprep.subr.bf16.mxu0 %v14660_v2  ;;  %v14700_v1 = vld [vmem:[%s18630_s1 + $0x10a8] sm:$0xff]  }
 0x1e6   :  { %13442 = vmatpush3.bf16.msra.mxu1 %v14659_v0  ;;  %v13129_v11 = vadd.f32 %v13128_v9, %v13127_v5  ;;  %10431 = vmatprep.mubr.bf16.mxu1 %v2494_v4  ;;  %v14701_v4 = vld [vmem:[%s18630_s1 + $0x1060] sm:$0xff]  }
 0x1e7   :  { %v13150_v13 = vpop.f32.mrf.mxu1  ;;  %v13130_v14 = vpop.f32.mrf.mxu0  ;;  %13443 = vmatprep.subr.bf16.mxu1 %v14661_v3  ;;  %v14704_v9 = vld [vmem:[%s18630_s1 + $0x10a0] sm:$0xff]  }
 0x1e8   :  { %v9834_v16 = vadd.f32 %v13129_v11, %v16760_v29  ;;  %v13151_v17 = vadd.f32 %v13150_v13, %v13149_v8  ;;  %13422 = vmatpush3.bf16.msra.mxu0 %v14662_v6  ;;  %v14674_v29 = vld [vmem:[%s18630_s1 + $0xf18] sm:$0xff]   ;;  %v14702_v6 = vld [vmem:[%s18630_s1 + $0x10e0] sm:$0xff]   ;;  %v14709_v14 = vld [vmem:[%s18630_s1 + $0x1050] sm:$0xff]  }
 0x1e9   :  { %v13152_v19 = vpop.f32.mrf.mxu1  ;;  %v13131_v20 = vpop.f32.mrf.mxu0  ;;  %13423 = vmatprep.subr.bf16.mxu0 %v14664_v10  ;;  %v14703_v8 = vld [vmem:[%s18630_s1 + $0x1020] sm:$0xff]   ;;  %v14705_v10 = vld [vmem:[%s18630_s1 + $0x1058] sm:$0xff]  }
 0x1ea   :  { %v16871_v22 = vadd.f32 %v13151_v17, %v9834_v16  ;;  %13444 = vmatpush3.bf16.msra.mxu1 %v14663_v7  ;;  %v14706_v11 = vld [vmem:[%s18630_s1 + $0x10d8] sm:$0xff]   ;;  %v14711_v16 = vld [vmem:[%s18630_s1 + $0x1010] sm:$0xff]   ;;  %v14714_v19 = vld [vmem:[%s18630_s1 + $0x10c8] sm:$0xff]  }
 0x1eb   :  { %v13153_v24 = vpop.f32.mrf.mxu1  ;;  %13445 = vmatprep.subr.bf16.mxu1 %v14665_v12  ;;  %v14707_v12 = vld [vmem:[%s18630_s1 + $0x1018] sm:$0xff]   ;;  %v14712_v17 = vld [vmem:[%s18630_s1 + $0x1090] sm:$0xff]   ;;  %v14715_v20 = vld [vmem:[%s18630_s1 + $0x1008] sm:$0xff]  }
 0x1ec   :  { %13424 = vmatpush3.bf16.msra.mxu0 %v14666_v15  ;;  %v14708_v13 = vld [vmem:[%s18630_s1 + $0x1098] sm:$0xff]   ;;  %v14710_v15 = vld [vmem:[%s18630_s1 + $0x10d0] sm:$0xff]  }
 0x1ed   :  { %13425 = vmatprep.subr.bf16.mxu0 %v14668_v21  ;;  %v14716_v21 = vld [vmem:[%s18630_s1 + $0x1088] sm:$0xff]  }
 0x1ee   :  { %13446 = vmatpush3.bf16.msra.mxu1 %v14667_v18  ;;  %v14713_v18 = vld [vmem:[%s18630_s1 + $0x1048] sm:$0xff]  }
 0x1ef   :  { %13447 = vmatprep.subr.bf16.mxu1 %v14669_v23  ;;  %v14717_v23 = vld [vmem:[%s18630_s1 + $0x1040] sm:$0xff]  }
 0x1f0   :  { %13426 = vmatpush3.bf16.msra.mxu0 %v14670_v25 }
 0x1f1   :  { %13427 = vmatprep.subr.bf16.mxu0 %v14672_v27  ;;  %v14719_v27 = vld [vmem:[%s18630_s1 + $0x1000] sm:$0xff]  }
 0x1f2   :  { %13448 = vmatpush3.bf16.msra.mxu1 %v14671_v26  ;;  %v14718_v26 = vld [vmem:[%s18630_s1 + $0x10c0] sm:$0xff]  }
 0x1f3   :  { %13449 = vmatprep.subr.bf16.mxu1 %v14673_v28 }
 0x1f4   :  { %13428 = vmatpush3.bf16.msra.mxu0 %v14674_v29 }
 0x1f5   :  { %13429 = vmatprep.subr.bf16.mxu0 %v14676_v31 }
 0x1f6   :  { %13450 = vmatpush3.bf16.msra.mxu1 %v14675_v30  ;;  %v14720_v30 = vld [vmem:[%s18630_s1 + $0x1080] sm:$0xff]  }
 0x1f7   :  { %13451 = vmatprep.subr.bf16.mxu1 %v14677_v32 }
 0x1f8   :  { %13430 = vmatpush3.bf16.msra.mxu0 %v14678_v33  ;;  %v14721_v33 = vld [vmem:[%s18630_s1 + $0x1178] sm:$0xff]  }
 0x1f9   :  { %13431 = vmatprep.subr.bf16.mxu0 %v14680_v35  ;;  %v14722_v35 = vld [vmem:[%s18630_s1 + $0x11f8] sm:$0xff]  }
 0x1fa   :  { %13452 = vmatpush3.bf16.msra.mxu1 %v14679_v34 }
 0x1fb   :  { %13453 = vmatprep.subr.bf16.mxu1 %v14681_v36 }
 0x1fc   :  { %13432 = vmatpush3.bf16.msra.mxu0 %v14682_v37  ;;  %v14723_v37 = vld [vmem:[%s18630_s1 + $0x1138] sm:$0xff]  }
 0x1fd   :  { %13433 = vmatprep.subr.bf16.mxu0 %v14684_v39  ;;  %v14724_v39 = vld [vmem:[%s18630_s1 + $0x11b8] sm:$0xff]  }
 0x1fe   :  { %13454 = vmatpush3.bf16.msra.mxu1 %v14683_v38 }
 0x1ff   :  { %13455 = vmatprep.subr.bf16.mxu1 %v14685_v40 }
 0x200   :  { %13434 = vmatpush3.bf16.msra.mxu0 %v14686_v42  ;;  %v14725_v42 = vld [vmem:[%s18630_s1 + $0x1170] sm:$0xff]  }
 0x201   :  { %13463 = vmatprep.subr.bf16.mxu0 %v14689_v45 }
 0x202   :  { %13456 = vmatpush3.bf16.msra.mxu1 %v14687_v43  ;;  %v14726_v43 = vld [vmem:[%s18630_s1 + $0x11f0] sm:$0xff]  }
 0x203   :  { %v13171_v52 = vpop.f32.mrf.mxu0  ;;  %10392 = vmatmul.mubr.bf16.vlgmr.msra.gmra.mxu0 %v2476_v44  ;;  %13485 = vmatprep.subr.bf16.mxu1 %v14690_v46  ;;  %v14727_v46 = vld [vmem:[%s18630_s1 + $0x1130] sm:$0xff]  }
 0x204   :  { %13464 = vmatpush3.bf16.msra.mxu0 %v14691_v47  ;;  %v14728_v47 = vld [vmem:[%s18630_s1 + $0x11b0] sm:$0xff]  }
 0x205   :  { %v13193_v55 = vpop.f32.mrf.mxu1  ;;  %10432 = vmatmul.mubr.bf16.vlgmr.msra.gmra.mxu1 %v2492_v49  ;;  %v13172_v56 = vpop.f32.mrf.mxu0  ;;  %13465 = vmatprep.subr.bf16.mxu0 %v14693_v50  ;;  %v14729_v50 = vld [vmem:[%s18630_s1 + $0x1168] sm:$0xff]  }
 0x206   :  { %13486 = vmatpush3.bf16.msra.mxu1 %v14692_v48  ;;  %v13173_v58 = vadd.f32 %v13172_v56, %v13171_v52  ;;  %v14730_v52 = vld [vmem:[%s18630_s1 + $0x11e8] sm:$0xff]  }
 0x207   :  { %v13194_v60 = vpop.f32.mrf.mxu1  ;;  %v13174_v61 = vpop.f32.mrf.mxu0  ;;  %13487 = vmatprep.subr.bf16.mxu1 %v14694_v51 }
 0x208   :  { %v9914_v63 = vadd.f32 %v13173_v58, %v16871_v22  ;;  %v13195_v0 = vadd.f32 %v13194_v60, %v13193_v55  ;;  %13466 = vmatpush3.bf16.msra.mxu0 %v14695_v53  ;;  %v24_v22 = vld [vmem:[%s18629_s0 + $0x40] sm:$0xff]  ;;  %v14731_v55 = vld [vmem:[%s18630_s1 + $0x1128] sm:$0xff]  }
 0x209   :  { %v13196_v2 = vpop.f32.mrf.mxu1  ;;  %v13175_v3 = vpop.f32.mrf.mxu0  ;;  %13467 = vmatprep.subr.bf16.mxu0 %v14697_v57  ;;  %v2502_v24 = vrot.slane %v24_v22, %v15358_v41  ;;  %v2495_v25 = vcombine.high %v24_v22, %v24_v22  ;;  %v14732_v58 = vld [vmem:[%s18630_s1 + $0x11a8] sm:$0xff]   ;;  %v14733_v61 = vld [vmem:[%s18630_s1 + $0x1160] sm:$0xff]   ;;  %v14756_v22 = vld [vmem:[%s18630_s1 + $0x1238] sm:$0xff]  }
 0x20a   :  { %v16972_v5 = vadd.f32 %v13195_v0, %v9914_v63  ;;  %13488 = vmatpush3.bf16.msra.mxu1 %v14696_v54  ;;  %v14734_v63 = vld [vmem:[%s18630_s1 + $0x11e0] sm:$0xff]   ;;  %v14737_v3 = vld [vmem:[%s18630_s1 + $0x1158] sm:$0xff]  }
 0x20b   :  { %v13197_v7 = vpop.f32.mrf.mxu1  ;;  %13489 = vmatprep.subr.bf16.mxu1 %v14698_v59  ;;  %v2510_v28 = vcombine.high %v2502_v24, %v2502_v24  ;;  %v17033_v29 = vrot.slane %v2495_v25, %v15358_v41  ;;  %v2518_v32 = vrot.slane %v2502_v24, %v15358_v41  ;;  %v14736_v2 = vld [vmem:[%s18630_s1 + $0x11a0] sm:$0xff]   ;;  %v14758_v25 = vld [vmem:[%s18630_s1 + $0x1270] sm:$0xff]  }
 0x20c   :  { %13468 = vmatpush3.bf16.msra.mxu0 %v14699_v62  ;;  %v14741_v7 = vld [vmem:[%s18630_s1 + $0x1150] sm:$0xff]  }
 0x20d   :  { %13469 = vmatprep.subr.bf16.mxu0 %v14701_v4  ;;  %v2532_v31 = vrot.slane %v2510_v28, %v15358_v41  ;;  %v2511_v34 = vcombine.high %v17033_v29, %v17033_v29  ;;  %v2540_v40 = vcombine.high %v2518_v32, %v2518_v32  ;;  %v14738_v4 = vld [vmem:[%s18630_s1 + $0x11d8] sm:$0xff]   ;;  %v14760_v28 = vld [vmem:[%s18630_s1 + $0x1230] sm:$0xff]  }
 0x20e   :  { %13490 = vmatpush3.bf16.msra.mxu1 %v14700_v1  ;;  %v14735_v1 = vld [vmem:[%s18630_s1 + $0x1120] sm:$0xff]  }
 0x20f   :  { %13491 = vmatprep.subr.bf16.mxu1 %v14702_v6  ;;  %10471 = vmatprep.mubr.bf16.mxu0 %v2532_v31  ;;  %v2542_v36 = vcombine.high %v2532_v31, %v2532_v31  ;;  %v2539_v38 = vrot.slane %v2511_v34, %v15358_v41  ;;  %v14740_v6 = vld [vmem:[%s18630_s1 + $0x1198] sm:$0xff]   ;;  %v14763_v34 = vld [vmem:[%s18630_s1 + $0x12e8] sm:$0xff]  }
 0x210   :  { %13470 = vmatpush3.bf16.msra.mxu0 %v14703_v8  ;;  %v14742_v8 = vld [vmem:[%s18630_s1 + $0x11d0] sm:$0xff]  }
 0x211   :  { %13471 = vmatprep.subr.bf16.mxu0 %v14705_v10  ;;  %10511 = vmatprep.mubr.bf16.mxu1 %v2542_v36  ;;  %v2543_v44 = vcombine.high %v2539_v38, %v2539_v38  ;;  %v14744_v10 = vld [vmem:[%s18630_s1 + $0x1190] sm:$0xff]  }
 0x212   :  { %13492 = vmatpush3.bf16.msra.mxu1 %v14704_v9  ;;  %v14743_v9 = vld [vmem:[%s18630_s1 + $0x1110] sm:$0xff]  }
 0x213   :  { %13493 = vmatprep.subr.bf16.mxu1 %v14706_v11  ;;  %v14745_v11 = vld [vmem:[%s18630_s1 + $0x1148] sm:$0xff]  }
 0x214   :  { %13472 = vmatpush3.bf16.msra.mxu0 %v14707_v12  ;;  %v14746_v12 = vld [vmem:[%s18630_s1 + $0x11c8] sm:$0xff]  }
 0x215   :  { %13473 = vmatprep.subr.bf16.mxu0 %v14709_v14  ;;  %v14748_v14 = vld [vmem:[%s18630_s1 + $0x1188] sm:$0xff]  }
 0x216   :  { %13494 = vmatpush3.bf16.msra.mxu1 %v14708_v13  ;;  %v14747_v13 = vld [vmem:[%s18630_s1 + $0x1108] sm:$0xff]  }
 0x217   :  { %13495 = vmatprep.subr.bf16.mxu1 %v14710_v15  ;;  %v14749_v15 = vld [vmem:[%s18630_s1 + $0x1140] sm:$0xff]  }
 0x218   :  { %13474 = vmatpush3.bf16.msra.mxu0 %v14711_v16  ;;  %v14750_v16 = vld [vmem:[%s18630_s1 + $0x11c0] sm:$0xff]  }
 0x219   :  { %13475 = vmatprep.subr.bf16.mxu0 %v14713_v18  ;;  %v14752_v18 = vld [vmem:[%s18630_s1 + $0x1180] sm:$0xff]  }
 0x21a   :  { %13496 = vmatpush3.bf16.msra.mxu1 %v14712_v17  ;;  %v14751_v17 = vld [vmem:[%s18630_s1 + $0x1100] sm:$0xff]  }
 0x21b   :  { %13497 = vmatprep.subr.bf16.mxu1 %v14714_v19  ;;  %v2525_v19 = vrot.slane %v17033_v29, %v15358_v41  ;;  %v14761_v29 = vld [vmem:[%s18630_s1 + $0x12b0] sm:$0xff]  }
 0x21c   :  { %13476 = vmatpush3.bf16.msra.mxu0 %v14715_v20  ;;  %v14754_v20 = vld [vmem:[%s18630_s1 + $0x1278] sm:$0xff]  }
 0x21d   :  { %13477 = vmatprep.subr.bf16.mxu0 %v14717_v23  ;;  %v14757_v23 = vld [vmem:[%s18630_s1 + $0x12b8] sm:$0xff]   ;;  %v2541_v24 = vcombine.high %v2525_v19, %v2525_v19 }
 0x21e   :  { %13498 = vmatpush3.bf16.msra.mxu1 %v14716_v21  ;;  %v14755_v21 = vld [vmem:[%s18630_s1 + $0x12f8] sm:$0xff]  }
 0x21f   :  { %13499 = vmatprep.subr.bf16.mxu1 %v14718_v26  ;;  %v14759_v26 = vld [vmem:[%s18630_s1 + $0x12f0] sm:$0xff]  }
 0x220   :  { %13478 = vmatpush3.bf16.msra.mxu0 %v14719_v27 }
 0x221   :  { %13507 = vmatprep.subr.bf16.mxu0 %v14721_v33 }
 0x222   :  { %13500 = vmatpush3.bf16.msra.mxu1 %v14720_v30 }
 0x223   :  { %v13215_v45 = vpop.f32.mrf.mxu0  ;;  %10472 = vmatmul.mubr.bf16.vlgmr.msra.gmra.mxu0 %v2518_v32  ;;  %13529 = vmatprep.subr.bf16.mxu1 %v14722_v35  ;;  %v14762_v32 = vld [vmem:[%s18630_s1 + $0x1268] sm:$0xff]  }
 0x224   :  { %13508 = vmatpush3.bf16.msra.mxu0 %v14723_v37  ;;  %10551 = vmatprep.mubr.bf16.mxu0 %v2539_v38  ;;  %v14764_v37 = vld [vmem:[%s18630_s1 + $0x1228] sm:$0xff]  }
 0x225   :  { %v13237_v48 = vpop.f32.mrf.mxu1  ;;  %10512 = vmatmul.mubr.bf16.vlgmr.msra.gmra.mxu1 %v2540_v40  ;;  %v13216_v49 = vpop.f32.mrf.mxu0  ;;  %13509 = vmatprep.subr.bf16.mxu0 %v14725_v42  ;;  %v14765_v40 = vld [vmem:[%s18630_s1 + $0x12a8] sm:$0xff]  }
 0x226   :  { %13530 = vmatpush3.bf16.msra.mxu1 %v14724_v39  ;;  %v13217_v51 = vadd.f32 %v13216_v49, %v13215_v45  ;;  %10591 = vmatprep.mubr.bf16.mxu1 %v2543_v44  ;;  %v14766_v44 = vld [vmem:[%s18630_s1 + $0x1260] sm:$0xff]  }
 0x227   :  { %v13238_v53 = vpop.f32.mrf.mxu1  ;;  %v13218_v54 = vpop.f32.mrf.mxu0  ;;  %13531 = vmatprep.subr.bf16.mxu1 %v14726_v43  ;;  %v14769_v49 = vld [vmem:[%s18630_s1 + $0x12a0] sm:$0xff]  }
 0x228   :  { %v9994_v56 = vadd.f32 %v13217_v51, %v16972_v5  ;;  %v13239_v57 = vadd.f32 %v13238_v53, %v13237_v48  ;;  %13510 = vmatpush3.bf16.msra.mxu0 %v14727_v46  ;;  %v14739_v5 = vld [vmem:[%s18630_s1 + $0x1118] sm:$0xff]   ;;  %v14767_v46 = vld [vmem:[%s18630_s1 + $0x12e0] sm:$0xff]   ;;  %v14774_v54 = vld [vmem:[%s18630_s1 + $0x1250] sm:$0xff]  }
 0x229   :  { %v13240_v59 = vpop.f32.mrf.mxu1  ;;  %v13219_v60 = vpop.f32.mrf.mxu0  ;;  %13511 = vmatprep.subr.bf16.mxu0 %v14729_v50  ;;  %v14768_v48 = vld [vmem:[%s18630_s1 + $0x1220] sm:$0xff]   ;;  %v14770_v50 = vld [vmem:[%s18630_s1 + $0x1258] sm:$0xff]  }
 0x22a   :  { %v17083_v62 = vadd.f32 %v13239_v57, %v9994_v56  ;;  %13532 = vmatpush3.bf16.msra.mxu1 %v14728_v47  ;;  %v14771_v51 = vld [vmem:[%s18630_s1 + $0x12d8] sm:$0xff]   ;;  %v14776_v56 = vld [vmem:[%s18630_s1 + $0x1210] sm:$0xff]   ;;  %v14779_v59 = vld [vmem:[%s18630_s1 + $0x12c8] sm:$0xff]  }
 0x22b   :  { %v13241_v0 = vpop.f32.mrf.mxu1  ;;  %13533 = vmatprep.subr.bf16.mxu1 %v14730_v52  ;;  %v14772_v52 = vld [vmem:[%s18630_s1 + $0x1218] sm:$0xff]   ;;  %v14777_v57 = vld [vmem:[%s18630_s1 + $0x1290] sm:$0xff]   ;;  %v14780_v60 = vld [vmem:[%s18630_s1 + $0x1208] sm:$0xff]  }
 0x22c   :  { %13512 = vmatpush3.bf16.msra.mxu0 %v14731_v55  ;;  %v14773_v53 = vld [vmem:[%s18630_s1 + $0x1298] sm:$0xff]   ;;  %v14775_v55 = vld [vmem:[%s18630_s1 + $0x12d0] sm:$0xff]  }
 0x22d   :  { %13513 = vmatprep.subr.bf16.mxu0 %v14733_v61  ;;  %v14781_v61 = vld [vmem:[%s18630_s1 + $0x1288] sm:$0xff]  }
 0x22e   :  { %13534 = vmatpush3.bf16.msra.mxu1 %v14732_v58  ;;  %v14778_v58 = vld [vmem:[%s18630_s1 + $0x1248] sm:$0xff]  }
 0x22f   :  { %13535 = vmatprep.subr.bf16.mxu1 %v14734_v63  ;;  %v14782_v63 = vld [vmem:[%s18630_s1 + $0x1240] sm:$0xff]  }
 0x230   :  { %13514 = vmatpush3.bf16.msra.mxu0 %v14735_v1 }
 0x231   :  { %13515 = vmatprep.subr.bf16.mxu0 %v14737_v3  ;;  %v14784_v3 = vld [vmem:[%s18630_s1 + $0x1200] sm:$0xff]  }
 0x232   :  { %13536 = vmatpush3.bf16.msra.mxu1 %v14736_v2  ;;  %v14783_v2 = vld [vmem:[%s18630_s1 + $0x12c0] sm:$0xff]  }
 0x233   :  { %13537 = vmatprep.subr.bf16.mxu1 %v14738_v4 }
 0x234   :  { %13516 = vmatpush3.bf16.msra.mxu0 %v14739_v5 }
 0x235   :  { %13517 = vmatprep.subr.bf16.mxu0 %v14741_v7 }
 0x236   :  { %13538 = vmatpush3.bf16.msra.mxu1 %v14740_v6  ;;  %v14785_v6 = vld [vmem:[%s18630_s1 + $0x1280] sm:$0xff]  }
 0x237   :  { %13539 = vmatprep.subr.bf16.mxu1 %v14742_v8 }
 0x238   :  { %13518 = vmatpush3.bf16.msra.mxu0 %v14743_v9  ;;  %v14786_v9 = vld [vmem:[%s18630_s1 + $0x1378] sm:$0xff]  }
 0x239   :  { %13519 = vmatprep.subr.bf16.mxu0 %v14745_v11  ;;  %v14787_v11 = vld [vmem:[%s18630_s1 + $0x13f8] sm:$0xff]  }
 0x23a   :  { %13540 = vmatpush3.bf16.msra.mxu1 %v14744_v10 }
 0x23b   :  { %13541 = vmatprep.subr.bf16.mxu1 %v14746_v12 }
 0x23c   :  { %13520 = vmatpush3.bf16.msra.mxu0 %v14747_v13  ;;  %v14788_v13 = vld [vmem:[%s18630_s1 + $0x1338] sm:$0xff]  }
 0x23d   :  { %13521 = vmatprep.subr.bf16.mxu0 %v14749_v15  ;;  %v14789_v15 = vld [vmem:[%s18630_s1 + $0x13b8] sm:$0xff]  }
 0x23e   :  { %13542 = vmatpush3.bf16.msra.mxu1 %v14748_v14 }
 0x23f   :  { %13543 = vmatprep.subr.bf16.mxu1 %v14750_v16 }
 0x240   :  { %13522 = vmatpush3.bf16.msra.mxu0 %v14751_v17  ;;  %v14790_v17 = vld [vmem:[%s18630_s1 + $0x1370] sm:$0xff]  }
 0x241   :  { %13551 = vmatprep.subr.bf16.mxu0 %v14754_v20 }
 0x242   :  { %13544 = vmatpush3.bf16.msra.mxu1 %v14752_v18  ;;  %v14791_v18 = vld [vmem:[%s18630_s1 + $0x13f0] sm:$0xff]  }
 0x243   :  { %v13259_v27 = vpop.f32.mrf.mxu0  ;;  %10552 = vmatmul.mubr.bf16.vlgmr.msra.gmra.mxu0 %v2525_v19  ;;  %13573 = vmatprep.subr.bf16.mxu1 %v14755_v21  ;;  %v14792_v21 = vld [vmem:[%s18630_s1 + $0x1330] sm:$0xff]  }
 0x244   :  { %13552 = vmatpush3.bf16.msra.mxu0 %v14756_v22  ;;  %v14793_v22 = vld [vmem:[%s18630_s1 + $0x13b0] sm:$0xff]  }
 0x245   :  { %v13281_v30 = vpop.f32.mrf.mxu1  ;;  %10592 = vmatmul.mubr.bf16.vlgmr.msra.gmra.mxu1 %v2541_v24  ;;  %v13260_v31 = vpop.f32.mrf.mxu0  ;;  %13553 = vmatprep.subr.bf16.mxu0 %v14758_v25  ;;  %v14794_v25 = vld [vmem:[%s18630_s1 + $0x1368] sm:$0xff]  }
 0x246   :  { %13574 = vmatpush3.bf16.msra.mxu1 %v14757_v23  ;;  %v13261_v33 = vadd.f32 %v13260_v31, %v13259_v27  ;;  %v14795_v27 = vld [vmem:[%s18630_s1 + $0x13e8] sm:$0xff]  }
 0x247   :  { %v13282_v35 = vpop.f32.mrf.mxu1  ;;  %v13262_v36 = vpop.f32.mrf.mxu0  ;;  %13575 = vmatprep.subr.bf16.mxu1 %v14759_v26 }
 0x248   :  { %v10074_v38 = vadd.f32 %v13261_v33, %v17083_v62  ;;  %v13283_v39 = vadd.f32 %v13282_v35, %v13281_v30  ;;  %13554 = vmatpush3.bf16.msra.mxu0 %v14760_v28  ;;  %v25_v62 = vld [vmem:[%s18629_s0 + $0x48] sm:$0xff]  ;;  %v14798_v36 = vld [vmem:[%s18630_s1 + $0x1360] sm:$0xff]  }
 0x249   :  { %v13284_v42 = vpop.f32.mrf.mxu1  ;;  %v13263_v43 = vpop.f32.mrf.mxu0  ;;  %13555 = vmatprep.subr.bf16.mxu0 %v14762_v32  ;;  %v2551_v0 = vrot.slane %v25_v62, %v15358_v41  ;;  %v2544_v1 = vcombine.high %v25_v62, %v25_v62  ;;  %v14796_v30 = vld [vmem:[%s18630_s1 + $0x1328] sm:$0xff]   ;;  %v14821_v62 = vld [vmem:[%s18630_s1 + $0x1438] sm:$0xff]  }
 0x24a   :  { %v17184_v45 = vadd.f32 %v13283_v39, %v10074_v38  ;;  %13576 = vmatpush3.bf16.msra.mxu1 %v14761_v29  ;;  %v14797_v33 = vld [vmem:[%s18630_s1 + $0x13a8] sm:$0xff]   ;;  %v14799_v38 = vld [vmem:[%s18630_s1 + $0x13e0] sm:$0xff]   ;;  %v14802_v43 = vld [vmem:[%s18630_s1 + $0x1358] sm:$0xff]  }
 0x24b   :  { %v13285_v47 = vpop.f32.mrf.mxu1  ;;  %13577 = vmatprep.subr.bf16.mxu1 %v14763_v34  ;;  %v2559_v4 = vcombine.high %v2551_v0, %v2551_v0  ;;  %v17245_v5 = vrot.slane %v2544_v1, %v15358_v41  ;;  %v2567_v8 = vrot.slane %v2551_v0, %v15358_v41  ;;  %v14801_v42 = vld [vmem:[%s18630_s1 + $0x13a0] sm:$0xff]   ;;  %v14823_v1 = vld [vmem:[%s18630_s1 + $0x1470] sm:$0xff]  }
 0x24c   :  { %13556 = vmatpush3.bf16.msra.mxu0 %v14764_v37  ;;  %v14806_v47 = vld [vmem:[%s18630_s1 + $0x1350] sm:$0xff]  }
 0x24d   :  { %13557 = vmatprep.subr.bf16.mxu0 %v14766_v44  ;;  %v2581_v7 = vrot.slane %v2559_v4, %v15358_v41  ;;  %v2560_v10 = vcombine.high %v17245_v5, %v17245_v5  ;;  %v2589_v16 = vcombine.high %v2567_v8, %v2567_v8  ;;  %v14803_v44 = vld [vmem:[%s18630_s1 + $0x13d8] sm:$0xff]   ;;  %v14825_v4 = vld [vmem:[%s18630_s1 + $0x1430] sm:$0xff]  }
 0x24e   :  { %13578 = vmatpush3.bf16.msra.mxu1 %v14765_v40  ;;  %v14800_v40 = vld [vmem:[%s18630_s1 + $0x1320] sm:$0xff]  }
 0x24f   :  { %13579 = vmatprep.subr.bf16.mxu1 %v14767_v46  ;;  %10631 = vmatprep.mubr.bf16.mxu0 %v2581_v7  ;;  %v2591_v12 = vcombine.high %v2581_v7, %v2581_v7  ;;  %v2588_v14 = vrot.slane %v2560_v10, %v15358_v41  ;;  %v14805_v46 = vld [vmem:[%s18630_s1 + $0x1398] sm:$0xff]   ;;  %v14828_v10 = vld [vmem:[%s18630_s1 + $0x14e8] sm:$0xff]  }
 0x250   :  { %13558 = vmatpush3.bf16.msra.mxu0 %v14768_v48  ;;  %v14807_v48 = vld [vmem:[%s18630_s1 + $0x13d0] sm:$0xff]  }
 0x251   :  { %13559 = vmatprep.subr.bf16.mxu0 %v14770_v50  ;;  %10671 = vmatprep.mubr.bf16.mxu1 %v2591_v12  ;;  %v2592_v19 = vcombine.high %v2588_v14, %v2588_v14  ;;  %v14809_v50 = vld [vmem:[%s18630_s1 + $0x1390] sm:$0xff]  }
 0x252   :  { %13580 = vmatpush3.bf16.msra.mxu1 %v14769_v49  ;;  %v14808_v49 = vld [vmem:[%s18630_s1 + $0x1310] sm:$0xff]  }
 0x253   :  { %13581 = vmatprep.subr.bf16.mxu1 %v14771_v51  ;;  %v14810_v51 = vld [vmem:[%s18630_s1 + $0x1348] sm:$0xff]  }
 0x254   :  { %13560 = vmatpush3.bf16.msra.mxu0 %v14772_v52  ;;  %v14811_v52 = vld [vmem:[%s18630_s1 + $0x13c8] sm:$0xff]  }
 0x255   :  { %13561 = vmatprep.subr.bf16.mxu0 %v14774_v54  ;;  %v14813_v54 = vld [vmem:[%s18630_s1 + $0x1388] sm:$0xff]  }
 0x256   :  { %13582 = vmatpush3.bf16.msra.mxu1 %v14773_v53  ;;  %v14812_v53 = vld [vmem:[%s18630_s1 + $0x1308] sm:$0xff]  }
 0x257   :  { %13583 = vmatprep.subr.bf16.mxu1 %v14775_v55  ;;  %v14814_v55 = vld [vmem:[%s18630_s1 + $0x1340] sm:$0xff]  }
 0x258   :  { %13562 = vmatpush3.bf16.msra.mxu0 %v14776_v56  ;;  %v14815_v56 = vld [vmem:[%s18630_s1 + $0x13c0] sm:$0xff]  }
 0x259   :  { %13563 = vmatprep.subr.bf16.mxu0 %v14778_v58  ;;  %v14817_v58 = vld [vmem:[%s18630_s1 + $0x1380] sm:$0xff]  }
 0x25a   :  { %13584 = vmatpush3.bf16.msra.mxu1 %v14777_v57  ;;  %v14816_v57 = vld [vmem:[%s18630_s1 + $0x1300] sm:$0xff]  }
 0x25b   :  { %13585 = vmatprep.subr.bf16.mxu1 %v14779_v59  ;;  %v2574_v59 = vrot.slane %v17245_v5, %v15358_v41  ;;  %v14826_v5 = vld [vmem:[%s18630_s1 + $0x14b0] sm:$0xff]  }
 0x25c   :  { %13564 = vmatpush3.bf16.msra.mxu0 %v14780_v60  ;;  %v14819_v60 = vld [vmem:[%s18630_s1 + $0x1478] sm:$0xff]  }
 0x25d   :  { %13565 = vmatprep.subr.bf16.mxu0 %v14782_v63  ;;  %v14822_v63 = vld [vmem:[%s18630_s1 + $0x14b8] sm:$0xff]   ;;  %v2590_v0 = vcombine.high %v2574_v59, %v2574_v59 }
 0x25e   :  { %13586 = vmatpush3.bf16.msra.mxu1 %v14781_v61  ;;  %v14820_v61 = vld [vmem:[%s18630_s1 + $0x14f8] sm:$0xff]  }
 0x25f   :  { %13587 = vmatprep.subr.bf16.mxu1 %v14783_v2  ;;  %v14824_v2 = vld [vmem:[%s18630_s1 + $0x14f0] sm:$0xff]  }
 0x260   :  { %13566 = vmatpush3.bf16.msra.mxu0 %v14784_v3 }
 0x261   :  { %13595 = vmatprep.subr.bf16.mxu0 %v14786_v9 }
 0x262   :  { %13588 = vmatpush3.bf16.msra.mxu1 %v14785_v6 }
 0x263   :  { %v13303_v20 = vpop.f32.mrf.mxu0  ;;  %10632 = vmatmul.mubr.bf16.vlgmr.msra.gmra.mxu0 %v2567_v8  ;;  %13617 = vmatprep.subr.bf16.mxu1 %v14787_v11  ;;  %v14827_v8 = vld [vmem:[%s18630_s1 + $0x1468] sm:$0xff]  }
 0x264   :  { %13596 = vmatpush3.bf16.msra.mxu0 %v14788_v13  ;;  %10711 = vmatprep.mubr.bf16.mxu0 %v2588_v14  ;;  %v14829_v13 = vld [vmem:[%s18630_s1 + $0x1428] sm:$0xff]  }
 0x265   :  { %v13325_v23 = vpop.f32.mrf.mxu1  ;;  %10672 = vmatmul.mubr.bf16.vlgmr.msra.gmra.mxu1 %v2589_v16  ;;  %v13304_v24 = vpop.f32.mrf.mxu0  ;;  %13597 = vmatprep.subr.bf16.mxu0 %v14790_v17  ;;  %v14830_v16 = vld [vmem:[%s18630_s1 + $0x14a8] sm:$0xff]  }
 0x266   :  { %13618 = vmatpush3.bf16.msra.mxu1 %v14789_v15  ;;  %v13305_v26 = vadd.f32 %v13304_v24, %v13303_v20  ;;  %10751 = vmatprep.mubr.bf16.mxu1 %v2592_v19  ;;  %v14831_v19 = vld [vmem:[%s18630_s1 + $0x1460] sm:$0xff]  }
 0x267   :  { %v13326_v28 = vpop.f32.mrf.mxu1  ;;  %v13306_v29 = vpop.f32.mrf.mxu0  ;;  %13619 = vmatprep.subr.bf16.mxu1 %v14791_v18  ;;  %v14834_v24 = vld [vmem:[%s18630_s1 + $0x14a0] sm:$0xff]  }
 0x268   :  { %v10154_v31 = vadd.f32 %v13305_v26, %v17184_v45  ;;  %v13327_v32 = vadd.f32 %v13326_v28, %v13325_v23  ;;  %13598 = vmatpush3.bf16.msra.mxu0 %v14792_v21  ;;  %v14804_v45 = vld [vmem:[%s18630_s1 + $0x1318] sm:$0xff]   ;;  %v14832_v21 = vld [vmem:[%s18630_s1 + $0x14e0] sm:$0xff]   ;;  %v14839_v29 = vld [vmem:[%s18630_s1 + $0x1450] sm:$0xff]  }
 0x269   :  { %v13328_v34 = vpop.f32.mrf.mxu1  ;;  %v13307_v35 = vpop.f32.mrf.mxu0  ;;  %13599 = vmatprep.subr.bf16.mxu0 %v14794_v25  ;;  %v14833_v23 = vld [vmem:[%s18630_s1 + $0x1420] sm:$0xff]   ;;  %v14835_v25 = vld [vmem:[%s18630_s1 + $0x1458] sm:$0xff]  }
 0x26a   :  { %v17295_v37 = vadd.f32 %v13327_v32, %v10154_v31  ;;  %13620 = vmatpush3.bf16.msra.mxu1 %v14793_v22  ;;  %v14836_v26 = vld [vmem:[%s18630_s1 + $0x14d8] sm:$0xff]   ;;  %v14841_v31 = vld [vmem:[%s18630_s1 + $0x1410] sm:$0xff]   ;;  %v14844_v34 = vld [vmem:[%s18630_s1 + $0x14c8] sm:$0xff]  }
 0x26b   :  { %v13329_v39 = vpop.f32.mrf.mxu1  ;;  %13621 = vmatprep.subr.bf16.mxu1 %v14795_v27  ;;  %v14837_v27 = vld [vmem:[%s18630_s1 + $0x1418] sm:$0xff]   ;;  %v14842_v32 = vld [vmem:[%s18630_s1 + $0x1490] sm:$0xff]   ;;  %v14845_v35 = vld [vmem:[%s18630_s1 + $0x1408] sm:$0xff]  }
 0x26c   :  { %13600 = vmatpush3.bf16.msra.mxu0 %v14796_v30  ;;  %v14838_v28 = vld [vmem:[%s18630_s1 + $0x1498] sm:$0xff]   ;;  %v14840_v30 = vld [vmem:[%s18630_s1 + $0x14d0] sm:$0xff]  }
 0x26d   :  { %13601 = vmatprep.subr.bf16.mxu0 %v14798_v36  ;;  %v14846_v36 = vld [vmem:[%s18630_s1 + $0x1488] sm:$0xff]  }
 0x26e   :  { %13622 = vmatpush3.bf16.msra.mxu1 %v14797_v33  ;;  %v14843_v33 = vld [vmem:[%s18630_s1 + $0x1448] sm:$0xff]  }
 0x26f   :  { %13623 = vmatprep.subr.bf16.mxu1 %v14799_v38  ;;  %v14847_v38 = vld [vmem:[%s18630_s1 + $0x1440] sm:$0xff]  }
 0x270   :  { %13602 = vmatpush3.bf16.msra.mxu0 %v14800_v40 }
 0x271   :  { %13603 = vmatprep.subr.bf16.mxu0 %v14802_v43  ;;  %v14849_v43 = vld [vmem:[%s18630_s1 + $0x1400] sm:$0xff]  }
 0x272   :  { %13624 = vmatpush3.bf16.msra.mxu1 %v14801_v42  ;;  %v14848_v42 = vld [vmem:[%s18630_s1 + $0x14c0] sm:$0xff]  }
 0x273   :  { %13625 = vmatprep.subr.bf16.mxu1 %v14803_v44 }
 0x274   :  { %13604 = vmatpush3.bf16.msra.mxu0 %v14804_v45 }
 0x275   :  { %13605 = vmatprep.subr.bf16.mxu0 %v14806_v47 }
 0x276   :  { %13626 = vmatpush3.bf16.msra.mxu1 %v14805_v46  ;;  %v14850_v46 = vld [vmem:[%s18630_s1 + $0x1480] sm:$0xff]  }
 0x277   :  { %13627 = vmatprep.subr.bf16.mxu1 %v14807_v48 }
 0x278   :  { %13606 = vmatpush3.bf16.msra.mxu0 %v14808_v49  ;;  %v14851_v49 = vld [vmem:[%s18630_s1 + $0x1578] sm:$0xff]  }
 0x279   :  { %13607 = vmatprep.subr.bf16.mxu0 %v14810_v51  ;;  %v14852_v51 = vld [vmem:[%s18630_s1 + $0x15f8] sm:$0xff]  }
 0x27a   :  { %13628 = vmatpush3.bf16.msra.mxu1 %v14809_v50 }
 0x27b   :  { %13629 = vmatprep.subr.bf16.mxu1 %v14811_v52 }
 0x27c   :  { %13608 = vmatpush3.bf16.msra.mxu0 %v14812_v53  ;;  %v14853_v53 = vld [vmem:[%s18630_s1 + $0x1538] sm:$0xff]  }
 0x27d   :  { %13609 = vmatprep.subr.bf16.mxu0 %v14814_v55  ;;  %v14854_v55 = vld [vmem:[%s18630_s1 + $0x15b8] sm:$0xff]  }
 0x27e   :  { %13630 = vmatpush3.bf16.msra.mxu1 %v14813_v54 }
 0x27f   :  { %13631 = vmatprep.subr.bf16.mxu1 %v14815_v56 }
 0x280   :  { %13610 = vmatpush3.bf16.msra.mxu0 %v14816_v57  ;;  %v14855_v57 = vld [vmem:[%s18630_s1 + $0x1570] sm:$0xff]  }
 0x281   :  { %13639 = vmatprep.subr.bf16.mxu0 %v14819_v60 }
 0x282   :  { %13632 = vmatpush3.bf16.msra.mxu1 %v14817_v58  ;;  %v14856_v58 = vld [vmem:[%s18630_s1 + $0x15f0] sm:$0xff]  }
 0x283   :  { %v13347_v3 = vpop.f32.mrf.mxu0  ;;  %10712 = vmatmul.mubr.bf16.vlgmr.msra.gmra.mxu0 %v2574_v59  ;;  %13661 = vmatprep.subr.bf16.mxu1 %v14820_v61  ;;  %v14857_v61 = vld [vmem:[%s18630_s1 + $0x1530] sm:$0xff]  }
 0x284   :  { %13640 = vmatpush3.bf16.msra.mxu0 %v14821_v62  ;;  %v14858_v62 = vld [vmem:[%s18630_s1 + $0x15b0] sm:$0xff]  }
 0x285   :  { %v13369_v6 = vpop.f32.mrf.mxu1  ;;  %10752 = vmatmul.mubr.bf16.vlgmr.msra.gmra.mxu1 %v2590_v0  ;;  %v13348_v7 = vpop.f32.mrf.mxu0  ;;  %13641 = vmatprep.subr.bf16.mxu0 %v14823_v1  ;;  %v14859_v1 = vld [vmem:[%s18630_s1 + $0x1568] sm:$0xff]  }
 0x286   :  { %13662 = vmatpush3.bf16.msra.mxu1 %v14822_v63  ;;  %v13349_v9 = vadd.f32 %v13348_v7, %v13347_v3  ;;  %v14860_v3 = vld [vmem:[%s18630_s1 + $0x15e8] sm:$0xff]  }
 0x287   :  { %v13370_v11 = vpop.f32.mrf.mxu1  ;;  %v13350_v12 = vpop.f32.mrf.mxu0  ;;  %13663 = vmatprep.subr.bf16.mxu1 %v14824_v2 }
 0x288   :  { %v10234_v14 = vadd.f32 %v13349_v9, %v17295_v37  ;;  %v13371_v15 = vadd.f32 %v13370_v11, %v13369_v6  ;;  %13642 = vmatpush3.bf16.msra.mxu0 %v14825_v4  ;;  %v26_v37 = vld [vmem:[%s18629_s0 + $0x50] sm:$0xff]  ;;  %v14861_v6 = vld [vmem:[%s18630_s1 + $0x1528] sm:$0xff]   ;;  %v14863_v12 = vld [vmem:[%s18630_s1 + $0x1560] sm:$0xff]  }
 0x289   :  { %v13372_v17 = vpop.f32.mrf.mxu1  ;;  %v13351_v18 = vpop.f32.mrf.mxu0  ;;  %13643 = vmatprep.subr.bf16.mxu0 %v14827_v8  ;;  %v2600_v39 = vrot.slane %v26_v37, %v15358_v41  ;;  %v2593_v40 = vcombine.high %v26_v37, %v26_v37  ;;  %v14862_v9 = vld [vmem:[%s18630_s1 + $0x15a8] sm:$0xff]   ;;  %v14886_v37 = vld [vmem:[%s18630_s1 + $0x1638] sm:$0xff]  }
 0x28a   :  { %v17396_v20 = vadd.f32 %v13371_v15, %v10234_v14  ;;  %13664 = vmatpush3.bf16.msra.mxu1 %v14826_v5  ;;  %v14864_v14 = vld [vmem:[%s18630_s1 + $0x15e0] sm:$0xff]   ;;  %v14867_v18 = vld [vmem:[%s18630_s1 + $0x1558] sm:$0xff]  }
 0x28b   :  { %v13373_v22 = vpop.f32.mrf.mxu1  ;;  %13665 = vmatprep.subr.bf16.mxu1 %v14828_v10  ;;  %v2608_v44 = vcombine.high %v2600_v39, %v2600_v39  ;;  %v17457_v45 = vrot.slane %v2593_v40, %v15358_v41  ;;  %v2616_v48 = vrot.slane %v2600_v39, %v15358_v41  ;;  %v14866_v17 = vld [vmem:[%s18630_s1 + $0x15a0] sm:$0xff]   ;;  %v14888_v40 = vld [vmem:[%s18630_s1 + $0x1670] sm:$0xff]  }
 0x28c   :  { %13644 = vmatpush3.bf16.msra.mxu0 %v14829_v13  ;;  %v14871_v22 = vld [vmem:[%s18630_s1 + $0x1550] sm:$0xff]  }
 0x28d   :  { %13645 = vmatprep.subr.bf16.mxu0 %v14831_v19  ;;  %v2630_v47 = vrot.slane %v2608_v44, %v15358_v41  ;;  %v2609_v50 = vcombine.high %v17457_v45, %v17457_v45  ;;  %v2638_v56 = vcombine.high %v2616_v48, %v2616_v48  ;;  %v14868_v19 = vld [vmem:[%s18630_s1 + $0x15d8] sm:$0xff]   ;;  %v14890_v44 = vld [vmem:[%s18630_s1 + $0x1630] sm:$0xff]  }
 0x28e   :  { %13666 = vmatpush3.bf16.msra.mxu1 %v14830_v16  ;;  %v14865_v16 = vld [vmem:[%s18630_s1 + $0x1520] sm:$0xff]  }
 0x28f   :  { %13667 = vmatprep.subr.bf16.mxu1 %v14832_v21  ;;  %10791 = vmatprep.mubr.bf16.mxu0 %v2630_v47  ;;  %v2640_v52 = vcombine.high %v2630_v47, %v2630_v47  ;;  %v2637_v54 = vrot.slane %v2609_v50, %v15358_v41  ;;  %v14870_v21 = vld [vmem:[%s18630_s1 + $0x1598] sm:$0xff]   ;;  %v14893_v50 = vld [vmem:[%s18630_s1 + $0x16e8] sm:$0xff]  }
 0x290   :  { %13646 = vmatpush3.bf16.msra.mxu0 %v14833_v23  ;;  %v14872_v23 = vld [vmem:[%s18630_s1 + $0x15d0] sm:$0xff]  }
 0x291   :  { %13647 = vmatprep.subr.bf16.mxu0 %v14835_v25  ;;  %10831 = vmatprep.mubr.bf16.mxu1 %v2640_v52  ;;  %v2641_v59 = vcombine.high %v2637_v54, %v2637_v54  ;;  %v14874_v25 = vld [vmem:[%s18630_s1 + $0x1590] sm:$0xff]  }
 0x292   :  { %13668 = vmatpush3.bf16.msra.mxu1 %v14834_v24  ;;  %v14873_v24 = vld [vmem:[%s18630_s1 + $0x1510] sm:$0xff]  }
 0x293   :  { %13669 = vmatprep.subr.bf16.mxu1 %v14836_v26  ;;  %v14875_v26 = vld [vmem:[%s18630_s1 + $0x1548] sm:$0xff]  }
 0x294   :  { %13648 = vmatpush3.bf16.msra.mxu0 %v14837_v27  ;;  %v14876_v27 = vld [vmem:[%s18630_s1 + $0x15c8] sm:$0xff]  }
 0x295   :  { %13649 = vmatprep.subr.bf16.mxu0 %v14839_v29  ;;  %v14878_v29 = vld [vmem:[%s18630_s1 + $0x1588] sm:$0xff]  }
 0x296   :  { %13670 = vmatpush3.bf16.msra.mxu1 %v14838_v28  ;;  %v14877_v28 = vld [vmem:[%s18630_s1 + $0x1508] sm:$0xff]  }
 0x297   :  { %13671 = vmatprep.subr.bf16.mxu1 %v14840_v30  ;;  %v14879_v30 = vld [vmem:[%s18630_s1 + $0x1540] sm:$0xff]  }
 0x298   :  { %13650 = vmatpush3.bf16.msra.mxu0 %v14841_v31  ;;  %v14880_v31 = vld [vmem:[%s18630_s1 + $0x15c0] sm:$0xff]  }
 0x299   :  { %13651 = vmatprep.subr.bf16.mxu0 %v14843_v33  ;;  %v14882_v33 = vld [vmem:[%s18630_s1 + $0x1580] sm:$0xff]  }
 0x29a   :  { %13672 = vmatpush3.bf16.msra.mxu1 %v14842_v32  ;;  %v14881_v32 = vld [vmem:[%s18630_s1 + $0x1500] sm:$0xff]  }
 0x29b   :  { %13673 = vmatprep.subr.bf16.mxu1 %v14844_v34  ;;  %v2623_v34 = vrot.slane %v17457_v45, %v15358_v41  ;;  %v14891_v45 = vld [vmem:[%s18630_s1 + $0x16b0] sm:$0xff]  }
 0x29c   :  { %13652 = vmatpush3.bf16.msra.mxu0 %v14845_v35  ;;  %v14884_v35 = vld [vmem:[%s18630_s1 + $0x1678] sm:$0xff]  }
 0x29d   :  { %13653 = vmatprep.subr.bf16.mxu0 %v14847_v38  ;;  %v14887_v38 = vld [vmem:[%s18630_s1 + $0x16b8] sm:$0xff]   ;;  %v2639_v39 = vcombine.high %v2623_v34, %v2623_v34 }
 0x29e   :  { %13674 = vmatpush3.bf16.msra.mxu1 %v14846_v36  ;;  %v14885_v36 = vld [vmem:[%s18630_s1 + $0x16f8] sm:$0xff]  }
 0x29f   :  { %13675 = vmatprep.subr.bf16.mxu1 %v14848_v42  ;;  %v14889_v42 = vld [vmem:[%s18630_s1 + $0x16f0] sm:$0xff]  }
 0x2a0   :  { %13654 = vmatpush3.bf16.msra.mxu0 %v14849_v43 }
 0x2a1   :  { %13683 = vmatprep.subr.bf16.mxu0 %v14851_v49 }
 0x2a2   :  { %13676 = vmatpush3.bf16.msra.mxu1 %v14850_v46 }
 0x2a3   :  { %v13391_v60 = vpop.f32.mrf.mxu0  ;;  %10792 = vmatmul.mubr.bf16.vlgmr.msra.gmra.mxu0 %v2616_v48  ;;  %13705 = vmatprep.subr.bf16.mxu1 %v14852_v51  ;;  %v14892_v48 = vld [vmem:[%s18630_s1 + $0x1668] sm:$0xff]  }
 0x2a4   :  { %13684 = vmatpush3.bf16.msra.mxu0 %v14853_v53  ;;  %10871 = vmatprep.mubr.bf16.mxu0 %v2637_v54  ;;  %v14894_v53 = vld [vmem:[%s18630_s1 + $0x1628] sm:$0xff]  }
 0x2a5   :  { %v13413_v63 = vpop.f32.mrf.mxu1  ;;  %10832 = vmatmul.mubr.bf16.vlgmr.msra.gmra.mxu1 %v2638_v56  ;;  %v13392_v0 = vpop.f32.mrf.mxu0  ;;  %13685 = vmatprep.subr.bf16.mxu0 %v14855_v57  ;;  %v14895_v56 = vld [vmem:[%s18630_s1 + $0x16a8] sm:$0xff]  }
 0x2a6   :  { %13706 = vmatpush3.bf16.msra.mxu1 %v14854_v55  ;;  %v13393_v2 = vadd.f32 %v13392_v0, %v13391_v60  ;;  %10911 = vmatprep.mubr.bf16.mxu1 %v2641_v59  ;;  %v14896_v59 = vld [vmem:[%s18630_s1 + $0x1660] sm:$0xff]  }
 0x2a7   :  { %v13414_v4 = vpop.f32.mrf.mxu1  ;;  %v13394_v5 = vpop.f32.mrf.mxu0  ;;  %13707 = vmatprep.subr.bf16.mxu1 %v14856_v58  ;;  %v14899_v0 = vld [vmem:[%s18630_s1 + $0x16a0] sm:$0xff]  }
 0x2a8   :  { %v10314_v7 = vadd.f32 %v13393_v2, %v17396_v20  ;;  %v13415_v8 = vadd.f32 %v13414_v4, %v13413_v63  ;;  %13686 = vmatpush3.bf16.msra.mxu0 %v14857_v61  ;;  %v14869_v20 = vld [vmem:[%s18630_s1 + $0x1518] sm:$0xff]   ;;  %v14897_v61 = vld [vmem:[%s18630_s1 + $0x16e0] sm:$0xff]   ;;  %v14904_v5 = vld [vmem:[%s18630_s1 + $0x1650] sm:$0xff]  }
 0x2a9   :  { %v13416_v10 = vpop.f32.mrf.mxu1  ;;  %v13395_v11 = vpop.f32.mrf.mxu0  ;;  %13687 = vmatprep.subr.bf16.mxu0 %v14859_v1  ;;  %v14898_v63 = vld [vmem:[%s18630_s1 + $0x1620] sm:$0xff]   ;;  %v14900_v1 = vld [vmem:[%s18630_s1 + $0x1658] sm:$0xff]  }
 0x2aa   :  { %v17507_v13 = vadd.f32 %v13415_v8, %v10314_v7  ;;  %13708 = vmatpush3.bf16.msra.mxu1 %v14858_v62  ;;  %v14901_v2 = vld [vmem:[%s18630_s1 + $0x16d8] sm:$0xff]   ;;  %v14906_v7 = vld [vmem:[%s18630_s1 + $0x1610] sm:$0xff]   ;;  %v14909_v10 = vld [vmem:[%s18630_s1 + $0x16c8] sm:$0xff]  }
 0x2ab   :  { %v13417_v15 = vpop.f32.mrf.mxu1  ;;  %13709 = vmatprep.subr.bf16.mxu1 %v14860_v3  ;;  %v14902_v3 = vld [vmem:[%s18630_s1 + $0x1618] sm:$0xff]   ;;  %v14907_v8 = vld [vmem:[%s18630_s1 + $0x1690] sm:$0xff]   ;;  %v14910_v11 = vld [vmem:[%s18630_s1 + $0x1608] sm:$0xff]  }
 0x2ac   :  { %13688 = vmatpush3.bf16.msra.mxu0 %v14861_v6  ;;  %v14903_v4 = vld [vmem:[%s18630_s1 + $0x1698] sm:$0xff]   ;;  %v14905_v6 = vld [vmem:[%s18630_s1 + $0x16d0] sm:$0xff]   ;;  %v14913_v15 = vld [vmem:[%s18630_s1 + $0x16c0] sm:$0xff]  }
 0x2ad   :  { %13689 = vmatprep.subr.bf16.mxu0 %v14863_v12  ;;  %v14911_v12 = vld [vmem:[%s18630_s1 + $0x1688] sm:$0xff]  }
 0x2ae   :  { %13710 = vmatpush3.bf16.msra.mxu1 %v14862_v9  ;;  %v14908_v9 = vld [vmem:[%s18630_s1 + $0x1648] sm:$0xff]  }
 0x2af   :  { %13711 = vmatprep.subr.bf16.mxu1 %v14864_v14  ;;  %v27_v14 = vld [vmem:[%s18629_s0 + $0x58] sm:$0xff] }
 0x2b0   :  { %13690 = vmatpush3.bf16.msra.mxu0 %v14865_v16  ;;  %v2649_v16 = vrot.slane %v27_v14, %v15358_v41 }
 0x2b1   :  { %13691 = vmatprep.subr.bf16.mxu0 %v14867_v18  ;;  %v14914_v18 = vld [vmem:[%s18630_s1 + $0x1600] sm:$0xff]  }
 0x2b2   :  { %13712 = vmatpush3.bf16.msra.mxu1 %v14866_v17  ;;  %v2642_v17 = vcombine.high %v27_v14, %v27_v14  ;;  %v14952_v14 = vld [vmem:[%s18630_s1 + $0x18b8] sm:$0xff]  }
 0x2b3   :  { %13713 = vmatprep.subr.bf16.mxu1 %v14868_v19  ;;  %v14915_v19 = vld [vmem:[%s18630_s1 + $0x1680] sm:$0xff]  }
 0x2b4   :  { %13692 = vmatpush3.bf16.msra.mxu0 %v14869_v20  ;;  %v2657_v20 = vcombine.high %v2649_v16, %v2649_v16 }
 0x2b5   :  { %13693 = vmatprep.subr.bf16.mxu0 %v14871_v22  ;;  %v2665_v22 = vrot.slane %v2649_v16, %v15358_v41  ;;  %v14953_v16 = vld [vmem:[%s18630_s1 + $0x1870] sm:$0xff]  }
 0x2b6   :  { %13714 = vmatpush3.bf16.msra.mxu1 %v14870_v21  ;;  %v17672_v21 = vrot.slane %v2642_v17, %v15358_v41  ;;  %v14954_v17 = vld [vmem:[%s18630_s1 + $0x18f0] sm:$0xff]  }
 0x2b7   :  { %13715 = vmatprep.subr.bf16.mxu1 %v14872_v23  ;;  %v14916_v23 = vld [vmem:[%s18630_s1 + $0x1778] sm:$0xff]  }
 0x2b8   :  { %13694 = vmatpush3.bf16.msra.mxu0 %v14873_v24  ;;  %v2679_v24 = vrot.slane %v2657_v20, %v15358_v41  ;;  %v14956_v20 = vld [vmem:[%s18630_s1 + $0x18b0] sm:$0xff]  }
 0x2b9   :  { %13695 = vmatprep.subr.bf16.mxu0 %v14875_v26  ;;  %v2658_v26 = vcombine.high %v17672_v21, %v17672_v21 }
 0x2ba   :  { %13716 = vmatpush3.bf16.msra.mxu1 %v14874_v25  ;;  %v14917_v25 = vld [vmem:[%s18630_s1 + $0x17f8] sm:$0xff]  }
 0x2bb   :  { %13717 = vmatprep.subr.bf16.mxu1 %v14876_v27  ;;  %v14918_v27 = vld [vmem:[%s18630_s1 + $0x1738] sm:$0xff]  }
 0x2bc   :  { %13696 = vmatpush3.bf16.msra.mxu0 %v14877_v28  ;;  %v2689_v28 = vcombine.high %v2679_v24, %v2679_v24 }
 0x2bd   :  { %13697 = vmatprep.subr.bf16.mxu0 %v14879_v30  ;;  %v2686_v30 = vrot.slane %v2658_v26, %v15358_v41 }
 0x2be   :  { %13718 = vmatpush3.bf16.msra.mxu1 %v14878_v29  ;;  %v14919_v29 = vld [vmem:[%s18630_s1 + $0x17b8] sm:$0xff]  }
 0x2bf   :  { %13719 = vmatprep.subr.bf16.mxu1 %v14880_v31  ;;  %v2687_v31 = vcombine.high %v2665_v22, %v2665_v22 }
 0x2c0   :  { %13698 = vmatpush3.bf16.msra.mxu0 %v14881_v32  ;;  %v14920_v32 = vld [vmem:[%s18630_s1 + $0x1770] sm:$0xff]  }
 0x2c1   :  { %13727 = vmatprep.subr.bf16.mxu0 %v14884_v35 }
 0x2c2   :  { %13720 = vmatpush3.bf16.msra.mxu1 %v14882_v33  ;;  %v14921_v33 = vld [vmem:[%s18630_s1 + $0x17f0] sm:$0xff]  }
 0x2c3   :  { %v13435_v43 = vpop.f32.mrf.mxu0  ;;  %10872 = vmatmul.mubr.bf16.vlgmr.msra.gmra.mxu0 %v2623_v34  ;;  %13749 = vmatprep.subr.bf16.mxu1 %v14885_v36  ;;  %v2690_v34 = vcombine.high %v2686_v30, %v2686_v30  ;;  %v14922_v36 = vld [vmem:[%s18630_s1 + $0x1730] sm:$0xff]  }
 0x2c4   :  { %13728 = vmatpush3.bf16.msra.mxu0 %v14886_v37  ;;  %10951 = vmatprep.mubr.bf16.mxu0 %v2679_v24  ;;  %v14923_v37 = vld [vmem:[%s18630_s1 + $0x17b0] sm:$0xff]  }
 0x2c5   :  { %v13457_v46 = vpop.f32.mrf.mxu1  ;;  %10912 = vmatmul.mubr.bf16.vlgmr.msra.gmra.mxu1 %v2639_v39  ;;  %v13436_v47 = vpop.f32.mrf.mxu0  ;;  %13729 = vmatprep.subr.bf16.mxu0 %v14888_v40  ;;  %v14924_v40 = vld [vmem:[%s18630_s1 + $0x1768] sm:$0xff]  }
 0x2c6   :  { %13750 = vmatpush3.bf16.msra.mxu1 %v14887_v38  ;;  %v13437_v49 = vadd.f32 %v13436_v47, %v13435_v43  ;;  %10991 = vmatprep.mubr.bf16.mxu1 %v2689_v28  ;;  %v14925_v43 = vld [vmem:[%s18630_s1 + $0x17e8] sm:$0xff]  }
 0x2c7   :  { %v13458_v51 = vpop.f32.mrf.mxu1  ;;  %v13438_v52 = vpop.f32.mrf.mxu0  ;;  %13751 = vmatprep.subr.bf16.mxu1 %v14889_v42  ;;  %v14959_v28 = vld [vmem:[%s18630_s1 + $0x1828] sm:$0xff]  }
 0x2c8   :  { %v10394_v54 = vadd.f32 %v13437_v49, %v17507_v13  ;;  %v13459_v55 = vadd.f32 %v13458_v51, %v13457_v46  ;;  %13730 = vmatpush3.bf16.msra.mxu0 %v14890_v44  ;;  %v14912_v13 = vld [vmem:[%s18630_s1 + $0x1640] sm:$0xff]   ;;  %v14926_v46 = vld [vmem:[%s18630_s1 + $0x1728] sm:$0xff]  }
 0x2c9   :  { %v13460_v57 = vpop.f32.mrf.mxu1  ;;  %v13439_v58 = vpop.f32.mrf.mxu0  ;;  %13731 = vmatprep.subr.bf16.mxu0 %v14892_v48  ;;  %v14927_v49 = vld [vmem:[%s18630_s1 + $0x17a8] sm:$0xff]   ;;  %v14928_v52 = vld [vmem:[%s18630_s1 + $0x1760] sm:$0xff]  }
 0x2ca   :  { %v17608_v60 = vadd.f32 %v13459_v55, %v10394_v54  ;;  %13752 = vmatpush3.bf16.msra.mxu1 %v14891_v45  ;;  %v14929_v54 = vld [vmem:[%s18630_s1 + $0x17e0] sm:$0xff]   ;;  %v14932_v58 = vld [vmem:[%s18630_s1 + $0x1758] sm:$0xff]  }
 0x2cb   :  { %v13461_v62 = vpop.f32.mrf.mxu1  ;;  %13753 = vmatprep.subr.bf16.mxu1 %v14893_v50  ;;  %v14931_v57 = vld [vmem:[%s18630_s1 + $0x17a0] sm:$0xff]  }
 0x2cc   :  { %13732 = vmatpush3.bf16.msra.mxu0 %v14894_v53  ;;  %v14936_v62 = vld [vmem:[%s18630_s1 + $0x1750] sm:$0xff]  }
 0x2cd   :  { %13733 = vmatprep.subr.bf16.mxu0 %v14896_v59  ;;  %v14933_v59 = vld [vmem:[%s18630_s1 + $0x17d8] sm:$0xff]  }
 0x2ce   :  { %13754 = vmatpush3.bf16.msra.mxu1 %v14895_v56  ;;  %v14930_v56 = vld [vmem:[%s18630_s1 + $0x1720] sm:$0xff]  }
 0x2cf   :  { %13755 = vmatprep.subr.bf16.mxu1 %v14897_v61  ;;  %v14935_v61 = vld [vmem:[%s18630_s1 + $0x1798] sm:$0xff]  }
 0x2d0   :  { %13734 = vmatpush3.bf16.msra.mxu0 %v14898_v63  ;;  %v14937_v63 = vld [vmem:[%s18630_s1 + $0x17d0] sm:$0xff]  }
 0x2d1   :  { %13735 = vmatprep.subr.bf16.mxu0 %v14900_v1  ;;  %v14939_v1 = vld [vmem:[%s18630_s1 + $0x1790] sm:$0xff]  }
 0x2d2   :  { %13756 = vmatpush3.bf16.msra.mxu1 %v14899_v0  ;;  %v14938_v0 = vld [vmem:[%s18630_s1 + $0x1710] sm:$0xff]  }
 0x2d3   :  { %13757 = vmatprep.subr.bf16.mxu1 %v14901_v2  ;;  %v14940_v2 = vld [vmem:[%s18630_s1 + $0x1748] sm:$0xff]  }
 0x2d4   :  { %13736 = vmatpush3.bf16.msra.mxu0 %v14902_v3  ;;  %v14941_v3 = vld [vmem:[%s18630_s1 + $0x17c8] sm:$0xff]  }
 0x2d5   :  { %13737 = vmatprep.subr.bf16.mxu0 %v14904_v5  ;;  %v14943_v5 = vld [vmem:[%s18630_s1 + $0x1788] sm:$0xff]  }
 0x2d6   :  { %13758 = vmatpush3.bf16.msra.mxu1 %v14903_v4  ;;  %v14942_v4 = vld [vmem:[%s18630_s1 + $0x1708] sm:$0xff]  }
 0x2d7   :  { %13759 = vmatprep.subr.bf16.mxu1 %v14905_v6  ;;  %v14944_v6 = vld [vmem:[%s18630_s1 + $0x1740] sm:$0xff]  }
 0x2d8   :  { %13738 = vmatpush3.bf16.msra.mxu0 %v14906_v7  ;;  %v14945_v7 = vld [vmem:[%s18630_s1 + $0x17c0] sm:$0xff]  }
 0x2d9   :  { %13739 = vmatprep.subr.bf16.mxu0 %v14908_v9  ;;  %v14947_v9 = vld [vmem:[%s18630_s1 + $0x1780] sm:$0xff]  }
 0x2da   :  { %13760 = vmatpush3.bf16.msra.mxu1 %v14907_v8  ;;  %v14946_v8 = vld [vmem:[%s18630_s1 + $0x1700] sm:$0xff]  }
 0x2db   :  { %13761 = vmatprep.subr.bf16.mxu1 %v14909_v10  ;;  %v2672_v10 = vrot.slane %v17672_v21, %v15358_v41 }
 0x2dc   :  { %13740 = vmatpush3.bf16.msra.mxu0 %v14910_v11  ;;  %v14949_v11 = vld [vmem:[%s18630_s1 + $0x1878] sm:$0xff]  }
 0x2dd   :  { %13741 = vmatprep.subr.bf16.mxu0 %v14912_v13  ;;  %v14951_v13 = vld [vmem:[%s18630_s1 + $0x1838] sm:$0xff]  }
 0x2de   :  { %13762 = vmatpush3.bf16.msra.mxu1 %v14911_v12  ;;  %v14950_v12 = vld [vmem:[%s18630_s1 + $0x18f8] sm:$0xff]  }
 0x2df   :  { %13763 = vmatprep.subr.bf16.mxu1 %v14913_v15  ;;  %v2688_v15 = vcombine.high %v2672_v10, %v2672_v10 }
 0x2e0   :  { %13742 = vmatpush3.bf16.msra.mxu0 %v14914_v18 }
 0x2e1   :  { %13771 = vmatprep.subr.bf16.mxu0 %v14916_v23  ;;  %v14957_v23 = vld [vmem:[%s18630_s1 + $0x1868] sm:$0xff]  }
 0x2e2   :  { %13764 = vmatpush3.bf16.msra.mxu1 %v14915_v19  ;;  %v14955_v19 = vld [vmem:[%s18630_s1 + $0x1830] sm:$0xff]  }
 0x2e3   :  { %v13479_v35 = vpop.f32.mrf.mxu0  ;;  %10952 = vmatmul.mubr.bf16.vlgmr.msra.gmra.mxu0 %v2665_v22  ;;  %13793 = vmatprep.subr.bf16.mxu1 %v14917_v25  ;;  %v14958_v25 = vld [vmem:[%s18630_s1 + $0x18e8] sm:$0xff]  }
 0x2e4   :  { %13772 = vmatpush3.bf16.msra.mxu0 %v14918_v27  ;;  %11031 = vmatprep.mubr.bf16.mxu0 %v2686_v30 }
 0x2e5   :  { %v13501_v38 = vpop.f32.mrf.mxu1  ;;  %10992 = vmatmul.mubr.bf16.vlgmr.msra.gmra.mxu1 %v2687_v31  ;;  %v13480_v39 = vpop.f32.mrf.mxu0  ;;  %13773 = vmatprep.subr.bf16.mxu0 %v14920_v32  ;;  %v14960_v31 = vld [vmem:[%s18630_s1 + $0x18a8] sm:$0xff]  }
 0x2e6   :  { %13794 = vmatpush3.bf16.msra.mxu1 %v14919_v29  ;;  %v13481_v42 = vadd.f32 %v13480_v39, %v13479_v35  ;;  %11071 = vmatprep.mubr.bf16.mxu1 %v2690_v34  ;;  %v14961_v34 = vld [vmem:[%s18630_s1 + $0x1860] sm:$0xff]  }
 0x2e7   :  { %v13502_v44 = vpop.f32.mrf.mxu1  ;;  %v13482_v45 = vpop.f32.mrf.mxu0  ;;  %13795 = vmatprep.subr.bf16.mxu1 %v14921_v33  ;;  %v14964_v39 = vld [vmem:[%s18630_s1 + $0x18a0] sm:$0xff]  }
 0x2e8   :  { %v10474_v47 = vadd.f32 %v13481_v42, %v17608_v60  ;;  %v13503_v48 = vadd.f32 %v13502_v44, %v13501_v38  ;;  %13774 = vmatpush3.bf16.msra.mxu0 %v14922_v36  ;;  %v14934_v60 = vld [vmem:[%s18630_s1 + $0x1718] sm:$0xff]   ;;  %v14962_v36 = vld [vmem:[%s18630_s1 + $0x18e0] sm:$0xff]   ;;  %v14969_v45 = vld [vmem:[%s18630_s1 + $0x1850] sm:$0xff]  }
 0x2e9   :  { %v13504_v50 = vpop.f32.mrf.mxu1  ;;  %v13483_v51 = vpop.f32.mrf.mxu0  ;;  %13775 = vmatprep.subr.bf16.mxu0 %v14924_v40  ;;  %v14963_v38 = vld [vmem:[%s18630_s1 + $0x1820] sm:$0xff]   ;;  %v14965_v40 = vld [vmem:[%s18630_s1 + $0x1858] sm:$0xff]  }
 0x2ea   :  { %v17719_v53 = vadd.f32 %v13503_v48, %v10474_v47  ;;  %13796 = vmatpush3.bf16.msra.mxu1 %v14923_v37  ;;  %v14966_v42 = vld [vmem:[%s18630_s1 + $0x18d8] sm:$0xff]   ;;  %v14971_v47 = vld [vmem:[%s18630_s1 + $0x1810] sm:$0xff]   ;;  %v14974_v50 = vld [vmem:[%s18630_s1 + $0x18c8] sm:$0xff]  }
 0x2eb   :  { %v13505_v55 = vpop.f32.mrf.mxu1  ;;  %13797 = vmatprep.subr.bf16.mxu1 %v14925_v43  ;;  %v14967_v43 = vld [vmem:[%s18630_s1 + $0x1818] sm:$0xff]   ;;  %v14972_v48 = vld [vmem:[%s18630_s1 + $0x1890] sm:$0xff]   ;;  %v14975_v51 = vld [vmem:[%s18630_s1 + $0x1808] sm:$0xff]  }
 0x2ec   :  { %13776 = vmatpush3.bf16.msra.mxu0 %v14926_v46  ;;  %v14968_v44 = vld [vmem:[%s18630_s1 + $0x1898] sm:$0xff]   ;;  %v14970_v46 = vld [vmem:[%s18630_s1 + $0x18d0] sm:$0xff]   ;;  %v14978_v55 = vld [vmem:[%s18630_s1 + $0x18c0] sm:$0xff]  }
 0x2ed   :  { %13777 = vmatprep.subr.bf16.mxu0 %v14928_v52  ;;  %v14976_v52 = vld [vmem:[%s18630_s1 + $0x1888] sm:$0xff]  }
 0x2ee   :  { %13798 = vmatpush3.bf16.msra.mxu1 %v14927_v49  ;;  %v14973_v49 = vld [vmem:[%s18630_s1 + $0x1848] sm:$0xff]  }
 0x2ef   :  { %13799 = vmatprep.subr.bf16.mxu1 %v14929_v54  ;;  %v28_v54 = vld [vmem:[%s18629_s0 + $0x60] sm:$0xff] }
 0x2f0   :  { %13778 = vmatpush3.bf16.msra.mxu0 %v14930_v56  ;;  %v2698_v56 = vrot.slane %v28_v54, %v15358_v41 }
 0x2f1   :  { %13779 = vmatprep.subr.bf16.mxu0 %v14932_v58  ;;  %v14979_v58 = vld [vmem:[%s18630_s1 + $0x1800] sm:$0xff]  }
 0x2f2   :  { %13800 = vmatpush3.bf16.msra.mxu1 %v14931_v57  ;;  %v2691_v57 = vcombine.high %v28_v54, %v28_v54  ;;  %v15017_v54 = vld [vmem:[%s18630_s1 + $0x1ab8] sm:$0xff]  }
 0x2f3   :  { %13801 = vmatprep.subr.bf16.mxu1 %v14933_v59  ;;  %v14980_v59 = vld [vmem:[%s18630_s1 + $0x1880] sm:$0xff]  }
 0x2f4   :  { %13780 = vmatpush3.bf16.msra.mxu0 %v14934_v60  ;;  %v2706_v60 = vcombine.high %v2698_v56, %v2698_v56 }
 0x2f5   :  { %13781 = vmatprep.subr.bf16.mxu0 %v14936_v62  ;;  %v2714_v62 = vrot.slane %v2698_v56, %v15358_v41  ;;  %v15018_v56 = vld [vmem:[%s18630_s1 + $0x1a70] sm:$0xff]  }
 0x2f6   :  { %13802 = vmatpush3.bf16.msra.mxu1 %v14935_v61  ;;  %v17884_v61 = vrot.slane %v2691_v57, %v15358_v41  ;;  %v15019_v57 = vld [vmem:[%s18630_s1 + $0x1af0] sm:$0xff]  }
 0x2f7   :  { %13803 = vmatprep.subr.bf16.mxu1 %v14937_v63  ;;  %v14981_v63 = vld [vmem:[%s18630_s1 + $0x1978] sm:$0xff]  }
 0x2f8   :  { %13782 = vmatpush3.bf16.msra.mxu0 %v14938_v0  ;;  %v2728_v0 = vrot.slane %v2706_v60, %v15358_v41  ;;  %v15021_v60 = vld [vmem:[%s18630_s1 + $0x1ab0] sm:$0xff]  }
 0x2f9   :  { %13783 = vmatprep.subr.bf16.mxu0 %v14940_v2  ;;  %v2707_v2 = vcombine.high %v17884_v61, %v17884_v61 }
 0x2fa   :  { %13804 = vmatpush3.bf16.msra.mxu1 %v14939_v1  ;;  %v14982_v1 = vld [vmem:[%s18630_s1 + $0x19f8] sm:$0xff]  }
 0x2fb   :  { %13805 = vmatprep.subr.bf16.mxu1 %v14941_v3  ;;  %v14983_v3 = vld [vmem:[%s18630_s1 + $0x1938] sm:$0xff]  }
 0x2fc   :  { %13784 = vmatpush3.bf16.msra.mxu0 %v14942_v4  ;;  %v2738_v4 = vcombine.high %v2728_v0, %v2728_v0 }
 0x2fd   :  { %13785 = vmatprep.subr.bf16.mxu0 %v14944_v6  ;;  %v2735_v6 = vrot.slane %v2707_v2, %v15358_v41 }
 0x2fe   :  { %13806 = vmatpush3.bf16.msra.mxu1 %v14943_v5  ;;  %v14984_v5 = vld [vmem:[%s18630_s1 + $0x19b8] sm:$0xff]  }
 0x2ff   :  { %13807 = vmatprep.subr.bf16.mxu1 %v14945_v7  ;;  %v2736_v7 = vcombine.high %v2714_v62, %v2714_v62 }
 0x300   :  { %13786 = vmatpush3.bf16.msra.mxu0 %v14946_v8  ;;  %v14985_v8 = vld [vmem:[%s18630_s1 + $0x1970] sm:$0xff]  }
 0x301   :  { %13815 = vmatprep.subr.bf16.mxu0 %v14949_v11 }
 0x302   :  { %13808 = vmatpush3.bf16.msra.mxu1 %v14947_v9  ;;  %v14986_v9 = vld [vmem:[%s18630_s1 + $0x19f0] sm:$0xff]  }
 0x303   :  { %v13523_v18 = vpop.f32.mrf.mxu0  ;;  %11032 = vmatmul.mubr.bf16.vlgmr.msra.gmra.mxu0 %v2672_v10  ;;  %13837 = vmatprep.subr.bf16.mxu1 %v14950_v12  ;;  %v2739_v10 = vcombine.high %v2735_v6, %v2735_v6  ;;  %v14987_v12 = vld [vmem:[%s18630_s1 + $0x1930] sm:$0xff]  }
 0x304   :  { %13816 = vmatpush3.bf16.msra.mxu0 %v14951_v13  ;;  %11111 = vmatprep.mubr.bf16.mxu0 %v2728_v0  ;;  %v14988_v13 = vld [vmem:[%s18630_s1 + $0x19b0] sm:$0xff]  }
 0x305   :  { %v13545_v21 = vpop.f32.mrf.mxu1  ;;  %11072 = vmatmul.mubr.bf16.vlgmr.msra.gmra.mxu1 %v2688_v15  ;;  %v13524_v22 = vpop.f32.mrf.mxu0  ;;  %13817 = vmatprep.subr.bf16.mxu0 %v14953_v16  ;;  %v14989_v16 = vld [vmem:[%s18630_s1 + $0x1968] sm:$0xff]  }
 0x306   :  { %13838 = vmatpush3.bf16.msra.mxu1 %v14952_v14  ;;  %v13525_v24 = vadd.f32 %v13524_v22, %v13523_v18  ;;  %11151 = vmatprep.mubr.bf16.mxu1 %v2738_v4  ;;  %v14990_v18 = vld [vmem:[%s18630_s1 + $0x19e8] sm:$0xff]  }
 0x307   :  { %v13546_v26 = vpop.f32.mrf.mxu1  ;;  %v13526_v27 = vpop.f32.mrf.mxu0  ;;  %13839 = vmatprep.subr.bf16.mxu1 %v14954_v17  ;;  %v15024_v4 = vld [vmem:[%s18630_s1 + $0x1a28] sm:$0xff]  }
 0x308   :  { %v10554_v29 = vadd.f32 %v13525_v24, %v17719_v53  ;;  %v13547_v30 = vadd.f32 %v13546_v26, %v13545_v21  ;;  %13818 = vmatpush3.bf16.msra.mxu0 %v14955_v19  ;;  %v14977_v53 = vld [vmem:[%s18630_s1 + $0x1840] sm:$0xff]   ;;  %v14991_v21 = vld [vmem:[%s18630_s1 + $0x1928] sm:$0xff]  }
 0x309   :  { %v13548_v32 = vpop.f32.mrf.mxu1  ;;  %v13527_v33 = vpop.f32.mrf.mxu0  ;;  %13819 = vmatprep.subr.bf16.mxu0 %v14957_v23  ;;  %v14992_v24 = vld [vmem:[%s18630_s1 + $0x19a8] sm:$0xff]   ;;  %v14993_v27 = vld [vmem:[%s18630_s1 + $0x1960] sm:$0xff]  }
 0x30a   :  { %v17820_v35 = vadd.f32 %v13547_v30, %v10554_v29  ;;  %13840 = vmatpush3.bf16.msra.mxu1 %v14956_v20  ;;  %v14994_v29 = vld [vmem:[%s18630_s1 + $0x19e0] sm:$0xff]   ;;  %v14997_v33 = vld [vmem:[%s18630_s1 + $0x1958] sm:$0xff]  }
 0x30b   :  { %v13549_v37 = vpop.f32.mrf.mxu1  ;;  %13841 = vmatprep.subr.bf16.mxu1 %v14958_v25  ;;  %v14996_v32 = vld [vmem:[%s18630_s1 + $0x19a0] sm:$0xff]  }
 0x30c   :  { %13820 = vmatpush3.bf16.msra.mxu0 %v14959_v28  ;;  %v15001_v37 = vld [vmem:[%s18630_s1 + $0x1950] sm:$0xff]  }
 0x30d   :  { %13821 = vmatprep.subr.bf16.mxu0 %v14961_v34  ;;  %v14998_v34 = vld [vmem:[%s18630_s1 + $0x19d8] sm:$0xff]  }
 0x30e   :  { %13842 = vmatpush3.bf16.msra.mxu1 %v14960_v31  ;;  %v14995_v31 = vld [vmem:[%s18630_s1 + $0x1920] sm:$0xff]  }
 0x30f   :  { %13843 = vmatprep.subr.bf16.mxu1 %v14962_v36  ;;  %v15000_v36 = vld [vmem:[%s18630_s1 + $0x1998] sm:$0xff]  }
 0x310   :  { %13822 = vmatpush3.bf16.msra.mxu0 %v14963_v38  ;;  %v15002_v38 = vld [vmem:[%s18630_s1 + $0x19d0] sm:$0xff]  }
 0x311   :  { %13823 = vmatprep.subr.bf16.mxu0 %v14965_v40  ;;  %v15004_v40 = vld [vmem:[%s18630_s1 + $0x1990] sm:$0xff]  }
 0x312   :  { %13844 = vmatpush3.bf16.msra.mxu1 %v14964_v39  ;;  %v15003_v39 = vld [vmem:[%s18630_s1 + $0x1910] sm:$0xff]  }
 0x313   :  { %13845 = vmatprep.subr.bf16.mxu1 %v14966_v42  ;;  %v15005_v42 = vld [vmem:[%s18630_s1 + $0x1948] sm:$0xff]  }
 0x314   :  { %13824 = vmatpush3.bf16.msra.mxu0 %v14967_v43  ;;  %v15006_v43 = vld [vmem:[%s18630_s1 + $0x19c8] sm:$0xff]  }
 0x315   :  { %13825 = vmatprep.subr.bf16.mxu0 %v14969_v45  ;;  %v15008_v45 = vld [vmem:[%s18630_s1 + $0x1988] sm:$0xff]  }
 0x316   :  { %13846 = vmatpush3.bf16.msra.mxu1 %v14968_v44  ;;  %v15007_v44 = vld [vmem:[%s18630_s1 + $0x1908] sm:$0xff]  }
 0x317   :  { %13847 = vmatprep.subr.bf16.mxu1 %v14970_v46  ;;  %v15009_v46 = vld [vmem:[%s18630_s1 + $0x1940] sm:$0xff]  }
 0x318   :  { %13826 = vmatpush3.bf16.msra.mxu0 %v14971_v47  ;;  %v15010_v47 = vld [vmem:[%s18630_s1 + $0x19c0] sm:$0xff]  }
 0x319   :  { %13827 = vmatprep.subr.bf16.mxu0 %v14973_v49  ;;  %v15012_v49 = vld [vmem:[%s18630_s1 + $0x1980] sm:$0xff]  }
 0x31a   :  { %13848 = vmatpush3.bf16.msra.mxu1 %v14972_v48  ;;  %v15011_v48 = vld [vmem:[%s18630_s1 + $0x1900] sm:$0xff]  }
 0x31b   :  { %13849 = vmatprep.subr.bf16.mxu1 %v14974_v50  ;;  %v2721_v50 = vrot.slane %v17884_v61, %v15358_v41 }
 0x31c   :  { %13828 = vmatpush3.bf16.msra.mxu0 %v14975_v51  ;;  %v15014_v51 = vld [vmem:[%s18630_s1 + $0x1a78] sm:$0xff]  }
 0x31d   :  { %13829 = vmatprep.subr.bf16.mxu0 %v14977_v53  ;;  %v15016_v53 = vld [vmem:[%s18630_s1 + $0x1a38] sm:$0xff]  }
 0x31e   :  { %13850 = vmatpush3.bf16.msra.mxu1 %v14976_v52  ;;  %v15015_v52 = vld [vmem:[%s18630_s1 + $0x1af8] sm:$0xff]  }
 0x31f   :  { %13851 = vmatprep.subr.bf16.mxu1 %v14978_v55  ;;  %v2737_v55 = vcombine.high %v2721_v50, %v2721_v50 }
 0x320   :  { %13830 = vmatpush3.bf16.msra.mxu0 %v14979_v58 }
 0x321   :  { %13859 = vmatprep.subr.bf16.mxu0 %v14981_v63  ;;  %v15022_v63 = vld [vmem:[%s18630_s1 + $0x1a68] sm:$0xff]  }
 0x322   :  { %13852 = vmatpush3.bf16.msra.mxu1 %v14980_v59  ;;  %v15020_v59 = vld [vmem:[%s18630_s1 + $0x1a30] sm:$0xff]  }
 0x323   :  { %v13567_v11 = vpop.f32.mrf.mxu0  ;;  %11112 = vmatmul.mubr.bf16.vlgmr.msra.gmra.mxu0 %v2714_v62  ;;  %13881 = vmatprep.subr.bf16.mxu1 %v14982_v1  ;;  %v15023_v1 = vld [vmem:[%s18630_s1 + $0x1ae8] sm:$0xff]  }
 0x324   :  { %13860 = vmatpush3.bf16.msra.mxu0 %v14983_v3  ;;  %11191 = vmatprep.mubr.bf16.mxu0 %v2735_v6 }
 0x325   :  { %v13589_v14 = vpop.f32.mrf.mxu1  ;;  %11152 = vmatmul.mubr.bf16.vlgmr.msra.gmra.mxu1 %v2736_v7  ;;  %v13568_v15 = vpop.f32.mrf.mxu0  ;;  %13861 = vmatprep.subr.bf16.mxu0 %v14985_v8  ;;  %v15025_v7 = vld [vmem:[%s18630_s1 + $0x1aa8] sm:$0xff]  }
 0x326   :  { %13882 = vmatpush3.bf16.msra.mxu1 %v14984_v5  ;;  %v13569_v17 = vadd.f32 %v13568_v15, %v13567_v11  ;;  %11231 = vmatprep.mubr.bf16.mxu1 %v2739_v10  ;;  %v15026_v10 = vld [vmem:[%s18630_s1 + $0x1a60] sm:$0xff]  }
 0x327   :  { %v13590_v19 = vpop.f32.mrf.mxu1  ;;  %v13570_v20 = vpop.f32.mrf.mxu0  ;;  %13883 = vmatprep.subr.bf16.mxu1 %v14986_v9  ;;  %v15029_v15 = vld [vmem:[%s18630_s1 + $0x1aa0] sm:$0xff]  }
 0x328   :  { %v10634_v22 = vadd.f32 %v13569_v17, %v17820_v35  ;;  %v13591_v23 = vadd.f32 %v13590_v19, %v13589_v14  ;;  %13862 = vmatpush3.bf16.msra.mxu0 %v14987_v12  ;;  %v14999_v35 = vld [vmem:[%s18630_s1 + $0x1918] sm:$0xff]   ;;  %v15027_v12 = vld [vmem:[%s18630_s1 + $0x1ae0] sm:$0xff]   ;;  %v15034_v20 = vld [vmem:[%s18630_s1 + $0x1a50] sm:$0xff]  }
 0x329   :  { %v13592_v25 = vpop.f32.mrf.mxu1  ;;  %v13571_v26 = vpop.f32.mrf.mxu0  ;;  %13863 = vmatprep.subr.bf16.mxu0 %v14989_v16  ;;  %v15028_v14 = vld [vmem:[%s18630_s1 + $0x1a20] sm:$0xff]   ;;  %v15030_v16 = vld [vmem:[%s18630_s1 + $0x1a58] sm:$0xff]  }
 0x32a   :  { %v17931_v28 = vadd.f32 %v13591_v23, %v10634_v22  ;;  %13884 = vmatpush3.bf16.msra.mxu1 %v14988_v13  ;;  %v15031_v17 = vld [vmem:[%s18630_s1 + $0x1ad8] sm:$0xff]   ;;  %v15036_v22 = vld [vmem:[%s18630_s1 + $0x1a10] sm:$0xff]   ;;  %v15039_v25 = vld [vmem:[%s18630_s1 + $0x1ac8] sm:$0xff]  }
 0x32b   :  { %v13593_v30 = vpop.f32.mrf.mxu1  ;;  %13885 = vmatprep.subr.bf16.mxu1 %v14990_v18  ;;  %v15032_v18 = vld [vmem:[%s18630_s1 + $0x1a18] sm:$0xff]   ;;  %v15037_v23 = vld [vmem:[%s18630_s1 + $0x1a90] sm:$0xff]   ;;  %v15040_v26 = vld [vmem:[%s18630_s1 + $0x1a08] sm:$0xff]  }
 0x32c   :  { %13864 = vmatpush3.bf16.msra.mxu0 %v14991_v21  ;;  %v15033_v19 = vld [vmem:[%s18630_s1 + $0x1a98] sm:$0xff]   ;;  %v15035_v21 = vld [vmem:[%s18630_s1 + $0x1ad0] sm:$0xff]   ;;  %v15043_v30 = vld [vmem:[%s18630_s1 + $0x1ac0] sm:$0xff]  }
 0x32d   :  { %13865 = vmatprep.subr.bf16.mxu0 %v14993_v27  ;;  %v15041_v27 = vld [vmem:[%s18630_s1 + $0x1a88] sm:$0xff]  }
 0x32e   :  { %13886 = vmatpush3.bf16.msra.mxu1 %v14992_v24  ;;  %v15038_v24 = vld [vmem:[%s18630_s1 + $0x1a48] sm:$0xff]  }
 0x32f   :  { %13887 = vmatprep.subr.bf16.mxu1 %v14994_v29  ;;  %v29_v29 = vld [vmem:[%s18629_s0 + $0x68] sm:$0xff] }
 0x330   :  { %13866 = vmatpush3.bf16.msra.mxu0 %v14995_v31  ;;  %v2747_v31 = vrot.slane %v29_v29, %v15358_v41 }
 0x331   :  { %13867 = vmatprep.subr.bf16.mxu0 %v14997_v33  ;;  %v15044_v33 = vld [vmem:[%s18630_s1 + $0x1a00] sm:$0xff]  }
 0x332   :  { %13888 = vmatpush3.bf16.msra.mxu1 %v14996_v32  ;;  %v2740_v32 = vcombine.high %v29_v29, %v29_v29  ;;  %v15082_v29 = vld [vmem:[%s18630_s1 + $0x1cb8] sm:$0xff]  }
 0x333   :  { %13889 = vmatprep.subr.bf16.mxu1 %v14998_v34  ;;  %v15045_v34 = vld [vmem:[%s18630_s1 + $0x1a80] sm:$0xff]  }
 0x334   :  { %13868 = vmatpush3.bf16.msra.mxu0 %v14999_v35  ;;  %v2755_v35 = vcombine.high %v2747_v31, %v2747_v31 }
 0x335   :  { %13869 = vmatprep.subr.bf16.mxu0 %v15001_v37  ;;  %v2763_v37 = vrot.slane %v2747_v31, %v15358_v41  ;;  %v15083_v31 = vld [vmem:[%s18630_s1 + $0x1c70] sm:$0xff]  }
 0x336   :  { %13890 = vmatpush3.bf16.msra.mxu1 %v15000_v36  ;;  %v18096_v36 = vrot.slane %v2740_v32, %v15358_v41  ;;  %v15084_v32 = vld [vmem:[%s18630_s1 + $0x1cf0] sm:$0xff]  }
 0x337   :  { %13891 = vmatprep.subr.bf16.mxu1 %v15002_v38  ;;  %v15046_v38 = vld [vmem:[%s18630_s1 + $0x1b78] sm:$0xff]  }
 0x338   :  { %13870 = vmatpush3.bf16.msra.mxu0 %v15003_v39  ;;  %v2777_v39 = vrot.slane %v2755_v35, %v15358_v41  ;;  %v15086_v35 = vld [vmem:[%s18630_s1 + $0x1cb0] sm:$0xff]  }
 0x339   :  { %13871 = vmatprep.subr.bf16.mxu0 %v15005_v42  ;;  %v2756_v42 = vcombine.high %v18096_v36, %v18096_v36 }
 0x33a   :  { %13892 = vmatpush3.bf16.msra.mxu1 %v15004_v40  ;;  %v15047_v40 = vld [vmem:[%s18630_s1 + $0x1bf8] sm:$0xff]  }
 0x33b   :  { %13893 = vmatprep.subr.bf16.mxu1 %v15006_v43  ;;  %v15048_v43 = vld [vmem:[%s18630_s1 + $0x1b38] sm:$0xff]  }
 0x33c   :  { %13872 = vmatpush3.bf16.msra.mxu0 %v15007_v44  ;;  %v2787_v44 = vcombine.high %v2777_v39, %v2777_v39 }
 0x33d   :  { %13873 = vmatprep.subr.bf16.mxu0 %v15009_v46  ;;  %v2784_v46 = vrot.slane %v2756_v42, %v15358_v41 }
 0x33e   :  { %13894 = vmatpush3.bf16.msra.mxu1 %v15008_v45  ;;  %v15049_v45 = vld [vmem:[%s18630_s1 + $0x1bb8] sm:$0xff]  }
 0x33f   :  { %13895 = vmatprep.subr.bf16.mxu1 %v15010_v47  ;;  %v2785_v47 = vcombine.high %v2763_v37, %v2763_v37 }
 0x340   :  { %13874 = vmatpush3.bf16.msra.mxu0 %v15011_v48  ;;  %v15050_v48 = vld [vmem:[%s18630_s1 + $0x1b70] sm:$0xff]  }
 0x341   :  { %13903 = vmatprep.subr.bf16.mxu0 %v15014_v51 }
 0x342   :  { %13896 = vmatpush3.bf16.msra.mxu1 %v15012_v49  ;;  %v15051_v49 = vld [vmem:[%s18630_s1 + $0x1bf0] sm:$0xff]  }
 0x343   :  { %v13611_v58 = vpop.f32.mrf.mxu0  ;;  %11192 = vmatmul.mubr.bf16.vlgmr.msra.gmra.mxu0 %v2721_v50  ;;  %13925 = vmatprep.subr.bf16.mxu1 %v15015_v52  ;;  %v2788_v50 = vcombine.high %v2784_v46, %v2784_v46  ;;  %v15052_v52 = vld [vmem:[%s18630_s1 + $0x1b30] sm:$0xff]  }
 0x344   :  { %13904 = vmatpush3.bf16.msra.mxu0 %v15016_v53  ;;  %11271 = vmatprep.mubr.bf16.mxu0 %v2777_v39  ;;  %v15053_v53 = vld [vmem:[%s18630_s1 + $0x1bb0] sm:$0xff]  }
 0x345   :  { %v13633_v61 = vpop.f32.mrf.mxu1  ;;  %11232 = vmatmul.mubr.bf16.vlgmr.msra.gmra.mxu1 %v2737_v55  ;;  %v13612_v62 = vpop.f32.mrf.mxu0  ;;  %13905 = vmatprep.subr.bf16.mxu0 %v15018_v56  ;;  %v15054_v56 = vld [vmem:[%s18630_s1 + $0x1b68] sm:$0xff]  }
 0x346   :  { %13926 = vmatpush3.bf16.msra.mxu1 %v15017_v54  ;;  %v13613_v0 = vadd.f32 %v13612_v62, %v13611_v58  ;;  %11311 = vmatprep.mubr.bf16.mxu1 %v2787_v44  ;;  %v15055_v58 = vld [vmem:[%s18630_s1 + $0x1be8] sm:$0xff]  }
 0x347   :  { %v13634_v2 = vpop.f32.mrf.mxu1  ;;  %v13614_v3 = vpop.f32.mrf.mxu0  ;;  %13927 = vmatprep.subr.bf16.mxu1 %v15019_v57  ;;  %v15089_v44 = vld [vmem:[%s18630_s1 + $0x1c28] sm:$0xff]  }
 0x348   :  { %v10714_v5 = vadd.f32 %v13613_v0, %v17931_v28  ;;  %v13635_v6 = vadd.f32 %v13634_v2, %v13633_v61  ;;  %13906 = vmatpush3.bf16.msra.mxu0 %v15020_v59  ;;  %v15042_v28 = vld [vmem:[%s18630_s1 + $0x1a40] sm:$0xff]   ;;  %v15056_v61 = vld [vmem:[%s18630_s1 + $0x1b28] sm:$0xff]  }
 0x349   :  { %v13636_v8 = vpop.f32.mrf.mxu1  ;;  %v13615_v9 = vpop.f32.mrf.mxu0  ;;  %13907 = vmatprep.subr.bf16.mxu0 %v15022_v63  ;;  %v15057_v0 = vld [vmem:[%s18630_s1 + $0x1ba8] sm:$0xff]   ;;  %v15058_v3 = vld [vmem:[%s18630_s1 + $0x1b60] sm:$0xff]  }
 0x34a   :  { %v18032_v11 = vadd.f32 %v13635_v6, %v10714_v5  ;;  %13928 = vmatpush3.bf16.msra.mxu1 %v15021_v60  ;;  %v15059_v5 = vld [vmem:[%s18630_s1 + $0x1be0] sm:$0xff]   ;;  %v15062_v9 = vld [vmem:[%s18630_s1 + $0x1b58] sm:$0xff]  }
 0x34b   :  { %v13637_v13 = vpop.f32.mrf.mxu1  ;;  %13929 = vmatprep.subr.bf16.mxu1 %v15023_v1  ;;  %v15061_v8 = vld [vmem:[%s18630_s1 + $0x1ba0] sm:$0xff]  }
 0x34c   :  { %13908 = vmatpush3.bf16.msra.mxu0 %v15024_v4  ;;  %v15066_v13 = vld [vmem:[%s18630_s1 + $0x1b50] sm:$0xff]  }
 0x34d   :  { %13909 = vmatprep.subr.bf16.mxu0 %v15026_v10  ;;  %v15063_v10 = vld [vmem:[%s18630_s1 + $0x1bd8] sm:$0xff]  }
 0x34e   :  { %13930 = vmatpush3.bf16.msra.mxu1 %v15025_v7  ;;  %v15060_v7 = vld [vmem:[%s18630_s1 + $0x1b20] sm:$0xff]  }
 0x34f   :  { %13931 = vmatprep.subr.bf16.mxu1 %v15027_v12  ;;  %v15065_v12 = vld [vmem:[%s18630_s1 + $0x1b98] sm:$0xff]  }
 0x350   :  { %13910 = vmatpush3.bf16.msra.mxu0 %v15028_v14  ;;  %v15067_v14 = vld [vmem:[%s18630_s1 + $0x1bd0] sm:$0xff]  }
 0x351   :  { %13911 = vmatprep.subr.bf16.mxu0 %v15030_v16  ;;  %v15069_v16 = vld [vmem:[%s18630_s1 + $0x1b90] sm:$0xff]  }
 0x352   :  { %13932 = vmatpush3.bf16.msra.mxu1 %v15029_v15  ;;  %v15068_v15 = vld [vmem:[%s18630_s1 + $0x1b10] sm:$0xff]  }
 0x353   :  { %13933 = vmatprep.subr.bf16.mxu1 %v15031_v17  ;;  %v15070_v17 = vld [vmem:[%s18630_s1 + $0x1b48] sm:$0xff]  }
 0x354   :  { %13912 = vmatpush3.bf16.msra.mxu0 %v15032_v18  ;;  %v15071_v18 = vld [vmem:[%s18630_s1 + $0x1bc8] sm:$0xff]  }
 0x355   :  { %13913 = vmatprep.subr.bf16.mxu0 %v15034_v20  ;;  %v15073_v20 = vld [vmem:[%s18630_s1 + $0x1b88] sm:$0xff]  }
 0x356   :  { %13934 = vmatpush3.bf16.msra.mxu1 %v15033_v19  ;;  %v15072_v19 = vld [vmem:[%s18630_s1 + $0x1b08] sm:$0xff]  }
 0x357   :  { %13935 = vmatprep.subr.bf16.mxu1 %v15035_v21  ;;  %v15074_v21 = vld [vmem:[%s18630_s1 + $0x1b40] sm:$0xff]  }
 0x358   :  { %13914 = vmatpush3.bf16.msra.mxu0 %v15036_v22  ;;  %v15075_v22 = vld [vmem:[%s18630_s1 + $0x1bc0] sm:$0xff]  }
 0x359   :  { %13915 = vmatprep.subr.bf16.mxu0 %v15038_v24  ;;  %v15077_v24 = vld [vmem:[%s18630_s1 + $0x1b80] sm:$0xff]  }
 0x35a   :  { %13936 = vmatpush3.bf16.msra.mxu1 %v15037_v23  ;;  %v15076_v23 = vld [vmem:[%s18630_s1 + $0x1b00] sm:$0xff]  }
 0x35b   :  { %13937 = vmatprep.subr.bf16.mxu1 %v15039_v25  ;;  %v2770_v25 = vrot.slane %v18096_v36, %v15358_v41 }
 0x35c   :  { %13916 = vmatpush3.bf16.msra.mxu0 %v15040_v26  ;;  %v15079_v26 = vld [vmem:[%s18630_s1 + $0x1c78] sm:$0xff]  }
 0x35d   :  { %13917 = vmatprep.subr.bf16.mxu0 %v15042_v28  ;;  %v15081_v28 = vld [vmem:[%s18630_s1 + $0x1c38] sm:$0xff]  }
 0x35e   :  { %13938 = vmatpush3.bf16.msra.mxu1 %v15041_v27  ;;  %v15080_v27 = vld [vmem:[%s18630_s1 + $0x1cf8] sm:$0xff]  }
 0x35f   :  { %13939 = vmatprep.subr.bf16.mxu1 %v15043_v30  ;;  %v2786_v30 = vcombine.high %v2770_v25, %v2770_v25 }
 0x360   :  { %13918 = vmatpush3.bf16.msra.mxu0 %v15044_v33 }
 0x361   :  { %13947 = vmatprep.subr.bf16.mxu0 %v15046_v38  ;;  %v15087_v38 = vld [vmem:[%s18630_s1 + $0x1c68] sm:$0xff]  }
 0x362   :  { %13940 = vmatpush3.bf16.msra.mxu1 %v15045_v34  ;;  %v15085_v34 = vld [vmem:[%s18630_s1 + $0x1c30] sm:$0xff]  }
 0x363   :  { %v13655_v51 = vpop.f32.mrf.mxu0  ;;  %11272 = vmatmul.mubr.bf16.vlgmr.msra.gmra.mxu0 %v2763_v37  ;;  %13969 = vmatprep.subr.bf16.mxu1 %v15047_v40  ;;  %v15088_v40 = vld [vmem:[%s18630_s1 + $0x1ce8] sm:$0xff]  }
 0x364   :  { %13948 = vmatpush3.bf16.msra.mxu0 %v15048_v43  ;;  %11351 = vmatprep.mubr.bf16.mxu0 %v2784_v46 }
 0x365   :  { %v13677_v54 = vpop.f32.mrf.mxu1  ;;  %11312 = vmatmul.mubr.bf16.vlgmr.msra.gmra.mxu1 %v2785_v47  ;;  %v13656_v55 = vpop.f32.mrf.mxu0  ;;  %13949 = vmatprep.subr.bf16.mxu0 %v15050_v48  ;;  %v15090_v47 = vld [vmem:[%s18630_s1 + $0x1ca8] sm:$0xff]  }
 0x366   :  { %13970 = vmatpush3.bf16.msra.mxu1 %v15049_v45  ;;  %v13657_v57 = vadd.f32 %v13656_v55, %v13655_v51  ;;  %11391 = vmatprep.mubr.bf16.mxu1 %v2788_v50  ;;  %v15091_v50 = vld [vmem:[%s18630_s1 + $0x1c60] sm:$0xff]  }
 0x367   :  { %v13678_v59 = vpop.f32.mrf.mxu1  ;;  %v13658_v60 = vpop.f32.mrf.mxu0  ;;  %13971 = vmatprep.subr.bf16.mxu1 %v15051_v49  ;;  %v15094_v55 = vld [vmem:[%s18630_s1 + $0x1ca0] sm:$0xff]  }
 0x368   :  { %v10794_v62 = vadd.f32 %v13657_v57, %v18032_v11  ;;  %v13679_v63 = vadd.f32 %v13678_v59, %v13677_v54  ;;  %13950 = vmatpush3.bf16.msra.mxu0 %v15052_v52  ;;  %v15064_v11 = vld [vmem:[%s18630_s1 + $0x1b18] sm:$0xff]   ;;  %v15092_v52 = vld [vmem:[%s18630_s1 + $0x1ce0] sm:$0xff]   ;;  %v15099_v60 = vld [vmem:[%s18630_s1 + $0x1c50] sm:$0xff]  }
 0x369   :  { %v13680_v1 = vpop.f32.mrf.mxu1  ;;  %v13659_v2 = vpop.f32.mrf.mxu0  ;;  %13951 = vmatprep.subr.bf16.mxu0 %v15054_v56  ;;  %v15093_v54 = vld [vmem:[%s18630_s1 + $0x1c20] sm:$0xff]   ;;  %v15095_v56 = vld [vmem:[%s18630_s1 + $0x1c58] sm:$0xff]  }
 0x36a   :  { %v18143_v4 = vadd.f32 %v13679_v63, %v10794_v62  ;;  %13972 = vmatpush3.bf16.msra.mxu1 %v15053_v53  ;;  %v15096_v57 = vld [vmem:[%s18630_s1 + $0x1cd8] sm:$0xff]   ;;  %v15101_v62 = vld [vmem:[%s18630_s1 + $0x1c10] sm:$0xff]   ;;  %v15104_v1 = vld [vmem:[%s18630_s1 + $0x1cc8] sm:$0xff]  }
 0x36b   :  { %v13681_v6 = vpop.f32.mrf.mxu1  ;;  %13973 = vmatprep.subr.bf16.mxu1 %v15055_v58  ;;  %v15097_v58 = vld [vmem:[%s18630_s1 + $0x1c18] sm:$0xff]   ;;  %v15102_v63 = vld [vmem:[%s18630_s1 + $0x1c90] sm:$0xff]   ;;  %v15105_v2 = vld [vmem:[%s18630_s1 + $0x1c08] sm:$0xff]  }
 0x36c   :  { %13952 = vmatpush3.bf16.msra.mxu0 %v15056_v61  ;;  %v15098_v59 = vld [vmem:[%s18630_s1 + $0x1c98] sm:$0xff]   ;;  %v15100_v61 = vld [vmem:[%s18630_s1 + $0x1cd0] sm:$0xff]   ;;  %v15108_v6 = vld [vmem:[%s18630_s1 + $0x1cc0] sm:$0xff]  }
 0x36d   :  { %13953 = vmatprep.subr.bf16.mxu0 %v15058_v3  ;;  %v15106_v3 = vld [vmem:[%s18630_s1 + $0x1c88] sm:$0xff]  }
 0x36e   :  { %13974 = vmatpush3.bf16.msra.mxu1 %v15057_v0  ;;  %v15103_v0 = vld [vmem:[%s18630_s1 + $0x1c48] sm:$0xff]  }
 0x36f   :  { %13975 = vmatprep.subr.bf16.mxu1 %v15059_v5  ;;  %v30_v5 = vld [vmem:[%s18629_s0 + $0x70] sm:$0xff] }
 0x370   :  { %13954 = vmatpush3.bf16.msra.mxu0 %v15060_v7  ;;  %v2796_v7 = vrot.slane %v30_v5, %v15358_v41 }
 0x371   :  { %13955 = vmatprep.subr.bf16.mxu0 %v15062_v9  ;;  %v15109_v9 = vld [vmem:[%s18630_s1 + $0x1c00] sm:$0xff]  }
 0x372   :  { %13976 = vmatpush3.bf16.msra.mxu1 %v15061_v8  ;;  %v2789_v8 = vcombine.high %v30_v5, %v30_v5 }
 0x373   :  { %13977 = vmatprep.subr.bf16.mxu1 %v15063_v10  ;;  %v2804_v10 = vcombine.high %v2796_v7, %v2796_v7 }
 0x374   :  { %13956 = vmatpush3.bf16.msra.mxu0 %v15064_v11  ;;  %v2812_v11 = vrot.slane %v2796_v7, %v15358_v41  ;;  %v15147_v7 = vld [vmem:[%s18630_s1 + $0x1eb8] sm:$0xff]  }
 0x375   :  { %13957 = vmatprep.subr.bf16.mxu0 %v15066_v13  ;;  %v18309_v13 = vrot.slane %v2789_v8, %v15358_v41 }
 0x376   :  { %13978 = vmatpush3.bf16.msra.mxu1 %v15065_v12  ;;  %v15111_v12 = vld [vmem:[%s18630_s1 + $0x1d78] sm:$0xff]  }
 0x377   :  { %13979 = vmatprep.subr.bf16.mxu1 %v15067_v14  ;;  %v15110_v14 = vld [vmem:[%s18630_s1 + $0x1c80] sm:$0xff]  }
 0x378   :  { %13958 = vmatpush3.bf16.msra.mxu0 %v15068_v15  ;;  %v2826_v15 = vrot.slane %v2804_v10, %v15358_v41  ;;  %v15150_v10 = vld [vmem:[%s18630_s1 + $0x1e30] sm:$0xff]  }
 0x379   :  { %13959 = vmatprep.subr.bf16.mxu0 %v15070_v17  ;;  %v2805_v17 = vcombine.high %v18309_v13, %v18309_v13 }
 0x37a   :  { %13980 = vmatpush3.bf16.msra.mxu1 %v15069_v16  ;;  %v15112_v16 = vld [vmem:[%s18630_s1 + $0x1df8] sm:$0xff]  }
 0x37b   :  { %13981 = vmatprep.subr.bf16.mxu1 %v15071_v18  ;;  %v15113_v18 = vld [vmem:[%s18630_s1 + $0x1d38] sm:$0xff]  }
 0x37c   :  { %13960 = vmatpush3.bf16.msra.mxu0 %v15072_v19  ;;  %v2836_v19 = vcombine.high %v2826_v15, %v2826_v15 }
 0x37d   :  { %13961 = vmatprep.subr.bf16.mxu0 %v15074_v21  ;;  %v15115_v21 = vld [vmem:[%s18630_s1 + $0x1d70] sm:$0xff]  }
 0x37e   :  { %13982 = vmatpush3.bf16.msra.mxu1 %v15073_v20  ;;  %v2834_v20 = vcombine.high %v2812_v11, %v2812_v11 }
 0x37f   :  { %13983 = vmatprep.subr.bf16.mxu1 %v15075_v22  ;;  %v2833_v22 = vrot.slane %v2805_v17, %v15358_v41 }
 0x380   :  { %13962 = vmatpush3.bf16.msra.mxu0 %v15076_v23  ;;  %v15114_v23 = vld [vmem:[%s18630_s1 + $0x1db8] sm:$0xff]  }
 0x381   :  { %13991 = vmatprep.subr.bf16.mxu0 %v15079_v26  ;;  %v2837_v26 = vcombine.high %v2833_v22, %v2833_v22 }
 0x382   :  { %13984 = vmatpush3.bf16.msra.mxu1 %v15077_v24 }
 0x383   :  { %v13699_v33 = vpop.f32.mrf.mxu0  ;;  %11352 = vmatmul.mubr.bf16.vlgmr.msra.gmra.mxu0 %v2770_v25  ;;  %14013 = vmatprep.subr.bf16.mxu1 %v15080_v27  ;;  %v15116_v25 = vld [vmem:[%s18630_s1 + $0x1df0] sm:$0xff]  }
 0x384   :  { %13992 = vmatpush3.bf16.msra.mxu0 %v15081_v28  ;;  %11431 = vmatprep.mubr.bf16.mxu0 %v2826_v15  ;;  %v15117_v27 = vld [vmem:[%s18630_s1 + $0x1d30] sm:$0xff]  }
 0x385   :  { %v13721_v36 = vpop.f32.mrf.mxu1  ;;  %11392 = vmatmul.mubr.bf16.vlgmr.msra.gmra.mxu1 %v2786_v30  ;;  %v13700_v37 = vpop.f32.mrf.mxu0  ;;  %13993 = vmatprep.subr.bf16.mxu0 %v15083_v31  ;;  %v15119_v30 = vld [vmem:[%s18630_s1 + $0x1d68] sm:$0xff]   ;;  %v15151_v15 = vld [vmem:[%s18630_s1 + $0x1eb0] sm:$0xff]  }
 0x386   :  { %14014 = vmatpush3.bf16.msra.mxu1 %v15082_v29  ;;  %v13701_v39 = vadd.f32 %v13700_v37, %v13699_v33  ;;  %11471 = vmatprep.mubr.bf16.mxu1 %v2836_v19 }
 0x387   :  { %v13722_v42 = vpop.f32.mrf.mxu1  ;;  %v13702_v43 = vpop.f32.mrf.mxu0  ;;  %14015 = vmatprep.subr.bf16.mxu1 %v15084_v32  ;;  %v15118_v32 = vld [vmem:[%s18630_s1 + $0x1db0] sm:$0xff]  }
 0x388   :  { %v10874_v45 = vadd.f32 %v13701_v39, %v18143_v4  ;;  %v13723_v46 = vadd.f32 %v13722_v42, %v13721_v36  ;;  %13994 = vmatpush3.bf16.msra.mxu0 %v15085_v34  ;;  %v15107_v4 = vld [vmem:[%s18630_s1 + $0x1c40] sm:$0xff]  }
 0x389   :  { %v13724_v48 = vpop.f32.mrf.mxu1  ;;  %v13703_v49 = vpop.f32.mrf.mxu0  ;;  %13995 = vmatprep.subr.bf16.mxu0 %v15087_v38  ;;  %v15121_v38 = vld [vmem:[%s18630_s1 + $0x1d28] sm:$0xff]   ;;  %v15123_v42 = vld [vmem:[%s18630_s1 + $0x1d60] sm:$0xff]  }
 0x38a   :  { %v18244_v51 = vadd.f32 %v13723_v46, %v10874_v45  ;;  %14016 = vmatpush3.bf16.msra.mxu1 %v15086_v35  ;;  %v15120_v35 = vld [vmem:[%s18630_s1 + $0x1de8] sm:$0xff]   ;;  %v15124_v46 = vld [vmem:[%s18630_s1 + $0x1de0] sm:$0xff]   ;;  %v15127_v48 = vld [vmem:[%s18630_s1 + $0x1d58] sm:$0xff]  }
 0x38b   :  { %v13725_v53 = vpop.f32.mrf.mxu1  ;;  %14017 = vmatprep.subr.bf16.mxu1 %v15088_v40  ;;  %v15126_v49 = vld [vmem:[%s18630_s1 + $0x1da0] sm:$0xff]  }
 0x38c   :  { %13996 = vmatpush3.bf16.msra.mxu0 %v15089_v44  ;;  %v15122_v44 = vld [vmem:[%s18630_s1 + $0x1da8] sm:$0xff]   ;;  %v15130_v53 = vld [vmem:[%s18630_s1 + $0x1d98] sm:$0xff]  }
 0x38d   :  { %13997 = vmatprep.subr.bf16.mxu0 %v15091_v50  ;;  %v15128_v50 = vld [vmem:[%s18630_s1 + $0x1dd8] sm:$0xff]  }
 0x38e   :  { %14018 = vmatpush3.bf16.msra.mxu1 %v15090_v47  ;;  %v15125_v47 = vld [vmem:[%s18630_s1 + $0x1d20] sm:$0xff]  }
 0x38f   :  { %14019 = vmatprep.subr.bf16.mxu1 %v15092_v52  ;;  %v15131_v52 = vld [vmem:[%s18630_s1 + $0x1d50] sm:$0xff]  }
 0x390   :  { %13998 = vmatpush3.bf16.msra.mxu0 %v15093_v54  ;;  %v15132_v54 = vld [vmem:[%s18630_s1 + $0x1dd0] sm:$0xff]  }
 0x391   :  { %13999 = vmatprep.subr.bf16.mxu0 %v15095_v56  ;;  %v15135_v56 = vld [vmem:[%s18630_s1 + $0x1d48] sm:$0xff]  }
 0x392   :  { %14020 = vmatpush3.bf16.msra.mxu1 %v15094_v55  ;;  %v15133_v55 = vld [vmem:[%s18630_s1 + $0x1d10] sm:$0xff]  }
 0x393   :  { %14021 = vmatprep.subr.bf16.mxu1 %v15096_v57  ;;  %v15134_v57 = vld [vmem:[%s18630_s1 + $0x1d90] sm:$0xff]  }
 0x394   :  { %14000 = vmatpush3.bf16.msra.mxu0 %v15097_v58  ;;  %v15136_v58 = vld [vmem:[%s18630_s1 + $0x1dc8] sm:$0xff]  }
 0x395   :  { %14001 = vmatprep.subr.bf16.mxu0 %v15099_v60  ;;  %v15139_v60 = vld [vmem:[%s18630_s1 + $0x1d40] sm:$0xff]  }
 0x396   :  { %14022 = vmatpush3.bf16.msra.mxu1 %v15098_v59  ;;  %v15137_v59 = vld [vmem:[%s18630_s1 + $0x1d08] sm:$0xff]  }
 0x397   :  { %14023 = vmatprep.subr.bf16.mxu1 %v15100_v61  ;;  %v15138_v61 = vld [vmem:[%s18630_s1 + $0x1d88] sm:$0xff]  }
 0x398   :  { %14002 = vmatpush3.bf16.msra.mxu0 %v15101_v62  ;;  %v15140_v62 = vld [vmem:[%s18630_s1 + $0x1dc0] sm:$0xff]  }
 0x399   :  { %14003 = vmatprep.subr.bf16.mxu0 %v15103_v0  ;;  %v2819_v0 = vrot.slane %v18309_v13, %v15358_v41  ;;  %v15152_v13 = vld [vmem:[%s18630_s1 + $0x1e68] sm:$0xff]  }
 0x39a   :  { %14024 = vmatpush3.bf16.msra.mxu1 %v15102_v63  ;;  %v15141_v63 = vld [vmem:[%s18630_s1 + $0x1d00] sm:$0xff]  }
 0x39b   :  { %14025 = vmatprep.subr.bf16.mxu1 %v15104_v1  ;;  %v15144_v1 = vld [vmem:[%s18630_s1 + $0x1e78] sm:$0xff]   ;;  %v2835_v5 = vcombine.high %v2819_v0, %v2819_v0 }
 0x39c   :  { %14004 = vmatpush3.bf16.msra.mxu0 %v15105_v2  ;;  %v15142_v2 = vld [vmem:[%s18630_s1 + $0x1d80] sm:$0xff]  }
 0x39d   :  { %14005 = vmatprep.subr.bf16.mxu0 %v15107_v4  ;;  %v15146_v4 = vld [vmem:[%s18630_s1 + $0x1e38] sm:$0xff]  }
 0x39e   :  { %14026 = vmatpush3.bf16.msra.mxu1 %v15106_v3  ;;  %v15145_v3 = vld [vmem:[%s18630_s1 + $0x1ef8] sm:$0xff]  }
 0x39f   :  { %14027 = vmatprep.subr.bf16.mxu1 %v15108_v6  ;;  %v15148_v6 = vld [vmem:[%s18630_s1 + $0x1e70] sm:$0xff]  }
 0x3a0   :  { %14006 = vmatpush3.bf16.msra.mxu0 %v15109_v9  ;;  %v15149_v9 = vld [vmem:[%s18630_s1 + $0x1ef0] sm:$0xff]  }
 0x3a1   :  { %14035 = vmatprep.subr.bf16.mxu0 %v15111_v12 }
 0x3a2   :  { %14028 = vmatpush3.bf16.msra.mxu1 %v15110_v14 }
 0x3a3   :  { %v13743_v24 = vpop.f32.mrf.mxu0  ;;  %11432 = vmatmul.mubr.bf16.vlgmr.msra.gmra.mxu0 %v2812_v11  ;;  %14057 = vmatprep.subr.bf16.mxu1 %v15112_v16 }
 0x3a4   :  { %14036 = vmatpush3.bf16.msra.mxu0 %v15113_v18  ;;  %11511 = vmatprep.mubr.bf16.mxu0 %v2833_v22  ;;  %v15153_v18 = vld [vmem:[%s18630_s1 + $0x1ee8] sm:$0xff]  }
 0x3a5   :  { %v13765_v28 = vpop.f32.mrf.mxu1  ;;  %11472 = vmatmul.mubr.bf16.vlgmr.msra.gmra.mxu1 %v2834_v20  ;;  %v13744_v29 = vpop.f32.mrf.mxu0  ;;  %14037 = vmatprep.subr.bf16.mxu0 %v15115_v21  ;;  %v15154_v21 = vld [vmem:[%s18630_s1 + $0x1e28] sm:$0xff]  }
 0x3a6   :  { %14058 = vmatpush3.bf16.msra.mxu1 %v15114_v23  ;;  %v13745_v31 = vadd.f32 %v13744_v29, %v13743_v24  ;;  %11551 = vmatprep.mubr.bf16.mxu1 %v2837_v26  ;;  %v15156_v24 = vld [vmem:[%s18630_s1 + $0x1e60] sm:$0xff]   ;;  %v15155_v26 = vld [vmem:[%s18630_s1 + $0x1ea8] sm:$0xff]  }
 0x3a7   :  { %v13766_v33 = vpop.f32.mrf.mxu1  ;;  %v13746_v34 = vpop.f32.mrf.mxu0  ;;  %14059 = vmatprep.subr.bf16.mxu1 %v15116_v25  ;;  %v15158_v29 = vld [vmem:[%s18630_s1 + $0x1e20] sm:$0xff]  }
 0x3a8   :  { %v10954_v36 = vadd.f32 %v13745_v31, %v18244_v51  ;;  %v13767_v37 = vadd.f32 %v13766_v33, %v13765_v28  ;;  %14038 = vmatpush3.bf16.msra.mxu0 %v15117_v27  ;;  %v15129_v51 = vld [vmem:[%s18630_s1 + $0x1d18] sm:$0xff]   ;;  %v15157_v28 = vld [vmem:[%s18630_s1 + $0x1ee0] sm:$0xff]   ;;  %v15164_v34 = vld [vmem:[%s18630_s1 + $0x1e50] sm:$0xff]  }
 0x3a9   :  { %v13768_v39 = vpop.f32.mrf.mxu1  ;;  %v13747_v40 = vpop.f32.mrf.mxu0  ;;  %14039 = vmatprep.subr.bf16.mxu0 %v15119_v30  ;;  %v15160_v30 = vld [vmem:[%s18630_s1 + $0x1e58] sm:$0xff]   ;;  %v15159_v31 = vld [vmem:[%s18630_s1 + $0x1ea0] sm:$0xff]  }
 0x3aa   :  { %v18352_v43 = vadd.f32 %v13767_v37, %v10954_v36  ;;  %14060 = vmatpush3.bf16.msra.mxu1 %v15118_v32  ;;  %v15161_v32 = vld [vmem:[%s18630_s1 + $0x1ed8] sm:$0xff]   ;;  %v15165_v36 = vld [vmem:[%s18630_s1 + $0x1ed0] sm:$0xff]   ;;  %v15169_v40 = vld [vmem:[%s18630_s1 + $0x1ec8] sm:$0xff]  }
 0x3ab   :  { %v13769_v45 = vpop.f32.mrf.mxu1  ;;  %14061 = vmatprep.subr.bf16.mxu1 %v15120_v35  ;;  %v15162_v33 = vld [vmem:[%s18630_s1 + $0x1e18] sm:$0xff]   ;;  %v15166_v37 = vld [vmem:[%s18630_s1 + $0x1e10] sm:$0xff]  }
 0x3ac   :  { %14040 = vmatpush3.bf16.msra.mxu0 %v15121_v38  ;;  %v15163_v35 = vld [vmem:[%s18630_s1 + $0x1e98] sm:$0xff]   ;;  %v15168_v38 = vld [vmem:[%s18630_s1 + $0x1e48] sm:$0xff]   ;;  %v15167_v39 = vld [vmem:[%s18630_s1 + $0x1e90] sm:$0xff]  }
 0x3ad   :  { %14041 = vmatprep.subr.bf16.mxu0 %v15123_v42  ;;  %v15170_v42 = vld [vmem:[%s18630_s1 + $0x1e08] sm:$0xff]   ;;  %v31_v45 = vld [vmem:[%s18629_s0 + $0x78] sm:$0xff] }
 0x3ae   :  { %14062 = vmatpush3.bf16.msra.mxu1 %v15122_v44  ;;  %v15171_v44 = vld [vmem:[%s18630_s1 + $0x1e88] sm:$0xff]  }
 0x3af   :  { %14063 = vmatprep.subr.bf16.mxu1 %v15124_v46  ;;  %v15173_v46 = vld [vmem:[%s18630_s1 + $0x1ec0] sm:$0xff]  }
 0x3b0   :  { %14042 = vmatpush3.bf16.msra.mxu0 %v15125_v47  ;;  %v2845_v47 = vrot.slane %v31_v45, %v15358_v41 }
 0x3b1   :  { %14043 = vmatprep.subr.bf16.mxu0 %v15127_v48  ;;  %v2838_v48 = vcombine.high %v31_v45, %v31_v45 }
 0x3b2   :  { %14064 = vmatpush3.bf16.msra.mxu1 %v15126_v49  ;;  %v15174_v49 = vld [vmem:[%s18630_s1 + $0x1e00] sm:$0xff]  }
 0x3b3   :  { %14065 = vmatprep.subr.bf16.mxu1 %v15128_v50  ;;  %v2853_v50 = vcombine.high %v2845_v47, %v2845_v47 }
 0x3b4   :  { %14044 = vmatpush3.bf16.msra.mxu0 %v15129_v51  ;;  %v2861_v51 = vrot.slane %v2845_v47, %v15358_v41 }
 0x3b5   :  { %14045 = vmatprep.subr.bf16.mxu0 %v15131_v52  ;;  %v15176_v52 = vld [vmem:[%s18630_s1 + $0x1f78] sm:$0xff]  }
 0x3b6   :  { %14066 = vmatpush3.bf16.msra.mxu1 %v15130_v53  ;;  %v18521_v53 = vrot.slane %v2838_v48, %v15358_v41 }
 0x3b7   :  { %14067 = vmatprep.subr.bf16.mxu1 %v15132_v54  ;;  %v15175_v54 = vld [vmem:[%s18630_s1 + $0x1e80] sm:$0xff]  }
 0x3b8   :  { %14046 = vmatpush3.bf16.msra.mxu0 %v15133_v55  ;;  %v2875_v55 = vrot.slane %v2853_v50, %v15358_v41 }
 0x3b9   :  { %14047 = vmatprep.subr.bf16.mxu0 %v15135_v56  ;;  %v15177_v56 = vld [vmem:[%s18630_s1 + $0x1ff8] sm:$0xff]  }
 0x3ba   :  { %14068 = vmatpush3.bf16.msra.mxu1 %v15134_v57  ;;  %v2854_v57 = vcombine.high %v18521_v53, %v18521_v53 }
 0x3bb   :  { %14069 = vmatprep.subr.bf16.mxu1 %v15136_v58  ;;  %v15178_v58 = vld [vmem:[%s18630_s1 + $0x1f38] sm:$0xff]  }
 0x3bc   :  { %14048 = vmatpush3.bf16.msra.mxu0 %v15137_v59  ;;  %v2885_v59 = vcombine.high %v2875_v55, %v2875_v55 }
 0x3bd   :  { %14049 = vmatprep.subr.bf16.mxu0 %v15139_v60  ;;  %v2883_v60 = vcombine.high %v2861_v51, %v2861_v51 }
 0x3be   :  { %14070 = vmatpush3.bf16.msra.mxu1 %v15138_v61  ;;  %v15180_v61 = vld [vmem:[%s18630_s1 + $0x1f70] sm:$0xff]  }
 0x3bf   :  { %14071 = vmatprep.subr.bf16.mxu1 %v15140_v62  ;;  %v2882_v62 = vrot.slane %v2854_v57, %v15358_v41 }
 0x3c0   :  { %14050 = vmatpush3.bf16.msra.mxu0 %v15141_v63  ;;  %v15179_v63 = vld [vmem:[%s18630_s1 + $0x1fb8] sm:$0xff]  }
 0x3c1   :  { %14079 = vmatprep.subr.bf16.mxu0 %v15144_v1  ;;  %v15181_v1 = vld [vmem:[%s18630_s1 + $0x1ff0] sm:$0xff]  }
 0x3c2   :  { %14072 = vmatpush3.bf16.msra.mxu1 %v15142_v2  ;;  %v2886_v2 = vcombine.high %v2882_v62, %v2882_v62 }
 0x3c3   :  { %v13787_v8 = vpop.f32.mrf.mxu0  ;;  %11512 = vmatmul.mubr.bf16.vlgmr.msra.gmra.mxu0 %v2819_v0  ;;  %14101 = vmatprep.subr.bf16.mxu1 %v15145_v3  ;;  %v15182_v3 = vld [vmem:[%s18630_s1 + $0x1f30] sm:$0xff]  }
 0x3c4   :  { %14080 = vmatpush3.bf16.msra.mxu0 %v15146_v4  ;;  %11591 = vmatprep.mubr.bf16.mxu0 %v2875_v55 }
 0x3c5   :  { %v13809_v11 = vpop.f32.mrf.mxu1  ;;  %11552 = vmatmul.mubr.bf16.vlgmr.msra.gmra.mxu1 %v2835_v5  ;;  %v13788_v12 = vpop.f32.mrf.mxu0  ;;  %14081 = vmatprep.subr.bf16.mxu0 %v15148_v6  ;;  %v15184_v6 = vld [vmem:[%s18630_s1 + $0x1f68] sm:$0xff]  }
 0x3c6   :  { %14102 = vmatpush3.bf16.msra.mxu1 %v15147_v7  ;;  %v13789_v14 = vadd.f32 %v13788_v12, %v13787_v8  ;;  %11631 = vmatprep.mubr.bf16.mxu1 %v2885_v59  ;;  %v15183_v8 = vld [vmem:[%s18630_s1 + $0x1fb0] sm:$0xff]  }
 0x3c7   :  { %v13810_v16 = vpop.f32.mrf.mxu1  ;;  %v13790_v17 = vpop.f32.mrf.mxu0  ;;  %14103 = vmatprep.subr.bf16.mxu1 %v15149_v9 }
 0x3c8   :  { %v11034_v19 = vadd.f32 %v13789_v14, %v18352_v43  ;;  %v13811_v20 = vadd.f32 %v13810_v16, %v13809_v11  ;;  %14082 = vmatpush3.bf16.msra.mxu0 %v15150_v10  ;;  %v15172_v43 = vld [vmem:[%s18630_s1 + $0x1e40] sm:$0xff]   ;;  %v15185_v11 = vld [vmem:[%s18630_s1 + $0x1fe8] sm:$0xff]  }
 0x3c9   :  { %v13812_v22 = vpop.f32.mrf.mxu1  ;;  %v13791_v23 = vpop.f32.mrf.mxu0  ;;  %14083 = vmatprep.subr.bf16.mxu0 %v15152_v13  ;;  %v15186_v14 = vld [vmem:[%s18630_s1 + $0x1f28] sm:$0xff]   ;;  %v15188_v17 = vld [vmem:[%s18630_s1 + $0x1f60] sm:$0xff]  }
 0x3ca   :  { %v18453_v25 = vadd.f32 %v13811_v20, %v11034_v19  ;;  %14104 = vmatpush3.bf16.msra.mxu1 %v15151_v15  ;;  %v15187_v19 = vld [vmem:[%s18630_s1 + $0x1fa8] sm:$0xff]   ;;  %v15190_v22 = vld [vmem:[%s18630_s1 + $0x1f20] sm:$0xff]   ;;  %v15192_v23 = vld [vmem:[%s18630_s1 + $0x1f58] sm:$0xff]  }
 0x3cb   :  { %v13813_v27 = vpop.f32.mrf.mxu1  ;;  %14105 = vmatprep.subr.bf16.mxu1 %v15153_v18 }
 0x3cc   :  { %14084 = vmatpush3.bf16.msra.mxu0 %v15154_v21  ;;  %v15189_v21 = vld [vmem:[%s18630_s1 + $0x1fe0] sm:$0xff]   ;;  %v15196_v27 = vld [vmem:[%s18630_s1 + $0x1f50] sm:$0xff]  }
 0x3cd   :  { %14085 = vmatprep.subr.bf16.mxu0 %v15156_v24  ;;  %v15191_v24 = vld [vmem:[%s18630_s1 + $0x1fa0] sm:$0xff]  }
 0x3ce   :  { %14106 = vmatpush3.bf16.msra.mxu1 %v15155_v26  ;;  %v15194_v26 = vld [vmem:[%s18630_s1 + $0x1f18] sm:$0xff]  }
 0x3cf   :  { %14107 = vmatprep.subr.bf16.mxu1 %v15157_v28  ;;  %v15195_v28 = vld [vmem:[%s18630_s1 + $0x1f98] sm:$0xff]  }
 0x3d0   :  { %14086 = vmatpush3.bf16.msra.mxu0 %v15158_v29  ;;  %v15197_v29 = vld [vmem:[%s18630_s1 + $0x1fd0] sm:$0xff]  }
 0x3d1   :  { %14087 = vmatprep.subr.bf16.mxu0 %v15160_v30  ;;  %v15198_v30 = vld [vmem:[%s18630_s1 + $0x1f10] sm:$0xff]  }
 0x3d2   :  { %14108 = vmatpush3.bf16.msra.mxu1 %v15159_v31  ;;  %v15200_v31 = vld [vmem:[%s18630_s1 + $0x1f48] sm:$0xff]  }
 0x3d3   :  { %14109 = vmatprep.subr.bf16.mxu1 %v15161_v32  ;;  %v15199_v32 = vld [vmem:[%s18630_s1 + $0x1f90] sm:$0xff]  }
 0x3d4   :  { %14088 = vmatpush3.bf16.msra.mxu0 %v15162_v33  ;;  %v15201_v33 = vld [vmem:[%s18630_s1 + $0x1fc8] sm:$0xff]  }
 0x3d5   :  { %14089 = vmatprep.subr.bf16.mxu0 %v15164_v34  ;;  %v15202_v34 = vld [vmem:[%s18630_s1 + $0x1f08] sm:$0xff]  }
 0x3d6   :  { %14110 = vmatpush3.bf16.msra.mxu1 %v15163_v35  ;;  %v15204_v35 = vld [vmem:[%s18630_s1 + $0x1f40] sm:$0xff]  }
 0x3d7   :  { %14111 = vmatprep.subr.bf16.mxu1 %v15165_v36  ;;  %v15203_v36 = vld [vmem:[%s18630_s1 + $0x1f88] sm:$0xff]  }
 0x3d8   :  { %14090 = vmatpush3.bf16.msra.mxu0 %v15166_v37 }
 0x3d9   :  { %14091 = vmatprep.subr.bf16.mxu0 %v15168_v38 }
 0x3da   :  { %14112 = vmatpush3.bf16.msra.mxu1 %v15167_v39 }
 0x3db   :  { %14113 = vmatprep.subr.bf16.mxu1 %v15169_v40 }
 0x3dc   :  { %14092 = vmatpush3.bf16.msra.mxu0 %v15170_v42 }
 0x3dd   :  { %14093 = vmatprep.subr.bf16.mxu0 %v15172_v43 }
 0x3de   :  { %14114 = vmatpush3.bf16.msra.mxu1 %v15171_v44 }
 0x3df   :  { %14115 = vmatprep.subr.bf16.mxu1 %v15173_v46 }
 0x3e0   :  { %14094 = vmatpush3.bf16.msra.mxu0 %v15174_v49 }
 0x3e1   :  { %14123 = vmatprep.subr.bf16.mxu0 %v15176_v52 }
 0x3e2   :  { %14116 = vmatpush3.bf16.msra.mxu1 %v15175_v54 }
 0x3e3   :  { %v13831_v0 = vpop.f32.mrf.mxu0  ;;  %11592 = vmatmul.mubr.bf16.vlgmr.msra.gmra.mxu0 %v2861_v51  ;;  %14145 = vmatprep.subr.bf16.mxu1 %v15177_v56 }
 0x3e4   :  { %14124 = vmatpush3.bf16.msra.mxu0 %v15178_v58  ;;  %11671 = vmatprep.mubr.bf16.mxu0 %v2882_v62 }
 0x3e5   :  { %v13853_v4 = vpop.f32.mrf.mxu1  ;;  %11632 = vmatmul.mubr.bf16.vlgmr.msra.gmra.mxu1 %v2883_v60  ;;  %v13832_v5 = vpop.f32.mrf.mxu0  ;;  %14125 = vmatprep.subr.bf16.mxu0 %v15180_v61 }
 0x3e6   :  { %14146 = vmatpush3.bf16.msra.mxu1 %v15179_v63  ;;  %v13833_v7 = vadd.f32 %v13832_v5, %v13831_v0  ;;  %11711 = vmatprep.mubr.bf16.mxu1 %v2886_v2 }
 0x3e7   :  { %v13854_v9 = vpop.f32.mrf.mxu1  ;;  %v13834_v10 = vpop.f32.mrf.mxu0  ;;  %14147 = vmatprep.subr.bf16.mxu1 %v15181_v1 }
 0x3e8   :  { %v11114_v12 = vadd.f32 %v13833_v7, %v18453_v25  ;;  %v13855_v13 = vadd.f32 %v13854_v9, %v13853_v4  ;;  %14126 = vmatpush3.bf16.msra.mxu0 %v15182_v3  ;;  %v15193_v25 = vld [vmem:[%s18630_s1 + $0x1fd8] sm:$0xff]  }
 0x3e9   :  { %v13856_v15 = vpop.f32.mrf.mxu1  ;;  %v13835_v16 = vpop.f32.mrf.mxu0  ;;  %14127 = vmatprep.subr.bf16.mxu0 %v15184_v6 }
 0x3ea   :  { %v11154_v18 = vadd.f32 %v13855_v13, %v11114_v12  ;;  %14148 = vmatpush3.bf16.msra.mxu1 %v15183_v8 }
 0x3eb   :  { %v13857_v20 = vpop.f32.mrf.mxu1  ;;  %14149 = vmatprep.subr.bf16.mxu1 %v15185_v11 }
 0x3ec   :  { %14128 = vmatpush3.bf16.msra.mxu0 %v15186_v14 }
 0x3ed   :  { %14129 = vmatprep.subr.bf16.mxu0 %v15188_v17 }
 0x3ee   :  { %14150 = vmatpush3.bf16.msra.mxu1 %v15187_v19 }
 0x3ef   :  { %14151 = vmatprep.subr.bf16.mxu1 %v15189_v21 }
 0x3f0   :  { %14130 = vmatpush3.bf16.msra.mxu0 %v15190_v22 }
 0x3f1   :  { %14131 = vmatprep.subr.bf16.mxu0 %v15192_v23 }
 0x3f2   :  { %14152 = vmatpush3.bf16.msra.mxu1 %v15191_v24 }
 0x3f3   :  { %14153 = vmatprep.subr.bf16.mxu1 %v15193_v25 }
 0x3f4   :  { %14132 = vmatpush3.bf16.msra.mxu0 %v15194_v26 }
 0x3f5   :  { %14133 = vmatprep.subr.bf16.mxu0 %v15196_v27 }
 0x3f6   :  { %14154 = vmatpush3.bf16.msra.mxu1 %v15195_v28 }
 0x3f7   :  { %14155 = vmatprep.subr.bf16.mxu1 %v15197_v29 }
 0x3f8   :  { %14134 = vmatpush3.bf16.msra.mxu0 %v15198_v30 }
 0x3f9   :  { %14135 = vmatprep.subr.bf16.mxu0 %v15200_v31 }
 0x3fa   :  { %14156 = vmatpush3.bf16.msra.mxu1 %v15199_v32 }
 0x3fb   :  { %8 = vsyncpa [#allocation3], 0  ;;  %14157 = vmatprep.subr.bf16.mxu1 %v15201_v33  ;;  %v15205_v37 = vld [vmem:[%s18630_s1 + $0x1fc0] sm:$0xff]   ;;  %v2868_v39 = vrot.slane %v18521_v53, %v15358_v41 }
 0x3fc   :  { %14136 = vmatpush3.bf16.msra.mxu0 %v15202_v34  ;;  %v15206_v38 = vld [vmem:[%s18630_s1 + $0x1f00] sm:$0xff]  }
 0x3fd   :  { %14137 = vmatprep.subr.bf16.mxu0 %v15204_v35  ;;  %v15207_v40 = vld [vmem:[%s18630_s1 + $0x1f80] sm:$0xff]   ;;  %v2884_v42 = vcombine.high %v2868_v39, %v2868_v39  ;;  %s15232_s1 = smov [#allocation2]  }
 0x3fe   :  { %14158 = vmatpush3.bf16.msra.mxu1 %v15203_v36  ;;  %s11726_s8 = sshll.u32 %s15232_s1, 4  ;;  %s11727_s8 = int_to_ptr.vmem [resolvable:$true] %s11726_s8 }
 0x3ff   :  { %14159 = vmatprep.subr.bf16.mxu1 %v15205_v37  ;;  %s15209_s9 = scalar_lea.vmem %s11727_s8, 32  ;;  %p15214_p1 = scmp.lt.s32.totalorder %s11727_s8, %s11727_s8 }
 0x400   :  { %14138 = vmatpush3.bf16.msra.mxu0 %v15206_v38  ;;  %p15210_p0 = scmp.ne.s32.totalorder %s11727_s8, %s15209_s9  ;;  %p15215_p2 = scmp.lt.s32.totalorder %s15209_s9, %s15209_s9 }
 0x402   :  { %14160 = vmatpush3.bf16.msra.mxu1 %v15207_v40  ;;  %p15216_p3 = por %p15215_p2, %p15214_p1 }
 0x403   :  { %v13875_v43 = vpop.f32.mrf.mxu0  ;;  %11672 = vmatmul.mubr.bf16.vlgmr.msra.gmra.mxu0 %v2868_v39 }
 0x404   :  { %p15217_p4 = pnand %p15216_p3, %p15210_p0 }
 0x405   :  { %v13897_v44 = vpop.f32.mrf.mxu1  ;;  %11712 = vmatmul.mubr.bf16.vlgmr.msra.gmra.mxu1 %v2884_v42  ;;  %v13876_v45 = vpop.f32.mrf.mxu0 }
 0x406   :  { %v13877_v46 = vadd.f32 %v13876_v45, %v13875_v43 }
 0x407   :  { %v13898_v47 = vpop.f32.mrf.mxu1  ;;  %v13878_v48 = vpop.f32.mrf.mxu0 }
 0x408   :  { %v11194_v49 = vadd.f32 %v13877_v46, %v11154_v18  ;;  %v13899_v50 = vadd.f32 %v13898_v47, %v13897_v44 }
 0x409   :  { %v13900_v41 = vpop.f32.mrf.mxu1  ;;  %v13879_v51 = vpop.f32.mrf.mxu0 }
 0x40a   :  { %v11234_v52 = vadd.f32 %v13899_v50, %v11194_v49 }
 0x40b   :  { %v13901_v53 = vpop.f32.mrf.mxu1 }
 0x423   :  { %v13919_v54 = vpop.f32.mrf.mxu0 }
 0x425   :  { %v13941_v55 = vpop.f32.mrf.mxu1  ;;  %v13920_v56 = vpop.f32.mrf.mxu0 }
 0x426   :  { %v13921_v57 = vadd.f32 %v13920_v56, %v13919_v54 }
 0x427   :  { %v13942_v58 = vpop.f32.mrf.mxu1  ;;  %v13922_v59 = vpop.f32.mrf.mxu0 }
 0x428   :  { %v11274_v60 = vadd.f32 %v13921_v57, %v11234_v52  ;;  %v13943_v61 = vadd.f32 %v13942_v58, %v13941_v55 }
 0x429   :  { %v13944_v62 = vpop.f32.mrf.mxu1  ;;  %v13923_v63 = vpop.f32.mrf.mxu0 }
 0x42a   :  { %v11314_v0 = vadd.f32 %v13943_v61, %v11274_v60 }
 0x42b   :  { %v13945_v1 = vpop.f32.mrf.mxu1 }
 0x443   :  { %v13963_v2 = vpop.f32.mrf.mxu0 }
 0x445   :  { %v13985_v3 = vpop.f32.mrf.mxu1  ;;  %v13964_v4 = vpop.f32.mrf.mxu0 }
 0x446   :  { %v13965_v5 = vadd.f32 %v13964_v4, %v13963_v2 }
 0x447   :  { %v13986_v6 = vpop.f32.mrf.mxu1  ;;  %v13966_v7 = vpop.f32.mrf.mxu0 }
 0x448   :  { %v11354_v8 = vadd.f32 %v13965_v5, %v11314_v0  ;;  %v13987_v9 = vadd.f32 %v13986_v6, %v13985_v3 }
 0x449   :  { %v13988_v10 = vpop.f32.mrf.mxu1  ;;  %v13967_v11 = vpop.f32.mrf.mxu0 }
 0x44a   :  { %v11394_v12 = vadd.f32 %v13987_v9, %v11354_v8 }
 0x44b   :  { %v13989_v13 = vpop.f32.mrf.mxu1 }
 0x463   :  { %v14007_v14 = vpop.f32.mrf.mxu0 }
 0x465   :  { %v14029_v15 = vpop.f32.mrf.mxu1  ;;  %v14008_v16 = vpop.f32.mrf.mxu0 }
 0x466   :  { %v14009_v17 = vadd.f32 %v14008_v16, %v14007_v14 }
 0x467   :  { %v14030_v18 = vpop.f32.mrf.mxu1  ;;  %v14010_v19 = vpop.f32.mrf.mxu0 }
 0x468   :  { %v11434_v20 = vadd.f32 %v14009_v17, %v11394_v12  ;;  %v14031_v21 = vadd.f32 %v14030_v18, %v14029_v15 }
 0x469   :  { %v14032_v22 = vpop.f32.mrf.mxu1  ;;  %v14011_v23 = vpop.f32.mrf.mxu0 }
 0x46a   :  { %v11474_v24 = vadd.f32 %v14031_v21, %v11434_v20 }
 0x46b   :  { %v14033_v25 = vpop.f32.mrf.mxu1 }
 0x483   :  { %v14051_v26 = vpop.f32.mrf.mxu0 }
 0x485   :  { %v14073_v27 = vpop.f32.mrf.mxu1  ;;  %v14052_v28 = vpop.f32.mrf.mxu0 }
 0x486   :  { %v14053_v43 = vadd.f32 %v14052_v28, %v14051_v26 }
 0x487   :  { %v14074_v29 = vpop.f32.mrf.mxu1  ;;  %v14054_v30 = vpop.f32.mrf.mxu0 }
 0x488   :  { %v11514_v44 = vadd.f32 %v14053_v43, %v11474_v24  ;;  %v14075_v45 = vadd.f32 %v14074_v29, %v14073_v27 }
 0x489   :  { %v14076_v31 = vpop.f32.mrf.mxu1  ;;  %v14055_v32 = vpop.f32.mrf.mxu0 }
 0x48a   :  { %v11554_v47 = vadd.f32 %v14075_v45, %v11514_v44 }
 0x48b   :  { %v14077_v33 = vpop.f32.mrf.mxu1 }
 0x4a3   :  { %v14095_v34 = vpop.f32.mrf.mxu0 }
 0x4a5   :  { %v14117_v35 = vpop.f32.mrf.mxu1  ;;  %v14096_v36 = vpop.f32.mrf.mxu0 }
 0x4a6   :  { %v14097_v46 = vadd.f32 %v14096_v36, %v14095_v34 }
 0x4a7   :  { %v14118_v37 = vpop.f32.mrf.mxu1  ;;  %v14098_v38 = vpop.f32.mrf.mxu0 }
 0x4a8   :  { %v11594_v48 = vadd.f32 %v14097_v46, %v11554_v47  ;;  %v14119_v49 = vadd.f32 %v14118_v37, %v14117_v35 }
 0x4a9   :  { %v14120_v39 = vpop.f32.mrf.mxu1  ;;  %v14099_v40 = vpop.f32.mrf.mxu0 }
 0x4aa   :  { %v11634_v52 = vadd.f32 %v14119_v49, %v11594_v48 }
 0x4ab   :  { %v14121_v42 = vpop.f32.mrf.mxu1 }
 0x4c3   :  { %v14139_v50 = vpop.f32.mrf.mxu0 }
 0x4c5   :  { %v14161_v41 = vpop.f32.mrf.mxu1  ;;  %v14140_v51 = vpop.f32.mrf.mxu0 }
 0x4c6   :  { %v14141_v53 = vadd.f32 %v14140_v51, %v14139_v50 }
 0x4c7   :  { %v14162_v54 = vpop.f32.mrf.mxu1  ;;  %v14142_v55 = vpop.f32.mrf.mxu0 }
 0x4c8   :  { %v11674_v56 = vadd.f32 %v14141_v53, %v11634_v52  ;;  %v14163_v57 = vadd.f32 %v14162_v54, %v14161_v41 }
 0x4c9   :  { %v14164_v58 = vpop.f32.mrf.mxu1  ;;  %v14143_v59 = vpop.f32.mrf.mxu0 }
 0x4ca   :  { %v11714_v60 = vadd.f32 %v14163_v57, %v11674_v56 }
 0x4cb   :  { %v14165_v61 = vpop.f32.mrf.mxu1 }
 0x4cc   :  { %11719 = vst [vmem:[#allocation2] sm:$0x3] %v11714_v60 }
 0x4cd   :  { %15220 = shalt.err (!%p15217_p4)
}
 0x4ce   :  { %11729 = dma.vmem_to_hbm [thread:$0]  %s11727_s8, 32, %s18632_s3, [#allocation3]  }
 0x4cf   :  { %15229 = dma.done.wait [#allocation3], 32  }
 0x4d0   :  { %15230 = vsyncadd [#allocation3], 4294967264 }
 0x4d1   :  { %11733 = vsyncpa [#allocation3], 1 }

</bundles_post_ra>
